<compile_context>
chip_gen: v7x
topology: tpu7x:2x2x1
jax: 0.10.0
libtpu: 0.0.40
codegen_flags: <defaults>
</compile_context>

<pallas_src>
import jax
import jax.numpy as jnp
from jax import lax
from jax.experimental import pallas as pl
from jax.experimental.pallas import tpu as pltpu

_LANE = 128


def _round_up(v, m):
    return (v + m - 1) // m * m


def _encoder_block_kernel(x_ref, w1_ref, b1_ref, w2_ref, b2_ref, o_ref,
                          pad_ref):
    # x_ref : (1, H, W+2, C) bf16  one batch element, W already has the 1-px
    #                              zero halo, channels padded to lane width C
    # w*_ref: (9, C, C)      bf16  tap-major (dy*3+dx) 3x3 weights
    # b*_ref: (1, C)         f32
    # o_ref : (1, H, W, C)   f32
    # pad_ref: (H+2, W+2, C) bf16  single reused zero-halo activation scratch
    H = o_ref.shape[1]
    W = o_ref.shape[2]
    C = o_ref.shape[3]
    Wp = W + 2

    def conv3x3_bias_relu(w_ref, b_ref):
        # 9 accumulating K=C matmuls (bf16 operands, f32 accumulation).
        acc = None
        for dy in range(3):
            for dx in range(3):
                slab = pad_ref[dy:dy + H, dx:dx + W, :].reshape(H * W, C)
                t = jnp.dot(slab, w_ref[dy * 3 + dx],
                            preferred_element_type=jnp.float32)
                acc = t if acc is None else acc + t
        return jnp.maximum(acc + b_ref[...], 0.0)          # (H*W, C) f32

    # Zero only the two halo rows, every step (cheap, aligned; the W halo
    # columns are rewritten below by the full-width aligned interior stores).
    pad_ref[0:1, :, :] = jnp.zeros((1, Wp, C), pad_ref.dtype)
    pad_ref[H + 1:H + 2, :, :] = jnp.zeros((1, Wp, C), pad_ref.dtype)

    # conv1: copy the W-haloed input tile into the scratch interior rows
    # (H-offset only -> dense, sublane-aligned store).
    pad_ref[1:H + 1, :, :] = x_ref[0]
    y1 = conv3x3_bias_relu(w1_ref, b1_ref)

    # conv2 reads conv1's activation straight from the same VMEM scratch:
    # re-attach the zero W halo to y1 and store full-width (aligned).
    zcol = jnp.zeros((H, 1, C), pad_ref.dtype)
    y1p = jnp.concatenate(
        [zcol, y1.reshape(H, W, C).astype(pad_ref.dtype), zcol], axis=1)
    pad_ref[1:H + 1, :, :] = y1p
    y2 = conv3x3_bias_relu(w2_ref, b2_ref)

    o_ref[0] = y2.reshape(H, W, C).astype(o_ref.dtype)


def encoder_block_forward_nhwc(x_nhwc, w1, b1, w2, b2):
    """Fused conv3x3+ReLU -> conv3x3+ReLU on NHWC activations (hot path)."""
    N, H, W, Cin = x_nhwc.shape
    Cout = w1.shape[-1]
    C = max(_round_up(Cin, _LANE), _round_up(Cout, _LANE))

    # Channel-pad to the 128-lane width, add the 1-px W halo, cast to bf16.
    # Padded channels see zero weights + zero bias -> stay exactly 0 via ReLU.
    x = jnp.pad(x_nhwc,
                ((0, 0), (0, 0), (1, 1), (0, C - Cin))).astype(jnp.bfloat16)

    def pack_w(w, ci, co):
        wp = jnp.zeros((3, 3, C, C), jnp.float32).at[:, :, :ci, :co].set(w)
        return wp.reshape(9, C, C).astype(jnp.bfloat16)   # tap-major

    def pack_b(b, co):
        return jnp.zeros((1, C), jnp.float32).at[0, :co].set(b)

    w1m, w2m = pack_w(w1, Cin, Cout), pack_w(w2, Cout, Cout)
    b1m, b2m = pack_b(b1, Cout), pack_b(b2, Cout)

    out = pl.pallas_call(
        _encoder_block_kernel,
        out_shape=jax.ShapeDtypeStruct((N, H, W, C), x_nhwc.dtype),
        grid_spec=pltpu.PrefetchScalarGridSpec(
            num_scalar_prefetch=0,
            grid=(N,),
            in_specs=[
                pl.BlockSpec((1, H, W + 2, C), lambda n: (n, 0, 0, 0)),
                pl.BlockSpec((9, C, C), lambda n: (0, 0, 0)),
                pl.BlockSpec((1, C), lambda n: (0, 0)),
                pl.BlockSpec((9, C, C), lambda n: (0, 0, 0)),
                pl.BlockSpec((1, C), lambda n: (0, 0)),
            ],
            out_specs=pl.BlockSpec((1, H, W, C), lambda n: (n, 0, 0, 0)),
            scratch_shapes=[
                pltpu.VMEM((H + 2, W + 2, C), jnp.bfloat16),
            ],
        ),
        compiler_params=pltpu.CompilerParams(
            dimension_semantics=("parallel",),
            # Re-derive per chip / tile size; 48 MiB is safe on v5e/v6e/v7x.
            vmem_limit_bytes=48 * 1024 * 1024),
    )(x, w1m, b1m, w2m, b2m)
    return out if Cout == C else out[..., :Cout]


@jax.jit
def encoder_block_forward(x_nchw, w1, b1, w2, b2):
    """EncoderBlock forward (NCHW interface, matching the PyTorch module)."""
    x = jnp.transpose(x_nchw, (0, 2, 3, 1))            # NCHW -> NHWC (boundary)
    y = encoder_block_forward_nhwc(x, w1, b1, w2, b2)
    return jnp.transpose(y, (0, 3, 1, 2))              # NHWC -> NCHW (boundary)


def _reference_forward(x_nchw, w1, b1, w2, b2):
    """Pure-JAX reference (lax conv, f32) for validation."""
    x = jnp.transpose(x_nchw, (0, 2, 3, 1))
    dn = lax.conv_dimension_numbers(x.shape, w1.shape, ("NHWC", "HWIO", "NHWC"))
    y = lax.conv_general_dilated(x, w1, (1, 1), ((1, 1), (1, 1)),
                                 dimension_numbers=dn)
    y = jnp.maximum(y + b1[None, None, None, :], 0.0)
    y = lax.conv_general_dilated(y, w2, (1, 1), ((1, 1), (1, 1)),
                                 dimension_numbers=dn)
    y = jnp.maximum(y + b2[None, None, None, :], 0.0)
    return jnp.transpose(y, (0, 3, 1, 2))


if __name__ == "__main__":
    key = jax.random.PRNGKey(0)
    N, Cin, Cout, H, W = 2, 4, 8, 16, 16

    k_x, k_w1, k_b1, k_w2, k_b2 = jax.random.split(key, 5)
    x = jax.random.normal(k_x, (N, Cin, H, W), dtype=jnp.float32)

    # Deterministic synthetic parameters (PyTorch Conv2d OIHW -> stored HWIO).
    fan1 = Cin * 9
    w1 = jax.random.uniform(k_w1, (3, 3, Cin, Cout), jnp.float32,
                            minval=-1.0, maxval=1.0) / jnp.sqrt(fan1)
    b1 = jax.random.uniform(k_b1, (Cout,), jnp.float32,
                            minval=-1.0, maxval=1.0) / jnp.sqrt(fan1)
    fan2 = Cout * 9
    w2 = jax.random.uniform(k_w2, (3, 3, Cout, Cout), jnp.float32,
                            minval=-1.0, maxval=1.0) / jnp.sqrt(fan2)
    b2 = jax.random.uniform(k_b2, (Cout,), jnp.float32,
                            minval=-1.0, maxval=1.0) / jnp.sqrt(fan2)

    out = jax.block_until_ready(encoder_block_forward(x, w1, b1, w2, b2))
    ref = jax.block_until_ready(_reference_forward(x, w1, b1, w2, b2))

    assert out.shape == (N, Cout, H, W), out.shape
    # bf16 MXU operands (f32 accumulation) -> loosened tolerance vs f32 ref.
    assert jnp.allclose(out, ref, atol=5e-2, rtol=5e-2), \
        float(jnp.max(jnp.abs(out - ref)))

    print("KERNEL_OK")
</pallas_src>

<mosaic_0001>
module attributes {stable_mosaic.version = 11 : i64} {
  func.func @_encoder_block_kernel(%arg0: i32, %arg1: memref<1x16x18x128xbf16, #tpu.memory_space<vmem>>, %arg2: memref<9x128x128xbf16, #tpu.memory_space<vmem>>, %arg3: memref<1x128xf32, #tpu.memory_space<vmem>>, %arg4: memref<9x128x128xbf16, #tpu.memory_space<vmem>>, %arg5: memref<1x128xf32, #tpu.memory_space<vmem>>, %arg6: memref<1x16x16x128xf32, #tpu.memory_space<vmem>>, %arg7: memref<18x18x128xbf16, #tpu.memory_space<vmem>>) attributes {dimension_semantics = [#tpu.dimension_semantics<parallel>], iteration_bounds = array<i64: 2>, scalar_prefetch = 0 : i64, scratch_operands = 1 : i64, tpu.core_type = #tpu.core_type<tc>, window_params = [{transform_indices = @transform_0, window_bounds = array<i64: 1, 16, 18, 128>}, {pipeline_mode = #tpu.pipeline_mode<synchronous>, transform_indices = @transform_1, window_bounds = array<i64: 9, 128, 128>}, {pipeline_mode = #tpu.pipeline_mode<synchronous>, transform_indices = @transform_2, window_bounds = array<i64: 1, 128>}, {pipeline_mode = #tpu.pipeline_mode<synchronous>, transform_indices = @transform_3, window_bounds = array<i64: 9, 128, 128>}, {pipeline_mode = #tpu.pipeline_mode<synchronous>, transform_indices = @transform_4, window_bounds = array<i64: 1, 128>}, {transform_indices = @transform_5, window_bounds = array<i64: 1, 16, 16, 128>}]} {
    %cst = arith.constant 0.000000e+00 : bf16
    %0 = vector.broadcast %cst : bf16 to vector<1x18x128xbf16>
    %c0 = arith.constant 0 : index
    %c0_0 = arith.constant 0 : index
    %c0_1 = arith.constant 0 : index
    %1 = vector.load %arg7[%c0, %c0_0, %c0_1] : memref<18x18x128xbf16, #tpu.memory_space<vmem>>, vector<1x18x128xbf16>
    tpu.vector_store %arg7[%c0, %c0_0, %c0_1], %0 {strides = array<i32>} : memref<18x18x128xbf16, #tpu.memory_space<vmem>>, vector<1x18x128xbf16>,
    %cst_2 = arith.constant 0.000000e+00 : bf16
    %2 = vector.broadcast %cst_2 : bf16 to vector<1x18x128xbf16>
    %c17 = arith.constant 17 : index
    %c0_3 = arith.constant 0 : index
    %c0_4 = arith.constant 0 : index
    %3 = vector.load %arg7[%c17, %c0_3, %c0_4] : memref<18x18x128xbf16, #tpu.memory_space<vmem>>, vector<1x18x128xbf16>
    tpu.vector_store %arg7[%c17, %c0_3, %c0_4], %2 {strides = array<i32>} : memref<18x18x128xbf16, #tpu.memory_space<vmem>>, vector<1x18x128xbf16>,
    %c0_5 = arith.constant 0 : index
    %c0_6 = arith.constant 0 : index
    %c0_7 = arith.constant 0 : index
    %c0_8 = arith.constant 0 : index
    %4 = vector.load %arg1[%c0_5, %c0_6, %c0_7, %c0_8] : memref<1x16x18x128xbf16, #tpu.memory_space<vmem>>, vector<1x16x18x128xbf16>
    %5 = vector.shape_cast %4 : vector<1x16x18x128xbf16> to vector<16x18x128xbf16>
    %c1 = arith.constant 1 : index
    %c0_9 = arith.constant 0 : index
    %c0_10 = arith.constant 0 : index
    %6 = vector.load %arg7[%c1, %c0_9, %c0_10] : memref<18x18x128xbf16, #tpu.memory_space<vmem>>, vector<16x18x128xbf16>
    tpu.vector_store %arg7[%c1, %c0_9, %c0_10], %5 {strides = array<i32>} : memref<18x18x128xbf16, #tpu.memory_space<vmem>>, vector<16x18x128xbf16>,
    %c0_11 = arith.constant 0 : index
    %c0_12 = arith.constant 0 : index
    %c0_13 = arith.constant 0 : index
    %7 = vector.load %arg7[%c0_11, %c0_12, %c0_13] : memref<18x18x128xbf16, #tpu.memory_space<vmem>>, vector<16x16x128xbf16>
    %8 = vector.shape_cast %7 : vector<16x16x128xbf16> to vector<256x128xbf16>
    %c0_14 = arith.constant 0 : index
    %c0_15 = arith.constant 0 : index
    %c0_16 = arith.constant 0 : index
    %9 = vector.load %arg2[%c0_14, %c0_15, %c0_16] : memref<9x128x128xbf16, #tpu.memory_space<vmem>>, vector<1x128x128xbf16>
    %10 = vector.shape_cast %9 : vector<1x128x128xbf16> to vector<128x128xbf16>
    %cst_17 = arith.constant dense<0.000000e+00> : vector<256x128xf32>
    %11 = tpu.matmul %8, %10, %cst_17 {dimension_numbers = #tpu.dot_dimension_numbers<[1], [0], [0], [1], [0, 0, 1, 1], [], []>} : vector<256x128xbf16>, vector<128x128xbf16>, vector<256x128xf32> -> vector<256x128xf32>
    %c0_18 = arith.constant 0 : index
    %c1_19 = arith.constant 1 : index
    %c0_20 = arith.constant 0 : index
    %12 = vector.load %arg7[%c0_18, %c1_19, %c0_20] : memref<18x18x128xbf16, #tpu.memory_space<vmem>>, vector<16x16x128xbf16>
    %13 = vector.shape_cast %12 : vector<16x16x128xbf16> to vector<256x128xbf16>
    %c1_21 = arith.constant 1 : index
    %c0_22 = arith.constant 0 : index
    %c0_23 = arith.constant 0 : index
    %14 = vector.load %arg2[%c1_21, %c0_22, %c0_23] : memref<9x128x128xbf16, #tpu.memory_space<vmem>>, vector<1x128x128xbf16>
    %15 = vector.shape_cast %14 : vector<1x128x128xbf16> to vector<128x128xbf16>
    %cst_24 = arith.constant dense<0.000000e+00> : vector<256x128xf32>
    %16 = tpu.matmul %13, %15, %cst_24 {dimension_numbers = #tpu.dot_dimension_numbers<[1], [0], [0], [1], [0, 0, 1, 1], [], []>} : vector<256x128xbf16>, vector<128x128xbf16>, vector<256x128xf32> -> vector<256x128xf32>
    %17 = arith.addf %11, %16 : vector<256x128xf32>
    %c0_25 = arith.constant 0 : index
    %c2 = arith.constant 2 : index
    %c0_26 = arith.constant 0 : index
    %18 = vector.load %arg7[%c0_25, %c2, %c0_26] : memref<18x18x128xbf16, #tpu.memory_space<vmem>>, vector<16x16x128xbf16>
    %19 = vector.shape_cast %18 : vector<16x16x128xbf16> to vector<256x128xbf16>
    %c2_27 = arith.constant 2 : index
    %c0_28 = arith.constant 0 : index
    %c0_29 = arith.constant 0 : index
    %20 = vector.load %arg2[%c2_27, %c0_28, %c0_29] : memref<9x128x128xbf16, #tpu.memory_space<vmem>>, vector<1x128x128xbf16>
    %21 = vector.shape_cast %20 : vector<1x128x128xbf16> to vector<128x128xbf16>
    %cst_30 = arith.constant dense<0.000000e+00> : vector<256x128xf32>
    %22 = tpu.matmul %19, %21, %cst_30 {dimension_numbers = #tpu.dot_dimension_numbers<[1], [0], [0], [1], [0, 0, 1, 1], [], []>} : vector<256x128xbf16>, vector<128x128xbf16>, vector<256x128xf32> -> vector<256x128xf32>
    %23 = arith.addf %17, %22 : vector<256x128xf32>
    %c1_31 = arith.constant 1 : index
    %c0_32 = arith.constant 0 : index
    %c0_33 = arith.constant 0 : index
    %24 = vector.load %arg7[%c1_31, %c0_32, %c0_33] : memref<18x18x128xbf16, #tpu.memory_space<vmem>>, vector<16x16x128xbf16>
    %25 = vector.shape_cast %24 : vector<16x16x128xbf16> to vector<256x128xbf16>
    %c3 = arith.constant 3 : index
    %c0_34 = arith.constant 0 : index
    %c0_35 = arith.constant 0 : index
    %26 = vector.load %arg2[%c3, %c0_34, %c0_35] : memref<9x128x128xbf16, #tpu.memory_space<vmem>>, vector<1x128x128xbf16>
    %27 = vector.shape_cast %26 : vector<1x128x128xbf16> to vector<128x128xbf16>
    %cst_36 = arith.constant dense<0.000000e+00> : vector<256x128xf32>
    %28 = tpu.matmul %25, %27, %cst_36 {dimension_numbers = #tpu.dot_dimension_numbers<[1], [0], [0], [1], [0, 0, 1, 1], [], []>} : vector<256x128xbf16>, vector<128x128xbf16>, vector<256x128xf32> -> vector<256x128xf32>
    %29 = arith.addf %23, %28 : vector<256x128xf32>
    %c1_37 = arith.constant 1 : index
    %c1_38 = arith.constant 1 : index
    %c0_39 = arith.constant 0 : index
    %30 = vector.load %arg7[%c1_37, %c1_38, %c0_39] : memref<18x18x128xbf16, #tpu.memory_space<vmem>>, vector<16x16x128xbf16>
    %31 = vector.shape_cast %30 : vector<16x16x128xbf16> to vector<256x128xbf16>
    %c4 = arith.constant 4 : index
    %c0_40 = arith.constant 0 : index
    %c0_41 = arith.constant 0 : index
    %32 = vector.load %arg2[%c4, %c0_40, %c0_41] : memref<9x128x128xbf16, #tpu.memory_space<vmem>>, vector<1x128x128xbf16>
    %33 = vector.shape_cast %32 : vector<1x128x128xbf16> to vector<128x128xbf16>
    %cst_42 = arith.constant dense<0.000000e+00> : vector<256x128xf32>
    %34 = tpu.matmul %31, %33, %cst_42 {dimension_numbers = #tpu.dot_dimension_numbers<[1], [0], [0], [1], [0, 0, 1, 1], [], []>} : vector<256x128xbf16>, vector<128x128xbf16>, vector<256x128xf32> -> vector<256x128xf32>
    %35 = arith.addf %29, %34 : vector<256x128xf32>
    %c1_43 = arith.constant 1 : index
    %c2_44 = arith.constant 2 : index
    %c0_45 = arith.constant 0 : index
    %36 = vector.load %arg7[%c1_43, %c2_44, %c0_45] : memref<18x18x128xbf16, #tpu.memory_space<vmem>>, vector<16x16x128xbf16>
    %37 = vector.shape_cast %36 : vector<16x16x128xbf16> to vector<256x128xbf16>
    %c5 = arith.constant 5 : index
    %c0_46 = arith.constant 0 : index
    %c0_47 = arith.constant 0 : index
    %38 = vector.load %arg2[%c5, %c0_46, %c0_47] : memref<9x128x128xbf16, #tpu.memory_space<vmem>>, vector<1x128x128xbf16>
    %39 = vector.shape_cast %38 : vector<1x128x128xbf16> to vector<128x128xbf16>
    %cst_48 = arith.constant dense<0.000000e+00> : vector<256x128xf32>
    %40 = tpu.matmul %37, %39, %cst_48 {dimension_numbers = #tpu.dot_dimension_numbers<[1], [0], [0], [1], [0, 0, 1, 1], [], []>} : vector<256x128xbf16>, vector<128x128xbf16>, vector<256x128xf32> -> vector<256x128xf32>
    %41 = arith.addf %35, %40 : vector<256x128xf32>
    %c2_49 = arith.constant 2 : index
    %c0_50 = arith.constant 0 : index
    %c0_51 = arith.constant 0 : index
    %42 = vector.load %arg7[%c2_49, %c0_50, %c0_51] : memref<18x18x128xbf16, #tpu.memory_space<vmem>>, vector<16x16x128xbf16>
    %43 = vector.shape_cast %42 : vector<16x16x128xbf16> to vector<256x128xbf16>
    %c6 = arith.constant 6 : index
    %c0_52 = arith.constant 0 : index
    %c0_53 = arith.constant 0 : index
    %44 = vector.load %arg2[%c6, %c0_52, %c0_53] : memref<9x128x128xbf16, #tpu.memory_space<vmem>>, vector<1x128x128xbf16>
    %45 = vector.shape_cast %44 : vector<1x128x128xbf16> to vector<128x128xbf16>
    %cst_54 = arith.constant dense<0.000000e+00> : vector<256x128xf32>
    %46 = tpu.matmul %43, %45, %cst_54 {dimension_numbers = #tpu.dot_dimension_numbers<[1], [0], [0], [1], [0, 0, 1, 1], [], []>} : vector<256x128xbf16>, vector<128x128xbf16>, vector<256x128xf32> -> vector<256x128xf32>
    %47 = arith.addf %41, %46 : vector<256x128xf32>
    %c2_55 = arith.constant 2 : index
    %c1_56 = arith.constant 1 : index
    %c0_57 = arith.constant 0 : index
    %48 = vector.load %arg7[%c2_55, %c1_56, %c0_57] : memref<18x18x128xbf16, #tpu.memory_space<vmem>>, vector<16x16x128xbf16>
    %49 = vector.shape_cast %48 : vector<16x16x128xbf16> to vector<256x128xbf16>
    %c7 = arith.constant 7 : index
    %c0_58 = arith.constant 0 : index
    %c0_59 = arith.constant 0 : index
    %50 = vector.load %arg2[%c7, %c0_58, %c0_59] : memref<9x128x128xbf16, #tpu.memory_space<vmem>>, vector<1x128x128xbf16>
    %51 = vector.shape_cast %50 : vector<1x128x128xbf16> to vector<128x128xbf16>
    %cst_60 = arith.constant dense<0.000000e+00> : vector<256x128xf32>
    %52 = tpu.matmul %49, %51, %cst_60 {dimension_numbers = #tpu.dot_dimension_numbers<[1], [0], [0], [1], [0, 0, 1, 1], [], []>} : vector<256x128xbf16>, vector<128x128xbf16>, vector<256x128xf32> -> vector<256x128xf32>
    %53 = arith.addf %47, %52 : vector<256x128xf32>
    %c2_61 = arith.constant 2 : index
    %c2_62 = arith.constant 2 : index
    %c0_63 = arith.constant 0 : index
    %54 = vector.load %arg7[%c2_61, %c2_62, %c0_63] : memref<18x18x128xbf16, #tpu.memory_space<vmem>>, vector<16x16x128xbf16>
    %55 = vector.shape_cast %54 : vector<16x16x128xbf16> to vector<256x128xbf16>
    %c8 = arith.constant 8 : index
    %c0_64 = arith.constant 0 : index
    %c0_65 = arith.constant 0 : index
    %56 = vector.load %arg2[%c8, %c0_64, %c0_65] : memref<9x128x128xbf16, #tpu.memory_space<vmem>>, vector<1x128x128xbf16>
    %57 = vector.shape_cast %56 : vector<1x128x128xbf16> to vector<128x128xbf16>
    %cst_66 = arith.constant dense<0.000000e+00> : vector<256x128xf32>
    %58 = tpu.matmul %55, %57, %cst_66 {dimension_numbers = #tpu.dot_dimension_numbers<[1], [0], [0], [1], [0, 0, 1, 1], [], []>} : vector<256x128xbf16>, vector<128x128xbf16>, vector<256x128xf32> -> vector<256x128xf32>
    %59 = arith.addf %53, %58 : vector<256x128xf32>
    %c0_67 = arith.constant 0 : index
    %c0_68 = arith.constant 0 : index
    %60 = vector.load %arg3[%c0_67, %c0_68] : memref<1x128xf32, #tpu.memory_space<vmem>>, vector<1x128xf32>
    %61 = vector.broadcast %60 : vector<1x128xf32> to vector<256x128xf32>
    %62 = arith.addf %59, %61 : vector<256x128xf32>
    %cst_69 = arith.constant 0.000000e+00 : f32
    %63 = vector.broadcast %cst_69 : f32 to vector<256x128xf32>
    %64 = arith.maximumf %62, %63 : vector<256x128xf32>
    %cst_70 = arith.constant 0.000000e+00 : bf16
    %65 = vector.broadcast %cst_70 : bf16 to vector<16x1x128xbf16>
    %66 = vector.shape_cast %64 : vector<256x128xf32> to vector<16x16x128xf32>
    %67 = arith.truncf %66 : vector<16x16x128xf32> to vector<16x16x128xbf16>
    %68 = tpu.concatenate %65, %67, %65 in 1 : vector<16x1x128xbf16>, vector<16x16x128xbf16>, vector<16x1x128xbf16> -> vector<16x18x128xbf16>
    %c1_71 = arith.constant 1 : index
    %c0_72 = arith.constant 0 : index
    %c0_73 = arith.constant 0 : index
    %69 = vector.load %arg7[%c1_71, %c0_72, %c0_73] : memref<18x18x128xbf16, #tpu.memory_space<vmem>>, vector<16x18x128xbf16>
    tpu.vector_store %arg7[%c1_71, %c0_72, %c0_73], %68 {strides = array<i32>} : memref<18x18x128xbf16, #tpu.memory_space<vmem>>, vector<16x18x128xbf16>,
    %c0_74 = arith.constant 0 : index
    %c0_75 = arith.constant 0 : index
    %c0_76 = arith.constant 0 : index
    %70 = vector.load %arg7[%c0_74, %c0_75, %c0_76] : memref<18x18x128xbf16, #tpu.memory_space<vmem>>, vector<16x16x128xbf16>
    %71 = vector.shape_cast %70 : vector<16x16x128xbf16> to vector<256x128xbf16>
    %c0_77 = arith.constant 0 : index
    %c0_78 = arith.constant 0 : index
    %c0_79 = arith.constant 0 : index
    %72 = vector.load %arg4[%c0_77, %c0_78, %c0_79] : memref<9x128x128xbf16, #tpu.memory_space<vmem>>, vector<1x128x128xbf16>
    %73 = vector.shape_cast %72 : vector<1x128x128xbf16> to vector<128x128xbf16>
    %cst_80 = arith.constant dense<0.000000e+00> : vector<256x128xf32>
    %74 = tpu.matmul %71, %73, %cst_80 {dimension_numbers = #tpu.dot_dimension_numbers<[1], [0], [0], [1], [0, 0, 1, 1], [], []>} : vector<256x128xbf16>, vector<128x128xbf16>, vector<256x128xf32> -> vector<256x128xf32>
    %c0_81 = arith.constant 0 : index
    %c1_82 = arith.constant 1 : index
    %c0_83 = arith.constant 0 : index
    %75 = vector.load %arg7[%c0_81, %c1_82, %c0_83] : memref<18x18x128xbf16, #tpu.memory_space<vmem>>, vector<16x16x128xbf16>
    %76 = vector.shape_cast %75 : vector<16x16x128xbf16> to vector<256x128xbf16>
    %c1_84 = arith.constant 1 : index
    %c0_85 = arith.constant 0 : index
    %c0_86 = arith.constant 0 : index
    %77 = vector.load %arg4[%c1_84, %c0_85, %c0_86] : memref<9x128x128xbf16, #tpu.memory_space<vmem>>, vector<1x128x128xbf16>
    %78 = vector.shape_cast %77 : vector<1x128x128xbf16> to vector<128x128xbf16>
    %cst_87 = arith.constant dense<0.000000e+00> : vector<256x128xf32>
    %79 = tpu.matmul %76, %78, %cst_87 {dimension_numbers = #tpu.dot_dimension_numbers<[1], [0], [0], [1], [0, 0, 1, 1], [], []>} : vector<256x128xbf16>, vector<128x128xbf16>, vector<256x128xf32> -> vector<256x128xf32>
    %80 = arith.addf %74, %79 : vector<256x128xf32>
    %c0_88 = arith.constant 0 : index
    %c2_89 = arith.constant 2 : index
    %c0_90 = arith.constant 0 : index
    %81 = vector.load %arg7[%c0_88, %c2_89, %c0_90] : memref<18x18x128xbf16, #tpu.memory_space<vmem>>, vector<16x16x128xbf16>
    %82 = vector.shape_cast %81 : vector<16x16x128xbf16> to vector<256x128xbf16>
    %c2_91 = arith.constant 2 : index
    %c0_92 = arith.constant 0 : index
    %c0_93 = arith.constant 0 : index
    %83 = vector.load %arg4[%c2_91, %c0_92, %c0_93] : memref<9x128x128xbf16, #tpu.memory_space<vmem>>, vector<1x128x128xbf16>
    %84 = vector.shape_cast %83 : vector<1x128x128xbf16> to vector<128x128xbf16>
    %cst_94 = arith.constant dense<0.000000e+00> : vector<256x128xf32>
    %85 = tpu.matmul %82, %84, %cst_94 {dimension_numbers = #tpu.dot_dimension_numbers<[1], [0], [0], [1], [0, 0, 1, 1], [], []>} : vector<256x128xbf16>, vector<128x128xbf16>, vector<256x128xf32> -> vector<256x128xf32>
    %86 = arith.addf %80, %85 : vector<256x128xf32>
    %c1_95 = arith.constant 1 : index
    %c0_96 = arith.constant 0 : index
    %c0_97 = arith.constant 0 : index
    %87 = vector.load %arg7[%c1_95, %c0_96, %c0_97] : memref<18x18x128xbf16, #tpu.memory_space<vmem>>, vector<16x16x128xbf16>
    %88 = vector.shape_cast %87 : vector<16x16x128xbf16> to vector<256x128xbf16>
    %c3_98 = arith.constant 3 : index
    %c0_99 = arith.constant 0 : index
    %c0_100 = arith.constant 0 : index
    %89 = vector.load %arg4[%c3_98, %c0_99, %c0_100] : memref<9x128x128xbf16, #tpu.memory_space<vmem>>, vector<1x128x128xbf16>
    %90 = vector.shape_cast %89 : vector<1x128x128xbf16> to vector<128x128xbf16>
    %cst_101 = arith.constant dense<0.000000e+00> : vector<256x128xf32>
    %91 = tpu.matmul %88, %90, %cst_101 {dimension_numbers = #tpu.dot_dimension_numbers<[1], [0], [0], [1], [0, 0, 1, 1], [], []>} : vector<256x128xbf16>, vector<128x128xbf16>, vector<256x128xf32> -> vector<256x128xf32>
    %92 = arith.addf %86, %91 : vector<256x128xf32>
    %c1_102 = arith.constant 1 : index
    %c1_103 = arith.constant 1 : index
    %c0_104 = arith.constant 0 : index
    %93 = vector.load %arg7[%c1_102, %c1_103, %c0_104] : memref<18x18x128xbf16, #tpu.memory_space<vmem>>, vector<16x16x128xbf16>
    %94 = vector.shape_cast %93 : vector<16x16x128xbf16> to vector<256x128xbf16>
    %c4_105 = arith.constant 4 : index
    %c0_106 = arith.constant 0 : index
    %c0_107 = arith.constant 0 : index
    %95 = vector.load %arg4[%c4_105, %c0_106, %c0_107] : memref<9x128x128xbf16, #tpu.memory_space<vmem>>, vector<1x128x128xbf16>
    %96 = vector.shape_cast %95 : vector<1x128x128xbf16> to vector<128x128xbf16>
    %cst_108 = arith.constant dense<0.000000e+00> : vector<256x128xf32>
    %97 = tpu.matmul %94, %96, %cst_108 {dimension_numbers = #tpu.dot_dimension_numbers<[1], [0], [0], [1], [0, 0, 1, 1], [], []>} : vector<256x128xbf16>, vector<128x128xbf16>, vector<256x128xf32> -> vector<256x128xf32>
    %98 = arith.addf %92, %97 : vector<256x128xf32>
    %c1_109 = arith.constant 1 : index
    %c2_110 = arith.constant 2 : index
    %c0_111 = arith.constant 0 : index
    %99 = vector.load %arg7[%c1_109, %c2_110, %c0_111] : memref<18x18x128xbf16, #tpu.memory_space<vmem>>, vector<16x16x128xbf16>
    %100 = vector.shape_cast %99 : vector<16x16x128xbf16> to vector<256x128xbf16>
    %c5_112 = arith.constant 5 : index
    %c0_113 = arith.constant 0 : index
    %c0_114 = arith.constant 0 : index
    %101 = vector.load %arg4[%c5_112, %c0_113, %c0_114] : memref<9x128x128xbf16, #tpu.memory_space<vmem>>, vector<1x128x128xbf16>
    %102 = vector.shape_cast %101 : vector<1x128x128xbf16> to vector<128x128xbf16>
    %cst_115 = arith.constant dense<0.000000e+00> : vector<256x128xf32>
    %103 = tpu.matmul %100, %102, %cst_115 {dimension_numbers = #tpu.dot_dimension_numbers<[1], [0], [0], [1], [0, 0, 1, 1], [], []>} : vector<256x128xbf16>, vector<128x128xbf16>, vector<256x128xf32> -> vector<256x128xf32>
    %104 = arith.addf %98, %103 : vector<256x128xf32>
    %c2_116 = arith.constant 2 : index
    %c0_117 = arith.constant 0 : index
    %c0_118 = arith.constant 0 : index
    %105 = vector.load %arg7[%c2_116, %c0_117, %c0_118] : memref<18x18x128xbf16, #tpu.memory_space<vmem>>, vector<16x16x128xbf16>
    %106 = vector.shape_cast %105 : vector<16x16x128xbf16> to vector<256x128xbf16>
    %c6_119 = arith.constant 6 : index
    %c0_120 = arith.constant 0 : index
    %c0_121 = arith.constant 0 : index
    %107 = vector.load %arg4[%c6_119, %c0_120, %c0_121] : memref<9x128x128xbf16, #tpu.memory_space<vmem>>, vector<1x128x128xbf16>
    %108 = vector.shape_cast %107 : vector<1x128x128xbf16> to vector<128x128xbf16>
    %cst_122 = arith.constant dense<0.000000e+00> : vector<256x128xf32>
    %109 = tpu.matmul %106, %108, %cst_122 {dimension_numbers = #tpu.dot_dimension_numbers<[1], [0], [0], [1], [0, 0, 1, 1], [], []>} : vector<256x128xbf16>, vector<128x128xbf16>, vector<256x128xf32> -> vector<256x128xf32>
    %110 = arith.addf %104, %109 : vector<256x128xf32>
    %c2_123 = arith.constant 2 : index
    %c1_124 = arith.constant 1 : index
    %c0_125 = arith.constant 0 : index
    %111 = vector.load %arg7[%c2_123, %c1_124, %c0_125] : memref<18x18x128xbf16, #tpu.memory_space<vmem>>, vector<16x16x128xbf16>
    %112 = vector.shape_cast %111 : vector<16x16x128xbf16> to vector<256x128xbf16>
    %c7_126 = arith.constant 7 : index
    %c0_127 = arith.constant 0 : index
    %c0_128 = arith.constant 0 : index
    %113 = vector.load %arg4[%c7_126, %c0_127, %c0_128] : memref<9x128x128xbf16, #tpu.memory_space<vmem>>, vector<1x128x128xbf16>
    %114 = vector.shape_cast %113 : vector<1x128x128xbf16> to vector<128x128xbf16>
    %cst_129 = arith.constant dense<0.000000e+00> : vector<256x128xf32>
    %115 = tpu.matmul %112, %114, %cst_129 {dimension_numbers = #tpu.dot_dimension_numbers<[1], [0], [0], [1], [0, 0, 1, 1], [], []>} : vector<256x128xbf16>, vector<128x128xbf16>, vector<256x128xf32> -> vector<256x128xf32>
    %116 = arith.addf %110, %115 : vector<256x128xf32>
    %c2_130 = arith.constant 2 : index
    %c2_131 = arith.constant 2 : index
    %c0_132 = arith.constant 0 : index
    %117 = vector.load %arg7[%c2_130, %c2_131, %c0_132] : memref<18x18x128xbf16, #tpu.memory_space<vmem>>, vector<16x16x128xbf16>
    %118 = vector.shape_cast %117 : vector<16x16x128xbf16> to vector<256x128xbf16>
    %c8_133 = arith.constant 8 : index
    %c0_134 = arith.constant 0 : index
    %c0_135 = arith.constant 0 : index
    %119 = vector.load %arg4[%c8_133, %c0_134, %c0_135] : memref<9x128x128xbf16, #tpu.memory_space<vmem>>, vector<1x128x128xbf16>
    %120 = vector.shape_cast %119 : vector<1x128x128xbf16> to vector<128x128xbf16>
    %cst_136 = arith.constant dense<0.000000e+00> : vector<256x128xf32>
    %121 = tpu.matmul %118, %120, %cst_136 {dimension_numbers = #tpu.dot_dimension_numbers<[1], [0], [0], [1], [0, 0, 1, 1], [], []>} : vector<256x128xbf16>, vector<128x128xbf16>, vector<256x128xf32> -> vector<256x128xf32>
    %122 = arith.addf %116, %121 : vector<256x128xf32>
    %c0_137 = arith.constant 0 : index
    %c0_138 = arith.constant 0 : index
    %123 = vector.load %arg5[%c0_137, %c0_138] : memref<1x128xf32, #tpu.memory_space<vmem>>, vector<1x128xf32>
    %124 = vector.broadcast %123 : vector<1x128xf32> to vector<256x128xf32>
    %125 = arith.addf %122, %124 : vector<256x128xf32>
    %cst_139 = arith.constant 0.000000e+00 : f32
    %126 = vector.broadcast %cst_139 : f32 to vector<256x128xf32>
    %127 = arith.maximumf %125, %126 : vector<256x128xf32>
    %128 = vector.shape_cast %127 : vector<256x128xf32> to vector<16x16x128xf32>
    %c0_140 = arith.constant 0 : index
    %c0_141 = arith.constant 0 : index
    %c0_142 = arith.constant 0 : index
    %c0_143 = arith.constant 0 : index
    %129 = vector.load %arg6[%c0_140, %c0_141, %c0_142, %c0_143] : memref<1x16x16x128xf32, #tpu.memory_space<vmem>>, vector<1x16x16x128xf32>
    %130 = vector.shape_cast %129 : vector<1x16x16x128xf32> to vector<16x16x128xf32>
    %131 = vector.shape_cast %128 : vector<16x16x128xf32> to vector<1x16x16x128xf32>
    tpu.vector_store %arg6[%c0_140, %c0_141, %c0_142, %c0_143], %131 {strides = array<i32>} : memref<1x16x16x128xf32, #tpu.memory_space<vmem>>, vector<1x16x16x128xf32>,
    return
  }
  func.func @transform_0(%arg0: i32) -> (i32, i32, i32, i32) {
    %c0_i32 = arith.constant 0 : i32
    %c0_i32_0 = arith.constant 0 : i32
    %c0_i32_1 = arith.constant 0 : i32
    %c0_i32_2 = arith.constant 0 : i32
    return %arg0, %c0_i32, %c0_i32_0, %c0_i32_1 : i32, i32, i32, i32
  }
  func.func @transform_1(%arg0: i32) -> (i32, i32, i32) {
    %c0_i32 = arith.constant 0 : i32
    %c0_i32_0 = arith.constant 0 : i32
    %c0_i32_1 = arith.constant 0 : i32
    %c0_i32_2 = arith.constant 0 : i32
    return %c0_i32, %c0_i32_0, %c0_i32_1 : i32, i32, i32
  }
  func.func @transform_2(%arg0: i32) -> (i32, i32) {
    %c0_i32 = arith.constant 0 : i32
    %c0_i32_0 = arith.constant 0 : i32
    %c0_i32_1 = arith.constant 0 : i32
    return %c0_i32, %c0_i32_0 : i32, i32
  }
  func.func @transform_3(%arg0: i32) -> (i32, i32, i32) {
    %c0_i32 = arith.constant 0 : i32
    %c0_i32_0 = arith.constant 0 : i32
    %c0_i32_1 = arith.constant 0 : i32
    %c0_i32_2 = arith.constant 0 : i32
    return %c0_i32, %c0_i32_0, %c0_i32_1 : i32, i32, i32
  }
  func.func @transform_4(%arg0: i32) -> (i32, i32) {
    %c0_i32 = arith.constant 0 : i32
    %c0_i32_0 = arith.constant 0 : i32
    %c0_i32_1 = arith.constant 0 : i32
    return %c0_i32, %c0_i32_0 : i32, i32
  }
  func.func @transform_5(%arg0: i32) -> (i32, i32, i32, i32) {
    %c0_i32 = arith.constant 0 : i32
    %c0_i32_0 = arith.constant 0 : i32
    %c0_i32_1 = arith.constant 0 : i32
    %c0_i32_2 = arith.constant 0 : i32
    return %arg0, %c0_i32, %c0_i32_0, %c0_i32_1 : i32, i32, i32, i32
  }
}

</mosaic_0001>

<bundles_post_ra>
// kernel: encoder_block_forward.1
= control target key start
LH: loop header
LB: loop body
LE: loop exit
PB: predicated region body
PF: predicated region fallthrough
CT: control target
= control target key end

     0   :  { %s13588_s18 = smov 0   ;;  %s16722_s0 = inlined_call_operand.vmem [shape: bf16[2,16,18,128], index: 0, kind: input, shape index: {}]   ;;  %s16723_s1 = inlined_call_operand.vmem [shape: bf16[9,128,128], index: 1, kind: input, shape index: {}]   ;;  %s16724_s2 = inlined_call_operand.vmem [shape: f32[1,128], index: 2, kind: input, shape index: {}]   ;;  %s16725_s3 = inlined_call_operand.vmem [shape: bf16[9,128,128], index: 3, kind: input, shape index: {}]   ;;  %s16726_s4 = inlined_call_operand.vmem [shape: f32[1,128], index: 4, kind: input, shape index: {}]   ;;  %s16727_s5 = inlined_call_operand.vmem [shape: f32[2,16,16,128], index: 5, kind: output, shape index: {}]  }
   0x1 LB: > { %s10587_s19 = sadd.s32 4294967295, %s13555_s18   ;;  %p10591_p0 = scmp.ge.s32.totalorder %s13555_s18, 1  ;;  %s13555_s18 = sphi %s13588_s18, %s15_s18  }
   0x2   : > { %p187_p1 = scmp.lt.s32.totalorder %s13555_s18, 3 }
   0x4   : > { %p188_p2 = pnand %p10591_p0, %p187_p1 }
   0x6   : > { %191 = sbr.rel (%p188_p2) target bundleno = 1638 (0x666), region = 40 }
   0xd   : > { %v13250_v0 = vld [vmem:[%s16723_s1 + $0x40] sm:$0xff]   ;;  %v13251_v1 = vld [vmem:[%s16723_s1 + $0x48] sm:$0xff]   ;;  %v13557_v2 = vmov 0   ;;  %p215_p3 = scmp.lt.s32.totalorder %s10587_s19, 1  ;;  %v13252_v3 = vld [vmem:[%s16723_s1 + $0x50] sm:$0xff]   ;;  %vm1424_vm3 = vcmask 1042432  }
   0xe   : > { %226 = vst [vmem:[#allocation2] sm:$0xf] %v13557_v2  ;;  %227 = vst [vmem:[#allocation2 + $0x4] sm:$0xf] %v13557_v2  ;;  %11864 = vmatprep.subr.bf16.mxu0 %v13250_v0  ;;  %v13253_v4 = vld [vmem:[%s16723_s1 + $0x58] sm:$0xff]   ;;  %v13254_v17 = vld [vmem:[%s16723_s1 + $0x60] sm:$0xff]  }
   0xf   : > { %228 = vst [vmem:[#allocation2 + $0x8] sm:$0x1] %v13557_v2  ;;  %230 = vst [vmem:[#allocation2 + $0xcc] sm:$0xf] %v13557_v2  ;;  %11865 = vmatpush3.bf16.msra.mxu0 %v13250_v0  ;;  %s16984_s19 = smov (!%p215_p3, %s10587_s19), 1  ;;  %v13255_v32 = vld [vmem:[%s16723_s1 + $0x68] sm:$0xff]  }
  0x10   : > { %231 = vst [vmem:[#allocation2 + $0xd0] sm:$0xf] %v13557_v2  ;;  %232 = vst [vmem:[#allocation2 + $0xd4] sm:$0x1] %v13557_v2  ;;  %11866 = vmatprep.subr.bf16.mxu0 %v13251_v1  ;;  %s13240_s26 = smul.u32 192, %s16984_s19  ;;  %v13256_v47 = vld [vmem:[%s16723_s1 + $0x70] sm:$0xff]  }
  0x11   : > { %vm394_vm0 = vsmask.f32 3328  ;;  %vm395_vm1 = vsmask.f32 7440  ;;  %vm1425_vm4 = vcmask 1046532   ;;  %vm5369_vm6 = vcmask 1040384  }
  0x12   : > { %s13614_s6 = scalar_lea.vmem %s16722_s0, %s13240_s26  ;;  %vm13635_vm2 = vmor %vm394_vm0, %vm395_vm1  ;;  %vm5370_vm7 = vsmask.f32 256  ;;  %s11431_s17 = sshll.u32 %s16984_s19, 8 }
  0x13   : > { %11867 = vmatpush3.bf16.msra.mxu0 %v13251_v1  ;;  %v233_v13 = vld [vmem:[%s13614_s6] sm:$0xff]   ;;  %v235_v16 = vld [vmem:[%s13614_s6 + $0x8] sm:$0x1]  ;;  %v236_v20 = vld [vmem:[%s13614_s6 + $0xc] sm:$0xff]   ;;  %s16654_s22 = scalar_lea.vmem %s16727_s5, %s11431_s17 }
  0x14   : > { %11868 = vmatprep.subr.bf16.mxu0 %v13252_v3  ;;  %282 = vst [vmem:[#allocation2 + $0xc] sm:$0xff] %v233_v13   ;;  %284 = vst [vmem:[#allocation2 + $0x14] sm:$0x1] %v235_v16  ;;  %v238_v22 = vld [vmem:[%s13614_s6 + $0x14] sm:$0x1]  ;;  %v239_v23 = vld [vmem:[%s13614_s6 + $0x18] sm:$0xff]  }
  0x15   : > { %v13616_v5 = vld [vmem:[#allocation2] sm:$0xf]  ;;  %v13618_v6 = vld [vmem:[#allocation2 + $0x4] sm:$0xf]  ;;  %285 = vst [vmem:[#allocation2 + $0x18] sm:$0xff] %v236_v20   ;;  %288 = vst [vmem:[#allocation2 + $0x24] sm:$0xff] %v239_v23  }
  0x16   : > { %v378_v7 = vld [vmem:[#allocation2 + $0x8] sm:$0x1]  ;;  %v398_v8 = vshrl.u32 %v13616_v5, 16  ;;  %v401_v9 = vshll.u32 %v13616_v5, 16  ;;  %v407_v10 = vshll.u32 %v13618_v6, 16  ;;  %v411_v11 = vshrl.u32 %v13618_v6, 16  ;;  %vm13964_vm5 = vmor %vm1424_vm3, %vm1425_vm4 }
  0x17   : > { %v417_v12 = vshll.u32 %v378_v7, 16  ;;  %11869 = vmatpush3.bf16.msra.mxu0 %v13252_v3  ;;  %v241_v24 = vld [vmem:[%s13614_s6 + $0x20] sm:$0x1]  ;;  %287 = vst [vmem:[#allocation2 + $0x20] sm:$0x1] %v238_v22  ;;  %v242_v29 = vld [vmem:[%s13614_s6 + $0x24] sm:$0xff]   ;;  %vm15000_vm8 = vmand %vm5369_vm6, %vm5370_vm7 }
  0x18   : > { %v400_v14 = vrot.slane %v398_v8, 4  ;;  %v403_v15 = vrot.slane %v401_v9, 5  ;;  %11870 = vmatprep.subr.bf16.mxu0 %v13253_v4  ;;  %v409_v18 = vrot.slane %v407_v10, 5  ;;  %v413_v19 = vrot.slane %v411_v11, 4  ;;  %290 = vst [vmem:[#allocation2 + $0x2c] sm:$0x1] %v241_v24 }
  0x19   : > { %v419_v27 = vrot.slane %v417_v12, 5  ;;  %v244_v30 = vld [vmem:[%s13614_s6 + $0x2c] sm:$0x1]  ;;  %v245_v31 = vld [vmem:[%s13614_s6 + $0x30] sm:$0xff]   ;;  %291 = vst [vmem:[#allocation2 + $0x30] sm:$0xff] %v242_v29   ;;  %v248_v36 = vld [vmem:[%s13614_s6 + $0x3c] sm:$0xff]  }
  0x1a   : > { %v404_v21 = vor.u32 %v403_v15, %v400_v14  ;;  %v414_v26 = vor.u32 %v413_v19, %v409_v18  ;;  %293 = vst [vmem:[#allocation2 + $0x38] sm:$0x1] %v244_v30  ;;  %v247_v34 = vld [vmem:[%s13614_s6 + $0x38] sm:$0x1]  ;;  %294 = vst [vmem:[#allocation2 + $0x3c] sm:$0xff] %v245_v31   ;;  %v251_v41 = vld [vmem:[%s13614_s6 + $0x48] sm:$0xff]  }
  0x1b   : > { %11871 = vmatpush3.bf16.msra.mxu0 %v13253_v4  ;;  %296 = vst [vmem:[#allocation2 + $0x44] sm:$0x1] %v247_v34  ;;  %v250_v37 = vld [vmem:[%s13614_s6 + $0x44] sm:$0x1]  ;;  %v13652_v39 = vld [vmem:[#allocation2 + $0xc] sm:$0xf] }
  0x1c   : > { %v405_v28 = vrot.slane %v404_v21, 4  ;;  %11872 = vmatprep.subr.bf16.mxu0 %v13254_v17  ;;  %v415_v33 = vrot.slane %v414_v26, 4  ;;  %v13654_v40 = vld [vmem:[#allocation2 + $0x10] sm:$0xf]  ;;  %297 = vst [vmem:[#allocation2 + $0x48] sm:$0xff] %v248_v36   ;;  %v422_v44 = vshrl.u32 %v13652_v39, 16 }
  0x1d   : > { %299 = vst [vmem:[#allocation2 + $0x50] sm:$0x1] %v250_v37  ;;  %v379_v43 = vld [vmem:[#allocation2 + $0x14] sm:$0x1]  ;;  %v425_v45 = vshll.u32 %v13652_v39, 16  ;;  %v431_v46 = vshll.u32 %v13654_v40, 16 }
  0x1e   : > { %v410_v35 = vsel %vm13635_vm2, %v405_v28, %v409_v18  ;;  %v420_v38 = vsel %vm13635_vm2, %v415_v33, %v419_v27  ;;  %300 = vst [vmem:[#allocation2 + $0x54] sm:$0xff] %v251_v41   ;;  %v435_v48 = vshrl.u32 %v13654_v40, 16  ;;  %v441_v49 = vshll.u32 %v379_v43, 16  ;;  %v13664_v50 = vld [vmem:[#allocation2 + $0x18] sm:$0xf]  ;;  %v257_v2 = vld [vmem:[%s13614_s6 + $0x60] sm:$0xff]  }
  0x1f   : > { %11873 = vmatpush3.bf16.msra.mxu0 %v13254_v17  ;;  %v10611_v42 = vcombine.low %v410_v35, %v420_v38  ;;  %v254_v51 = vld [vmem:[%s13614_s6 + $0x54] sm:$0xff]   ;;  %v424_v52 = vrot.slane %v422_v44, 4  ;;  %v427_v53 = vrot.slane %v425_v45, 5  ;;  %v433_v54 = vrot.slane %v431_v46, 5  ;;  %v13667_v55 = vld [vmem:[#allocation2 + $0x1c] sm:$0xf] }
  0x20   : > { %11874 = vmatprep.subr.bf16.mxu0 %v13255_v32  ;;  %v446_v56 = vshrl.u32 %v13664_v50, 16  ;;  %303 = vst [vmem:[#allocation2 + $0x60] sm:$0xff] %v254_v51   ;;  %v437_v57 = vrot.slane %v435_v48, 4  ;;  %v380_v58 = vld [vmem:[#allocation2 + $0x20] sm:$0x1]  ;;  %v449_v59 = vshll.u32 %v13664_v50, 16 }
  0x21   : > { %11880 = vmatprep.mubr.bf16.mxu0 %v10611_v42  ;;  %v455_v60 = vshll.u32 %v13667_v55, 16  ;;  %v428_v61 = vor.u32 %v427_v53, %v424_v52  ;;  %v459_v63 = vshrl.u32 %v13667_v55, 16  ;;  %v465_v0 = vshll.u32 %v380_v58, 16  ;;  %v13673_v1 = vld [vmem:[#allocation2 + $0x24] sm:$0xf]  ;;  %v13257_v3 = vld [vmem:[%s16723_s1 + $0x78] sm:$0xff]  }
  0x22   : > { %v448_v62 = vrot.slane %v446_v56, 4  ;;  %v438_v4 = vor.u32 %v437_v57, %v433_v54  ;;  %v443_v7 = vrot.slane %v441_v49, 5  ;;  %v451_v8 = vrot.slane %v449_v59, 5  ;;  %v13679_v10 = vld [vmem:[#allocation2 + $0x28] sm:$0xf]  ;;  %306 = vst [vmem:[#allocation2 + $0x6c] sm:$0xff] %v257_v2  }
  0x23   : > { %11875 = vmatpush3.bf16.msra.mxu0 %v13255_v32  ;;  %v457_v9 = vrot.slane %v455_v60, 5  ;;  %v429_v11 = vrot.slane %v428_v61, 4  ;;  %v461_v12 = vrot.slane %v459_v63, 4  ;;  %v467_v13 = vrot.slane %v465_v0, 5  ;;  %v381_v17 = vld [vmem:[#allocation2 + $0x2c] sm:$0x1] }
  0x24   : > { %11876 = vmatprep.subr.bf16.mxu0 %v13256_v47  ;;  %v470_v14 = vshrl.u32 %v13673_v1, 16  ;;  %v439_v15 = vrot.slane %v438_v4, 4  ;;  %v452_v16 = vor.u32 %v451_v8, %v448_v62  ;;  %v473_v18 = vshll.u32 %v13673_v1, 16  ;;  %v13258_v21 = vld [vmem:[%s16723_s1] sm:$0xff]   ;;  %v13690_v26 = vld [vmem:[#allocation2 + $0x30] sm:$0xf] }
  0x25   : > { %v479_v19 = vshll.u32 %v13679_v10, 16  ;;  %v434_v20 = vsel %vm13635_vm2, %v429_v11, %v433_v54  ;;  %v462_v22 = vor.u32 %v461_v12, %v457_v9  ;;  %v483_v24 = vshrl.u32 %v13679_v10, 16  ;;  %v13694_v31 = vld [vmem:[#allocation2 + $0x34] sm:$0xf]  ;;  %v260_v32 = vld [vmem:[%s13614_s6 + $0x6c] sm:$0xff]   ;;  %v263_v37 = vld [vmem:[%s13614_s6 + $0x78] sm:$0xff]  }
  0x26   : > { %v472_v23 = vrot.slane %v470_v14, 4  ;;  %v444_v27 = vsel %vm13635_vm2, %v439_v15, %v443_v7  ;;  %v453_v28 = vrot.slane %v452_v16, 4  ;;  %v475_v29 = vrot.slane %v473_v18, 5  ;;  %309 = vst [vmem:[#allocation2 + $0x78] sm:$0xff] %v260_v32   ;;  %v382_v42 = vld [vmem:[#allocation2 + $0x38] sm:$0x1] }
  0x27   : > { %11877 = vmatpush3.bf16.msra.mxu0 %v13256_v47  ;;  %v481_v30 = vrot.slane %v479_v19, 5  ;;  %v10612_v33 = vcombine.low %v434_v20, %v444_v27  ;;  %v463_v34 = vrot.slane %v462_v22, 4  ;;  %v485_v35 = vrot.slane %v483_v24, 4  ;;  %v13702_v45 = vld [vmem:[#allocation2 + $0x3c] sm:$0xf]  ;;  %312 = vst [vmem:[#allocation2 + $0x84] sm:$0xff] %v263_v37  }
  0x28   : > { %11878 = vmatprep.subr.bf16.mxu0 %v13257_v3  ;;  %v489_v36 = vshll.u32 %v381_v17, 16  ;;  %v458_v38 = vsel %vm13635_vm2, %v453_v28, %v457_v9  ;;  %v476_v41 = vor.u32 %v475_v29, %v472_v23  ;;  %v494_v43 = vshrl.u32 %v13690_v26, 16  ;;  %v13707_v51 = vld [vmem:[#allocation2 + $0x40] sm:$0xf]  ;;  %v253_v52 = vld [vmem:[%s13614_s6 + $0x50] sm:$0x1] }
  0x29   : > { %v497_v44 = vshll.u32 %v13690_v26, 16  ;;  %v468_v46 = vsel %vm13635_vm2, %v463_v34, %v467_v13  ;;  %v486_v47 = vor.u32 %v485_v35, %v481_v30  ;;  %v503_v49 = vshll.u32 %v13694_v31, 16  ;;  %v13259_v56 = vld [vmem:[%s16723_s1 + $0x8] sm:$0xff]   ;;  %v383_v59 = vld [vmem:[#allocation2 + $0x44] sm:$0x1]  ;;  %v13260_v8 = vld [vmem:[%s16723_s1 + $0x10] sm:$0xff]  }
  0x2a   : > { %v491_v48 = vrot.slane %v489_v36, 5  ;;  %v10613_v53 = vcombine.low %v458_v38, %v468_v46  ;;  %v477_v54 = vrot.slane %v476_v41, 4  ;;  %v496_v57 = vrot.slane %v494_v43, 4  ;;  %302 = vst [vmem:[#allocation2 + $0x5c] sm:$0x1] %v253_v52  ;;  %v266_v15 = vld [vmem:[%s13614_s6 + $0x84] sm:$0xff]  }
  0x2b   : > { %11879 = vmatpush3.bf16.msra.mxu0 %v13257_v3  ;;  %v499_v58 = vrot.slane %v497_v44, 5  ;;  %v487_v60 = vrot.slane %v486_v47, 4  ;;  %v505_v61 = vrot.slane %v503_v49, 5  ;;  %v507_v62 = vshrl.u32 %v13694_v31, 16  ;;  %v13714_v0 = vld [vmem:[#allocation2 + $0x48] sm:$0xf] }
  0x2c   : > { %11912 = vmatprep.subr.bf16.mxu0 %v13258_v21  ;;  %v513_v63 = vshll.u32 %v382_v42, 16  ;;  %v482_v2 = vsel %vm13635_vm2, %v477_v54, %v481_v30  ;;  %v518_v4 = vshrl.u32 %v13702_v45, 16  ;;  %v521_v7 = vshll.u32 %v13702_v45, 16  ;;  %v256_v14 = vld [vmem:[%s13614_s6 + $0x5c] sm:$0x1]  ;;  %315 = vst [vmem:[#allocation2 + $0x90] sm:$0xff] %v266_v15  }
  0x2d   : > { %v500_v3 = vor.u32 %v499_v58, %v496_v57  ;;  %v492_v9 = vsel %vm13635_vm2, %v487_v60, %v491_v48  ;;  %v509_v11 = vrot.slane %v507_v62, 4  ;;  %v527_v13 = vshll.u32 %v13707_v51, 16  ;;  %v13728_v20 = vld [vmem:[#allocation2 + $0x4c] sm:$0xf]  ;;  %305 = vst [vmem:[#allocation2 + $0x68] sm:$0x1] %v256_v14 }
  0x2e   : > { %11881 = vmatmul.mubr.bf16.vlgmr.msra.gmra.mrb[0].mxu0 %v10612_v33  ;;  %v515_v12 = vrot.slane %v513_v63, 5  ;;  %v10614_v16 = vcombine.low %v482_v2, %v492_v9  ;;  %v520_v18 = vrot.slane %v518_v4, 4  ;;  %v523_v19 = vrot.slane %v521_v7, 5  ;;  %v384_v30 = vld [vmem:[#allocation2 + $0x50] sm:$0x1]  ;;  %v13261_v34 = vld [vmem:[%s16723_s1 + $0x18] sm:$0xff]  }
  0x2f   : > { %11913 = vmatpush3.bf16.msra.mxu0 %v13258_v21  ;;  %11884 = vmatprep.mubr.bf16.mxu0 %v10613_v53  ;;  %v501_v17 = vrot.slane %v500_v3, 4  ;;  %v269_v21 = vld [vmem:[%s13614_s6 + $0x90] sm:$0xff]   ;;  %v510_v22 = vor.u32 %v509_v11, %v505_v61  ;;  %v529_v23 = vrot.slane %v527_v13, 5  ;;  %v531_v24 = vshrl.u32 %v13707_v51, 16  ;;  %v259_v35 = vld [vmem:[%s13614_s6 + $0x68] sm:$0x1] }
  0x30   : > { %11914 = vmatprep.subr.bf16.mxu0 %v13259_v56  ;;  %v537_v27 = vshll.u32 %v383_v59, 16  ;;  %318 = vst [vmem:[#allocation2 + $0x9c] sm:$0xff] %v269_v21   ;;  %v524_v29 = vor.u32 %v523_v19, %v520_v18  ;;  %v542_v32 = vshrl.u32 %v13714_v0, 16  ;;  %v545_v33 = vshll.u32 %v13714_v0, 16  ;;  %v13741_v42 = vld [vmem:[#allocation2 + $0x54] sm:$0xf] }
  0x31   : > { %v506_v28 = vsel %vm13635_vm2, %v501_v17, %v505_v61  ;;  %v511_v36 = vrot.slane %v510_v22, 4  ;;  %v533_v37 = vrot.slane %v531_v24, 4  ;;  %v551_v41 = vshll.u32 %v13728_v20, 16  ;;  %308 = vst [vmem:[#allocation2 + $0x74] sm:$0x1] %v259_v35  ;;  %v13262_v61 = vld [vmem:[%s16723_s1 + $0x20] sm:$0xff]  }
  0x32   : > { %v539_v38 = vrot.slane %v537_v27, 5  ;;  %v525_v43 = vrot.slane %v524_v29, 4  ;;  %v544_v44 = vrot.slane %v542_v32, 4  ;;  %v547_v46 = vrot.slane %v545_v33, 5  ;;  %v13744_v48 = vld [vmem:[#allocation2 + $0x58] sm:$0xf] }
  0x33   : > { %11915 = vmatpush3.bf16.msra.mxu0 %v13259_v56  ;;  %v555_v47 = vshrl.u32 %v13728_v20, 16  ;;  %v516_v49 = vsel %vm13635_vm2, %v511_v36, %v515_v12  ;;  %v534_v52 = vor.u32 %v533_v37, %v529_v23  ;;  %v553_v53 = vrot.slane %v551_v41, 5  ;;  %v385_v60 = vld [vmem:[#allocation2 + $0x5c] sm:$0x1]  ;;  %v262_v62 = vld [vmem:[%s13614_s6 + $0x74] sm:$0x1] }
  0x34   : > { %11916 = vmatprep.subr.bf16.mxu0 %v13260_v8  ;;  %v561_v54 = vshll.u32 %v384_v30, 16  ;;  %v10615_v56 = vcombine.low %v506_v28, %v516_v49  ;;  %v530_v57 = vsel %vm13635_vm2, %v525_v43, %v529_v23  ;;  %v548_v58 = vor.u32 %v547_v46, %v544_v44  ;;  %v272_v63 = vld [vmem:[%s13614_s6 + $0x9c] sm:$0xff]   ;;  %311 = vst [vmem:[#allocation2 + $0x80] sm:$0x1] %v262_v62  ;;  %v13761_v15 = vld [vmem:[#allocation2 + $0x64] sm:$0xf] }
  0x35   : > { %v557_v59 = vrot.slane %v555_v47, 4  ;;  %v535_v2 = vrot.slane %v534_v52, 4  ;;  %v566_v4 = vshrl.u32 %v13741_v42, 16  ;;  %v569_v7 = vshll.u32 %v13741_v42, 16  ;;  %v13757_v9 = vld [vmem:[#allocation2 + $0x60] sm:$0xf] }
  0x36   : > { %11885 = vmatmul.mubr.bf16.gmra.mrb[4].mxu0 %v10614_v16  ;;  %v563_v3 = vrot.slane %v561_v54, 5  ;;  %321 = vst [vmem:[#allocation2 + $0xa8] sm:$0xff] %v272_v63   ;;  %v549_v11 = vrot.slane %v548_v58, 4  ;;  %v575_v13 = vshll.u32 %v13744_v48, 16  ;;  %v579_v14 = vshrl.u32 %v13744_v48, 16 }
  0x37   : > { %11917 = vmatpush3.bf16.msra.mxu0 %v13260_v8  ;;  %11888 = vmatprep.mubr.bf16.mxu0 %v10615_v56  ;;  %v558_v12 = vor.u32 %v557_v59, %v553_v53  ;;  %v275_v8 = vld [vmem:[%s13614_s6 + $0xa8] sm:$0xff]   ;;  %v540_v16 = vsel %vm13635_vm2, %v535_v2, %v539_v38  ;;  %v568_v17 = vrot.slane %v566_v4, 4  ;;  %v571_v18 = vrot.slane %v569_v7, 5  ;;  %v265_v21 = vld [vmem:[%s13614_s6 + $0x80] sm:$0x1]  ;;  %v13264_v2 = vld [vmem:[%s16723_s1 + $0x30] sm:$0xff]  }
  0x38   : > { %11918 = vmatprep.subr.bf16.mxu0 %v13261_v34  ;;  %v585_v19 = vshll.u32 %v385_v60, 16  ;;  %324 = vst [vmem:[#allocation2 + $0xb4] sm:$0xff] %v275_v8   ;;  %v10616_v22 = vcombine.low %v530_v57, %v540_v16  ;;  %v554_v23 = vsel %vm13635_vm2, %v549_v11, %v553_v53  ;;  %v577_v27 = vrot.slane %v575_v13, 5  ;;  %v13769_v28 = vld [vmem:[#allocation2 + $0x6c] sm:$0xf] }
  0x39   : > { %v559_v24 = vrot.slane %v558_v12, 4  ;;  %314 = vst [vmem:[#allocation2 + $0x8c] sm:$0x1] %v265_v21  ;;  %v572_v29 = vor.u32 %v571_v18, %v568_v17  ;;  %v581_v30 = vrot.slane %v579_v14, 4  ;;  %v13771_v33 = vld [vmem:[#allocation2 + $0x68] sm:$0x1] }
  0x3a   : > { %v587_v32 = vrot.slane %v585_v19, 5  ;;  %v590_v35 = vshrl.u32 %v13757_v9, 16  ;;  %v13774_v36 = vld [vmem:[#allocation2 + $0x70] sm:$0xf]  ;;  %v593_v38 = vshll.u32 %v13757_v9, 16  ;;  %v599_v41 = vshll.u32 %v13761_v15, 16 }
  0x3b   : > { %11919 = vmatpush3.bf16.msra.mxu0 %v13261_v34  ;;  %v564_v37 = vsel %vm13635_vm2, %v559_v24, %v563_v3  ;;  %v603_v43 = vshrl.u32 %v13761_v15, 16  ;;  %v13263_v34 = vld [vmem:[%s16723_s1 + $0x28] sm:$0xff]   ;;  %v573_v46 = vrot.slane %v572_v29, 4  ;;  %v582_v47 = vor.u32 %v581_v30, %v577_v27  ;;  %v13790_v63 = vld [vmem:[#allocation2 + $0x78] sm:$0xf] }
  0x3c   : > { %11920 = vmatprep.subr.bf16.mxu0 %v13262_v61  ;;  %v10617_v44 = vcombine.low %v554_v23, %v564_v37  ;;  %v592_v49 = vrot.slane %v590_v35, 4  ;;  %v268_v52 = vld [vmem:[%s13614_s6 + $0x8c] sm:$0x1]  ;;  %v595_v53 = vrot.slane %v593_v38, 5  ;;  %v601_v54 = vrot.slane %v599_v41, 5  ;;  %v13265_v35 = vld [vmem:[%s16723_s1 + $0x38] sm:$0xff]  }
  0x3d   : > { %v605_v56 = vrot.slane %v603_v43, 4  ;;  %v609_v57 = vshll.u32 %v13771_v33, 16  ;;  %317 = vst [vmem:[#allocation2 + $0x98] sm:$0x1] %v268_v52  ;;  %v578_v58 = vsel %vm13635_vm2, %v573_v46, %v577_v27  ;;  %v583_v59 = vrot.slane %v582_v47, 4 }
  0x3e   : > { %11889 = vmatmul.mubr.bf16.gmra.mrb[8].mxu0 %v10616_v22  ;;  %v614_v60 = vshrl.u32 %v13769_v28, 16  ;;  %v617_v62 = vshll.u32 %v13769_v28, 16  ;;  %v596_v3 = vor.u32 %v595_v53, %v592_v49  ;;  %v13795_v11 = vld [vmem:[#allocation2 + $0x74] sm:$0x1]  ;;  %v623_v12 = vshll.u32 %v13774_v36, 16 }
  0x3f   : > { %11892 = vmatprep.mubr.bf16.mxu0 %v10617_v44  ;;  %11921 = vmatpush3.bf16.msra.mxu0 %v13262_v61  ;;  %v606_v4 = vor.u32 %v605_v56, %v601_v54  ;;  %v611_v7 = vrot.slane %v609_v57, 5  ;;  %v271_v13 = vld [vmem:[%s13614_s6 + $0x98] sm:$0x1]  ;;  %v588_v14 = vsel %vm13635_vm2, %v583_v59, %v587_v32  ;;  %v627_v16 = vshrl.u32 %v13774_v36, 16  ;;  %v13802_v17 = vld [vmem:[#allocation2 + $0x7c] sm:$0xf] }
  0x40   : > { %11922 = vmatprep.subr.bf16.mxu0 %v13263_v34  ;;  %v616_v8 = vrot.slane %v614_v60, 4  ;;  %v619_v61 = vrot.slane %v617_v62, 5  ;;  %320 = vst [vmem:[#allocation2 + $0xa4] sm:$0x1] %v271_v13  ;;  %v10618_v18 = vcombine.low %v578_v58, %v588_v14  ;;  %v597_v19 = vrot.slane %v596_v3, 4 }
  0x41   : > { %v607_v21 = vrot.slane %v606_v4, 4  ;;  %v625_v22 = vrot.slane %v623_v12, 5  ;;  %v13804_v23 = vld [vmem:[#allocation2 + $0x84] sm:$0xf]  ;;  %v629_v27 = vrot.slane %v627_v16, 4  ;;  %v633_v29 = vshll.u32 %v13795_v11, 16 }
  0x42   : > { %v620_v24 = vor.u32 %v619_v61, %v616_v8  ;;  %v13807_v30 = vld [vmem:[#allocation2 + $0x80] sm:$0x1]  ;;  %v638_v32 = vshrl.u32 %v13790_v63, 16  ;;  %v602_v37 = vsel %vm13635_vm2, %v597_v19, %v601_v54  ;;  %v641_v41 = vshll.u32 %v13790_v63, 16  ;;  %v274_v52 = vld [vmem:[%s13614_s6 + $0xa4] sm:$0x1] }
  0x43   : > { %11923 = vmatpush3.bf16.msra.mxu0 %v13263_v34  ;;  %v612_v38 = vsel %vm13635_vm2, %v607_v21, %v611_v7  ;;  %v647_v43 = vshll.u32 %v13802_v17, 16  ;;  %v630_v47 = vor.u32 %v629_v27, %v625_v22  ;;  %v635_v49 = vrot.slane %v633_v29, 5  ;;  %v13819_v34 = vld [vmem:[#allocation2 + $0x88] sm:$0xf]  ;;  %323 = vst [vmem:[#allocation2 + $0xb0] sm:$0x1] %v274_v52 }
  0x44   : > { %11924 = vmatprep.subr.bf16.mxu0 %v13264_v2  ;;  %v10619_v44 = vcombine.low %v602_v37, %v612_v38  ;;  %v621_v46 = vrot.slane %v620_v24, 4  ;;  %v640_v53 = vrot.slane %v638_v32, 4  ;;  %v643_v56 = vrot.slane %v641_v41, 5  ;;  %v13827_v3 = vld [vmem:[#allocation2 + $0x90] sm:$0xf]  ;;  %v13836_v8 = vld [vmem:[%s16723_s1 + $0x80] sm:$0xff]  }
  0x45   : > { %v649_v57 = vrot.slane %v647_v43, 5  ;;  %v651_v54 = vshrl.u32 %v13802_v17, 16  ;;  %v631_v59 = vrot.slane %v630_v47, 4  ;;  %v657_v60 = vshll.u32 %v13807_v30, 16  ;;  %v13829_v12 = vld [vmem:[#allocation2 + $0x8c] sm:$0x1] }
  0x46   : > { %11893 = vmatmul.mubr.bf16.gmra.mrb[12].mxu0 %v10618_v18  ;;  %v626_v58 = vsel %vm13635_vm2, %v621_v46, %v625_v22  ;;  %v662_v62 = vshrl.u32 %v13804_v23, 16  ;;  %v644_v4 = vor.u32 %v643_v56, %v640_v53  ;;  %v665_v13 = vshll.u32 %v13804_v23, 16  ;;  %v277_v19 = vld [vmem:[%s13614_s6 + $0xb0] sm:$0x1]  ;;  %v13842_v29 = vld [vmem:[#allocation2 + $0x94] sm:$0xf] }
  0x47   : > { %11896 = vmatprep.mubr.bf16.mxu0 %v10619_v44  ;;  %11925 = vmatpush3.bf16.msra.mxu0 %v13264_v2  ;;  %v653_v7 = vrot.slane %v651_v54, 4  ;;  %v671_v14 = vshll.u32 %v13819_v34, 16  ;;  %v636_v61 = vsel %vm13635_vm2, %v631_v59, %v635_v49  ;;  %v659_v16 = vrot.slane %v657_v60, 5  ;;  %v13844_v32 = vld [vmem:[#allocation2 + $0x98] sm:$0x1] }
  0x48   : > { %11926 = vmatprep.subr.bf16.mxu0 %v13265_v35  ;;  %v664_v18 = vrot.slane %v662_v62, 4  ;;  %v675_v2 = vshrl.u32 %v13819_v34, 16  ;;  %v10620_v21 = vcombine.low %v626_v58, %v636_v61  ;;  %v645_v22 = vrot.slane %v644_v4, 4  ;;  %16802 = vst [vmem:[#allocation3_spill] sm:$0xff] %v13844_v32  ;;  %326 = vst [vmem:[#allocation2 + $0xbc] sm:$0x1] %v277_v19 }
  0x49   : > { %v654_v24 = vor.u32 %v653_v7, %v649_v57  ;;  %v667_v27 = vrot.slane %v665_v13, 5  ;;  %v673_v37 = vrot.slane %v671_v14, 5  ;;  %v681_v41 = vshll.u32 %v13829_v12, 16  ;;  %v13848_v44 = vld [vmem:[#allocation2 + $0x9c] sm:$0xf] }
  0x4a   : > { %v677_v38 = vrot.slane %v675_v2, 4  ;;  %v686_v43 = vshrl.u32 %v13827_v3, 16  ;;  %v650_v46 = vsel %vm13635_vm2, %v645_v22, %v649_v57  ;;  %v689_v52 = vshll.u32 %v13827_v3, 16  ;;  %v13855_v59 = vld [vmem:[#allocation2 + $0xa0] sm:$0xf] }
  0x4b   : > { %11927 = vmatpush3.bf16.msra.mxu0 %v13265_v35  ;;  %v655_v47 = vrot.slane %v654_v24, 4  ;;  %v668_v49 = vor.u32 %v667_v27, %v664_v18  ;;  %v683_v56 = vrot.slane %v681_v41, 5  ;;  %v695_v58 = vshll.u32 %v13842_v29, 16  ;;  %v13860_v4 = vld [vmem:[#allocation2 + $0xa4] sm:$0x1] }
  0x4c   : > { %11960 = vmatprep.subr.bf16.mxu0 %v13836_v8  ;;  %v678_v53 = vor.u32 %v677_v38, %v673_v37  ;;  %v688_v54 = vrot.slane %v686_v43, 4  ;;  %v691_v62 = vrot.slane %v689_v52, 5  ;;  %v699_v57 = vshrl.u32 %v13842_v29, 16  ;;  %16803 = vst [vmem:[#allocation4_spill] sm:$0xff] %v13860_v4  ;;  %v13863_v18 = vld [vmem:[#allocation2 + $0xa8] sm:$0xf] }
  0x4d   : > { %v660_v35 = vsel %vm13635_vm2, %v655_v47, %v659_v16  ;;  %v669_v60 = vrot.slane %v668_v49, 4  ;;  %v697_v14 = vrot.slane %v695_v58, 5  ;;  %v705_v61 = vshll.u32 %v13844_v32, 16  ;;  %v13872_v41 = vld [vmem:[#allocation2 + $0xac] sm:$0xf] }
  0x4e   : > { %11897 = vmatmul.mubr.bf16.gmra.mrb[16].mxu0 %v10620_v21  ;;  %v10621_v7 = vcombine.low %v650_v46, %v660_v35  ;;  %v679_v13 = vrot.slane %v678_v53, 4  ;;  %v692_v19 = vor.u32 %v691_v62, %v688_v54  ;;  %v701_v21 = vrot.slane %v699_v57, 4  ;;  %v13876_v58 = vld [vmem:[#allocation2 + $0xb0] sm:$0x1] }
  0x4f   : > { %v674_v2 = vsel %vm13635_vm2, %v669_v60, %v673_v37  ;;  %v710_v16 = vshrl.u32 %v13848_v44, 16  ;;  %v707_v24 = vrot.slane %v705_v61, 5  ;;  %v713_v27 = vshll.u32 %v13848_v44, 16 }
  0x50   : > { %11900 = vmatprep.mubr.bf16.mxu0 %v10621_v7  ;;  %v684_v22 = vsel %vm13635_vm2, %v679_v13, %v683_v56  ;;  %v719_v38 = vshll.u32 %v13855_v59, 16  ;;  %v693_v46 = vrot.slane %v692_v19, 4  ;;  %v702_v47 = vor.u32 %v701_v21, %v697_v14  ;;  %v13878_v56 = vld [vmem:[#allocation2 + $0xb4] sm:$0xf]  ;;  %v13884_v7 = vld [vmem:[#allocation2 + $0xb8] sm:$0xf] }
  0x51   : > { %v10622_v43 = vcombine.low %v674_v2, %v684_v22  ;;  %v712_v49 = vrot.slane %v710_v16, 4  ;;  %v715_v37 = vrot.slane %v713_v27, 5  ;;  %v723_v53 = vshrl.u32 %v13855_v59, 16 }
  0x52   : > { %v721_v52 = vrot.slane %v719_v38, 5  ;;  %v729_v54 = vshll.u32 %v13860_v4, 16  ;;  %v698_v35 = vsel %vm13635_vm2, %v693_v46, %v697_v14  ;;  %v703_v60 = vrot.slane %v702_v47, 4  ;;  %v13890_v4 = vld [vmem:[#allocation2 + $0xbc] sm:$0x1] }
  0x53   : > { %v734_v62 = vshrl.u32 %v13863_v18, 16  ;;  %v737_v57 = vshll.u32 %v13863_v18, 16  ;;  %v716_v13 = vor.u32 %v715_v37, %v712_v49  ;;  %v725_v61 = vrot.slane %v723_v53, 4 }
  0x54   : > { %v731_v2 = vrot.slane %v729_v54, 5  ;;  %v743_v19 = vshll.u32 %v13872_v41, 16  ;;  %v708_v21 = vsel %vm13635_vm2, %v703_v60, %v707_v24  ;;  %v747_v14 = vshrl.u32 %v13872_v41, 16 }
  0x55   : > { %v736_v16 = vrot.slane %v734_v62, 4  ;;  %v739_v22 = vrot.slane %v737_v57, 5  ;;  %v10623_v27 = vcombine.low %v698_v35, %v708_v21  ;;  %v717_v38 = vrot.slane %v716_v13, 4 }
  0x56   : > { %11901 = vmatmul.mubr.bf16.gmra.mrb[20].mxu0 %v10622_v43  ;;  %v726_v46 = vor.u32 %v725_v61, %v721_v52  ;;  %v745_v47 = vrot.slane %v743_v19, 5  ;;  %v749_v49 = vrot.slane %v747_v14, 4  ;;  %v753_v37 = vshll.u32 %v13876_v58, 16 }
  0x57   : > { %v740_v32 = vor.u32 %v739_v22, %v736_v16  ;;  %v758_v53 = vshrl.u32 %v13878_v56, 16  ;;  %11904 = vmatprep.mubr.bf16.mxu0 %v10623_v27  ;;  %v722_v24 = vsel %vm13635_vm2, %v717_v38, %v721_v52  ;;  %v761_v54 = vshll.u32 %v13878_v56, 16 }
  0x58   : > { %v727_v43 = vrot.slane %v726_v46, 4  ;;  %v767_v35 = vshll.u32 %v13884_v7, 16  ;;  %v750_v62 = vor.u32 %v749_v49, %v745_v47  ;;  %v755_v57 = vrot.slane %v753_v37, 5 }
  0x59   : > { %v741_v60 = vrot.slane %v740_v32, 4  ;;  %v760_v13 = vrot.slane %v758_v53, 4  ;;  %v763_v19 = vrot.slane %v761_v54, 5  ;;  %v771_v16 = vshrl.u32 %v13884_v7, 16 }
  0x5a   : > { %v732_v61 = vsel %vm13635_vm2, %v727_v43, %v731_v2  ;;  %v769_v21 = vrot.slane %v767_v35, 5  ;;  %v751_v14 = vrot.slane %v750_v62, 4  ;;  %v777_v27 = vshll.u32 %v13890_v4, 16 }
  0x5b   : > { %v10624_v22 = vcombine.low %v722_v24, %v732_v61  ;;  %v746_v52 = vsel %vm13635_vm2, %v741_v60, %v745_v47  ;;  %v764_v38 = vor.u32 %v763_v19, %v760_v13  ;;  %v773_v46 = vrot.slane %v771_v16, 4  ;;  %v13491_v13 = vld [vmem:[#allocation2 + $0x4] sm:$0xf]  ;;  %v278_v16 = vld [vmem:[%s13614_s6 + $0xb4] sm:$0xff]  }
  0x5c   : > { %v756_v32 = vsel %vm13635_vm2, %v751_v14, %v755_v57  ;;  %v779_v53 = vrot.slane %v777_v27, 5  ;;  %v10635_v54 = vcombine.low %v13616_v5, %v13618_v6  ;;  %v10636_v60 = vcombine.low %v13652_v39, %v13654_v40  ;;  %v13271_v57 = vld [vmem:[%s16723_s1 + $0x88] sm:$0xff]   ;;  %v13274_v5 = vld [vmem:[%s16723_s1 + $0x90] sm:$0xff]   ;;  %v13277_v40 = vld [vmem:[%s16723_s1 + $0x98] sm:$0xff]   ;;  %327 = vst [vmem:[#allocation2 + $0xc0] sm:$0xff] %v278_v16  }
  0x5d   : > { %v10625_v49 = vcombine.low %v746_v52, %v756_v32  ;;  %v765_v37 = vrot.slane %v764_v38, 4  ;;  %v774_v2 = vor.u32 %v773_v46, %v769_v21  ;;  %v10637_v62 = vcombine.low %v13664_v50, %v13667_v55  ;;  %v13280_v50 = vld [vmem:[%s16723_s1 + $0xa0] sm:$0xff]   ;;  %v1378_v14 = vld [vmem:[#allocation2 + $0x18] sm:$0xe]  ;;  %v13493_v27 = vld [vmem:[#allocation2 + $0x1c] sm:$0xf] }
  0x5e   : > { %11905 = vmatmul.mubr.bf16.gmra.mrb[24].mxu0 %v10624_v22  ;;  %v10638_v6 = vcombine.low %v13673_v1, %v13679_v10  ;;  %v10639_v39 = vcombine.low %v13690_v26, %v13694_v31  ;;  %v10640_v55 = vcombine.low %v13702_v45, %v13707_v51  ;;  %v10641_v1 = vcombine.low %v13714_v0, %v13728_v20  ;;  %v13283_v10 = vld [vmem:[%s16723_s1 + $0xa8] sm:$0xff]   ;;  %v13286_v26 = vld [vmem:[%s16723_s1 + $0xb0] sm:$0xff]   ;;  %v13289_v45 = vld [vmem:[%s16723_s1 + $0xb8] sm:$0xff]  }
  0x5f   : > { %11908 = vmatprep.mubr.bf16.mxu0 %v10625_v49  ;;  %v770_v24 = vsel %vm13635_vm2, %v765_v37, %v769_v21  ;;  %v775_v43 = vrot.slane %v774_v2, 4  ;;  %v10642_v31 = vcombine.low %v13741_v42, %v13744_v48  ;;  %v10643_v51 = vcombine.low %v13757_v9, %v13761_v15  ;;  %v13953_v0 = vld [vmem:[%s16723_s1 + $0xc0] sm:$0xff]   ;;  %v13492_v22 = vld [vmem:[#allocation2 + $0x10] sm:$0xf]  ;;  %v13494_v32 = vld [vmem:[#allocation2 + $0x14] sm:$0x1] }
  0x60   : > { %v10644_v20 = vcombine.low %v13769_v28, %v13774_v36  ;;  %v10645_v42 = vcombine.low %v13790_v63, %v13802_v17  ;;  %v10646_v48 = vcombine.low %v13804_v23, %v13819_v34  ;;  %v1376_v9 = vld [vmem:[#allocation2] sm:$0xe]  ;;  %v10647_v15 = vcombine.low %v13827_v3, %v13842_v29  ;;  %v1377_v3 = vld [vmem:[#allocation2 + $0xc] sm:$0xe]  ;;  %v1382_v16 = vld [vmem:[#allocation2 + $0x48] sm:$0xe] }
  0x61   : > { %v780_v47 = vsel %vm13635_vm2, %v775_v43, %v779_v53  ;;  %v10659_v63 = vrot.slane %v1376_v9, 9  ;;  %v1429_v61 = vrot.slane %v13491_v13, 5  ;;  %v10648_v19 = vcombine.low %v13848_v44, %v13855_v59 }
  0x62   : > { %v10626_v35 = vcombine.low %v770_v24, %v780_v47  ;;  %v10649_v23 = vcombine.low %v13863_v18, %v13872_v41  ;;  %v1436_v52 = vrot.slane %v13492_v22, 5  ;;  %v1443_v38 = vrot.slane %v13493_v27, 5  ;;  %v13495_v47 = vld [vmem:[#allocation2 + $0x20] sm:$0x1]  ;;  %v13502_v27 = vld [vmem:[#allocation2 + $0x44] sm:$0x1] }
  0x63   : > { %v1431_v21 = vrot.slane %v1429_v61, 4  ;;  %v1430_v46 = vsel %vm13964_vm5, %v10659_v63, %v1429_v61  ;;  %v1439_v49 = vrot.slane %v13494_v32, 5  ;;  %v10650_v18 = vcombine.low %v13878_v56, %v13884_v7  ;;  %v13503_v32 = vld [vmem:[#allocation2 + $0x50] sm:$0x1] }
  0x64   : > { %v10660_v2 = vrot.slane %v1377_v3, 9  ;;  %v1438_v53 = vrot.slane %v1436_v52, 4  ;;  %v10661_v24 = vrot.slane %v1378_v14, 9  ;;  %v1445_v43 = vrot.slane %v1443_v38, 4 }
  0x66   : > { %11909 = vmatmul.mubr.bf16.gmra.mrb[28].mxu0 %v10626_v35  ;;  %v1379_v35 = vld [vmem:[#allocation2 + $0x24] sm:$0xe]  ;;  %v1444_v56 = vsel %vm13964_vm5, %v10661_v24, %v1443_v38  ;;  %v1467_v38 = vrot.slane %v13502_v27, 5  ;;  %v13504_v24 = vld [vmem:[#allocation2 + $0x58] sm:$0xf] }
  0x67   : > { %11928 = vmatprep.mubr.bf16.mxu0 %v10635_v54  ;;  %v1446_v54 = vrot.slane %v13495_v47, 5  ;;  %v13300_v27 = vld [vmem:[%s16723_s1 + $0x100] sm:$0xff]  }
  0x6e   : > { %11929 = vmatmul.mubr.bf16.vlgmr.msra.gmra.mrb[0].mxu0 %v10636_v60  ;;  %v1380_v60 = vld [vmem:[#allocation2 + $0x30] sm:$0xe] }
  0x6f   : > { %11961 = vmatpush3.bf16.msra.mxu0 %v13836_v8  ;;  %11932 = vmatprep.mubr.bf16.mxu0 %v10637_v62  ;;  %v13490_v8 = vld [vmem:[#allocation2 + $0x8] sm:$0x1]  ;;  %v1437_v62 = vsel %vm13964_vm5, %v10660_v2, %v1436_v52 }
  0x70   : > { %11962 = vmatprep.subr.bf16.mxu0 %v13271_v57  ;;  %v1432_v28 = vrot.slane %v13490_v8, 5 }
  0x72   : > { %v1433_v44 = vsel %vm13964_vm5, %v1431_v21, %v1432_v28  ;;  %v13500_v28 = vld [vmem:[#allocation2 + $0x40] sm:$0xf] }
  0x73   : > { %11963 = vmatpush3.bf16.msra.mxu0 %v13271_v57  ;;  %v10691_v37 = vcombine.low %v1430_v46, %v1433_v44  ;;  %v1440_v57 = vsel %vm13964_vm5, %v1438_v53, %v1439_v49  ;;  %v1464_v63 = vrot.slane %v13500_v28, 5  ;;  %v10665_v46 = vrot.slane %v1382_v16, 9  ;;  %v1383_v53 = vld [vmem:[#allocation2 + $0x54] sm:$0xe] }
  0x74   : > { %11964 = vmatprep.subr.bf16.mxu0 %v13274_v5  ;;  %v1474_v49 = vrot.slane %v13503_v32, 5 }
  0x75   : > { %v1466_v14 = vrot.slane %v1464_v63, 4 }
  0x76   : > { %11933 = vmatmul.mubr.bf16.gmra.mrb[4].mxu0 %v10638_v6 }
  0x77   : > { %11936 = vmatprep.mubr.bf16.mxu0 %v10639_v39  ;;  %11965 = vmatpush3.bf16.msra.mxu0 %v13274_v5  ;;  %v13496_v5 = vld [vmem:[#allocation2 + $0x28] sm:$0xf]  ;;  %v1447_v39 = vsel %vm13964_vm5, %v1445_v43, %v1446_v54  ;;  %v1468_v2 = vsel %vm13964_vm5, %v1466_v14, %v1467_v38  ;;  %v1478_v43 = vrot.slane %v13504_v24, 5  ;;  %v1513_v14 = vrot.slane %v13842_v29, 5  ;;  %v1388_v38 = vld [vmem:[#allocation2 + $0x90] sm:$0xe] }
  0x78   : > { %11966 = vmatprep.subr.bf16.mxu0 %v13277_v40  ;;  %v1450_v6 = vrot.slane %v13496_v5, 5 }
  0x7b   : > { %11967 = vmatpush3.bf16.msra.mxu0 %v13277_v40  ;;  %v13497_v40 = vld [vmem:[#allocation2 + $0x34] sm:$0xf] }
  0x7c   : > { %11968 = vmatprep.subr.bf16.mxu0 %v13280_v50 }
  0x7e   : > { %11937 = vmatmul.mubr.bf16.gmra.mrb[8].mxu0 %v10640_v55  ;;  %v10692_v55 = vcombine.low %v1437_v62, %v1440_v57  ;;  %v13294_v62 = vld [vmem:[%s16723_s1 + $0xe0] sm:$0xff]  }
  0x7f   : > { %11940 = vmatprep.mubr.bf16.mxu0 %v10641_v1  ;;  %11969 = vmatpush3.bf16.msra.mxu0 %v13280_v50  ;;  %v1457_v50 = vrot.slane %v13497_v40, 5  ;;  %v10662_v1 = vrot.slane %v1379_v35, 9  ;;  %v13505_v35 = vld [vmem:[#allocation2 + $0x64] sm:$0xf]  ;;  %v1384_v57 = vld [vmem:[#allocation2 + $0x60] sm:$0xe] }
  0x80   : > { %11970 = vmatprep.subr.bf16.mxu0 %v13283_v10  ;;  %v13506_v40 = vld [vmem:[#allocation2 + $0x5c] sm:$0x1] }
  0x83   : > { %11971 = vmatpush3.bf16.msra.mxu0 %v13283_v10  ;;  %v10693_v10 = vcombine.low %v1444_v56, %v1447_v39  ;;  %v10666_v56 = vrot.slane %v1383_v53, 9  ;;  %v1480_v39 = vrot.slane %v1478_v43, 4 }
  0x84   : > { %11972 = vmatprep.subr.bf16.mxu0 %v13286_v26 }
  0x86   : > { %11941 = vmatmul.mubr.bf16.gmra.mrb[12].mxu0 %v10642_v31  ;;  %v13498_v31 = vld [vmem:[#allocation2 + $0x2c] sm:$0x1] }
  0x87   : > { %11944 = vmatprep.mubr.bf16.mxu0 %v10643_v51  ;;  %11973 = vmatpush3.bf16.msra.mxu0 %v13286_v26  ;;  %v1452_v26 = vrot.slane %v1450_v6, 4  ;;  %v13291_v51 = vld [vmem:[%s16723_s1 + $0xc8] sm:$0xff]  }
  0x88   : > { %11974 = vmatprep.subr.bf16.mxu0 %v13289_v45 }
  0x8b   : > { %11975 = vmatpush3.bf16.msra.mxu0 %v13289_v45  ;;  %v1453_v45 = vrot.slane %v13498_v31, 5  ;;  %v1479_v31 = vsel %vm13964_vm5, %v10666_v56, %v1478_v43  ;;  %v1520_v43 = vrot.slane %v13855_v59, 5  ;;  %v16807_v56 = vld [vmem:[#allocation4_spill] sm:$0xff]  ;;  %v1530_v59 = vrot.slane %v13876_v58, 5 }
  0x8c   : > { %12008 = vmatprep.subr.bf16.mxu0 %v13953_v0 }
  0x8d   : > { %v1454_v8 = vsel %vm13964_vm5, %v1452_v26, %v1453_v45  ;;  %v13295_v26 = vld [vmem:[%s16723_s1 + $0xe8] sm:$0xff]  }
  0x8e   : > { %11945 = vmatmul.mubr.bf16.gmra.mrb[16].mxu0 %v10644_v20  ;;  %v10663_v20 = vrot.slane %v1380_v60, 9  ;;  %v1485_v60 = vrot.slane %v13505_v35, 5  ;;  %v1527_v35 = vrot.slane %v13872_v41, 5  ;;  %v1534_v41 = vrot.slane %v13884_v7, 5 }
  0x8f   : > { %11948 = vmatprep.mubr.bf16.mxu0 %v10645_v42  ;;  %v1459_v42 = vrot.slane %v1457_v50, 4 }
  0x90   : > { %v1458_v13 = vsel %vm13964_vm5, %v10663_v20, %v1457_v50  ;;  %v1481_v50 = vrot.slane %v13506_v40, 5 }
  0x92   : > { %v1482_v45 = vsel %vm13964_vm5, %v1480_v39, %v1481_v50  ;;  %v1523_v39 = vrot.slane %v16807_v56, 5  ;;  %v1529_v50 = vrot.slane %v1527_v35, 4 }
  0x93   : > { %v10698_v28 = vcombine.low %v1479_v31, %v1482_v45  ;;  %v1391_v45 = vld [vmem:[#allocation2 + $0xb4] sm:$0xe] }
  0x94   : > { %v1531_v31 = vsel %vm13964_vm5, %v1529_v50, %v1530_v59 }
  0x96   : > { %11949 = vmatmul.mubr.bf16.gmra.mrb[20].mxu0 %v10646_v48  ;;  %v13499_v48 = vld [vmem:[#allocation2 + $0x38] sm:$0x1] }
  0x97   : > { %11952 = vmatprep.mubr.bf16.mxu0 %v10647_v15  ;;  %v1460_v9 = vrot.slane %v13499_v48, 5  ;;  %v1451_v15 = vsel %vm13964_vm5, %v10662_v1, %v1450_v6  ;;  %v1487_v1 = vrot.slane %v1485_v60, 4  ;;  %v1385_v48 = vld [vmem:[#allocation2 + $0x6c] sm:$0xe] }
  0x98   : > { %v10694_v3 = vcombine.low %v1451_v15, %v1454_v8  ;;  %v13296_v15 = vld [vmem:[%s16723_s1 + $0xf0] sm:$0xff]   ;;  %v1386_v8 = vld [vmem:[#allocation2 + $0x78] sm:$0xe] }
  0x99   : > { %v1461_v61 = vsel %vm13964_vm5, %v1459_v42, %v1460_v9  ;;  %v1499_v9 = vrot.slane %v13802_v17, 5  ;;  %v13297_v17 = vld [vmem:[%s16723_s1 + $0xf8] sm:$0xff]  }
  0x9a   : > { %v10695_v22 = vcombine.low %v1458_v13, %v1461_v61  ;;  %v10668_v13 = vrot.slane %v1385_v48, 9 }
  0x9e   : > { %11953 = vmatmul.mubr.bf16.gmra.mrb[24].mxu0 %v10648_v19  ;;  %v1381_v19 = vld [vmem:[#allocation2 + $0x3c] sm:$0xe] }
  0x9f   : > { %11956 = vmatprep.mubr.bf16.mxu0 %v10649_v23  ;;  %v13501_v23 = vld [vmem:[#allocation2 + $0x4c] sm:$0xf]  ;;  %v10664_v52 = vrot.slane %v1381_v19, 9  ;;  %v1495_v19 = vrot.slane %v13795_v11, 5  ;;  %v1506_v11 = vrot.slane %v13819_v34, 5  ;;  %v1509_v34 = vrot.slane %v13829_v12, 5 }
  0xa0   : > { %v1471_v21 = vrot.slane %v13501_v23, 5  ;;  %v1501_v23 = vrot.slane %v1499_v9, 4 }
  0xa2   : > { %v1473_v44 = vrot.slane %v1471_v21, 4  ;;  %v1472_v47 = vsel %vm13964_vm5, %v10665_v46, %v1471_v21  ;;  %v1502_v21 = vrot.slane %v13807_v30, 5 }
  0xa4   : > { %v1475_v54 = vsel %vm13964_vm5, %v1473_v44, %v1474_v49  ;;  %v1508_v49 = vrot.slane %v1506_v11, 4 }
  0xa5   : > { %v10697_v6 = vcombine.low %v1472_v47, %v1475_v54  ;;  %v1389_v54 = vld [vmem:[#allocation2 + $0x9c] sm:$0xe] }
  0xa6   : > { %11957 = vmatmul.mubr.bf16.gmra.mrb[28].mxu0 %v10650_v18  ;;  %v13293_v18 = vld [vmem:[%s16723_s1 + $0xd8] sm:$0xff]   ;;  %v1510_v24 = vsel %vm13964_vm5, %v1508_v49, %v1509_v34 }
  0xa7   : > { %11976 = vmatprep.mubr.bf16.mxu0 %v10691_v37  ;;  %v1465_v37 = vsel %vm13964_vm5, %v10664_v52, %v1464_v63  ;;  %v1503_v52 = vsel %vm13964_vm5, %v1501_v23, %v1502_v21  ;;  %v13304_v21 = vld [vmem:[#allocation2 + $0x3c] sm:$0xff]   ;;  %v13307_v34 = vld [vmem:[#allocation2 + $0x54] sm:$0xff]  }
  0xa8   : > { %v10696_v5 = vcombine.low %v1465_v37, %v1468_v2  ;;  %v1515_v37 = vrot.slane %v1513_v14, 4  ;;  %v16806_v2 = vld [vmem:[#allocation3_spill] sm:$0xff] }
  0xa9   : > { %v1516_v53 = vrot.slane %v16806_v2, 5  ;;  %v13315_v2 = vld [vmem:[%s16723_s1 + $0x128] sm:$0xff]  }
  0xab   : > { %v1517_v12 = vsel %vm13964_vm5, %v1515_v37, %v1516_v53  ;;  %v14102_v53 = vld [vmem:[#allocation2 + $0x20] sm:$0x1] }
  0xae   : > { %11977 = vmatmul.mubr.bf16.vlgmr.msra.gmra.mrb[0].mxu0 %v10692_v55  ;;  %v10667_v55 = vrot.slane %v1384_v57, 9 }
  0xaf   : > { %12009 = vmatpush3.bf16.msra.mxu0 %v13953_v0  ;;  %11980 = vmatprep.mubr.bf16.mxu0 %v10693_v10  ;;  %v13292_v0 = vld [vmem:[%s16723_s1 + $0xd0] sm:$0xff]   ;;  %v1488_v10 = vrot.slane %v13771_v33, 5 }
  0xb0   : > { %12010 = vmatprep.subr.bf16.mxu0 %v13291_v51  ;;  %v1486_v42 = vsel %vm13964_vm5, %v10667_v55, %v1485_v60  ;;  %v1390_v60 = vld [vmem:[#allocation2 + $0xa8] sm:$0xe] }
  0xb1   : > { %v1489_v33 = vsel %vm13964_vm5, %v1487_v1, %v1488_v10  ;;  %v10673_v40 = vrot.slane %v1390_v60, 9  ;;  %v280_v10 = vld [vmem:[%s13614_s6 + $0xbc] sm:$0x1] }
  0xb2   : > { %v10699_v63 = vcombine.low %v1486_v42, %v1489_v33  ;;  %329 = vst [vmem:[#allocation2 + $0xc8] sm:$0x1] %v280_v10  ;;  %v1536_v42 = vrot.slane %v1534_v41, 4  ;;  %v1537_v33 = vrot.slane %v13890_v4, 5  ;;  %v2248_v4 = vld [vmem:[#allocation2 + $0x10] sm:$0xf] }
  0xb3   : > { %12011 = vmatpush3.bf16.msra.mxu0 %v13291_v51  ;;  %v13507_v51 = vld [vmem:[#allocation2 + $0x70] sm:$0xf]  ;;  %v14123_v10 = vld [vmem:[#allocation2 + $0x2c] sm:$0x1] }
  0xb4   : > { %12012 = vmatprep.subr.bf16.mxu0 %v13292_v0  ;;  %v1492_v20 = vrot.slane %v13507_v51, 5  ;;  %v1538_v48 = vsel %vm13964_vm5, %v1536_v42, %v1537_v33 }
  0xb6   : > { %11981 = vmatmul.mubr.bf16.gmra.mrb[4].mxu0 %v10694_v3  ;;  %v1494_v61 = vrot.slane %v1492_v20, 4  ;;  %v1493_v16 = vsel %vm13964_vm5, %v10668_v13, %v1492_v20  ;;  %v10674_v20 = vrot.slane %v1391_v45, 9  ;;  %v2247_v13 = vld [vmem:[#allocation2 + $0xc] sm:$0xf] }
  0xb7   : > { %11984 = vmatprep.mubr.bf16.mxu0 %v10695_v22  ;;  %12013 = vmatpush3.bf16.msra.mxu0 %v13292_v0  ;;  %v10669_v0 = vrot.slane %v1386_v8, 9  ;;  %v1387_v22 = vld [vmem:[#allocation2 + $0x84] sm:$0xe]  ;;  %v13299_v8 = vld [vmem:[#allocation2 + $0x18] sm:$0xff]   ;;  %v2299_v23 = vshll.u32 %v2247_v13, 16 }
  0xb8   : > { %12014 = vmatprep.subr.bf16.mxu0 %v13293_v18  ;;  %v1496_v3 = vsel %vm13964_vm5, %v1494_v61, %v1495_v19  ;;  %v10670_v32 = vrot.slane %v1387_v22, 9  ;;  %v1535_v7 = vsel %vm13964_vm5, %v10674_v20, %v1534_v41  ;;  %v13302_v61 = vld [vmem:[#allocation2 + $0x30] sm:$0xff]   ;;  %v2250_v22 = vld [vmem:[#allocation2 + $0x18] sm:$0xf]  ;;  %v14135_v20 = vld [vmem:[%s16723_s1 + $0x140] sm:$0xff]  }
  0xb9   : > { %v1500_v30 = vsel %vm13964_vm5, %v10669_v0, %v1499_v9  ;;  %v10700_v46 = vcombine.low %v1493_v16, %v1496_v3  ;;  %v10706_v9 = vcombine.low %v1535_v7, %v1538_v48  ;;  %v13306_v19 = vld [vmem:[%s16723_s1 + $0x110] sm:$0xff]   ;;  %v2296_v0 = vshrl.u32 %v2247_v13, 16  ;;  %v13309_v3 = vld [vmem:[%s16723_s1 + $0x118] sm:$0xff]  }
  0xba   : > { %v10701_v44 = vcombine.low %v1500_v30, %v1503_v52  ;;  %v1507_v29 = vsel %vm13964_vm5, %v10670_v32, %v1506_v11  ;;  %v2309_v16 = vshrl.u32 %v2248_v4, 16  ;;  %v14088_v11 = vld [vmem:[#allocation2 + $0x14] sm:$0x1]  ;;  %v14090_v30 = vld [vmem:[#allocation2 + $0x1c] sm:$0xf]  ;;  %v13312_v52 = vld [vmem:[%s16723_s1 + $0x120] sm:$0xff]  }
  0xbb   : > { %12015 = vmatpush3.bf16.msra.mxu0 %v13293_v18  ;;  %v10671_v18 = vrot.slane %v1388_v38, 9  ;;  %v2320_v38 = vshrl.u32 %v2250_v22, 16  ;;  %v2329_v37 = vshll.u32 %v14090_v30, 16  ;;  %v2256_v41 = vld [vmem:[#allocation2 + $0x30] sm:$0xf] }
  0xbc   : > { %12016 = vmatprep.subr.bf16.mxu0 %v13294_v62  ;;  %v2311_v49 = vrot.slane %v2309_v16, 4  ;;  %v2368_v48 = vshrl.u32 %v2256_v41, 16  ;;  %v2259_v16 = vld [vmem:[#allocation2 + $0x3c] sm:$0xf] }
  0xbd   : > { %v1514_v47 = vsel %vm13964_vm5, %v10671_v18, %v1513_v14  ;;  %v2298_v14 = vrot.slane %v2296_v0, 4  ;;  %v2315_v18 = vshll.u32 %v14088_v11, 16  ;;  %v14110_v60 = vrot.slane %v2329_v37, 5 }
  0xbe   : > { %11985 = vmatmul.mubr.bf16.gmra.mrb[8].mxu0 %v10696_v5  ;;  %v10703_v57 = vcombine.low %v1514_v47, %v1517_v12  ;;  %v10672_v5 = vrot.slane %v1389_v54, 9  ;;  %v2253_v12 = vld [vmem:[#allocation2 + $0x24] sm:$0xf]  ;;  %v13318_v54 = vld [vmem:[%s16723_s1 + $0x130] sm:$0xff]  }
  0xbf   : > { %11988 = vmatprep.mubr.bf16.mxu0 %v10697_v6  ;;  %12017 = vmatpush3.bf16.msra.mxu0 %v13294_v62  ;;  %v10702_v62 = vcombine.low %v1507_v29, %v1510_v24  ;;  %v1522_v6 = vrot.slane %v1520_v43, 4  ;;  %v2344_v50 = vshrl.u32 %v2253_v12, 16  ;;  %v2347_v59 = vshll.u32 %v2253_v12, 16 }
  0xc0   : > { %12018 = vmatprep.subr.bf16.mxu0 %v13295_v26  ;;  %v1521_v55 = vsel %vm13964_vm5, %v10672_v5, %v1520_v43  ;;  %v2322_v43 = vrot.slane %v2320_v38, 4  ;;  %v13308_v5 = vld [vmem:[#allocation2 + $0x60] sm:$0xff]  }
  0xc1   : > { %v1524_v1 = vsel %vm13964_vm5, %v1522_v6, %v1523_v39  ;;  %v13310_v39 = vld [vmem:[#allocation2 + $0x6c] sm:$0xff]   ;;  %v2346_v42 = vrot.slane %v2344_v50, 4  ;;  %v2349_v33 = vrot.slane %v2347_v59, 5 }
  0xc2   : > { %v10704_v58 = vcombine.low %v1521_v55, %v1524_v1  ;;  %v13321_v55 = vld [vmem:[%s16723_s1 + $0x138] sm:$0xff]   ;;  %v13317_v59 = vld [vmem:[#allocation2 + $0xa8] sm:$0xff]  }
  0xc3   : > { %12019 = vmatpush3.bf16.msra.mxu0 %v13295_v26  ;;  %v1528_v26 = vsel %vm13964_vm5, %v10673_v40, %v1527_v35  ;;  %v14108_v35 = vrot.slane %v2315_v18, 5  ;;  %v14118_v40 = vld [vmem:[#allocation2 + $0x28] sm:$0xf]  ;;  %v2395_v18 = vshll.u32 %v2259_v16, 16 }
  0xc4   : > { %12020 = vmatprep.subr.bf16.mxu0 %v13296_v15  ;;  %v10705_v51 = vcombine.low %v1528_v26, %v1531_v31  ;;  %v2357_v7 = vshrl.u32 %v14118_v40, 16 }
  0xc6   : > { %11989 = vmatmul.mubr.bf16.gmra.mrb[12].mxu0 %v10698_v28  ;;  %v13301_v28 = vld [vmem:[#allocation2 + $0x24] sm:$0xff]  }
  0xc7   : > { %11992 = vmatprep.mubr.bf16.mxu0 %v10699_v63  ;;  %12021 = vmatpush3.bf16.msra.mxu0 %v13296_v15  ;;  %v13298_v15 = vld [vmem:[#allocation2 + $0xc] sm:$0xff]  }
  0xc8   : > { %12022 = vmatprep.subr.bf16.mxu0 %v13297_v17  ;;  %v13303_v63 = vld [vmem:[%s16723_s1 + $0x108] sm:$0xff]  }
  0xcb   : > { %12023 = vmatpush3.bf16.msra.mxu0 %v13297_v17  ;;  %v2305_v17 = vshll.u32 %v2248_v4, 16 }
  0xcc   : > { %12056 = vmatprep.subr.bf16.mxu0 %v13300_v27 }
  0xcd   : > { %v14095_v32 = vrot.slane %v2305_v17, 5 }
  0xce   : > { %11993 = vmatmul.mubr.bf16.gmra.mrb[16].mxu0 %v10700_v46  ;;  %v2323_v46 = vshll.u32 %v2250_v22, 16 }
  0xcf   : > { %11996 = vmatprep.mubr.bf16.mxu0 %v10701_v44  ;;  %v13305_v44 = vld [vmem:[#allocation2 + $0x48] sm:$0xff]   ;;  %v2312_v24 = vor.u32 %v2311_v49, %v14095_v32  ;;  %v14156_v49 = vld [vmem:[#allocation2 + $0x40] sm:$0xf] }
  0xd0   : > { %v2325_v47 = vrot.slane %v2323_v46, 5  ;;  %v2405_v50 = vshrl.u32 %v14156_v49, 16 }
  0xd1   : > { %v14116_v56 = vrot.slane %v2312_v24, 4  ;;  %v2262_v24 = vld [vmem:[#allocation2 + $0x48] sm:$0xf] }
  0xd2   : > { %v2326_v1 = vor.u32 %v2325_v47, %v2322_v43 }
  0xd4   : > { %v14125_v26 = vrot.slane %v2326_v1, 4  ;;  %v2419_v1 = vshll.u32 %v2262_v24, 16 }
  0xd6   : > { %11997 = vmatmul.mubr.bf16.gmra.mrb[20].mxu0 %v10702_v62  ;;  %v2333_v62 = vshrl.u32 %v14090_v30, 16 }
  0xd7   : > { %12000 = vmatprep.mubr.bf16.mxu0 %v10703_v57  ;;  %v2339_v57 = vshll.u32 %v14102_v53, 16 }
  0xd8   : > { %v2335_v31 = vrot.slane %v2333_v62, 4  ;;  %v14167_v62 = vld [vmem:[#allocation2 + $0x4c] sm:$0xf] }
  0xd9   : > { %v14127_v45 = vrot.slane %v2339_v57, 5 }
  0xda   : > { %v2336_v4 = vor.u32 %v2335_v31, %v14110_v60  ;;  %v14170_v31 = vld [vmem:[#allocation2 + $0x44] sm:$0x1] }
  0xde   : > { %12001 = vmatmul.mubr.bf16.gmra.mrb[24].mxu0 %v10704_v58  ;;  %v2353_v58 = vshll.u32 %v14118_v40, 16 }
  0xdf   : > { %12004 = vmatprep.mubr.bf16.mxu0 %v10705_v51  ;;  %v14130_v51 = vld [vmem:[#allocation2 + $0x34] sm:$0xf] }
  0xe0   : > { %v2381_v13 = vshrl.u32 %v14130_v51, 16  ;;  %v14145_v0 = vrot.slane %v2353_v58, 5  ;;  %v2425_v58 = vshll.u32 %v14167_v62, 16 }
  0xe6   : > { %12005 = vmatmul.mubr.bf16.gmra.mrb[28].mxu0 %v10706_v9  ;;  %v13311_v9 = vld [vmem:[#allocation2 + $0x78] sm:$0xff]  }
  0xe7   : > { %12024 = vmatprep.mubr.bf16.mxu0 %v13298_v15  ;;  %v2363_v15 = vshll.u32 %v14123_v10, 16 }
  0xe9   : > { %v14153_v38 = vrot.slane %v2363_v15, 5  ;;  %v2411_v15 = vshll.u32 %v14170_v31, 16 }
  0xee   : > { %12025 = vmatmul.mubr.bf16.vlgmr.msra.gmra.mrb[0].mxu0 %v13299_v8  ;;  %v2371_v8 = vshll.u32 %v2256_v41, 16  ;;  %v13319_v41 = vld [vmem:[#allocation2 + $0xb4] sm:$0xff]  }
  0xef   : > { %12057 = vmatpush3.bf16.msra.mxu0 %v13300_v27  ;;  %12028 = vmatprep.mubr.bf16.mxu0 %v13301_v28  ;;  %v2301_v27 = vrot.slane %v2299_v23, 5  ;;  %v13313_v28 = vld [vmem:[#allocation2 + $0x84] sm:$0xff]   ;;  %v2359_v23 = vrot.slane %v2357_v7, 4 }
  0xf0   : > { %12058 = vmatprep.subr.bf16.mxu0 %v13303_v63  ;;  %v2373_v17 = vrot.slane %v2371_v8, 5 }
  0xf1   : > { %v2302_v29 = vor.u32 %v2301_v27, %v2298_v14  ;;  %v2383_v14 = vrot.slane %v2381_v13, 4  ;;  %v13314_v27 = vld [vmem:[#allocation2 + $0x90] sm:$0xff]   ;;  %v2360_v37 = vor.u32 %v2359_v23, %v14145_v0  ;;  %v2421_v13 = vrot.slane %v2419_v1, 5  ;;  %v13320_v23 = vld [vmem:[#allocation2 + $0xc0] sm:$0xff]  }
  0xf3   : > { %12059 = vmatpush3.bf16.msra.mxu0 %v13303_v63  ;;  %v14114_v6 = vrot.slane %v2302_v29, 4  ;;  %v2377_v63 = vshll.u32 %v14130_v51, 16  ;;  %v14160_v43 = vrot.slane %v2360_v37, 4 }
  0xf4   : > { %12060 = vmatprep.subr.bf16.mxu0 %v13306_v19 }
  0xf5   : > { %v2366_v37 = vsel %vm13635_vm2, %v14160_v43, %v14153_v38 }
  0xf6   : > { %12029 = vmatmul.mubr.bf16.gmra.mrb[4].mxu0 %v13302_v61  ;;  %v2350_v61 = vor.u32 %v2349_v33, %v2346_v42  ;;  %v2429_v42 = vshrl.u32 %v14167_v62, 16  ;;  %v2265_v33 = vld [vmem:[#allocation2 + $0x54] sm:$0xf] }
  0xf7   : > { %12032 = vmatprep.mubr.bf16.mxu0 %v13304_v21  ;;  %12061 = vmatpush3.bf16.msra.mxu0 %v13306_v19  ;;  %v14142_v19 = vld [vmem:[#allocation2 + $0x38] sm:$0x1]  ;;  %v2370_v21 = vrot.slane %v2368_v48, 4 }
  0xf8   : > { %12062 = vmatprep.subr.bf16.mxu0 %v13309_v3  ;;  %v14149_v22 = vrot.slane %v2350_v61, 4  ;;  %v2387_v46 = vshll.u32 %v14142_v19, 16  ;;  %v2440_v61 = vshrl.u32 %v2265_v33, 16 }
  0xfa   : > { %v14164_v12 = vrot.slane %v2387_v46, 5 }
  0xfb   : > { %12063 = vmatpush3.bf16.msra.mxu0 %v13309_v3  ;;  %v14147_v3 = vrot.slane %v2336_v4, 4  ;;  %v14181_v4 = vrot.slane %v2425_v58, 5  ;;  %v2271_v58 = vld [vmem:[#allocation2 + $0x6c] sm:$0xf] }
  0xfc   : > { %12064 = vmatprep.subr.bf16.mxu0 %v13312_v52 }
  0xfe   : > { %12033 = vmatmul.mubr.bf16.gmra.mrb[8].mxu0 %v13305_v44  ;;  %v13316_v44 = vld [vmem:[#allocation2 + $0x9c] sm:$0xff]  }
  0xff   : > { %12036 = vmatprep.mubr.bf16.mxu0 %v13307_v34  ;;  %12065 = vmatpush3.bf16.msra.mxu0 %v13312_v52  ;;  %v14151_v52 = vrot.slane %v2377_v63, 5  ;;  %v2392_v34 = vshrl.u32 %v2259_v16, 16  ;;  %v2431_v16 = vrot.slane %v2429_v42, 4  ;;  %v14231_v42 = vld [vmem:[#allocation2 + $0x70] sm:$0xf] }
 0x100   : > { %12066 = vmatprep.subr.bf16.mxu0 %v13315_v2 }
 0x101   : > { %v2384_v29 = vor.u32 %v2383_v14, %v14151_v52  ;;  %v2443_v14 = vshll.u32 %v2265_v33, 16  ;;  %v13323_v33 = vld [vmem:[%s16723_s1 + $0x148] sm:$0xff]  }
 0x103   : > { %12067 = vmatpush3.bf16.msra.mxu0 %v13315_v2  ;;  %v2374_v2 = vor.u32 %v2373_v17, %v2370_v21  ;;  %v2385_v57 = vrot.slane %v2384_v29, 4  ;;  %v2308_v21 = vsel %vm13635_vm2, %v14114_v6, %v14095_v32  ;;  %v2318_v17 = vsel %vm13635_vm2, %v14116_v56, %v14108_v35 }
 0x104   : > { %12068 = vmatprep.subr.bf16.mxu0 %v13318_v54  ;;  %v2332_v32 = vsel %vm13635_vm2, %v14125_v26, %v14110_v60  ;;  %v2342_v35 = vsel %vm13635_vm2, %v14147_v3, %v14127_v45  ;;  %v2356_v56 = vsel %vm13635_vm2, %v14149_v22, %v14145_v0  ;;  %v2445_v60 = vrot.slane %v2443_v14, 5  ;;  %v14212_v26 = vld [vmem:[#allocation2 + $0x64] sm:$0xf]  ;;  %v14250_v14 = vld [vmem:[#allocation2 + $0x68] sm:$0x1] }
 0x105   : > { %v14162_v47 = vrot.slane %v2374_v2, 4  ;;  %v2442_v2 = vrot.slane %v2440_v61, 4  ;;  %v2390_v3 = vsel %vm13635_vm2, %v2385_v57, %v14164_v12  ;;  %v2432_v12 = vor.u32 %v2431_v16, %v14181_v4  ;;  %v14248_v16 = vld [vmem:[#allocation2 + $0x7c] sm:$0xf] }
 0x106   : > { %12037 = vmatmul.mubr.bf16.gmra.mrb[12].mxu0 %v13308_v5  ;;  %v2394_v5 = vrot.slane %v2392_v34, 4  ;;  %v14193_v34 = vld [vmem:[#allocation2 + $0x50] sm:$0x1] }
 0x107   : > { %12040 = vmatprep.mubr.bf16.mxu0 %v13310_v39  ;;  %12069 = vmatpush3.bf16.msra.mxu0 %v13318_v54  ;;  %v2401_v54 = vshll.u32 %v14156_v49, 16  ;;  %v2397_v39 = vrot.slane %v2395_v18, 5  ;;  %v2268_v18 = vld [vmem:[#allocation2 + $0x60] sm:$0xf]  ;;  %v2380_v45 = vsel %vm13635_vm2, %v14162_v47, %v14151_v52  ;;  %v2435_v38 = vshll.u32 %v14193_v34, 16 }
 0x108   : > { %12070 = vmatprep.subr.bf16.mxu0 %v13321_v55  ;;  %v2464_v43 = vshrl.u32 %v2268_v18, 16  ;;  %v2477_v52 = vshrl.u32 %v14212_v26, 16  ;;  %v10772_v47 = vcombine.low %v2332_v32, %v2342_v35  ;;  %v2446_v57 = vor.u32 %v2445_v60, %v2442_v2 }
 0x109   : > { %v2398_v7 = vor.u32 %v2397_v39, %v2394_v5  ;;  %v14174_v48 = vrot.slane %v2401_v54, 5  ;;  %v2467_v54 = vshll.u32 %v2268_v18, 16  ;;  %v2413_v39 = vrot.slane %v2411_v15, 5 }
 0x10a   : > { %v2466_v15 = vrot.slane %v2464_v43, 4  ;;  %v2501_v18 = vshrl.u32 %v14231_v42, 16  ;;  %v2521_v2 = vshll.u32 %v14248_v16, 16  ;;  %v2525_v60 = vshrl.u32 %v14248_v16, 16 }
 0x10b   : > { %12071 = vmatpush3.bf16.msra.mxu0 %v13321_v55  ;;  %v2416_v55 = vshrl.u32 %v2262_v24, 16  ;;  %v14179_v63 = vrot.slane %v2398_v7, 4  ;;  %v14224_v24 = vld [vmem:[#allocation2 + $0x5c] sm:$0x1] }
 0x10c   : > { %12104 = vmatprep.subr.bf16.mxu0 %v14135_v20 }
 0x10d   : > { %v2418_v8 = vrot.slane %v2416_v55, 4  ;;  %v10774_v55 = vcombine.low %v2380_v45, %v2390_v3 }
 0x10e   : > { %12041 = vmatmul.mubr.bf16.gmra.mrb[16].mxu0 %v13311_v9  ;;  %v2407_v9 = vrot.slane %v2405_v50, 4  ;;  %v2473_v50 = vshll.u32 %v14212_v26, 16 }
 0x10f   : > { %12044 = vmatprep.mubr.bf16.mxu0 %v13313_v28  ;;  %v14177_v28 = vld [vmem:[#allocation2 + $0x58] sm:$0xf]  ;;  %v2422_v29 = vor.u32 %v2421_v13, %v2418_v8  ;;  %v2469_v8 = vrot.slane %v2467_v54, 5  ;;  %v2404_v13 = vsel %vm13635_vm2, %v14179_v63, %v14174_v48  ;;  %v2447_v63 = vrot.slane %v2446_v57, 4 }
 0x110   : > { %v2453_v46 = vshrl.u32 %v14177_v28, 16  ;;  %v2408_v6 = vor.u32 %v2407_v9, %v14174_v48  ;;  %v14238_v9 = vrot.slane %v2435_v38, 5  ;;  %v2433_v48 = vrot.slane %v2432_v12, 4  ;;  %v2277_v12 = vld [vmem:[#allocation2 + $0x84] sm:$0xf] }
 0x111   : > { %v14236_v7 = vrot.slane %v2422_v29, 4  ;;  %v2470_v3 = vor.u32 %v2469_v8, %v2466_v15  ;;  %v14262_v29 = vld [vmem:[#allocation2 + $0x74] sm:$0x1]  ;;  %v14292_v15 = vld [vmem:[#allocation2 + $0x80] sm:$0x1] }
 0x112   : > { %v2455_v22 = vrot.slane %v2453_v46, 4  ;;  %v2409_v5 = vrot.slane %v2408_v6, 4  ;;  %v2491_v46 = vshll.u32 %v2271_v58, 16  ;;  %v13324_v6 = vld [vmem:[%s16723_s1 + $0x150] sm:$0xff]  }
 0x114   : > { %v2414_v61 = vsel %vm13635_vm2, %v2409_v5, %v2413_v39  ;;  %v2493_v43 = vrot.slane %v2491_v46, 5  ;;  %v2503_v5 = vrot.slane %v2501_v18, 4  ;;  %v2428_v39 = vsel %vm13635_vm2, %v14236_v7, %v14181_v4 }
 0x115   : > { %v10775_v45 = vcombine.low %v2404_v13, %v2414_v61  ;;  %v14281_v4 = vrot.slane %v2521_v2, 5  ;;  %v2536_v61 = vshrl.u32 %v2277_v12, 16  ;;  %v14312_v2 = vld [vmem:[#allocation2 + $0x94] sm:$0xf] }
 0x116   : > { %12045 = vmatmul.mubr.bf16.gmra.mrb[20].mxu0 %v13314_v27  ;;  %v2449_v27 = vshll.u32 %v14177_v28, 16 }
 0x117   : > { %12048 = vmatprep.mubr.bf16.mxu0 %v13316_v44  ;;  %v10771_v44 = vcombine.low %v2308_v21, %v2318_v17  ;;  %v2479_v21 = vrot.slane %v2477_v52, 4  ;;  %v2274_v17 = vld [vmem:[#allocation2 + $0x78] sm:$0xf] }
 0x118   : > { %v14221_v0 = vrot.slane %v2449_v27, 5  ;;  %v2488_v27 = vshrl.u32 %v2271_v58, 16  ;;  %v14283_v58 = vld [vmem:[#allocation2 + $0x88] sm:$0xf] }
 0x11a   : > { %v2456_v1 = vor.u32 %v2455_v22, %v14221_v0  ;;  %v2483_v22 = vshll.u32 %v14250_v14, 16  ;;  %v2490_v38 = vrot.slane %v2488_v27, 4  ;;  %v2452_v52 = vsel %vm13635_vm2, %v2447_v63, %v14221_v0  ;;  %v2280_v63 = vld [vmem:[#allocation2 + $0x90] sm:$0xf] }
 0x11b   : > { %v2549_v27 = vshrl.u32 %v14283_v58, 16 }
 0x11c   : > { %v2457_v32 = vrot.slane %v2456_v1, 4  ;;  %v14289_v0 = vrot.slane %v2483_v22, 5  ;;  %v2494_v8 = vor.u32 %v2493_v43, %v2490_v38  ;;  %v2283_v22 = vld [vmem:[#allocation2 + $0x9c] sm:$0xf] }
 0x11d   : > { %v2551_v43 = vrot.slane %v2549_v27, 4 }
 0x11e   : > { %12049 = vmatmul.mubr.bf16.gmra.mrb[24].mxu0 %v13317_v59  ;;  %v10773_v59 = vcombine.low %v2356_v56, %v2366_v37  ;;  %v2512_v56 = vshrl.u32 %v2274_v17, 16  ;;  %v2515_v37 = vshll.u32 %v2274_v17, 16  ;;  %v2545_v17 = vshll.u32 %v14283_v58, 16 }
 0x11f   : > { %12052 = vmatprep.mubr.bf16.mxu0 %v13319_v41  ;;  %v2459_v41 = vshll.u32 %v14224_v24, 16 }
 0x120   : > { %v2514_v57 = vrot.slane %v2512_v56, 4  ;;  %v2517_v1 = vrot.slane %v2515_v37, 5  ;;  %v14310_v37 = vld [vmem:[#allocation2 + $0x8c] sm:$0x1]  ;;  %v14314_v38 = vrot.slane %v2545_v17, 5 }
 0x121   : > { %v2461_v35 = vrot.slane %v2459_v41, 5  ;;  %v2527_v41 = vrot.slane %v2525_v60, 4  ;;  %v2495_v60 = vrot.slane %v2494_v8, 4 }
 0x123   : > { %v2528_v18 = vor.u32 %v2527_v41, %v14281_v4  ;;  %v2584_v41 = vshrl.u32 %v2283_v22, 16 }
 0x126   : > { %12053 = vmatmul.mubr.bf16.gmra.mrb[28].mxu0 %v13320_v23  ;;  %v14246_v23 = vrot.slane %v2473_v50, 5  ;;  %v2438_v50 = vsel %vm13635_vm2, %v2433_v48, %v14238_v9  ;;  %v2507_v9 = vshll.u32 %v14262_v29, 16  ;;  %v2531_v48 = vshll.u32 %v14292_v15, 16 }
 0x127   : > { %12072 = vmatprep.mubr.bf16.mxu0 %v10771_v44  ;;  %v2497_v44 = vshll.u32 %v14231_v42, 16  ;;  %v10776_v46 = vcombine.low %v2428_v39, %v2438_v50  ;;  %v14316_v39 = vld [vmem:[#allocation2 + $0xa0] sm:$0xf] }
 0x128   : > { %v2509_v56 = vrot.slane %v2507_v9, 5  ;;  %v2593_v9 = vshll.u32 %v14316_v39, 16  ;;  %v2597_v8 = vshrl.u32 %v14316_v39, 16 }
 0x129   : > { %v14264_v54 = vrot.slane %v2497_v44, 5  ;;  %v2518_v44 = vor.u32 %v2517_v1, %v2514_v57  ;;  %v13327_v57 = vld [vmem:[%s16723_s1 + $0x168] sm:$0xff]   ;;  %v2569_v1 = vshll.u32 %v14312_v2, 16 }
 0x12b   : > { %v2504_v13 = vor.u32 %v2503_v5, %v14264_v54  ;;  %v2563_v5 = vshll.u32 %v2280_v63, 16  ;;  %v2519_v50 = vrot.slane %v2518_v44, 4  ;;  %v14337_v44 = vld [vmem:[#allocation2 + $0x98] sm:$0x1] }
 0x12d   : > { %v2565_v17 = vrot.slane %v2563_v5, 5  ;;  %v2524_v27 = vsel %vm13635_vm2, %v2519_v50, %v14281_v4  ;;  %v14346_v4 = vrot.slane %v2593_v9, 5  ;;  %v2579_v5 = vshll.u32 %v14337_v44, 16  ;;  %v14349_v50 = vld [vmem:[#allocation2 + $0xac] sm:$0xf] }
 0x12e   : > { %12073 = vmatmul.mubr.bf16.vlgmr.msra.gmra.mrb[0].mxu0 %v10772_v47  ;;  %v2462_v47 = vsel %vm13635_vm2, %v2457_v32, %v2461_v35  ;;  %16808 = vst [vmem:[#allocation3_spill] sm:$0xff] %v14349_v50 }
 0x12f   : > { %12105 = vmatpush3.bf16.msra.mxu0 %v14135_v20  ;;  %12076 = vmatprep.mubr.bf16.mxu0 %v10773_v59  ;;  %v2480_v20 = vor.u32 %v2479_v21, %v14246_v23  ;;  %v13325_v59 = vld [vmem:[%s16723_s1 + $0x158] sm:$0xff]   ;;  %v2539_v21 = vshll.u32 %v2277_v12, 16  ;;  %v10777_v32 = vcombine.low %v2452_v52, %v2462_v47  ;;  %v2529_v52 = vrot.slane %v2528_v18, 4  ;;  %v13328_v18 = vld [vmem:[%s16723_s1 + $0x170] sm:$0xff]  }
 0x130   : > { %12106 = vmatprep.subr.bf16.mxu0 %v13323_v33  ;;  %v2533_v47 = vrot.slane %v2531_v48, 5  ;;  %v2555_v12 = vshll.u32 %v14310_v37, 16  ;;  %v14342_v48 = vrot.slane %v2569_v1, 5 }
 0x131   : > { %v14287_v7 = vrot.slane %v2480_v20, 4  ;;  %v2541_v20 = vrot.slane %v2539_v21, 5 }
 0x133   : > { %12107 = vmatpush3.bf16.msra.mxu0 %v13323_v33  ;;  %v14285_v33 = vrot.slane %v2470_v3, 4  ;;  %v2538_v3 = vrot.slane %v2536_v61, 4  ;;  %v2552_v61 = vor.u32 %v2551_v43, %v14314_v38 }
 0x134   : > { %12108 = vmatprep.subr.bf16.mxu0 %v13324_v6 }
 0x135   : > { %v2476_v35 = vsel %vm13635_vm2, %v14285_v33, %v14246_v23  ;;  %v2560_v23 = vshrl.u32 %v2280_v63, 16  ;;  %v2587_v33 = vshll.u32 %v2283_v22, 16  ;;  %v2586_v63 = vrot.slane %v2584_v41, 4  ;;  %v14356_v41 = vld [vmem:[#allocation2 + $0xb8] sm:$0xf] }
 0x136   : > { %12077 = vmatmul.mubr.bf16.gmra.mrb[4].mxu0 %v10774_v55  ;;  %v13326_v55 = vld [vmem:[%s16723_s1 + $0x160] sm:$0xff]   ;;  %v2553_v43 = vrot.slane %v2552_v61, 4  ;;  %16809 = vst [vmem:[#allocation4_spill] sm:$0xff] %v14356_v41  ;;  %v2581_v61 = vrot.slane %v2579_v5, 5 }
 0x137   : > { %12080 = vmatprep.mubr.bf16.mxu0 %v10775_v45  ;;  %12109 = vmatpush3.bf16.msra.mxu0 %v13324_v6  ;;  %v2486_v6 = vsel %vm13635_vm2, %v14287_v7, %v14289_v0  ;;  %v2505_v45 = vrot.slane %v2504_v13, 4  ;;  %v2500_v7 = vsel %vm13635_vm2, %v2495_v60, %v14264_v54  ;;  %v2542_v13 = vor.u32 %v2541_v20, %v2538_v3  ;;  %v2286_v20 = vld [vmem:[#allocation2 + $0xa8] sm:$0xf] }
 0x138   : > { %12110 = vmatprep.subr.bf16.mxu0 %v13325_v59  ;;  %v2562_v21 = vrot.slane %v2560_v23, 4  ;;  %v2534_v54 = vsel %vm13635_vm2, %v2529_v52, %v2533_v47  ;;  %v2599_v3 = vrot.slane %v2597_v8, 4  ;;  %v2608_v1 = vshrl.u32 %v2286_v20, 16 }
 0x139   : > { %v2510_v0 = vsel %vm13635_vm2, %v2505_v45, %v2509_v56  ;;  %v10778_v56 = vcombine.low %v2476_v35, %v2486_v6  ;;  %v14344_v45 = vld [vmem:[#allocation2 + $0xa4] sm:$0x1]  ;;  %v2543_v22 = vrot.slane %v2542_v13, 4  ;;  %v10780_v52 = vcombine.low %v2524_v27, %v2534_v54  ;;  %v13329_v35 = vld [vmem:[%s16723_s1 + $0x178] sm:$0xff]  }
 0x13a   : > { %v10779_v60 = vcombine.low %v2500_v7, %v2510_v0  ;;  %v2566_v23 = vor.u32 %v2565_v17, %v2562_v21  ;;  %v2617_v7 = vshll.u32 %v14349_v50, 16  ;;  %v2621_v0 = vshrl.u32 %v14349_v50, 16  ;;  %v14375_v50 = vld [vmem:[#allocation2 + $0xc4] sm:$0xf] }
 0x13b   : > { %12111 = vmatpush3.bf16.msra.mxu0 %v13325_v59  ;;  %v2573_v59 = vshrl.u32 %v14312_v2, 16  ;;  %v2548_v9 = vsel %vm13635_vm2, %v2543_v22, %v14314_v38  ;;  %v2641_v27 = vshll.u32 %v14356_v41, 16  ;;  %v2645_v54 = vshrl.u32 %v14356_v41, 16 }
 0x13c   : > { %12112 = vmatprep.subr.bf16.mxu0 %v13326_v55  ;;  %v2567_v13 = vrot.slane %v2566_v23, 4 }
 0x13d   : > { %v2647_v41 = vrot.slane %v2645_v54, 4 }
 0x13e   : > { %12081 = vmatmul.mubr.bf16.gmra.mrb[8].mxu0 %v10776_v46  ;;  %v2557_v46 = vrot.slane %v2555_v12, 5  ;;  %v2603_v12 = vshll.u32 %v14344_v45, 16 }
 0x13f   : > { %12084 = vmatprep.mubr.bf16.mxu0 %v10777_v32  ;;  %12113 = vmatpush3.bf16.msra.mxu0 %v13326_v55  ;;  %v2575_v55 = vrot.slane %v2573_v59, 4  ;;  %v2589_v32 = vrot.slane %v2587_v33, 5  ;;  %v2289_v59 = vld [vmem:[#allocation2 + $0xb4] sm:$0xf]  ;;  %v2611_v33 = vshll.u32 %v2286_v20, 16  ;;  %v2623_v20 = vrot.slane %v2621_v0, 4 }
 0x140   : > { %12114 = vmatprep.subr.bf16.mxu0 %v13327_v57  ;;  %v2558_v8 = vsel %vm13635_vm2, %v2553_v43, %v2557_v46  ;;  %v2632_v21 = vshrl.u32 %v2289_v59, 16  ;;  %v2635_v17 = vshll.u32 %v2289_v59, 16  ;;  %v2292_v43 = vld [vmem:[#allocation2 + $0xc0] sm:$0xf]  ;;  %v2643_v59 = vrot.slane %v2641_v27, 5 }
 0x141   : > { %v2576_v6 = vor.u32 %v2575_v55, %v14342_v48  ;;  %v2590_v47 = vor.u32 %v2589_v32, %v2586_v63  ;;  %v14371_v55 = vld [vmem:[%s16723_s1 + $0x180] sm:$0xff]   ;;  %v2605_v32 = vrot.slane %v2603_v12, 5  ;;  %v10781_v22 = vcombine.low %v2548_v9, %v2558_v8 }
 0x142   : > { %v2634_v23 = vrot.slane %v2632_v21, 4  ;;  %v2637_v5 = vrot.slane %v2635_v17, 5  ;;  %v2656_v0 = vshrl.u32 %v2292_v43, 16  ;;  %v2665_v9 = vshll.u32 %v14375_v50, 16 }
 0x143   : > { %12115 = vmatpush3.bf16.msra.mxu0 %v13327_v57  ;;  %v2600_v57 = vor.u32 %v2599_v3, %v14346_v4  ;;  %v2577_v63 = vrot.slane %v2576_v6, 4  ;;  %v2591_v38 = vrot.slane %v2590_v47, 4  ;;  %v2619_v3 = vrot.slane %v2617_v7, 5 }
 0x144   : > { %12116 = vmatprep.subr.bf16.mxu0 %v13328_v18  ;;  %v2572_v6 = vsel %vm13635_vm2, %v2567_v13, %v14342_v48  ;;  %v2659_v48 = vshll.u32 %v2292_v43, 16  ;;  %v2669_v8 = vshrl.u32 %v14375_v50, 16  ;;  %v2638_v13 = vor.u32 %v2637_v5, %v2634_v23 }
 0x145   : > { %v2601_v46 = vrot.slane %v2600_v57, 4  ;;  %v2582_v47 = vsel %vm13635_vm2, %v2577_v63, %v2581_v61  ;;  %v2624_v7 = vor.u32 %v2623_v20, %v2619_v3  ;;  %v2648_v61 = vor.u32 %v2647_v41, %v2643_v59 }
 0x146   : > { %12085 = vmatmul.mubr.bf16.gmra.mrb[12].mxu0 %v10778_v56  ;;  %v2610_v56 = vrot.slane %v2608_v1, 4  ;;  %v14384_v1 = vld [vmem:[#allocation2 + $0xbc] sm:$0x1]  ;;  %v10782_v21 = vcombine.low %v2572_v6, %v2582_v47  ;;  %v2658_v63 = vrot.slane %v2656_v0, 4 }
 0x147   : > { %12088 = vmatprep.mubr.bf16.mxu0 %v10779_v60  ;;  %12117 = vmatpush3.bf16.msra.mxu0 %v13328_v18  ;;  %v14373_v60 = vld [vmem:[#allocation2 + $0xb0] sm:$0x1]  ;;  %v2613_v18 = vrot.slane %v2611_v33, 5  ;;  %v2606_v57 = vsel %vm13635_vm2, %v2601_v46, %v2605_v32  ;;  %v2667_v32 = vrot.slane %v2665_v9, 5  ;;  %v2639_v46 = vrot.slane %v2638_v13, 4 }
 0x148   : > { %12118 = vmatprep.subr.bf16.mxu0 %v13329_v35  ;;  %v2627_v12 = vshll.u32 %v14373_v60, 16 }
 0x149   : > { %v2614_v33 = vor.u32 %v2613_v18, %v2610_v56  ;;  %v2671_v56 = vrot.slane %v2669_v8, 4  ;;  %v2649_v18 = vrot.slane %v2648_v61, 4  ;;  %v2644_v47 = vsel %vm13635_vm2, %v2639_v46, %v2643_v59 }
 0x14a   : > { %v2629_v54 = vrot.slane %v2627_v12, 5  ;;  %v3070_v61 = vrot.slane %v14088_v11, 5  ;;  %v3003_v11 = vld [vmem:[#allocation2 + $0x24] sm:$0xe] }
 0x14b   : > { %12119 = vmatpush3.bf16.msra.mxu0 %v13329_v35  ;;  %v2596_v35 = vsel %vm13635_vm2, %v2591_v38, %v14346_v4  ;;  %v2615_v27 = vrot.slane %v2614_v33, 4  ;;  %v2625_v4 = vrot.slane %v2624_v7, 4  ;;  %v2661_v38 = vrot.slane %v2659_v48, 5  ;;  %v3001_v33 = vld [vmem:[#allocation2 + $0xc] sm:$0xe] }
 0x14c   : > { %12152 = vmatprep.subr.bf16.mxu0 %v14371_v55  ;;  %v10783_v17 = vcombine.low %v2596_v35, %v2606_v57  ;;  %v2672_v5 = vor.u32 %v2671_v56, %v2667_v32  ;;  %v13508_v35 = vld [vmem:[#allocation2 + $0x10] sm:$0xf]  ;;  %v10795_v8 = vrot.slane %v3001_v33, 9  ;;  %v3091_v33 = vrot.slane %v14142_v19, 5 }
 0x14d   : > { %v2620_v41 = vsel %vm13635_vm2, %v2615_v27, %v2619_v3  ;;  %v2630_v43 = vsel %vm13635_vm2, %v2625_v4, %v2629_v54  ;;  %v2662_v23 = vor.u32 %v2661_v38, %v2658_v63  ;;  %v3067_v57 = vrot.slane %v13508_v35, 5  ;;  %v3002_v4 = vld [vmem:[#allocation2 + $0x18] sm:$0xe] }
 0x14e   : > { %12089 = vmatmul.mubr.bf16.gmra.mrb[16].mxu0 %v10780_v52  ;;  %v2651_v52 = vshll.u32 %v14384_v1, 16  ;;  %v10784_v7 = vcombine.low %v2620_v41, %v2630_v43  ;;  %v2673_v48 = vrot.slane %v2672_v5, 4  ;;  %v3081_v54 = vrot.slane %v14118_v40, 5  ;;  %v3004_v5 = vld [vmem:[#allocation2 + $0x30] sm:$0xe] }
 0x14f   : > { %12092 = vmatprep.mubr.bf16.mxu0 %v10781_v22  ;;  %v14394_v22 = vld [vmem:[#allocation2 + $0xc8] sm:$0x1]  ;;  %v2663_v3 = vrot.slane %v2662_v23, 4  ;;  %v3069_v13 = vrot.slane %v3067_v57, 4  ;;  %v10796_v56 = vrot.slane %v3002_v4, 9  ;;  %v3088_v40 = vrot.slane %v14130_v51, 5 }
 0x150   : > { %v2653_v20 = vrot.slane %v2651_v52, 5  ;;  %v2675_v6 = vshll.u32 %v14394_v22, 16  ;;  %v10798_v35 = vrot.slane %v3004_v5, 9  ;;  %v13331_v51 = vld [vmem:[%s16723_s1 + $0x188] sm:$0xff]   ;;  %v3102_v19 = vrot.slane %v14167_v62, 5 }
 0x151   : > { %v2668_v59 = vsel %vm13635_vm2, %v2663_v3, %v2667_v32  ;;  %v3071_v27 = vsel %vm13964_vm5, %v3069_v13, %v3070_v61  ;;  %v3077_v32 = vrot.slane %v14102_v53, 5  ;;  %v3098_v3 = vrot.slane %v14170_v31, 5  ;;  %v3006_v31 = vld [vmem:[#allocation2 + $0x48] sm:$0xe]  ;;  %v3007_v61 = vld [vmem:[#allocation2 + $0x54] sm:$0xe] }
 0x152   : > { %v2654_v12 = vsel %vm13635_vm2, %v2649_v18, %v2653_v20  ;;  %v2677_v9 = vrot.slane %v2675_v6, 5  ;;  %v10797_v18 = vrot.slane %v3003_v11, 9  ;;  %v3083_v20 = vrot.slane %v3081_v54, 4  ;;  %v13333_v11 = vld [vmem:[%s16723_s1 + $0x198] sm:$0xff]  }
 0x153   : > { %v10785_v0 = vcombine.low %v2644_v47, %v2654_v12  ;;  %v3095_v6 = vrot.slane %v14156_v49, 5  ;;  %v3089_v49 = vsel %vm13964_vm5, %v10798_v35, %v3088_v40  ;;  %v3109_v13 = vrot.slane %v14177_v28, 5  ;;  %v13336_v35 = vld [vmem:[%s16723_s1 + $0x1b0] sm:$0xff]  }
 0x154   : > { %v2678_v52 = vsel %vm13635_vm2, %v2673_v48, %v2677_v9  ;;  %v3082_v23 = vsel %vm13964_vm5, %v10797_v18, %v3081_v54  ;;  %v3104_v62 = vrot.slane %v3102_v19, 4  ;;  %v3112_v54 = vrot.slane %v14224_v24, 5  ;;  %v3009_v18 = vld [vmem:[#allocation2 + $0x6c] sm:$0xe] }
 0x155   : > { %v10786_v63 = vcombine.low %v2668_v59, %v2678_v52  ;;  %v3111_v4 = vrot.slane %v3109_v13, 4 }
 0x156   : > { %12093 = vmatmul.mubr.bf16.gmra.mrb[20].mxu0 %v10782_v21  ;;  %v3074_v21 = vrot.slane %v14090_v30, 5  ;;  %v3084_v30 = vrot.slane %v14123_v10, 5  ;;  %v3005_v10 = vld [vmem:[#allocation2 + $0x3c] sm:$0xe] }
 0x157   : > { %12096 = vmatprep.mubr.bf16.mxu0 %v10783_v17  ;;  %v3068_v17 = vsel %vm13964_vm5, %v10795_v8, %v3067_v57  ;;  %v3090_v57 = vrot.slane %v3088_v40, 4  ;;  %v3113_v24 = vsel %vm13964_vm5, %v3111_v4, %v3112_v54  ;;  %v10803_v40 = vrot.slane %v3009_v18, 9 }
 0x158   : > { %v10827_v38 = vcombine.low %v3068_v17, %v3071_v27  ;;  %v3076_v46 = vrot.slane %v3074_v21, 4  ;;  %v3075_v41 = vsel %vm13964_vm5, %v10796_v56, %v3074_v21  ;;  %v3085_v53 = vsel %vm13964_vm5, %v3083_v20, %v3084_v30  ;;  %v3008_v56 = vld [vmem:[#allocation2 + $0x60] sm:$0xe] }
 0x159   : > { %v10829_v12 = vcombine.low %v3082_v23, %v3085_v53  ;;  %v3092_v48 = vsel %vm13964_vm5, %v3090_v57, %v3091_v33  ;;  %v10800_v21 = vrot.slane %v3006_v31, 9  ;;  %v3105_v17 = vrot.slane %v14193_v34, 5  ;;  %v3011_v57 = vld [vmem:[#allocation2 + $0x84] sm:$0xe]  ;;  %v3012_v31 = vld [vmem:[#allocation2 + $0x90] sm:$0xe] }
 0x15a   : > { %v3078_v43 = vsel %vm13964_vm5, %v3076_v46, %v3077_v32  ;;  %v10830_v59 = vcombine.low %v3089_v49, %v3092_v48  ;;  %v10801_v27 = vrot.slane %v3007_v61, 9  ;;  %v3116_v34 = vrot.slane %v14212_v26, 5  ;;  %v13334_v32 = vld [vmem:[%s16723_s1 + $0x1a0] sm:$0xff]   ;;  %v3013_v61 = vld [vmem:[#allocation2 + $0x9c] sm:$0xe] }
 0x15b   : > { %v10828_v47 = vcombine.low %v3075_v41, %v3078_v43  ;;  %v3103_v28 = vsel %vm13964_vm5, %v10800_v21, %v3102_v19  ;;  %v3123_v46 = vrot.slane %v14231_v42, 5  ;;  %v10802_v41 = vrot.slane %v3008_v56, 9  ;;  %v13335_v42 = vld [vmem:[%s16723_s1 + $0x1a8] sm:$0xff]  }
 0x15c   : > { %v3118_v43 = vrot.slane %v3116_v34, 4  ;;  %v3119_v26 = vrot.slane %v14250_v14, 5  ;;  %v3126_v53 = vrot.slane %v14262_v29, 5  ;;  %v3130_v14 = vrot.slane %v14248_v16, 5 }
 0x15d   : > { %v3125_v23 = vrot.slane %v3123_v46, 4  ;;  %v3117_v5 = vsel %vm13964_vm5, %v10802_v41, %v3116_v34  ;;  %v3140_v48 = vrot.slane %v14310_v37, 5  ;;  %v10806_v21 = vrot.slane %v3012_v31, 9  ;;  %v3014_v34 = vld [vmem:[#allocation2 + $0xa8] sm:$0xe]  ;;  %v14555_v31 = vld [vmem:[%s16723_s1 + $0x200] sm:$0xff]  }
 0x15e   : > { %12097 = vmatmul.mubr.bf16.gmra.mrb[24].mxu0 %v10784_v7  ;;  %v10799_v7 = vrot.slane %v3005_v10, 9  ;;  %v3124_v10 = vsel %vm13964_vm5, %v10803_v40, %v3123_v46  ;;  %v3132_v16 = vrot.slane %v3130_v14, 4  ;;  %v3154_v4 = vrot.slane %v14344_v45, 5 }
 0x15f   : > { %12100 = vmatprep.mubr.bf16.mxu0 %v10785_v0  ;;  %v3097_v0 = vrot.slane %v3095_v6, 4  ;;  %v3127_v29 = vsel %vm13964_vm5, %v3125_v23, %v3126_v53  ;;  %v3172_v23 = vrot.slane %v14375_v50, 5 }
 0x160   : > { %v3096_v9 = vsel %vm13964_vm5, %v10799_v7, %v3095_v6  ;;  %v3120_v6 = vsel %vm13964_vm5, %v3118_v43, %v3119_v26  ;;  %v3168_v43 = vrot.slane %v14384_v1, 5 }
 0x161   : > { %v3099_v8 = vsel %vm13964_vm5, %v3097_v0, %v3098_v3  ;;  %v10834_v33 = vcombine.low %v3117_v5, %v3120_v6  ;;  %v3133_v0 = vrot.slane %v14292_v15, 5  ;;  %v10805_v3 = vrot.slane %v3011_v57, 9  ;;  %v13341_v57 = vld [vmem:[#allocation2 + $0x30] sm:$0xff]  }
 0x162   : > { %v10831_v52 = vcombine.low %v3096_v9, %v3099_v8  ;;  %v3144_v15 = vrot.slane %v14312_v2, 5 }
 0x163   : > { %v3134_v9 = vsel %vm13964_vm5, %v3132_v16, %v3133_v0  ;;  %v13349_v16 = vld [vmem:[%s16723_s1 + $0x1d8] sm:$0xff]   ;;  %v13352_v0 = vld [vmem:[%s16723_s1 + $0x1e0] sm:$0xff]  }
 0x164   : > { %v3146_v2 = vrot.slane %v3144_v15, 4 }
 0x166   : > { %12101 = vmatmul.mubr.bf16.gmra.mrb[28].mxu0 %v10786_v63  ;;  %v3106_v63 = vsel %vm13964_vm5, %v3104_v62, %v3105_v17  ;;  %v3147_v62 = vrot.slane %v14337_v44, 5  ;;  %v10807_v17 = vrot.slane %v3013_v61, 9 }
 0x167   : > { %12120 = vmatprep.mubr.bf16.mxu0 %v10827_v38  ;;  %v3110_v38 = vsel %vm13964_vm5, %v10801_v27, %v3109_v13  ;;  %v10832_v20 = vcombine.low %v3103_v28, %v3106_v63  ;;  %v13340_v13 = vld [vmem:[%s16723_s1 + $0x1c0] sm:$0xff]  }
 0x168   : > { %v10833_v30 = vcombine.low %v3110_v38, %v3113_v24  ;;  %v3148_v54 = vsel %vm13964_vm5, %v3146_v2, %v3147_v62  ;;  %v16811_v38 = vld [vmem:[#allocation4_spill] sm:$0xff]  ;;  %v3015_v24 = vld [vmem:[#allocation2 + $0xb4] sm:$0xe]  ;;  %v14559_v62 = vld [vmem:[#allocation2 + $0x28] sm:$0xf] }
 0x169   : > { %v3165_v45 = vrot.slane %v16811_v38, 5  ;;  %v13353_v2 = vld [vmem:[#allocation2 + $0x90] sm:$0xff]   ;;  %v3972_v38 = vshrl.u32 %v14559_v62, 16 }
 0x16b   : > { %v3167_v41 = vrot.slane %v3165_v45, 4 }
 0x16e   : > { %12121 = vmatmul.mubr.bf16.vlgmr.msra.gmra.mrb[0].mxu0 %v10828_v47  ;;  %v3010_v47 = vld [vmem:[#allocation2 + $0x78] sm:$0xe] }
 0x16f   : > { %12153 = vmatpush3.bf16.msra.mxu0 %v14371_v55  ;;  %12124 = vmatprep.mubr.bf16.mxu0 %v10829_v12  ;;  %v13332_v55 = vld [vmem:[%s16723_s1 + $0x190] sm:$0xff]   ;;  %v3137_v12 = vrot.slane %v14283_v58, 5  ;;  %v10804_v7 = vrot.slane %v3010_v47, 9  ;;  %v13337_v58 = vld [vmem:[%s16723_s1 + $0x1b8] sm:$0xff]  }
 0x170   : > { %12154 = vmatprep.subr.bf16.mxu0 %v13331_v51 }
 0x171   : > { %v3139_v49 = vrot.slane %v3137_v12, 4  ;;  %v3131_v19 = vsel %vm13964_vm5, %v10804_v7, %v3130_v14  ;;  %v3138_v8 = vsel %vm13964_vm5, %v10805_v3, %v3137_v12  ;;  %v3174_v14 = vrot.slane %v3172_v23, 4  ;;  %v13338_v12 = vld [vmem:[#allocation2 + $0x18] sm:$0xff]   ;;  %v13344_v7 = vld [vmem:[#allocation2 + $0x48] sm:$0xff]  }
 0x172   : > { %v13345_v3 = vld [vmem:[#allocation2 + $0x54] sm:$0xff]  }
 0x173   : > { %12155 = vmatpush3.bf16.msra.mxu0 %v13331_v51  ;;  %v10835_v51 = vcombine.low %v3124_v10, %v3127_v29  ;;  %v3141_v37 = vsel %vm13964_vm5, %v3139_v49, %v3140_v48  ;;  %v3175_v10 = vrot.slane %v14394_v22, 5  ;;  %v13346_v22 = vld [vmem:[%s16723_s1 + $0x1d0] sm:$0xff]   ;;  %v13347_v49 = vld [vmem:[#allocation2 + $0x60] sm:$0xff]   ;;  %v13355_v48 = vld [vmem:[%s16723_s1 + $0x1e8] sm:$0xff]  }
 0x174   : > { %12156 = vmatprep.subr.bf16.mxu0 %v13332_v55 }
 0x175   : > { %v3176_v50 = vsel %vm13964_vm5, %v3174_v14, %v3175_v10  ;;  %v14581_v10 = vld [vmem:[#allocation2 + $0x38] sm:$0x1] }
 0x176   : > { %12125 = vmatmul.mubr.bf16.gmra.mrb[4].mxu0 %v10830_v59  ;;  %v10836_v59 = vcombine.low %v3131_v19, %v3134_v9  ;;  %v13348_v19 = vld [vmem:[#allocation2 + $0x6c] sm:$0xff]   ;;  %v13350_v9 = vld [vmem:[#allocation2 + $0x78] sm:$0xff]  }
 0x177   : > { %12128 = vmatprep.mubr.bf16.mxu0 %v10831_v52  ;;  %12157 = vmatpush3.bf16.msra.mxu0 %v13332_v55  ;;  %v3151_v55 = vrot.slane %v14316_v39, 5  ;;  %v10837_v52 = vcombine.low %v3138_v8, %v3141_v37  ;;  %v3145_v39 = vsel %vm13964_vm5, %v10806_v21, %v3144_v15  ;;  %v13361_v15 = vld [vmem:[%s16723_s1 + $0x1f8] sm:$0xff]  }
 0x178   : > { %12158 = vmatprep.subr.bf16.mxu0 %v13333_v11  ;;  %v10838_v56 = vcombine.low %v3145_v39, %v3148_v54  ;;  %v3886_v8 = vld [vmem:[#allocation2 + $0x18] sm:$0xf]  ;;  %v14550_v37 = vld [vmem:[#allocation2 + $0x1c] sm:$0xf] }
 0x179   : > { %v3153_v27 = vrot.slane %v3151_v55, 4  ;;  %v3152_v63 = vsel %vm13964_vm5, %v10807_v17, %v3151_v55  ;;  %v3889_v55 = vld [vmem:[#allocation2 + $0x24] sm:$0xf]  ;;  %v3935_v61 = vshrl.u32 %v3886_v8, 16  ;;  %v3948_v21 = vshrl.u32 %v14550_v37, 16 }
 0x17a   : > { %v3959_v17 = vshrl.u32 %v3889_v55, 16 }
 0x17b   : > { %12159 = vmatpush3.bf16.msra.mxu0 %v13333_v11  ;;  %v16810_v11 = vld [vmem:[#allocation3_spill] sm:$0xff]  ;;  %v3155_v44 = vsel %vm13964_vm5, %v3153_v27, %v3154_v4  ;;  %v3962_v27 = vshll.u32 %v3889_v55, 16  ;;  %v3892_v4 = vld [vmem:[#allocation2 + $0x30] sm:$0xf]  ;;  %v3937_v39 = vrot.slane %v3935_v61, 4 }
 0x17c   : > { %12160 = vmatprep.subr.bf16.mxu0 %v13334_v32  ;;  %v3158_v28 = vrot.slane %v16810_v11, 5  ;;  %v10839_v46 = vcombine.low %v3152_v63, %v3155_v44  ;;  %v14564_v63 = vld [vmem:[#allocation2 + $0x34] sm:$0xf]  ;;  %v14566_v44 = vld [vmem:[#allocation2 + $0x20] sm:$0x1] }
 0x17d   : > { %v13357_v55 = vld [vmem:[#allocation2 + $0xb4] sm:$0xff]  }
 0x17e   : > { %12129 = vmatmul.mubr.bf16.gmra.mrb[8].mxu0 %v10832_v20  ;;  %v3160_v18 = vrot.slane %v3158_v28, 4  ;;  %v3161_v20 = vrot.slane %v14373_v60, 5  ;;  %v3169_v60 = vsel %vm13964_vm5, %v3167_v41, %v3168_v43  ;;  %v3954_v43 = vshll.u32 %v14566_v44, 16 }
 0x17f   : > { %12132 = vmatprep.mubr.bf16.mxu0 %v10833_v30  ;;  %12161 = vmatpush3.bf16.msra.mxu0 %v13334_v32  ;;  %v10808_v32 = vrot.slane %v3014_v34, 9  ;;  %v10809_v30 = vrot.slane %v3015_v24, 9  ;;  %v3968_v34 = vshll.u32 %v14559_v62, 16  ;;  %v3964_v24 = vrot.slane %v3962_v27, 5 }
 0x180   : > { %12162 = vmatprep.subr.bf16.mxu0 %v13335_v42  ;;  %v3162_v40 = vsel %vm13964_vm5, %v3160_v18, %v3161_v20  ;;  %v3996_v18 = vshrl.u32 %v14564_v63, 16  ;;  %v13354_v20 = vld [vmem:[#allocation2 + $0x9c] sm:$0xff]  }
 0x181   : > { %v3159_v26 = vsel %vm13964_vm5, %v10808_v32, %v3158_v28  ;;  %v3166_v53 = vsel %vm13964_vm5, %v10809_v30, %v3165_v45  ;;  %v3950_v28 = vrot.slane %v3948_v21, 4  ;;  %v3961_v45 = vrot.slane %v3959_v17, 4  ;;  %v3901_v21 = vld [vmem:[#allocation2 + $0x54] sm:$0xf] }
 0x182   : > { %v10840_v5 = vcombine.low %v3159_v26, %v3162_v40  ;;  %v10841_v6 = vcombine.low %v3166_v53, %v3169_v60  ;;  %v3992_v32 = vshll.u32 %v14564_v63, 16  ;;  %v14574_v26 = vld [vmem:[#allocation2 + $0x2c] sm:$0x1]  ;;  %v3974_v53 = vrot.slane %v3972_v38, 4  ;;  %v14614_v38 = vld [vmem:[#allocation2 + $0x58] sm:$0xf] }
 0x183   : > { %12163 = vmatpush3.bf16.msra.mxu0 %v13335_v42  ;;  %v3016_v42 = vld [vmem:[#allocation2 + $0xc0] sm:$0xe]  ;;  %v13356_v40 = vld [vmem:[#allocation2 + $0xa8] sm:$0xff]   ;;  %v3965_v60 = vor.u32 %v3964_v24, %v3961_v45  ;;  %v3978_v14 = vshll.u32 %v14574_v26, 16  ;;  %v14618_v24 = vld [vmem:[#allocation2 + $0x50] sm:$0x1] }
 0x184   : > { %12164 = vmatprep.subr.bf16.mxu0 %v13336_v35  ;;  %v10810_v1 = vrot.slane %v3016_v42, 9 }
 0x186   : > { %12133 = vmatmul.mubr.bf16.gmra.mrb[12].mxu0 %v10834_v33  ;;  %v3173_v29 = vsel %vm13964_vm5, %v10810_v1, %v3172_v23  ;;  %v13343_v33 = vld [vmem:[%s16723_s1 + $0x1c8] sm:$0xff]   ;;  %v14576_v23 = vrot.slane %v3968_v34, 5  ;;  %v14578_v1 = vld [vmem:[#allocation2 + $0x40] sm:$0xf] }
 0x187   : > { %12136 = vmatprep.mubr.bf16.mxu0 %v10835_v51  ;;  %12165 = vmatpush3.bf16.msra.mxu0 %v13336_v35  ;;  %v10842_v47 = vcombine.low %v3173_v29, %v3176_v50  ;;  %v13339_v35 = vld [vmem:[#allocation2 + $0x24] sm:$0xff]   ;;  %v13342_v51 = vld [vmem:[#allocation2 + $0x3c] sm:$0xff]   ;;  %v14583_v29 = vrot.slane %v3992_v32, 5  ;;  %v3998_v50 = vrot.slane %v3996_v18, 4  ;;  %v4055_v32 = vshrl.u32 %v3901_v21, 16 }
 0x188   : > { %12166 = vmatprep.subr.bf16.mxu0 %v13337_v58 }
 0x18b   : > { %12167 = vmatpush3.bf16.msra.mxu0 %v13337_v58  ;;  %v13358_v58 = vld [vmem:[%s16723_s1 + $0x1f0] sm:$0xff]  }
 0x18c   : > { %12200 = vmatprep.subr.bf16.mxu0 %v13340_v13 }
 0x18e   : > { %12137 = vmatmul.mubr.bf16.gmra.mrb[16].mxu0 %v10836_v59  ;;  %v3938_v59 = vshll.u32 %v3886_v8, 16 }
 0x18f   : > { %12140 = vmatprep.mubr.bf16.mxu0 %v10837_v52  ;;  %v3944_v52 = vshll.u32 %v14550_v37, 16 }
 0x190   : > { %v3940_v54 = vrot.slane %v3938_v59, 5 }
 0x191   : > { %v14562_v11 = vrot.slane %v3944_v52, 5 }
 0x192   : > { %v3941_v30 = vor.u32 %v3940_v54, %v3937_v39 }
 0x193   : > { %v3951_v41 = vor.u32 %v3950_v28, %v14562_v11 }
 0x196   : > { %12141 = vmatmul.mubr.bf16.gmra.mrb[20].mxu0 %v10838_v56  ;;  %v3983_v56 = vshrl.u32 %v3892_v4, 16 }
 0x197   : > { %12144 = vmatprep.mubr.bf16.mxu0 %v10839_v46  ;;  %v3986_v46 = vshll.u32 %v3892_v4, 16 }
 0x198   : > { %v3985_v42 = vrot.slane %v3983_v56, 4 }
 0x19e   : > { %12145 = vmatmul.mubr.bf16.gmra.mrb[24].mxu0 %v10840_v5  ;;  %v3988_v5 = vrot.slane %v3986_v46, 5 }
 0x19f   : > { %12148 = vmatprep.mubr.bf16.mxu0 %v10841_v6  ;;  %v3895_v6 = vld [vmem:[#allocation2 + $0x3c] sm:$0xf] }
 0x1a6   : > { %12149 = vmatmul.mubr.bf16.gmra.mrb[28].mxu0 %v10842_v47  ;;  %v3942_v47 = vrot.slane %v3941_v30, 4 }
 0x1a7   : > { %12168 = vmatprep.mubr.bf16.mxu0 %v13338_v12  ;;  %v3952_v12 = vrot.slane %v3951_v41, 4  ;;  %v14622_v41 = vld [vmem:[#allocation2 + $0xd0] sm:$0xf] }
 0x1ae   : > { %12169 = vmatmul.mubr.bf16.vlgmr.msra.gmra.mrb[0].mxu0 %v13339_v35  ;;  %v3956_v35 = vrot.slane %v3954_v43, 5  ;;  %v14624_v43 = vld [vmem:[#allocation2 + $0xd4] sm:$0x1] }
 0x1af   : > { %12201 = vmatpush3.bf16.msra.mxu0 %v13340_v13  ;;  %12172 = vmatprep.mubr.bf16.mxu0 %v13341_v57  ;;  %v13351_v13 = vld [vmem:[#allocation2 + $0x84] sm:$0xff]  }
 0x1b0   : > { %12202 = vmatprep.subr.bf16.mxu0 %v13343_v33  ;;  %v3898_v57 = vld [vmem:[#allocation2 + $0x48] sm:$0xf]  ;;  %v3957_v61 = vsel %vm13635_vm2, %v3952_v12, %v3956_v35  ;;  %v14634_v12 = vld [vmem:[#allocation2 + $0x64] sm:$0xf] }
 0x1b1   : > { %v4034_v8 = vshll.u32 %v3898_v57, 16 }
 0x1b3   : > { %12203 = vmatpush3.bf16.msra.mxu0 %v13343_v33  ;;  %v3975_v33 = vor.u32 %v3974_v53, %v14576_v23  ;;  %v4036_v46 = vrot.slane %v4034_v8, 5  ;;  %v4092_v8 = vshrl.u32 %v14634_v12, 16 }
 0x1b4   : > { %12204 = vmatprep.subr.bf16.mxu0 %v13346_v22 }
 0x1b5   : > { %v14605_v17 = vrot.slane %v3975_v33, 4 }
 0x1b6   : > { %12173 = vmatmul.mubr.bf16.gmra.mrb[4].mxu0 %v13342_v51  ;;  %v4010_v51 = vshll.u32 %v3895_v6, 16 }
 0x1b7   : > { %12176 = vmatprep.mubr.bf16.mxu0 %v13344_v7  ;;  %12205 = vmatpush3.bf16.msra.mxu0 %v13346_v22  ;;  %v4007_v22 = vshrl.u32 %v3895_v6, 16  ;;  %v4016_v7 = vshll.u32 %v14578_v1, 16  ;;  %v4814_v6 = vrot.slane %v14624_v43, 5 }
 0x1b8   : > { %12206 = vmatprep.subr.bf16.mxu0 %v13349_v16  ;;  %v4012_v4 = vrot.slane %v4010_v51, 5  ;;  %v13360_v51 = vld [vmem:[#allocation2 + $0xcc] sm:$0xff]  }
 0x1b9   : > { %v4009_v27 = vrot.slane %v4007_v22, 4  ;;  %v14607_v39 = vrot.slane %v4016_v7, 5 }
 0x1bb   : > { %12207 = vmatpush3.bf16.msra.mxu0 %v13349_v16  ;;  %v14587_v16 = vld [vmem:[#allocation2 + $0x4c] sm:$0xf]  ;;  %v4013_v53 = vor.u32 %v4012_v4, %v4009_v27 }
 0x1bc   : > { %12208 = vmatprep.subr.bf16.mxu0 %v13352_v0  ;;  %v4040_v59 = vshll.u32 %v14587_v16, 16  ;;  %v4044_v52 = vshrl.u32 %v14587_v16, 16 }
 0x1bd   : > { %v14663_v27 = vrot.slane %v4013_v53, 4 }
 0x1be   : > { %12177 = vmatmul.mubr.bf16.gmra.mrb[8].mxu0 %v13345_v3  ;;  %v3989_v3 = vor.u32 %v3988_v5, %v3985_v42  ;;  %v4046_v30 = vrot.slane %v4044_v52, 4  ;;  %v4655_v42 = vld [vmem:[#allocation2 + $0xcc] sm:$0xe]  ;;  %v4811_v5 = vrot.slane %v14622_v41, 5 }
 0x1bf   : > { %12180 = vmatprep.mubr.bf16.mxu0 %v13347_v49  ;;  %12209 = vmatpush3.bf16.msra.mxu0 %v13352_v0  ;;  %v14589_v0 = vrot.slane %v3965_v60, 4  ;;  %v4002_v49 = vshll.u32 %v14581_v10, 16  ;;  %v3904_v60 = vld [vmem:[#allocation2 + $0x60] sm:$0xf]  ;;  %v10946_v35 = vrot.slane %v4655_v42, 9 }
 0x1c0   : > { %12210 = vmatprep.subr.bf16.mxu0 %v13355_v48  ;;  %v14609_v54 = vrot.slane %v3989_v3, 4  ;;  %v4813_v22 = vrot.slane %v4811_v5, 4  ;;  %v4079_v3 = vshrl.u32 %v3904_v60, 16 }
 0x1c1   : > { %v14611_v28 = vrot.slane %v4002_v49, 5  ;;  %v14641_v49 = vsel %vm13964_vm5, %v10946_v35, %v4811_v5 }
 0x1c2   : > { %16812 = vst [vmem:[#allocation3_spill] sm:$0xff] %v14641_v49  ;;  %v14813_v49 = vld [vmem:[#allocation2 + $0xb8] sm:$0xf] }
 0x1c3   : > { %12211 = vmatpush3.bf16.msra.mxu0 %v13355_v48  ;;  %v4020_v48 = vshrl.u32 %v14578_v1, 16  ;;  %16816 = vst [vmem:[#allocation7_spill] sm:$0xff] %v14813_v49 }
 0x1c4   : > { %12212 = vmatprep.subr.bf16.mxu0 %v13358_v58 }
 0x1c6   : > { %12181 = vmatmul.mubr.bf16.gmra.mrb[12].mxu0 %v13348_v19  ;;  %v3999_v19 = vor.u32 %v3998_v50, %v14583_v29  ;;  %v4064_v50 = vshll.u32 %v14614_v38, 16 }
 0x1c7   : > { %12184 = vmatprep.mubr.bf16.mxu0 %v13350_v9  ;;  %12213 = vmatpush3.bf16.msra.mxu0 %v13358_v58  ;;  %v14593_v58 = vrot.slane %v3978_v14, 5  ;;  %v14596_v9 = vld [vmem:[#allocation2 + $0x44] sm:$0x1]  ;;  %v4058_v14 = vshll.u32 %v3901_v21, 16 }
 0x1c8   : > { %12214 = vmatprep.subr.bf16.mxu0 %v13361_v15  ;;  %v4026_v34 = vshll.u32 %v14596_v9, 16  ;;  %v14616_v45 = vrot.slane %v3999_v19, 4  ;;  %v4082_v19 = vshll.u32 %v3904_v60, 16 }
 0x1c9   : > { %v3981_v21 = vsel %vm13635_vm2, %v14605_v17, %v14593_v58  ;;  %v3907_v17 = vld [vmem:[#allocation2 + $0x6c] sm:$0xf] }
 0x1ca   : > { %v14665_v4 = vrot.slane %v4026_v34, 5  ;;  %v4094_v34 = vrot.slane %v4092_v8, 4  ;;  %v14710_v8 = vld [vmem:[#allocation2 + $0x74] sm:$0x1] }
 0x1cb   : > { %12215 = vmatpush3.bf16.msra.mxu0 %v13361_v15  ;;  %v4031_v15 = vshrl.u32 %v3898_v57, 16 }
 0x1cc   : > { %12248 = vmatprep.subr.bf16.mxu0 %v14555_v31 }
 0x1cd   : > { %v4033_v56 = vrot.slane %v4031_v15, 4  ;;  %v4088_v15 = vshll.u32 %v14634_v12, 16 }
 0x1ce   : > { %12185 = vmatmul.mubr.bf16.gmra.mrb[16].mxu0 %v13351_v13  ;;  %v3947_v13 = vsel %vm13635_vm2, %v3942_v47, %v14562_v11  ;;  %v4022_v11 = vrot.slane %v4020_v48, 4  ;;  %v4068_v47 = vshrl.u32 %v14614_v38, 16  ;;  %v14643_v48 = vld [vmem:[#allocation2 + $0x5c] sm:$0x1] }
 0x1cf   : > { %12188 = vmatprep.mubr.bf16.mxu0 %v13353_v2  ;;  %v13359_v2 = vld [vmem:[#allocation2 + $0xc0] sm:$0xff]   ;;  %v10907_v18 = vcombine.low %v3947_v13, %v3957_v61  ;;  %v4037_v33 = vor.u32 %v4036_v46, %v4033_v56  ;;  %v4060_v13 = vrot.slane %v4058_v14, 5  ;;  %v14651_v61 = vrot.slane %v4064_v50, 5 }
 0x1d0   : > { %v4023_v57 = vor.u32 %v4022_v11, %v14607_v39  ;;  %v4005_v11 = vsel %vm13635_vm2, %v14616_v45, %v14611_v28  ;;  %v4074_v58 = vshll.u32 %v14643_v48, 16  ;;  %v14681_v45 = vld [vmem:[#allocation2 + $0x68] sm:$0x1]  ;;  %v4103_v14 = vshrl.u32 %v3907_v17, 16 }
 0x1d1   : > { %v4038_v53 = vrot.slane %v4037_v33, 4  ;;  %v4106_v50 = vshll.u32 %v3907_v17, 16  ;;  %v3910_v33 = vld [vmem:[#allocation2 + $0x78] sm:$0xf] }
 0x1d2   : > { %v14671_v56 = vrot.slane %v4023_v57, 4 }
 0x1d6   : > { %12189 = vmatmul.mubr.bf16.gmra.mrb[20].mxu0 %v13354_v20  ;;  %v14620_v20 = vrot.slane %v4040_v59, 5  ;;  %v4070_v59 = vrot.slane %v4068_v47, 4  ;;  %v4029_v47 = vsel %vm13635_vm2, %v14671_v56, %v14665_v4  ;;  %v14714_v4 = vld [vmem:[#allocation2 + $0x88] sm:$0xf] }
 0x1d7   : > { %12192 = vmatprep.mubr.bf16.mxu0 %v13356_v40  ;;  %v3971_v40 = vsel %vm13635_vm2, %v14589_v0, %v14576_v23  ;;  %v4050_v23 = vshll.u32 %v14618_v24, 16  ;;  %v4057_v0 = vrot.slane %v4055_v32, 4  ;;  %v4081_v32 = vrot.slane %v4079_v3, 4 }
 0x1d8   : > { %v4047_v7 = vor.u32 %v4046_v30, %v14620_v20  ;;  %v14678_v30 = vld [vmem:[#allocation2 + $0x70] sm:$0xf]  ;;  %v4071_v28 = vor.u32 %v4070_v59, %v14651_v61  ;;  %v10908_v5 = vcombine.low %v3971_v40, %v3981_v21  ;;  %v13363_v40 = vld [vmem:[%s16723_s1 + $0x208] sm:$0xff]   ;;  %v4127_v59 = vshrl.u32 %v3910_v33, 16 }
 0x1d9   : > { %v14673_v46 = vrot.slane %v4050_v23, 5  ;;  %v4061_v42 = vor.u32 %v4060_v13, %v4057_v0  ;;  %v4112_v35 = vshll.u32 %v14678_v30, 16  ;;  %v4116_v57 = vshrl.u32 %v14678_v30, 16  ;;  %v14693_v23 = vld [vmem:[#allocation2 + $0x7c] sm:$0xf] }
 0x1da   : > { %v4048_v60 = vrot.slane %v4047_v7, 4  ;;  %v4098_v7 = vshll.u32 %v14681_v45, 16  ;;  %v4043_v0 = vsel %vm13635_vm2, %v4038_v53, %v14620_v20  ;;  %v3913_v13 = vld [vmem:[#allocation2 + $0x84] sm:$0xf]  ;;  %v4130_v21 = vshll.u32 %v3910_v33, 16 }
 0x1db   : > { %v4105_v20 = vrot.slane %v4103_v14, 4  ;;  %v14716_v56 = vrot.slane %v4112_v35, 5  ;;  %v4151_v53 = vshrl.u32 %v3913_v13, 16 }
 0x1dc   : > { %v4053_v3 = vsel %vm13635_vm2, %v4048_v60, %v14673_v46  ;;  %v4118_v46 = vrot.slane %v4116_v57, 4  ;;  %v4154_v60 = vshll.u32 %v3913_v13, 16  ;;  %v4132_v14 = vrot.slane %v4130_v21, 5 }
 0x1dd   : > { %v10911_v35 = vcombine.low %v4043_v0, %v4053_v3  ;;  %v13365_v0 = vld [vmem:[%s16723_s1 + $0x218] sm:$0xff]   ;;  %v4153_v3 = vrot.slane %v4151_v53, 4 }
 0x1de   : > { %12193 = vmatmul.mubr.bf16.gmra.mrb[24].mxu0 %v13357_v55  ;;  %v14649_v55 = vsel %vm13964_vm5, %v4813_v22, %v4814_v6  ;;  %v14698_v22 = vrot.slane %v4074_v58, 5  ;;  %v4119_v33 = vor.u32 %v4118_v46, %v14716_v56  ;;  %v4156_v13 = vrot.slane %v4154_v60, 5 }
 0x1df   : > { %12196 = vmatprep.mubr.bf16.mxu0 %v13359_v2  ;;  %16813 = vst [vmem:[#allocation4_spill] sm:$0xff] %v14649_v55  ;;  %v3995_v2 = vsel %vm13635_vm2, %v14609_v54, %v14583_v29  ;;  %v4084_v29 = vrot.slane %v4082_v19, 5  ;;  %v14676_v54 = vrot.slane %v4088_v15, 5  ;;  %v14708_v19 = vrot.slane %v4061_v42, 4 }
 0x1e0   : > { %v10909_v6 = vcombine.low %v3995_v2, %v4005_v11  ;;  %v4072_v15 = vrot.slane %v4071_v28, 4  ;;  %v4136_v2 = vshll.u32 %v14693_v23, 16  ;;  %v4108_v11 = vrot.slane %v4106_v50, 5 }
 0x1e1   : > { %v4160_v42 = vshll.u32 %v14714_v4, 16  ;;  %v4164_v28 = vshrl.u32 %v14714_v4, 16 }
 0x1e2   : > { %v4109_v57 = vor.u32 %v4108_v11, %v4105_v20  ;;  %v14757_v20 = vrot.slane %v4119_v33, 4 }
 0x1e6   : > { %12197 = vmatmul.mubr.bf16.gmra.mrb[28].mxu0 %v13360_v51  ;;  %v4085_v51 = vor.u32 %v4084_v29, %v4081_v32  ;;  %v4100_v32 = vrot.slane %v4098_v7, 5  ;;  %v4122_v29 = vshll.u32 %v14710_v8, 16  ;;  %v4077_v7 = vsel %vm13635_vm2, %v4072_v15, %v14698_v22 }
 0x1e7   : > { %12216 = vmatprep.mubr.bf16.mxu0 %v10907_v18  ;;  %v4019_v18 = vsel %vm13635_vm2, %v14663_v27, %v14607_v39  ;;  %v4095_v39 = vor.u32 %v4094_v34, %v14676_v54  ;;  %v4140_v27 = vshrl.u32 %v14693_v23, 16  ;;  %v13364_v34 = vld [vmem:[%s16723_s1 + $0x210] sm:$0xff]  }
 0x1e8   : > { %v4086_v58 = vrot.slane %v4085_v51, 4  ;;  %v10910_v50 = vcombine.low %v4019_v18, %v4029_v47  ;;  %v14728_v51 = vld [vmem:[#allocation2 + $0x80] sm:$0x1]  ;;  %v14740_v47 = vrot.slane %v4122_v29, 5  ;;  %v4157_v29 = vor.u32 %v4156_v13, %v4153_v3 }
 0x1e9   : > { %v4096_v17 = vrot.slane %v4095_v39, 4  ;;  %v4067_v39 = vsel %vm13635_vm2, %v14708_v19, %v14651_v61  ;;  %v4166_v61 = vrot.slane %v4164_v28, 4  ;;  %v14747_v19 = vld [vmem:[#allocation2 + $0x94] sm:$0xf]  ;;  %v4146_v21 = vshll.u32 %v14728_v51, 16 }
 0x1ea   : > { %v4091_v18 = vsel %vm13635_vm2, %v4086_v58, %v14676_v54  ;;  %v4184_v58 = vshll.u32 %v14747_v19, 16  ;;  %v3919_v28 = vld [vmem:[#allocation2 + $0x9c] sm:$0xf] }
 0x1eb   : > { %v4101_v22 = vsel %vm13635_vm2, %v4096_v17, %v4100_v32  ;;  %v4188_v17 = vshrl.u32 %v14747_v19, 16  ;;  %v10912_v32 = vcombine.low %v4067_v39, %v4077_v7  ;;  %v14776_v7 = vld [vmem:[#allocation2 + $0xa0] sm:$0xf]  ;;  %v4199_v13 = vshrl.u32 %v3919_v28, 16 }
 0x1ed   : > { %v4190_v3 = vrot.slane %v4188_v17, 4 }
 0x1ee   : > { %12217 = vmatmul.mubr.bf16.vlgmr.msra.gmra.mrb[0].mxu0 %v10908_v5  ;;  %v4129_v5 = vrot.slane %v4127_v59, 4  ;;  %v14745_v59 = vrot.slane %v4160_v42, 5  ;;  %v13366_v42 = vld [vmem:[%s16723_s1 + $0x220] sm:$0xff]  }
 0x1ef   : > { %12249 = vmatpush3.bf16.msra.mxu0 %v14555_v31  ;;  %12220 = vmatprep.mubr.bf16.mxu0 %v10909_v6  ;;  %v14725_v31 = vrot.slane %v4136_v2, 5  ;;  %v4142_v6 = vrot.slane %v4140_v27, 4  ;;  %v14753_v2 = vld [vmem:[#allocation2 + $0x8c] sm:$0x1]  ;;  %v14755_v27 = vrot.slane %v4109_v57, 4  ;;  %v4125_v57 = vsel %vm13635_vm2, %v14757_v20, %v14740_v47 }
 0x1f0   : > { %12250 = vmatprep.subr.bf16.mxu0 %v13363_v40  ;;  %v4133_v15 = vor.u32 %v4132_v14, %v4129_v5  ;;  %v4167_v53 = vor.u32 %v4166_v61, %v14745_v59  ;;  %v4170_v60 = vshll.u32 %v14753_v2, 16  ;;  %v10913_v5 = vcombine.low %v4091_v18, %v4101_v22  ;;  %v3922_v18 = vld [vmem:[#allocation2 + $0xa8] sm:$0xf]  ;;  %v14780_v22 = vld [vmem:[#allocation2 + $0xac] sm:$0xf] }
 0x1f1   : > { %v4143_v54 = vor.u32 %v4142_v6, %v14725_v31  ;;  %v4202_v61 = vshll.u32 %v3919_v28, 16  ;;  %v13367_v47 = vld [vmem:[%s16723_s1 + $0x228] sm:$0xff]   ;;  %v4223_v20 = vshrl.u32 %v3922_v18, 16  ;;  %v4232_v17 = vshll.u32 %v14780_v22, 16 }
 0x1f2   : > { %v4134_v14 = vrot.slane %v4133_v15, 4  ;;  %v4158_v15 = vrot.slane %v4157_v29, 4  ;;  %v4236_v29 = vshrl.u32 %v14780_v22, 16  ;;  %v4201_v28 = vrot.slane %v4199_v13, 4  ;;  %v14808_v13 = vld [vmem:[#allocation2 + $0xb0] sm:$0x1] }
 0x1f3   : > { %12251 = vmatpush3.bf16.msra.mxu0 %v13363_v40  ;;  %v3916_v40 = vld [vmem:[#allocation2 + $0x90] sm:$0xf]  ;;  %v4144_v6 = vrot.slane %v4143_v54, 4  ;;  %v4172_v54 = vrot.slane %v4170_v60, 5  ;;  %v4204_v52 = vrot.slane %v4202_v61, 5  ;;  %16815 = vst [vmem:[#allocation6_spill] sm:$0xff] %v14808_v13 }
 0x1f4   : > { %12252 = vmatprep.subr.bf16.mxu0 %v13364_v34  ;;  %v4175_v11 = vshrl.u32 %v3916_v40, 16  ;;  %v4178_v46 = vshll.u32 %v3916_v40, 16  ;;  %v14778_v40 = vrot.slane %v4184_v58, 5  ;;  %v4238_v61 = vrot.slane %v4236_v29, 4 }
 0x1f5   : > { %v4260_v29 = vshrl.u32 %v14813_v49, 16 }
 0x1f6   : > { %12221 = vmatmul.mubr.bf16.gmra.mrb[4].mxu0 %v10910_v50  ;;  %v14766_v50 = vld [vmem:[#allocation2 + $0x98] sm:$0x1]  ;;  %v4177_v33 = vrot.slane %v4175_v11, 4  ;;  %v4180_v39 = vrot.slane %v4178_v46, 5  ;;  %v4226_v11 = vshll.u32 %v3922_v18, 16  ;;  %v4139_v46 = vsel %vm13635_vm2, %v4134_v14, %v14725_v31 }
 0x1f7   : > { %12224 = vmatprep.mubr.bf16.mxu0 %v10911_v35  ;;  %12253 = vmatpush3.bf16.msra.mxu0 %v13364_v34  ;;  %v4148_v34 = vrot.slane %v4146_v21, 5  ;;  %v4115_v35 = vsel %vm13635_vm2, %v14755_v27, %v14716_v56  ;;  %v4168_v56 = vrot.slane %v4167_v53, 4  ;;  %v4194_v21 = vshll.u32 %v14766_v50, 16 }
 0x1f8   : > { %12254 = vmatprep.subr.bf16.mxu0 %v13365_v0  ;;  %v4208_v27 = vshll.u32 %v14776_v7, 16  ;;  %v4181_v53 = vor.u32 %v4180_v39, %v4177_v33  ;;  %v4191_v60 = vor.u32 %v4190_v3, %v14778_v40  ;;  %v4225_v33 = vrot.slane %v4223_v20, 4 }
 0x1f9   : > { %v4149_v58 = vsel %vm13635_vm2, %v4144_v6, %v4148_v34  ;;  %v4173_v31 = vsel %vm13635_vm2, %v4168_v56, %v4172_v54  ;;  %v4196_v14 = vrot.slane %v4194_v21, 5  ;;  %v14801_v6 = vld [vmem:[#allocation2 + $0xa4] sm:$0x1]  ;;  %v4228_v39 = vrot.slane %v4226_v11, 5 }
 0x1fa   : > { %16814 = vst [vmem:[#allocation5_spill] sm:$0xff] %v14801_v6  ;;  %v10914_v18 = vcombine.low %v4115_v35, %v4125_v57  ;;  %v10915_v3 = vcombine.low %v4139_v46, %v4149_v58  ;;  %v4182_v56 = vrot.slane %v4181_v53, 4  ;;  %v4192_v54 = vrot.slane %v4191_v60, 4  ;;  %v13369_v35 = vld [vmem:[%s16723_s1 + $0x238] sm:$0xff]   ;;  %v3928_v46 = vld [vmem:[#allocation2 + $0xc0] sm:$0xf] }
 0x1fb   : > { %12255 = vmatpush3.bf16.msra.mxu0 %v13365_v0  ;;  %v4212_v0 = vshrl.u32 %v14776_v7, 16  ;;  %v4205_v21 = vor.u32 %v4204_v52, %v4201_v28  ;;  %v4218_v55 = vshll.u32 %v14801_v6, 16  ;;  %v4242_v20 = vshll.u32 %v14808_v13, 16  ;;  %v14820_v58 = vld [vmem:[#allocation2 + $0xc4] sm:$0xf] }
 0x1fc   : > { %12256 = vmatprep.subr.bf16.mxu0 %v13366_v42  ;;  %v4187_v53 = vsel %vm13635_vm2, %v4182_v56, %v14778_v40  ;;  %v4197_v60 = vsel %vm13635_vm2, %v4192_v54, %v4196_v14  ;;  %v14832_v13 = vld [vmem:[#allocation2 + $0xbc] sm:$0x1]  ;;  %v4262_v14 = vrot.slane %v4260_v29, 4  ;;  %v3931_v6 = vld [vmem:[#allocation2 + $0xcc] sm:$0xf] }
 0x1fd   : > { %v4214_v34 = vrot.slane %v4212_v0, 4  ;;  %v4229_v0 = vor.u32 %v4228_v39, %v4225_v33  ;;  %v4206_v28 = vrot.slane %v4205_v21, 4  ;;  %v4280_v33 = vshll.u32 %v14820_v58, 16 }
 0x1fe   : > { %12225 = vmatmul.mubr.bf16.gmra.mrb[8].mxu0 %v10912_v32  ;;  %v4163_v32 = vsel %vm13635_vm2, %v4158_v15, %v14745_v59  ;;  %v14810_v59 = vrot.slane %v4232_v17, 5  ;;  %v3925_v15 = vld [vmem:[#allocation2 + $0xb4] sm:$0xf]  ;;  %v4256_v17 = vshll.u32 %v14813_v49, 16  ;;  %v4284_v39 = vshrl.u32 %v14820_v58, 16 }
 0x1ff   : > { %12228 = vmatprep.mubr.bf16.mxu0 %v10913_v5  ;;  %12257 = vmatpush3.bf16.msra.mxu0 %v13366_v42  ;;  %v13368_v42 = vld [vmem:[%s16723_s1 + $0x230] sm:$0xff]   ;;  %v14806_v5 = vrot.slane %v4208_v27, 5  ;;  %v10916_v27 = vcombine.low %v4163_v32, %v4173_v31  ;;  %v4247_v11 = vshrl.u32 %v3925_v15, 16  ;;  %v4220_v32 = vrot.slane %v4218_v55, 5 }
 0x200   : > { %12258 = vmatprep.subr.bf16.mxu0 %v13367_v47  ;;  %v4239_v52 = vor.u32 %v4238_v61, %v14810_v59  ;;  %v4271_v31 = vshrl.u32 %v3928_v46, 16  ;;  %v4230_v61 = vrot.slane %v4229_v0, 4  ;;  %v4258_v56 = vrot.slane %v4256_v17, 5 }
 0x201   : > { %v4215_v57 = vor.u32 %v4214_v34, %v14806_v5  ;;  %v4274_v34 = vshll.u32 %v3928_v46, 16  ;;  %v10917_v54 = vcombine.low %v4187_v53, %v4197_v60  ;;  %v4282_v21 = vrot.slane %v4280_v33, 5 }
 0x202   : > { %v4240_v49 = vrot.slane %v4239_v52, 4  ;;  %v4273_v55 = vrot.slane %v4271_v31, 4  ;;  %v4286_v46 = vrot.slane %v4284_v39, 4  ;;  %v4263_v17 = vor.u32 %v4262_v14, %v4258_v56 }
 0x203   : > { %12259 = vmatpush3.bf16.msra.mxu0 %v13367_v47  ;;  %v4250_v47 = vshll.u32 %v3925_v15, 16  ;;  %v4249_v15 = vrot.slane %v4247_v11, 4  ;;  %v14840_v11 = vld [vmem:[#allocation2 + $0xc8] sm:$0x1]  ;;  %v4295_v29 = vshrl.u32 %v3931_v6, 16  ;;  %v4304_v53 = vshll.u32 %v14622_v41, 16 }
 0x204   : > { %12260 = vmatprep.subr.bf16.mxu0 %v13368_v42  ;;  %v4308_v60 = vshrl.u32 %v14622_v41, 16 }
 0x205   : > { %v4252_v40 = vrot.slane %v4250_v47, 5 }
 0x206   : > { %12229 = vmatmul.mubr.bf16.gmra.mrb[12].mxu0 %v10914_v18  ;;  %v4216_v18 = vrot.slane %v4215_v57, 4  ;;  %v4211_v57 = vsel %vm13635_vm2, %v4206_v28, %v14806_v5  ;;  %v4298_v5 = vshll.u32 %v3931_v6, 16 }
 0x207   : > { %12232 = vmatprep.mubr.bf16.mxu0 %v10915_v3  ;;  %12261 = vmatpush3.bf16.msra.mxu0 %v13368_v42  ;;  %v4244_v3 = vrot.slane %v4242_v20, 5  ;;  %v4276_v42 = vrot.slane %v4274_v34, 5  ;;  %v4266_v20 = vshll.u32 %v14832_v13, 16  ;;  %v4253_v47 = vor.u32 %v4252_v40, %v4249_v15 }
 0x208   : > { %12262 = vmatprep.subr.bf16.mxu0 %v13369_v35  ;;  %v4221_v0 = vsel %vm13635_vm2, %v4216_v18, %v4220_v32  ;;  %v4287_v32 = vor.u32 %v4286_v46, %v4282_v21  ;;  %v4297_v18 = vrot.slane %v4295_v29, 4 }
 0x209   : > { %v4245_v52 = vsel %vm13635_vm2, %v4240_v49, %v4244_v3  ;;  %v4277_v28 = vor.u32 %v4276_v42, %v4273_v55  ;;  %v10918_v31 = vcombine.low %v4211_v57, %v4221_v0  ;;  %v4254_v33 = vrot.slane %v4253_v47, 4 }
 0x20a   : > { %v4268_v39 = vrot.slane %v4266_v20, 5  ;;  %v4300_v49 = vrot.slane %v4298_v5, 5  ;;  %v4310_v3 = vrot.slane %v4308_v60, 4  ;;  %v4288_v40 = vrot.slane %v4287_v32, 4  ;;  %v4640_v20 = vld [vmem:[#allocation2 + $0x18] sm:$0xe] }
 0x20b   : > { %12263 = vmatpush3.bf16.msra.mxu0 %v13369_v35  ;;  %v4235_v35 = vsel %vm13635_vm2, %v4230_v61, %v14810_v59  ;;  %v4264_v59 = vrot.slane %v4263_v17, 4  ;;  %v4306_v61 = vrot.slane %v4304_v53, 5  ;;  %v4278_v15 = vrot.slane %v4277_v28, 4  ;;  %v4641_v32 = vld [vmem:[#allocation2 + $0x24] sm:$0xe] }
 0x20c   : > { %v10919_v34 = vcombine.low %v4235_v35, %v4245_v52  ;;  %v4259_v41 = vsel %vm13635_vm2, %v4254_v33, %v4258_v56  ;;  %v4314_v42 = vshll.u32 %v14624_v43, 16  ;;  %v4706_v0 = vrot.slane %v14550_v37, 5 }
 0x20d   : > { %v4269_v14 = vsel %vm13635_vm2, %v4264_v59, %v4268_v39  ;;  %v4311_v55 = vor.u32 %v4310_v3, %v4306_v61  ;;  %v4283_v46 = vsel %vm13635_vm2, %v4278_v15, %v4282_v21  ;;  %v10931_v29 = vrot.slane %v4640_v20, 9 }
 0x20e   : > { %12233 = vmatmul.mubr.bf16.gmra.mrb[16].mxu0 %v10916_v27  ;;  %v4290_v27 = vshll.u32 %v14840_v11, 16  ;;  %v10920_v35 = vcombine.low %v4259_v41, %v4269_v14  ;;  %v4316_v17 = vrot.slane %v4314_v42, 5  ;;  %v4708_v5 = vrot.slane %v4706_v0, 4 }
 0x20f   : > { %12236 = vmatprep.mubr.bf16.mxu0 %v10917_v54  ;;  %v4301_v54 = vor.u32 %v4300_v49, %v4297_v18  ;;  %v4312_v47 = vrot.slane %v4311_v55, 4  ;;  %v4709_v53 = vrot.slane %v14566_v44, 5  ;;  %v4713_v37 = vrot.slane %v14559_v62, 5  ;;  %v4642_v44 = vld [vmem:[#allocation2 + $0x30] sm:$0xe] }
 0x210   : > { %v4292_v6 = vrot.slane %v4290_v27, 5  ;;  %v4707_v60 = vsel %vm13964_vm5, %v10931_v29, %v4706_v0  ;;  %v4720_v27 = vrot.slane %v14564_v63, 5  ;;  %v10932_v33 = vrot.slane %v4641_v32, 9  ;;  %v4647_v32 = vld [vmem:[#allocation2 + $0x6c] sm:$0xe] }
 0x211   : > { %v4302_v56 = vrot.slane %v4301_v54, 4  ;;  %v4317_v21 = vsel %vm13635_vm2, %v4312_v47, %v4316_v17  ;;  %v4710_v28 = vsel %vm13964_vm5, %v4708_v5, %v4709_v53  ;;  %v4715_v59 = vrot.slane %v4713_v37, 4 }
 0x212   : > { %v4293_v57 = vsel %vm13635_vm2, %v4288_v40, %v4292_v6  ;;  %v4716_v39 = vrot.slane %v14574_v26, 5  ;;  %v10933_v18 = vrot.slane %v4642_v44, 9  ;;  %v4722_v49 = vrot.slane %v4720_v27, 4  ;;  %v4643_v40 = vld [vmem:[#allocation2 + $0x3c] sm:$0xe] }
 0x213   : > { %v10921_v52 = vcombine.low %v4283_v46, %v4293_v57  ;;  %v4307_v43 = vsel %vm13635_vm2, %v4302_v56, %v4306_v61  ;;  %v4723_v62 = vrot.slane %v14581_v10, 5  ;;  %v4714_v61 = vsel %vm13964_vm5, %v10932_v33, %v4713_v37  ;;  %v4644_v10 = vld [vmem:[#allocation2 + $0x48] sm:$0xe] }
 0x214   : > { %v4717_v3 = vsel %vm13964_vm5, %v4715_v59, %v4716_v39  ;;  %v4727_v63 = vrot.slane %v14578_v1, 5  ;;  %v4721_v15 = vsel %vm13964_vm5, %v10933_v18, %v4720_v27  ;;  %v4734_v6 = vrot.slane %v14587_v16, 5 }
 0x215   : > { %v4724_v26 = vsel %vm13964_vm5, %v4722_v49, %v4723_v62  ;;  %v10964_v41 = vcombine.low %v4714_v61, %v4717_v3  ;;  %v10934_v54 = vrot.slane %v4643_v40, 9  ;;  %v4730_v42 = vrot.slane %v14596_v9, 5  ;;  %v4649_v3 = vld [vmem:[#allocation2 + $0x84] sm:$0xe] }
 0x216   : > { %12237 = vmatmul.mubr.bf16.gmra.mrb[20].mxu0 %v10918_v31  ;;  %v10922_v31 = vcombine.low %v4307_v43, %v4317_v21  ;;  %v10965_v14 = vcombine.low %v4721_v15, %v4724_v26  ;;  %v4729_v55 = vrot.slane %v4727_v63, 4  ;;  %v10935_v46 = vrot.slane %v4644_v10, 9 }
 0x217   : > { %12240 = vmatprep.mubr.bf16.mxu0 %v10919_v34  ;;  %v10963_v34 = vcombine.low %v4707_v60, %v4710_v28  ;;  %v4736_v57 = vrot.slane %v4734_v6, 4  ;;  %v4737_v1 = vrot.slane %v14618_v24, 5  ;;  %v4728_v0 = vsel %vm13964_vm5, %v10934_v54, %v4727_v63  ;;  %v4646_v24 = vld [vmem:[#allocation2 + $0x60] sm:$0xe] }
 0x218   : > { %v4731_v20 = vsel %vm13964_vm5, %v4729_v55, %v4730_v42  ;;  %v4741_v16 = vrot.slane %v14614_v38, 5  ;;  %v4748_v56 = vrot.slane %v14634_v12, 5  ;;  %v4744_v53 = vrot.slane %v14643_v48, 5 }
 0x219   : > { %v4738_v9 = vsel %vm13964_vm5, %v4736_v57, %v4737_v1  ;;  %v10966_v47 = vcombine.low %v4728_v0, %v4731_v20  ;;  %v10937_v43 = vrot.slane %v4646_v24, 9  ;;  %v4751_v38 = vrot.slane %v14681_v45, 5  ;;  %v4648_v45 = vld [vmem:[#allocation2 + $0x78] sm:$0xe]  ;;  %v16818_v24 = vld [vmem:[#allocation6_spill] sm:$0xff] }
 0x21a   : > { %v4743_v5 = vrot.slane %v4741_v16, 4  ;;  %v4750_v21 = vrot.slane %v4748_v56, 4  ;;  %v4755_v12 = vrot.slane %v14678_v30, 5  ;;  %v4762_v27 = vrot.slane %v14693_v23, 5 }
 0x21b   : > { %v4749_v28 = vsel %vm13964_vm5, %v10937_v43, %v4748_v56  ;;  %v4758_v59 = vrot.slane %v14710_v8, 5  ;;  %v10939_v39 = vrot.slane %v4648_v45, 9  ;;  %v4765_v30 = vrot.slane %v14728_v51, 5  ;;  %v4650_v51 = vld [vmem:[#allocation2 + $0x90] sm:$0xe] }
 0x21c   : > { %v4745_v60 = vsel %vm13964_vm5, %v4743_v5, %v4744_v53  ;;  %v4752_v48 = vsel %vm13964_vm5, %v4750_v21, %v4751_v38  ;;  %v4757_v33 = vrot.slane %v4755_v12, 4  ;;  %v4764_v18 = vrot.slane %v4762_v27, 4  ;;  %v4653_v43 = vld [vmem:[#allocation2 + $0xb4] sm:$0xe]  ;;  %v4654_v38 = vld [vmem:[#allocation2 + $0xc0] sm:$0xe] }
 0x21d   : > { %v4769_v23 = vrot.slane %v14714_v4, 5  ;;  %v4763_v61 = vsel %vm13964_vm5, %v10939_v39, %v4762_v27  ;;  %v4776_v63 = vrot.slane %v14747_v19, 5  ;;  %v10940_v40 = vrot.slane %v4649_v3, 9  ;;  %v5629_v3 = vld [vmem:[#allocation2 + $0x4] sm:$0xf] }
 0x21e   : > { %12241 = vmatmul.mubr.bf16.gmra.mrb[24].mxu0 %v10920_v35  ;;  %v4735_v35 = vsel %vm13964_vm5, %v10935_v46, %v4734_v6  ;;  %v4759_v62 = vsel %vm13964_vm5, %v4757_v33, %v4758_v59  ;;  %v4766_v8 = vsel %vm13964_vm5, %v4764_v18, %v4765_v30  ;;  %v4772_v10 = vrot.slane %v14753_v2, 5  ;;  %v4651_v46 = vld [vmem:[#allocation2 + $0x9c] sm:$0xe]  ;;  %v13370_v18 = vld [vmem:[%s16725_s3 + $0x40] sm:$0xff]   ;;  %v13371_v30 = vld [vmem:[%s16725_s3 + $0x48] sm:$0xff]  }
 0x21f   : > { %12244 = vmatprep.mubr.bf16.mxu0 %v10921_v52  ;;  %v4645_v52 = vld [vmem:[#allocation2 + $0x54] sm:$0xe]  ;;  %v10967_v17 = vcombine.low %v4735_v35, %v4738_v9  ;;  %v10971_v26 = vcombine.low %v4763_v61, %v4766_v8  ;;  %v4771_v6 = vrot.slane %v4769_v23, 4  ;;  %v4779_v4 = vrot.slane %v14766_v50, 5  ;;  %v4652_v50 = vld [vmem:[#allocation2 + $0xa8] sm:$0xe]  ;;  %12296 = vmatprep.subr.bf16.mxu1 %v13370_v18 }
 0x220   : > { %v10936_v29 = vrot.slane %v4645_v52, 9  ;;  %v4770_v54 = vsel %vm13964_vm5, %v10940_v40, %v4769_v23  ;;  %v4783_v19 = vrot.slane %v14776_v7, 5  ;;  %v4790_v57 = vrot.slane %v14780_v22, 5  ;;  %v16817_v35 = vld [vmem:[#allocation5_spill] sm:$0xff]  ;;  %v16819_v22 = vld [vmem:[#allocation7_spill] sm:$0xff]  ;;  %12297 = vmatpush3.bf16.msra.mxu1 %v13370_v18  ;;  %v13374_v23 = vld [vmem:[%s16725_s3 + $0x60] sm:$0xff]  }
 0x221   : > { %v4773_v55 = vsel %vm13964_vm5, %v4771_v6, %v4772_v10  ;;  %v10942_v20 = vrot.slane %v4651_v46, 9  ;;  %v4786_v9 = vrot.slane %v16817_v35, 5  ;;  %v10943_v52 = vrot.slane %v4652_v50, 9  ;;  %v16820_v59 = vld [vmem:[#allocation3_spill] sm:$0xff]  ;;  %12298 = vmatprep.subr.bf16.mxu1 %v13371_v30  ;;  %v13375_v61 = vld [vmem:[%s16725_s3 + $0x68] sm:$0xff]   ;;  %v13376_v40 = vld [vmem:[%s16725_s3 + $0x70] sm:$0xff]  }
 0x222   : > { %v4742_v37 = vsel %vm13964_vm5, %v10936_v29, %v4741_v16  ;;  %v10972_v1 = vcombine.low %v4770_v54, %v4773_v55  ;;  %v4785_v16 = vrot.slane %v4783_v19, 4  ;;  %v4792_v56 = vrot.slane %v4790_v57, 4  ;;  %v5628_v8 = vld [vmem:[#allocation2] sm:$0xf] }
 0x223   : > { %v10968_v44 = vcombine.low %v4742_v37, %v4745_v60  ;;  %v4793_v7 = vrot.slane %v16818_v24, 5  ;;  %v4797_v29 = vrot.slane %v16819_v22, 5  ;;  %v4791_v5 = vsel %vm13964_vm5, %v10943_v52, %v4790_v57 }
 0x224   : > { %v4804_v21 = vrot.slane %v14820_v58, 5  ;;  %v4807_v45 = vrot.slane %v14840_v11, 5  ;;  %v16821_v11 = vld [vmem:[#allocation4_spill] sm:$0xff]  ;;  %12299 = vmatpush3.bf16.msra.mxu1 %v13371_v30 }
 0x225   : > { %v4794_v53 = vsel %vm13964_vm5, %v4792_v56, %v4793_v7  ;;  %v16822_v39 = vcombine.low %v16820_v59, %v16821_v11 }
 0x226   : > { %12245 = vmatmul.mubr.bf16.gmra.mrb[28].mxu0 %v10922_v31  ;;  %v10969_v31 = vcombine.low %v4749_v28, %v4752_v48  ;;  %v10975_v60 = vcombine.low %v4791_v5, %v4794_v53  ;;  %v4799_v28 = vrot.slane %v4797_v29, 4  ;;  %v4800_v48 = vrot.slane %v14832_v13, 5 }
 0x227   : > { %12264 = vmatprep.mubr.bf16.mxu0 %v10963_v34  ;;  %v10938_v34 = vrot.slane %v4647_v32, 9  ;;  %v10945_v32 = vrot.slane %v4654_v38, 9  ;;  %v4806_v27 = vrot.slane %v4804_v21, 4 }
 0x229   : > { %v4756_v49 = vsel %vm13964_vm5, %v10938_v34, %v4755_v12  ;;  %v10944_v12 = vrot.slane %v4653_v43, 9  ;;  %v4805_v58 = vsel %vm13964_vm5, %v10945_v32, %v4804_v21  ;;  %v4808_v34 = vsel %vm13964_vm5, %v4806_v27, %v4807_v45 }
 0x22a   : > { %v10970_v15 = vcombine.low %v4756_v49, %v4759_v62  ;;  %v10977_v13 = vcombine.low %v4805_v58, %v4808_v34  ;;  %v13372_v49 = vld [vmem:[%s16725_s3 + $0x50] sm:$0xff]   ;;  %v13373_v62 = vld [vmem:[%s16725_s3 + $0x58] sm:$0xff]  }
 0x22b   : > { %12300 = vmatprep.subr.bf16.mxu1 %v13372_v49 }
 0x22c   : > { %12301 = vmatpush3.bf16.msra.mxu1 %v13372_v49 }
 0x22d   : > { %12302 = vmatprep.subr.bf16.mxu1 %v13373_v62 }
 0x22e   : > { %12265 = vmatmul.mubr.bf16.vlgmr.msra.gmra.mrb[0].mxu0 %v10964_v41  ;;  %v10941_v41 = vrot.slane %v4650_v51, 9  ;;  %v5696_v51 = vshll.u32 %v5628_v8, 16 }
 0x22f   : > { %12268 = vmatprep.mubr.bf16.mxu0 %v10965_v14  ;;  %v4778_v14 = vrot.slane %v4776_v63, 4 }
 0x230   : > { %v4777_v42 = vsel %vm13964_vm5, %v10941_v41, %v4776_v63  ;;  %12303 = vmatpush3.bf16.msra.mxu1 %v13373_v62  ;;  %v5693_v63 = vshrl.u32 %v5628_v8, 16  ;;  %v5698_v10 = vrot.slane %v5696_v51, 5 }
 0x231   : > { %v4780_v2 = vsel %vm13964_vm5, %v4778_v14, %v4779_v4  ;;  %12304 = vmatprep.subr.bf16.mxu1 %v13374_v23  ;;  %v5676_v4 = vld [vmem:[#allocation2 + $0x8] sm:$0x1] }
 0x232   : > { %v10973_v0 = vcombine.low %v4777_v42, %v4780_v2  ;;  %v5695_v6 = vrot.slane %v5693_v63, 4  ;;  %v13377_v42 = vld [vmem:[%s16725_s3 + $0x78] sm:$0xff]  }
 0x234   : > { %12305 = vmatpush3.bf16.msra.mxu1 %v13374_v23  ;;  %v5699_v54 = vor.u32 %v5698_v10, %v5695_v6 }
 0x235   : > { %12306 = vmatprep.subr.bf16.mxu1 %v13375_v61 }
 0x236   : > { %12269 = vmatmul.mubr.bf16.gmra.mrb[4].mxu0 %v10966_v47  ;;  %v4784_v47 = vsel %vm13964_vm5, %v10942_v20, %v4783_v19  ;;  %v5712_v19 = vshll.u32 %v5676_v4, 16  ;;  %v5700_v2 = vrot.slane %v5699_v54, 4  ;;  %v14987_v20 = vld [vmem:[%s16725_s3] sm:$0xff]  }
 0x237   : > { %12272 = vmatprep.mubr.bf16.mxu0 %v10967_v17  ;;  %v4787_v17 = vsel %vm13964_vm5, %v4785_v16, %v4786_v9  ;;  %v14993_v16 = vld [vmem:[%s16724_s2] ss:$0 sm:$0xff] }
 0x238   : > { %v10974_v37 = vcombine.low %v4784_v47, %v4787_v17  ;;  %12307 = vmatpush3.bf16.msra.mxu1 %v13375_v61  ;;  %v5714_v57 = vrot.slane %v5712_v19, 5 }
 0x239   : > { %12308 = vmatprep.subr.bf16.mxu1 %v13376_v40 }
 0x23c   : > { %12309 = vmatpush3.bf16.msra.mxu1 %v13376_v40 }
 0x23d   : > { %12310 = vmatprep.subr.bf16.mxu1 %v13377_v42 }
 0x23e   : > { %12273 = vmatmul.mubr.bf16.gmra.mrb[8].mxu0 %v10968_v44  ;;  %v4798_v44 = vsel %vm13964_vm5, %v10944_v12, %v4797_v29 }
 0x23f   : > { %12276 = vmatprep.mubr.bf16.mxu0 %v10969_v31  ;;  %v4801_v31 = vsel %vm13964_vm5, %v4799_v28, %v4800_v48 }
 0x240   : > { %v10976_v33 = vcombine.low %v4798_v44, %v4801_v31  ;;  %12311 = vmatpush3.bf16.msra.mxu1 %v13377_v42 }
 0x241   : > { %12344 = vmatprep.subr.bf16.mxu1 %v14987_v20 }
 0x246   : > { %12277 = vmatmul.mubr.bf16.gmra.mrb[12].mxu0 %v10970_v15  ;;  %v5702_v15 = vshll.u32 %v5629_v3, 16 }
 0x247   : > { %12280 = vmatprep.mubr.bf16.mxu0 %v10971_v26  ;;  %v5706_v26 = vshrl.u32 %v5629_v3, 16 }
 0x248   : > { %v5704_v41 = vrot.slane %v5702_v15, 5 }
 0x249   : > { %v5708_v14 = vrot.slane %v5706_v26, 4 }
 0x24a   : > { %v5705_v50 = vsel %vm13635_vm2, %v5700_v2, %v5704_v41 }
 0x24b   : > { %v5709_v55 = vor.u32 %v5708_v14, %v5704_v41 }
 0x24d   : > { %v5710_v46 = vrot.slane %v5709_v55, 4 }
 0x24e   : > { %12281 = vmatmul.mubr.bf16.gmra.mrb[16].mxu0 %v10972_v1 }
 0x24f   : > { %12284 = vmatprep.mubr.bf16.mxu0 %v10973_v0  ;;  %v5715_v1 = vsel %vm13635_vm2, %v5710_v46, %v5714_v57 }
 0x250   : > { %v11052_v0 = vcombine.low %v5705_v50, %v5715_v1 }
 0x252   : > { %12312 = vmatprep.mubr.bf16.mxu1 %v11052_v0 }
 0x256   : > { %12285 = vmatmul.mubr.bf16.gmra.mrb[20].mxu0 %v10974_v37 }
 0x257   : > { %12288 = vmatprep.mubr.bf16.mxu0 %v10975_v60 }
 0x25e   : > { %12289 = vmatmul.mubr.bf16.gmra.mrb[24].mxu0 %v10976_v33 }
 0x25f   : > { %12292 = vmatprep.mubr.bf16.mxu0 %v10977_v13 }
 0x266   : > { %12293 = vmatmul.mubr.bf16.gmra.mrb[28].mxu0 %v16822_v39 }
 0x301   : > { %v12266_v35 = vpop.f32.mrb[0].mxu0 }
 0x302   : > { %v5147_v9 = vadd.f32 %v12266_v35, %v14993_v16  ;;  %v4979_v52 = vpop.f32.mrb[1].mxu0 }
 0x303   : > { %v5145_v56 = vadd.f32 %v14993_v16, %v4979_v52  ;;  %v12267_v24 = vpop.f32.mrb[2].mxu0 }
 0x304   : > { %v5148_v7 = vadd.f32 %v12267_v24, %v14993_v16  ;;  %v4982_v47 = vpop.f32.mrb[3].mxu0  ;;  %v5179_v22 = vmax.f32 %v5147_v9, 0.0 }
 0x305   : > { %v5146_v17 = vadd.f32 %v14993_v16, %v4982_v47  ;;  %v5177_v5 = vmax.f32 %v5145_v56, 0.0 }
 0x306   : > { %v5180_v29 = vmax.f32 %v5148_v7, 0.0 }
 0x307   : > { %v5178_v53 = vmax.f32 %v5146_v17, 0.0 }
 0x308   : > { %v5210_v43 = vpack.c.bf16 %v5180_v29, %v5179_v22 }
 0x309   : > { %v5209_v21 = vpack.c.bf16 %v5178_v53, %v5177_v5  ;;  %v12270_v38 = vpop.f32.mrb[4].mxu0 }
 0x30a   : > { %v5233_v37 = vshrl.u32 %v5210_v43, 16  ;;  %v5151_v60 = vadd.f32 %v12270_v38, %v14993_v16  ;;  %v4995_v12 = vpop.f32.mrb[5].mxu0  ;;  %v5236_v44 = vshll.u32 %v5210_v43, 16 }
 0x30b   : > { %v5226_v48 = vshrl.u32 %v5209_v21, 16  ;;  %v5149_v32 = vadd.f32 %v14993_v16, %v4995_v12  ;;  %v12271_v27 = vpop.f32.mrb[6].mxu0  ;;  %v5229_v33 = vshll.u32 %v5209_v21, 16 }
 0x30c   : > { %v5235_v45 = vrot.slane %v5233_v37, 7  ;;  %v5152_v31 = vadd.f32 %v12271_v27, %v14993_v16  ;;  %v4998_v58 = vpop.f32.mrb[7].mxu0  ;;  %v5183_v13 = vmax.f32 %v5151_v60, 0.0 }
 0x30d   : > { %v5228_v34 = vrot.slane %v5226_v48, 7  ;;  %v5150_v59 = vadd.f32 %v14993_v16, %v4998_v58  ;;  %v5181_v18 = vmax.f32 %v5149_v32, 0.0 }
 0x30e   : > { %v5238_v11 = vor.u32 %v5236_v44, %v5235_v45  ;;  %v5389_v39 = vsel %vm15000_vm8, %v5235_v45, 0  ;;  %v5184_v30 = vmax.f32 %v5152_v31, 0.0 }
 0x30f   : > { %v10993_v49 = vcombine.low %v5389_v39, %v5389_v39  ;;  %v5231_v62 = vor.u32 %v5229_v33, %v5228_v34  ;;  %v5388_v23 = vsel %vm15000_vm8, %v5228_v34, 0  ;;  %v5182_v61 = vmax.f32 %v5150_v59, 0.0 }
 0x310   : > { %v5373_v8 = vsel %vm15000_vm8, 0, %v5238_v11  ;;  %v10990_v3 = vcombine.low %v5388_v23, %v5388_v23  ;;  %v5212_v63 = vpack.c.bf16 %v5184_v30, %v5183_v13 }
 0x311   : > { %v10991_v51 = vcombine.low %v5373_v8, %v5373_v8  ;;  %v10992_v15 = vcombine.high %v5373_v8, %v5373_v8  ;;  %5585 = vst [vmem:[#allocation2 + $0x20] sm:$0x1] %v10993_v49  ;;  %v5372_v26 = vsel %vm15000_vm8, 0, %v5231_v62  ;;  %v5211_v40 = vpack.c.bf16 %v5182_v61, %v5181_v18  ;;  %v12274_v6 = vpop.f32.mrb[8].mxu0 }
 0x312   : > { %v10988_v10 = vcombine.low %v5372_v26, %v5372_v26  ;;  %v10989_v41 = vcombine.high %v5372_v26, %v5372_v26  ;;  %5582 = vst [vmem:[#allocation2 + $0x14] sm:$0x1] %v10990_v3  ;;  %v5247_v14 = vshrl.u32 %v5212_v63, 16  ;;  %v5011_v4 = vpop.f32.mrb[9].mxu0  ;;  %v5155_v55 = vadd.f32 %v12274_v6, %v14993_v16 }
 0x313   : > { %5584 = vst [vmem:[#allocation2 + $0x1c] sm:$0xf] %v10992_v15  ;;  %5583 = vst [vmem:[#allocation2 + $0x18] sm:$0xf] %v10991_v51  ;;  %v5240_v54 = vshrl.u32 %v5211_v40, 16  ;;  %v5153_v19 = vadd.f32 %v14993_v16, %v5011_v4  ;;  %v12275_v42 = vpop.f32.mrb[10].mxu0 }
 0x314   : > { %5580 = vst [vmem:[#allocation2 + $0xc] sm:$0xf] %v10988_v10  ;;  %5581 = vst [vmem:[#allocation2 + $0x10] sm:$0xf] %v10989_v41  ;;  %v5249_v2 = vrot.slane %v5247_v14, 7  ;;  %v5250_v46 = vshll.u32 %v5212_v63, 16  ;;  %v5156_v57 = vadd.f32 %v12275_v42, %v14993_v16 }
 0x315   : > { %v5014_v50 = vpop.f32.mrb[11].mxu0  ;;  %v5242_v1 = vrot.slane %v5240_v54, 7  ;;  %v5243_v0 = vshll.u32 %v5211_v40, 16  ;;  %v5187_v35 = vmax.f32 %v5155_v55, 0.0  ;;  %v5185_v24 = vmax.f32 %v5153_v19, 0.0 }
 0x316   : > { %v5154_v9 = vadd.f32 %v14993_v16, %v5014_v50  ;;  %v5252_v52 = vor.u32 %v5250_v46, %v5249_v2  ;;  %v5391_v56 = vsel %vm15000_vm8, %v5249_v2, 0  ;;  %v5188_v7 = vmax.f32 %v5156_v57, 0.0 }
 0x317   : > { %v10999_v47 = vcombine.low %v5391_v56, %v5391_v56  ;;  %v5245_v17 = vor.u32 %v5243_v0, %v5242_v1  ;;  %v5390_v22 = vsel %vm15000_vm8, %v5242_v1, 0 }
 0x318   : > { %v5186_v29 = vmax.f32 %v5154_v9, 0.0  ;;  %v5375_v5 = vsel %vm15000_vm8, 0, %v5252_v52  ;;  %v10996_v53 = vcombine.low %v5390_v22, %v5390_v22  ;;  %v5214_v43 = vpack.c.bf16 %v5188_v7, %v5187_v35 }
 0x319   : > { %v10997_v21 = vcombine.low %v5375_v5, %v5375_v5  ;;  %v10998_v38 = vcombine.high %v5375_v5, %v5375_v5  ;;  %5591 = vst [vmem:[#allocation2 + $0x38] sm:$0x1] %v10999_v47  ;;  %v5374_v37 = vsel %vm15000_vm8, 0, %v5245_v17  ;;  %v12278_v12 = vpop.f32.mrb[12].mxu0 }
 0x31a   : > { %v5213_v60 = vpack.c.bf16 %v5186_v29, %v5185_v24  ;;  %v10994_v48 = vcombine.low %v5374_v37, %v5374_v37  ;;  %v10995_v32 = vcombine.high %v5374_v37, %v5374_v37  ;;  %5588 = vst [vmem:[#allocation2 + $0x2c] sm:$0x1] %v10996_v53  ;;  %v5261_v27 = vshrl.u32 %v5214_v43, 16  ;;  %v5027_v44 = vpop.f32.mrb[13].mxu0 }
 0x31b   : > { %v5264_v45 = vshll.u32 %v5214_v43, 16  ;;  %5590 = vst [vmem:[#allocation2 + $0x34] sm:$0xf] %v10998_v38  ;;  %5589 = vst [vmem:[#allocation2 + $0x30] sm:$0xf] %v10997_v21  ;;  %v5159_v34 = vadd.f32 %v12278_v12, %v14993_v16  ;;  %v5157_v33 = vadd.f32 %v14993_v16, %v5027_v44  ;;  %v12279_v13 = vpop.f32.mrb[14].mxu0 }
 0x31c   : > { %v5254_v31 = vshrl.u32 %v5213_v60, 16  ;;  %v5257_v58 = vshll.u32 %v5213_v60, 16  ;;  %v5630_v59 = vld [vmem:[#allocation2 + $0xc] sm:$0xf]  ;;  %5587 = vst [vmem:[#allocation2 + $0x28] sm:$0xf] %v10995_v32  ;;  %v5160_v39 = vadd.f32 %v12279_v13, %v14993_v16 }
 0x31d   : > { %5586 = vst [vmem:[#allocation2 + $0x24] sm:$0xf] %v10994_v48  ;;  %v5263_v11 = vrot.slane %v5261_v27, 7  ;;  %v5030_v18 = vpop.f32.mrb[15].mxu0  ;;  %v5717_v30 = vshrl.u32 %v5630_v59, 16  ;;  %v5720_v49 = vshll.u32 %v5630_v59, 16 }
 0x31e   : > { %v5256_v62 = vrot.slane %v5254_v31, 7  ;;  %v5191_v23 = vmax.f32 %v5159_v34, 0.0  ;;  %v5189_v61 = vmax.f32 %v5157_v33, 0.0  ;;  %v5158_v8 = vadd.f32 %v14993_v16, %v5030_v18  ;;  %v5631_v35 = vld [vmem:[#allocation2 + $0x10] sm:$0xf] }
 0x31f   : > { %v5266_v3 = vor.u32 %v5264_v45, %v5263_v11  ;;  %v5393_v63 = vsel %vm15000_vm8, %v5263_v11, 0  ;;  %v5192_v51 = vmax.f32 %v5160_v39, 0.0  ;;  %v5719_v15 = vrot.slane %v5717_v30, 4  ;;  %v5677_v33 = vld [vmem:[#allocation2 + $0x14] sm:$0x1] }
 0x320   : > { %v11005_v26 = vcombine.low %v5393_v63, %v5393_v63  ;;  %v5259_v40 = vor.u32 %v5257_v58, %v5256_v62  ;;  %v5392_v6 = vsel %vm15000_vm8, %v5256_v62, 0  ;;  %v5190_v10 = vmax.f32 %v5158_v8, 0.0  ;;  %v5632_v30 = vld [vmem:[#allocation2 + $0x18] sm:$0xf] }
 0x321   : > { %v5377_v41 = vsel %vm15000_vm8, 0, %v5266_v3  ;;  %v11002_v14 = vcombine.low %v5392_v6, %v5392_v6  ;;  %v5216_v4 = vpack.c.bf16 %v5192_v51, %v5191_v23  ;;  %v5722_v54 = vrot.slane %v5720_v49, 5  ;;  %v12282_v46 = vpop.f32.mrb[16].mxu0  ;;  %v5633_v3 = vld [vmem:[#allocation2 + $0x1c] sm:$0xf] }
 0x322   : > { %v11003_v55 = vcombine.low %v5377_v41, %v5377_v41  ;;  %v11004_v19 = vcombine.high %v5377_v41, %v5377_v41  ;;  %5597 = vst [vmem:[#allocation2 + $0x50] sm:$0x1] %v11005_v26  ;;  %v5376_v42 = vsel %vm15000_vm8, 0, %v5259_v40  ;;  %v5215_v2 = vpack.c.bf16 %v5190_v10, %v5189_v61  ;;  %v5043_v0 = vpop.f32.mrb[17].mxu0 }
 0x323   : > { %v11000_v57 = vcombine.low %v5376_v42, %v5376_v42  ;;  %v11001_v50 = vcombine.high %v5376_v42, %v5376_v42  ;;  %5594 = vst [vmem:[#allocation2 + $0x44] sm:$0x1] %v11002_v14  ;;  %v5275_v1 = vshrl.u32 %v5216_v4, 16  ;;  %v5278_v9 = vshll.u32 %v5216_v4, 16  ;;  %v12283_v7 = vpop.f32.mrb[18].mxu0 }
 0x324   : > { %5596 = vst [vmem:[#allocation2 + $0x4c] sm:$0xf] %v11004_v19  ;;  %5595 = vst [vmem:[#allocation2 + $0x48] sm:$0xf] %v11003_v55  ;;  %v5268_v52 = vshrl.u32 %v5215_v2, 16  ;;  %v5163_v56 = vadd.f32 %v12282_v46, %v14993_v16  ;;  %v5161_v24 = vadd.f32 %v14993_v16, %v5043_v0  ;;  %v5271_v17 = vshll.u32 %v5215_v2, 16 }
 0x325   : > { %5593 = vst [vmem:[#allocation2 + $0x40] sm:$0xf] %v11001_v50  ;;  %5592 = vst [vmem:[#allocation2 + $0x3c] sm:$0xf] %v11000_v57  ;;  %v5277_v47 = vrot.slane %v5275_v1, 7  ;;  %v5164_v22 = vadd.f32 %v12283_v7, %v14993_v16  ;;  %v5046_v29 = vpop.f32.mrb[19].mxu0  ;;  %v5723_v5 = vor.u32 %v5722_v54, %v5719_v15 }
 0x326   : > { %v5270_v53 = vrot.slane %v5268_v52, 7  ;;  %v5195_v43 = vmax.f32 %v5163_v56, 0.0  ;;  %v5162_v21 = vadd.f32 %v14993_v16, %v5046_v29  ;;  %v5726_v38 = vshll.u32 %v5631_v35, 16  ;;  %v5678_v7 = vld [vmem:[#allocation2 + $0x20] sm:$0x1] }
 0x327   : > { %v5280_v37 = vor.u32 %v5278_v9, %v5277_v47  ;;  %v5395_v60 = vsel %vm15000_vm8, %v5277_v47, 0  ;;  %v5193_v12 = vmax.f32 %v5161_v24, 0.0  ;;  %v5196_v48 = vmax.f32 %v5164_v22, 0.0 }
 0x328   : > { %v11011_v32 = vcombine.low %v5395_v60, %v5395_v60  ;;  %v5273_v27 = vor.u32 %v5271_v17, %v5270_v53  ;;  %v5394_v45 = vsel %vm15000_vm8, %v5270_v53, 0  ;;  %v5194_v44 = vmax.f32 %v5162_v21, 0.0 }
 0x329   : > { %v5379_v31 = vsel %vm15000_vm8, 0, %v5280_v37  ;;  %v11008_v58 = vcombine.low %v5394_v45, %v5394_v45  ;;  %v5218_v34 = vpack.c.bf16 %v5196_v48, %v5195_v43  ;;  %v15049_v13 = vrot.slane %v5723_v5, 4  ;;  %v12286_v49 = vpop.f32.mrb[20].mxu0 }
 0x32a   : > { %v11009_v59 = vcombine.low %v5379_v31, %v5379_v31  ;;  %v11010_v11 = vcombine.high %v5379_v31, %v5379_v31  ;;  %5603 = vst [vmem:[#allocation2 + $0x68] sm:$0x1] %v11011_v32  ;;  %v5378_v39 = vsel %vm15000_vm8, 0, %v5273_v27  ;;  %v5217_v18 = vpack.c.bf16 %v5194_v44, %v5193_v12  ;;  %v5059_v63 = vpop.f32.mrb[21].mxu0  ;;  %v15074_v44 = vld [vmem:[#allocation2 + $0x24] sm:$0xf] }
 0x32b   : > { %v11006_v62 = vcombine.low %v5378_v39, %v5378_v39  ;;  %v11007_v23 = vcombine.high %v5378_v39, %v5378_v39  ;;  %5600 = vst [vmem:[#allocation2 + $0x5c] sm:$0x1] %v11008_v58  ;;  %v5289_v61 = vshrl.u32 %v5218_v34, 16  ;;  %v5728_v8 = vrot.slane %v5726_v38, 5  ;;  %v12287_v6 = vpop.f32.mrb[22].mxu0 }
 0x32c   : > { %5602 = vst [vmem:[#allocation2 + $0x64] sm:$0xf] %v11010_v11  ;;  %5601 = vst [vmem:[#allocation2 + $0x60] sm:$0xf] %v11009_v59  ;;  %v5292_v51 = vshll.u32 %v5218_v34, 16  ;;  %v5282_v15 = vshrl.u32 %v5217_v18, 16  ;;  %v5167_v27 = vadd.f32 %v12286_v49, %v14993_v16  ;;  %v5165_v45 = vadd.f32 %v14993_v16, %v5059_v63 }
 0x32d   : > { %v5285_v26 = vshll.u32 %v5217_v18, 16  ;;  %v5730_v40 = vshrl.u32 %v5631_v35, 16  ;;  %5599 = vst [vmem:[#allocation2 + $0x58] sm:$0xf] %v11007_v23  ;;  %5598 = vst [vmem:[#allocation2 + $0x54] sm:$0xf] %v11006_v62  ;;  %v5729_v41 = vsel %vm13635_vm2, %v15049_v13, %v5728_v8  ;;  %v5168_v13 = vadd.f32 %v12287_v6, %v14993_v16 }
 0x32e   : > { %v5291_v10 = vrot.slane %v5289_v61, 7  ;;  %v5736_v14 = vshll.u32 %v5677_v33, 16  ;;  %v5741_v4 = vshrl.u32 %v5632_v30, 16  ;;  %v5062_v54 = vpop.f32.mrb[23].mxu0  ;;  %v5284_v55 = vrot.slane %v5282_v15, 7  ;;  %v13379_v11 = vld [vmem:[%s16725_s3 + $0x8] sm:$0xff]  }
 0x32f   : > { %v5732_v19 = vrot.slane %v5730_v40, 4  ;;  %v5744_v42 = vshll.u32 %v5632_v30, 16  ;;  %v5750_v2 = vshll.u32 %v5633_v3, 16  ;;  %v5754_v60 = vshrl.u32 %v5633_v3, 16  ;;  %v15079_v59 = vld [vmem:[#allocation2 + $0x28] sm:$0xf] }
 0x330   : > { %v5294_v46 = vor.u32 %v5292_v51, %v5291_v10  ;;  %v5397_v57 = vsel %vm15000_vm8, %v5291_v10, 0  ;;  %v5738_v50 = vrot.slane %v5736_v14, 5  ;;  %v5743_v1 = vrot.slane %v5741_v4, 4  ;;  %v5679_v23 = vld [vmem:[#allocation2 + $0x2c] sm:$0x1]  ;;  %v13380_v4 = vld [vmem:[%s16725_s3 + $0x10] sm:$0xff]  }
 0x331   : > { %v11017_v0 = vcombine.low %v5397_v57, %v5397_v57  ;;  %v5287_v35 = vor.u32 %v5285_v26, %v5284_v55  ;;  %v5396_v9 = vsel %vm15000_vm8, %v5284_v55, 0  ;;  %v5733_v52 = vor.u32 %v5732_v19, %v5728_v8  ;;  %v15066_v43 = vpop.f32.mrb[24].mxu0 }
 0x332   : > { %v5381_v56 = vsel %vm15000_vm8, 0, %v5294_v46  ;;  %v11014_v24 = vcombine.low %v5396_v9, %v5396_v9  ;;  %v5746_v47 = vrot.slane %v5744_v42, 5  ;;  %v15062_v17 = vrot.slane %v5750_v2, 5  ;;  %v15068_v12 = vpop.f32.mrb[25].mxu0  ;;  %v15099_v42 = vld [vmem:[#allocation2 + $0x30] sm:$0xf] }
 0x333   : > { %v11015_v22 = vcombine.low %v5381_v56, %v5381_v56  ;;  %v11016_v29 = vcombine.high %v5381_v56, %v5381_v56  ;;  %5609 = vst [vmem:[#allocation2 + $0x80] sm:$0x1] %v11017_v0  ;;  %v5380_v5 = vsel %vm15000_vm8, 0, %v5287_v35  ;;  %v5734_v53 = vrot.slane %v5733_v52, 4  ;;  %v15076_v31 = vpop.f32.mrb[26].mxu0 }
 0x334   : > { %v11012_v21 = vcombine.low %v5380_v5, %v5380_v5  ;;  %v11013_v38 = vcombine.high %v5380_v5, %v5380_v5  ;;  %5606 = vst [vmem:[#allocation2 + $0x74] sm:$0x1] %v11014_v24  ;;  %v5747_v37 = vor.u32 %v5746_v47, %v5743_v1  ;;  %v5760_v32 = vshll.u32 %v5678_v7, 16  ;;  %v15084_v39 = vpop.f32.mrb[27].mxu0  ;;  %v15105_v0 = vld [vmem:[#allocation2 + $0x34] sm:$0xf] }
 0x335   : > { %5608 = vst [vmem:[#allocation2 + $0x7c] sm:$0xf] %v11016_v29  ;;  %5607 = vst [vmem:[#allocation2 + $0x78] sm:$0xf] %v11015_v22  ;;  %v5739_v48 = vsel %vm13635_vm2, %v5734_v53, %v5738_v50  ;;  %v5756_v33 = vrot.slane %v5754_v60, 4  ;;  %v5199_v30 = vmax.f32 %v5167_v27, 0.0  ;;  %v5166_v62 = vadd.f32 %v14993_v16, %v5062_v54 }
 0x336   : > { %5605 = vst [vmem:[#allocation2 + $0x70] sm:$0xf] %v11013_v38  ;;  %5604 = vst [vmem:[#allocation2 + $0x6c] sm:$0xf] %v11012_v21  ;;  %v11053_v58 = vcombine.low %v5729_v41, %v5739_v48  ;;  %v5748_v34 = vrot.slane %v5747_v37, 4  ;;  %v5762_v18 = vrot.slane %v5760_v32, 5 }
 0x337   : > { %v5197_v49 = vmax.f32 %v5165_v45, 0.0  ;;  %v5757_v8 = vor.u32 %v5756_v33, %v15062_v17  ;;  %v5200_v3 = vmax.f32 %v5168_v13, 0.0  ;;  %v5765_v63 = vshrl.u32 %v15074_v44, 16  ;;  %v13381_v53 = vld [vmem:[%s16725_s3 + $0x18] sm:$0xff]  }
 0x338   : > { %12313 = vmatmul.mubr.bf16.vlgmr.msra.gmra.mrb[0].mxu1 %v11053_v58  ;;  %v5753_v61 = vsel %vm13635_vm2, %v5748_v34, %v15062_v17  ;;  %v5198_v51 = vmax.f32 %v5166_v62, 0.0  ;;  %v5768_v15 = vshll.u32 %v15074_v44, 16  ;;  %v5774_v26 = vshll.u32 %v15079_v59, 16 }
 0x339   : > { %12345 = vmatpush3.bf16.msra.mxu1 %v14987_v20  ;;  %v5778_v40 = vshrl.u32 %v15079_v59, 16  ;;  %v5758_v6 = vrot.slane %v5757_v8, 4  ;;  %v5220_v10 = vpack.c.bf16 %v5200_v3, %v5199_v30  ;;  %v5767_v41 = vrot.slane %v5765_v63, 4  ;;  %v15101_v2 = vpop.f32.mrb[28].mxu0 }
 0x33a   : > { %v5784_v14 = vshll.u32 %v5679_v23, 16  ;;  %12346 = vmatprep.subr.bf16.mxu1 %v13379_v11  ;;  %v5219_v54 = vpack.c.bf16 %v5198_v51, %v5197_v49  ;;  %v5770_v55 = vrot.slane %v5768_v15, 5  ;;  %v5776_v19 = vrot.slane %v5774_v26, 5  ;;  %v15107_v35 = vpop.f32.mrb[29].mxu0  ;;  %v15130_v23 = vld [vmem:[#allocation2 + $0x3c] sm:$0xf] }
 0x33b   : > { %v5780_v20 = vrot.slane %v5778_v40, 4  ;;  %v5763_v46 = vsel %vm13635_vm2, %v5758_v6, %v5762_v18  ;;  %v5303_v57 = vshrl.u32 %v5220_v10, 16  ;;  %v5306_v50 = vshll.u32 %v5220_v10, 16  ;;  %v15109_v7 = vpop.f32.mrb[30].mxu0  ;;  %v13382_v51 = vld [vmem:[%s16725_s3 + $0x20] sm:$0xff]  }
 0x33c   : > { %v5786_v1 = vrot.slane %v5784_v14, 5  ;;  %v11054_v9 = vcombine.low %v5753_v61, %v5763_v46  ;;  %v5296_v52 = vshrl.u32 %v5219_v54, 16  ;;  %v5299_v56 = vshll.u32 %v5219_v54, 16  ;;  %v15113_v5 = vpop.f32.mrb[31].mxu0  ;;  %v15137_v10 = vld [vmem:[#allocation2 + $0x40] sm:$0xf] }
 0x33d   : > { %v5771_v24 = vor.u32 %v5770_v55, %v5767_v41  ;;  %12347 = vmatpush3.bf16.msra.mxu1 %v13379_v11  ;;  %v5305_v47 = vrot.slane %v5303_v57, 7  ;;  %v5781_v17 = vor.u32 %v5780_v20, %v5776_v19  ;;  %v5789_v22 = vshrl.u32 %v15099_v42, 16  ;;  %v5680_v11 = vld [vmem:[#allocation2 + $0x38] sm:$0x1]  ;;  %v5681_v55 = vld [vmem:[#allocation2 + $0x44] sm:$0x1] }
 0x33e   : > { %v5792_v29 = vshll.u32 %v15099_v42, 16  ;;  %12348 = vmatprep.subr.bf16.mxu1 %v13380_v4  ;;  %12316 = vmatprep.mubr.bf16.mxu1 %v11054_v9  ;;  %v5298_v21 = vrot.slane %v5296_v52, 7  ;;  %v5798_v37 = vshll.u32 %v15105_v0, 16  ;;  %v5802_v60 = vshrl.u32 %v15105_v0, 16 }
 0x33f   : > { %v5772_v38 = vrot.slane %v5771_v24, 4  ;;  %v5308_v48 = vor.u32 %v5306_v50, %v5305_v47  ;;  %v5399_v32 = vsel %vm15000_vm8, %v5305_v47, 0  ;;  %v5782_v27 = vrot.slane %v5781_v17, 4 }
 0x340   : > { %v5791_v45 = vrot.slane %v5789_v22, 4  ;;  %v11023_v58 = vcombine.low %v5399_v32, %v5399_v32  ;;  %v5301_v34 = vor.u32 %v5299_v56, %v5298_v21  ;;  %v5398_v33 = vsel %vm15000_vm8, %v5298_v21, 0 }
 0x341   : > { %v5777_v13 = vsel %vm13635_vm2, %v5772_v38, %v5776_v19  ;;  %12349 = vmatpush3.bf16.msra.mxu1 %v13380_v4  ;;  %v5383_v18 = vsel %vm15000_vm8, 0, %v5308_v48  ;;  %v11020_v30 = vcombine.low %v5398_v33, %v5398_v33  ;;  %v5787_v49 = vsel %vm13635_vm2, %v5782_v27, %v5786_v1  ;;  %v15143_v19 = vld [vmem:[#allocation2 + $0x48] sm:$0xf] }
 0x342   : > { %v5794_v62 = vrot.slane %v5792_v29, 5  ;;  %12350 = vmatprep.subr.bf16.mxu1 %v13381_v53  ;;  %v11021_v61 = vcombine.low %v5383_v18, %v5383_v18  ;;  %v11022_v8 = vcombine.high %v5383_v18, %v5383_v18  ;;  %5615 = vst [vmem:[#allocation2 + $0x98] sm:$0x1] %v11023_v58  ;;  %v5382_v3 = vsel %vm15000_vm8, 0, %v5301_v34 }
 0x343   : > { %v11055_v63 = vcombine.low %v5777_v13, %v5787_v49  ;;  %v11018_v15 = vcombine.low %v5382_v3, %v5382_v3  ;;  %v11019_v26 = vcombine.high %v5382_v3, %v5382_v3  ;;  %5612 = vst [vmem:[#allocation2 + $0x8c] sm:$0x1] %v11020_v30  ;;  %v5800_v6 = vrot.slane %v5798_v37, 5 }
 0x344   : > { %v5795_v40 = vor.u32 %v5794_v62, %v5791_v45  ;;  %5614 = vst [vmem:[#allocation2 + $0x94] sm:$0xf] %v11022_v8  ;;  %5613 = vst [vmem:[#allocation2 + $0x90] sm:$0xf] %v11021_v61  ;;  %v5804_v41 = vrot.slane %v5802_v60, 4  ;;  %v5808_v14 = vshll.u32 %v5680_v11, 16  ;;  %v5171_v4 = vadd.f32 %v15066_v43, %v14993_v16 }
 0x345   : > { %12317 = vmatmul.mubr.bf16.gmra.mrb[4].mxu1 %v11055_v63  ;;  %v5169_v54 = vadd.f32 %v14993_v16, %v15068_v12  ;;  %5611 = vst [vmem:[#allocation2 + $0x88] sm:$0xf] %v11019_v26  ;;  %5610 = vst [vmem:[#allocation2 + $0x84] sm:$0xf] %v11018_v15  ;;  %v5172_v46 = vadd.f32 %v15076_v31, %v14993_v16  ;;  %v5170_v57 = vadd.f32 %v14993_v16, %v15084_v39  ;;  %v13383_v12 = vld [vmem:[%s16725_s3 + $0x28] sm:$0xff]   ;;  %v13384_v45 = vld [vmem:[%s16725_s3 + $0x30] sm:$0xff]  }
 0x346   : > { %v5796_v20 = vrot.slane %v5795_v40, 4  ;;  %v5813_v50 = vshrl.u32 %v15130_v23, 16  ;;  %12351 = vmatpush3.bf16.msra.mxu1 %v13381_v53  ;;  %v5805_v1 = vor.u32 %v5804_v41, %v5800_v6  ;;  %v5810_v43 = vrot.slane %v5808_v14, 5  ;;  %v15164_v11 = vld [vmem:[#allocation2 + $0x4c] sm:$0xf] }
 0x347   : > { %v5203_v9 = vmax.f32 %v5171_v4, 0.0  ;;  %v5201_v52 = vmax.f32 %v5169_v54, 0.0  ;;  %12352 = vmatprep.subr.bf16.mxu1 %v13382_v51  ;;  %v5204_v24 = vmax.f32 %v5172_v46, 0.0  ;;  %v5202_v31 = vmax.f32 %v5170_v57, 0.0 }
 0x348   : > { %v5801_v56 = vsel %vm13635_vm2, %v5796_v20, %v5800_v6  ;;  %v5815_v47 = vrot.slane %v5813_v50, 4  ;;  %v5806_v17 = vrot.slane %v5805_v1, 4  ;;  %v5816_v39 = vshll.u32 %v15130_v23, 16  ;;  %v13385_v6 = vld [vmem:[%s16725_s3 + $0x38] sm:$0xff]   ;;  %v15180_v50 = vld [vmem:[#allocation2 + $0x50] sm:$0x1] }
 0x349   : > { %v5822_v22 = vshll.u32 %v15137_v10, 16  ;;  %v5826_v29 = vshrl.u32 %v15137_v10, 16  ;;  %v5222_v53 = vpack.c.bf16 %v5204_v24, %v5203_v9  ;;  %v5221_v21 = vpack.c.bf16 %v5202_v31, %v5201_v52 }
 0x34a   : > { %v5832_v38 = vshll.u32 %v5681_v55, 16  ;;  %v5837_v37 = vshrl.u32 %v15143_v19, 16  ;;  %12353 = vmatpush3.bf16.msra.mxu1 %v13382_v51  ;;  %v5811_v60 = vsel %vm13635_vm2, %v5806_v17, %v5810_v43  ;;  %v5818_v48 = vrot.slane %v5816_v39, 5  ;;  %v15191_v17 = vld [vmem:[%s16725_s3 + $0x80] sm:$0xff]  }
 0x34b   : > { %v5824_v32 = vrot.slane %v5822_v22, 5  ;;  %v5828_v27 = vrot.slane %v5826_v29, 4  ;;  %12354 = vmatprep.subr.bf16.mxu1 %v13383_v12  ;;  %v11056_v58 = vcombine.low %v5801_v56, %v5811_v60  ;;  %v5317_v34 = vshrl.u32 %v5222_v53, 16 }
 0x34c   : > { %v5320_v33 = vshll.u32 %v5222_v53, 16  ;;  %v5310_v13 = vshrl.u32 %v5221_v21, 16  ;;  %v5313_v18 = vshll.u32 %v5221_v21, 16  ;;  %v5819_v30 = vor.u32 %v5818_v48, %v5815_v47  ;;  %v15186_v47 = vld [vmem:[#allocation2 + $0x54] sm:$0xf] }
 0x34d   : > { %v5829_v49 = vor.u32 %v5828_v27, %v5824_v32  ;;  %v5834_v62 = vrot.slane %v5832_v38, 5  ;;  %12320 = vmatprep.mubr.bf16.mxu1 %v11056_v58  ;;  %v5319_v61 = vrot.slane %v5317_v34, 7  ;;  %v5839_v3 = vrot.slane %v5837_v37, 4  ;;  %v15202_v48 = vld [vmem:[#allocation2 + $0x5c] sm:$0x1] }
 0x34e   : > { %v5312_v8 = vrot.slane %v5310_v13, 7  ;;  %v5840_v63 = vshll.u32 %v15143_v19, 16  ;;  %12355 = vmatpush3.bf16.msra.mxu1 %v13383_v12  ;;  %v5820_v51 = vrot.slane %v5819_v30, 4  ;;  %v5846_v26 = vshll.u32 %v15164_v11, 16  ;;  %v15204_v58 = vld [vmem:[#allocation2 + $0x58] sm:$0xf] }
 0x34f   : > { %v5830_v15 = vrot.slane %v5829_v49, 4  ;;  %v5850_v40 = vshrl.u32 %v15164_v11, 16  ;;  %12356 = vmatprep.subr.bf16.mxu1 %v13384_v45  ;;  %v5322_v41 = vor.u32 %v5320_v33, %v5319_v61  ;;  %v5401_v14 = vsel %vm15000_vm8, %v5319_v61, 0 }
 0x350   : > { %v5315_v4 = vor.u32 %v5313_v18, %v5312_v8  ;;  %v5400_v54 = vsel %vm15000_vm8, %v5312_v8, 0  ;;  %v11029_v55 = vcombine.low %v5401_v14, %v5401_v14  ;;  %v5825_v46 = vsel %vm13635_vm2, %v5820_v51, %v5824_v32  ;;  %v15207_v18 = vld [vmem:[#allocation2 + $0x60] sm:$0xf]  ;;  %v15219_v14 = vld [vmem:[#allocation2 + $0x64] sm:$0xf] }
 0x351   : > { %v11026_v20 = vcombine.low %v5400_v54, %v5400_v54  ;;  %v5835_v57 = vsel %vm13635_vm2, %v5830_v15, %v5834_v62  ;;  %v5385_v1 = vsel %vm15000_vm8, 0, %v5322_v41  ;;  %v5842_v52 = vrot.slane %v5840_v63, 5 }
 0x352   : > { %v5384_v43 = vsel %vm15000_vm8, 0, %v5315_v4  ;;  %v11057_v9 = vcombine.low %v5825_v46, %v5835_v57  ;;  %12357 = vmatpush3.bf16.msra.mxu1 %v13384_v45  ;;  %v11027_v12 = vcombine.low %v5385_v1, %v5385_v1  ;;  %v11028_v56 = vcombine.high %v5385_v1, %v5385_v1  ;;  %5621 = vst [vmem:[#allocation2 + $0xb0] sm:$0x1] %v11029_v55 }
 0x353   : > { %v11024_v24 = vcombine.low %v5384_v43, %v5384_v43  ;;  %v11025_v31 = vcombine.high %v5384_v43, %v5384_v43  ;;  %5618 = vst [vmem:[#allocation2 + $0xa4] sm:$0x1] %v11026_v20  ;;  %12358 = vmatprep.subr.bf16.mxu1 %v13385_v6  ;;  %v5843_v39 = vor.u32 %v5842_v52, %v5839_v3  ;;  %v5848_v22 = vrot.slane %v5846_v26, 5 }
 0x354   : > { %12321 = vmatmul.mubr.bf16.gmra.mrb[8].mxu1 %v11057_v9  ;;  %v5852_v29 = vrot.slane %v5850_v40, 4  ;;  %v5856_v53 = vshll.u32 %v15180_v50, 16  ;;  %5620 = vst [vmem:[#allocation2 + $0xac] sm:$0xf] %v11028_v56  ;;  %5619 = vst [vmem:[#allocation2 + $0xa8] sm:$0xf] %v11027_v12  ;;  %v5175_v21 = vadd.f32 %v15101_v2, %v14993_v16  ;;  %v5173_v38 = vadd.f32 %v14993_v16, %v15107_v35 }
 0x355   : > { %5617 = vst [vmem:[#allocation2 + $0xa0] sm:$0xf] %v11025_v31  ;;  %5616 = vst [vmem:[#allocation2 + $0x9c] sm:$0xf] %v11024_v24  ;;  %v5176_v37 = vadd.f32 %v15109_v7, %v14993_v16  ;;  %v5174_v60 = vadd.f32 %v14993_v16, %v15113_v5  ;;  %v5844_v32 = vrot.slane %v5843_v39, 4  ;;  %v5861_v34 = vshrl.u32 %v15186_v47, 16 }
 0x356   : > { %v5853_v27 = vor.u32 %v5852_v29, %v5848_v22  ;;  %v5858_v45 = vrot.slane %v5856_v53, 5  ;;  %12359 = vmatpush3.bf16.msra.mxu1 %v13385_v6  ;;  %v5207_v2 = vmax.f32 %v5175_v21, 0.0  ;;  %v5205_v33 = vmax.f32 %v5173_v38, 0.0  ;;  %v15227_v29 = vld [vmem:[#allocation2 + $0x68] sm:$0x1] }
 0x357   : > { %v5208_v13 = vmax.f32 %v5176_v37, 0.0  ;;  %v5206_v35 = vmax.f32 %v5174_v60, 0.0  ;;  %12392 = vmatprep.subr.bf16.mxu1 %v15191_v17  ;;  %v5849_v16 = vsel %vm13635_vm2, %v5844_v32, %v5848_v22  ;;  %v5863_v5 = vrot.slane %v5861_v34, 4  ;;  %v15229_v53 = vld [vmem:[#allocation2 + $0x6c] sm:$0xf] }
 0x358   : > { %v5854_v7 = vrot.slane %v5853_v27, 4  ;;  %v5864_v30 = vshll.u32 %v15186_v47, 16  ;;  %v5870_v61 = vshll.u32 %v15204_v58, 16  ;;  %v5874_v8 = vshrl.u32 %v15204_v58, 16  ;;  %v15233_v32 = vld [vmem:[#allocation2 + $0x70] sm:$0xf] }
 0x359   : > { %v5224_v49 = vpack.c.bf16 %v5208_v13, %v5207_v2  ;;  %v5223_v62 = vpack.c.bf16 %v5206_v35, %v5205_v33  ;;  %v5880_v51 = vshll.u32 %v15202_v48, 16  ;;  %v5885_v15 = vshrl.u32 %v15207_v18, 16 }
 0x35a   : > { %v5859_v3 = vsel %vm13635_vm2, %v5854_v7, %v5858_v45  ;;  %v5866_v63 = vrot.slane %v5864_v30, 5  ;;  %v5872_v55 = vrot.slane %v5870_v61, 5  ;;  %v5876_v20 = vrot.slane %v5874_v8, 4 }
 0x35b   : > { %v11058_v26 = vcombine.low %v5849_v16, %v5859_v3  ;;  %v5331_v40 = vshrl.u32 %v5224_v49, 16  ;;  %v5334_v6 = vshll.u32 %v5224_v49, 16  ;;  %v5324_v41 = vshrl.u32 %v5223_v62, 16 }
 0x35c   : > { %v5327_v4 = vshll.u32 %v5223_v62, 16  ;;  %v5867_v54 = vor.u32 %v5866_v63, %v5863_v5  ;;  %v5882_v1 = vrot.slane %v5880_v51, 5  ;;  %v5887_v43 = vrot.slane %v5885_v15, 4  ;;  %v15243_v62 = vld [vmem:[#allocation2 + $0x74] sm:$0x1] }
 0x35d   : > { %12324 = vmatprep.mubr.bf16.mxu1 %v11058_v26  ;;  %v5333_v46 = vrot.slane %v5331_v40, 7  ;;  %v5326_v57 = vrot.slane %v5324_v41, 7  ;;  %v5877_v52 = vor.u32 %v5876_v20, %v5872_v55  ;;  %v5888_v12 = vshll.u32 %v15207_v18, 16  ;;  %v15248_v63 = vld [vmem:[#allocation2 + $0x78] sm:$0xf] }
 0x35e   : > { %v5868_v9 = vrot.slane %v5867_v54, 4  ;;  %v5894_v56 = vshll.u32 %v15219_v14, 16  ;;  %v5898_v30 = vshrl.u32 %v15219_v14, 16  ;;  %v5904_v49 = vshll.u32 %v15227_v29, 16 }
 0x35f   : > { %v5336_v24 = vor.u32 %v5334_v6, %v5333_v46  ;;  %v5403_v31 = vsel %vm15000_vm8, %v5333_v46, 0  ;;  %v5329_v39 = vor.u32 %v5327_v4, %v5326_v57  ;;  %v5402_v22 = vsel %vm15000_vm8, %v5326_v57, 0  ;;  %v15251_v6 = vld [vmem:[#allocation2 + $0x7c] sm:$0xf] }
 0x360   : > { %v11035_v21 = vcombine.low %v5403_v31, %v5403_v31  ;;  %v11032_v38 = vcombine.low %v5402_v22, %v5402_v22  ;;  %v5873_v37 = vsel %vm13635_vm2, %v5868_v9, %v5872_v55  ;;  %v5878_v60 = vrot.slane %v5877_v52, 4 }
 0x361   : > { %v5387_v27 = vsel %vm15000_vm8, 0, %v5336_v24  ;;  %v5386_v45 = vsel %vm15000_vm8, 0, %v5329_v39  ;;  %v5890_v34 = vrot.slane %v5888_v12, 5  ;;  %v5896_v2 = vrot.slane %v5894_v56, 5  ;;  %v15261_v24 = vld [vmem:[#allocation2 + $0x84] sm:$0xf] }
 0x362   : > { %v11033_v33 = vcombine.low %v5387_v27, %v5387_v27  ;;  %v11034_v13 = vcombine.high %v5387_v27, %v5387_v27  ;;  %5627 = vst [vmem:[#allocation2 + $0xc8] sm:$0x1] %v11035_v21  ;;  %v11030_v35 = vcombine.low %v5386_v45, %v5386_v45  ;;  %v11031_v16 = vcombine.high %v5386_v45, %v5386_v45 }
 0x363   : > { %5624 = vst [vmem:[#allocation2 + $0xbc] sm:$0x1] %v11032_v38  ;;  %v5883_v7 = vsel %vm13635_vm2, %v5878_v60, %v5882_v1  ;;  %v5891_v5 = vor.u32 %v5890_v34, %v5887_v43  ;;  %v5909_v61 = vshrl.u32 %v15229_v53, 16  ;;  %v5912_v8 = vshll.u32 %v15229_v53, 16  ;;  %v15256_v1 = vld [vmem:[#allocation2 + $0x80] sm:$0x1] }
 0x364   : > { %5626 = vst [vmem:[#allocation2 + $0xc4] sm:$0xf] %v11034_v13  ;;  %5625 = vst [vmem:[#allocation2 + $0xc0] sm:$0xf] %v11033_v33  ;;  %v11059_v28 = vcombine.low %v5873_v37, %v5883_v7  ;;  %v5918_v3 = vshll.u32 %v15233_v32, 16  ;;  %v5900_v15 = vrot.slane %v5898_v30, 4 }
 0x365   : > { %5623 = vst [vmem:[#allocation2 + $0xb8] sm:$0xf] %v11031_v16  ;;  %5622 = vst [vmem:[#allocation2 + $0xb4] sm:$0xf] %v11030_v35  ;;  %v5892_v51 = vrot.slane %v5891_v5, 4  ;;  %v5906_v26 = vrot.slane %v5904_v49, 5 }
 0x366   : > { %v5922_v40 = vshrl.u32 %v15233_v32, 16  ;;  %12325 = vmatmul.mubr.bf16.gmra.mrb[12].mxu1 %v11059_v28  ;;  %v5911_v41 = vrot.slane %v5909_v61, 4  ;;  %v5914_v4 = vrot.slane %v5912_v8, 5  ;;  %v5920_v54 = vrot.slane %v5918_v3, 5  ;;  %v15267_v33 = vld [vmem:[#allocation2 + $0x88] sm:$0xf] }
 0x367   : > { %v5928_v55 = vshll.u32 %v15243_v62, 16  ;;  %v5897_v20 = vsel %vm13635_vm2, %v5892_v51, %v5896_v2  ;;  %v5901_v46 = vor.u32 %v5900_v15, %v5896_v2  ;;  %v5933_v43 = vshrl.u32 %v15248_v63, 16  ;;  %v15272_v30 = vld [vmem:[#allocation2 + $0x8c] sm:$0x1]  ;;  %v15274_v49 = vld [vmem:[#allocation2 + $0x90] sm:$0xf] }
 0x368   : > { %v5924_v57 = vrot.slane %v5922_v40, 4  ;;  %v5915_v9 = vor.u32 %v5914_v4, %v5911_v41  ;;  %v5936_v12 = vshll.u32 %v15248_v63, 16  ;;  %v5942_v56 = vshll.u32 %v15251_v6, 16  ;;  %v15279_v51 = vld [vmem:[#allocation2 + $0x94] sm:$0xf] }
 0x369   : > { %v5930_v52 = vrot.slane %v5928_v55, 5  ;;  %v5902_v31 = vrot.slane %v5901_v46, 4  ;;  %v5935_v22 = vrot.slane %v5933_v43, 4  ;;  %v5946_v21 = vshrl.u32 %v15251_v6, 16  ;;  %v15283_v4 = vld [vmem:[#allocation2 + $0x98] sm:$0x1] }
 0x36a   : > { %v5925_v39 = vor.u32 %v5924_v57, %v5920_v54  ;;  %v5916_v38 = vrot.slane %v5915_v9, 4  ;;  %v5938_v37 = vrot.slane %v5936_v12, 5  ;;  %v5944_v60 = vrot.slane %v5942_v56, 5  ;;  %v15290_v12 = vld [vmem:[#allocation2 + $0x9c] sm:$0xf] }
 0x36b   : > { %v5952_v27 = vshll.u32 %v15256_v1, 16  ;;  %v5907_v45 = vsel %vm13635_vm2, %v5902_v31, %v5906_v26  ;;  %v5948_v2 = vrot.slane %v5946_v21, 4  ;;  %v5957_v13 = vshrl.u32 %v15261_v24, 16 }
 0x36c   : > { %v5926_v34 = vrot.slane %v5925_v39, 4  ;;  %v11060_v35 = vcombine.low %v5897_v20, %v5907_v45  ;;  %v5921_v16 = vsel %vm13635_vm2, %v5916_v38, %v5920_v54  ;;  %v5939_v7 = vor.u32 %v5938_v37, %v5935_v22 }
 0x36d   : > { %v5954_v5 = vrot.slane %v5952_v27, 5  ;;  %v5949_v61 = vor.u32 %v5948_v2, %v5944_v60  ;;  %v5959_v8 = vrot.slane %v5957_v13, 4  ;;  %v5960_v3 = vshll.u32 %v15261_v24, 16  ;;  %v15297_v2 = vld [vmem:[#allocation2 + $0xa0] sm:$0xf] }
 0x36e   : > { %v5931_v28 = vsel %vm13635_vm2, %v5926_v34, %v5930_v52  ;;  %12328 = vmatprep.mubr.bf16.mxu1 %v11060_v35  ;;  %v5940_v26 = vrot.slane %v5939_v7, 4  ;;  %v5966_v40 = vshll.u32 %v15267_v33, 16  ;;  %v5970_v41 = vshrl.u32 %v15267_v33, 16 }
 0x36f   : > { %v11061_v15 = vcombine.low %v5921_v16, %v5931_v28  ;;  %v5950_v54 = vrot.slane %v5949_v61, 4  ;;  %v5962_v55 = vrot.slane %v5960_v3, 5  ;;  %v5976_v20 = vshll.u32 %v15272_v30, 16 }
 0x370   : > { %v5981_v46 = vshrl.u32 %v15274_v49, 16  ;;  %v5945_v57 = vsel %vm13635_vm2, %v5940_v26, %v5944_v60  ;;  %v5968_v43 = vrot.slane %v5966_v40, 5  ;;  %v5972_v9 = vrot.slane %v5970_v41, 4  ;;  %v15305_v26 = vld [vmem:[#allocation2 + $0xa8] sm:$0xf] }
 0x371   : > { %12329 = vmatmul.mubr.bf16.gmra.mrb[16].mxu1 %v11061_v15  ;;  %v5984_v52 = vshll.u32 %v15274_v49, 16  ;;  %v5955_v56 = vsel %vm13635_vm2, %v5950_v54, %v5954_v5  ;;  %v5963_v31 = vor.u32 %v5962_v55, %v5959_v8  ;;  %v5978_v39 = vrot.slane %v5976_v20, 5  ;;  %v15300_v5 = vld [vmem:[#allocation2 + $0xa4] sm:$0x1] }
 0x372   : > { %v5983_v22 = vrot.slane %v5981_v46, 4  ;;  %v11062_v21 = vcombine.low %v5945_v57, %v5955_v56  ;;  %v5973_v38 = vor.u32 %v5972_v9, %v5968_v43  ;;  %v5990_v27 = vshll.u32 %v15279_v51, 16 }
 0x373   : > { %v5986_v37 = vrot.slane %v5984_v52, 5  ;;  %v5964_v45 = vrot.slane %v5963_v31, 4  ;;  %v5994_v60 = vshrl.u32 %v15279_v51, 16  ;;  %v6000_v34 = vshll.u32 %v15283_v4, 16  ;;  %v15312_v52 = vld [vmem:[#allocation2 + $0xac] sm:$0xf] }
 0x374   : > { %v6005_v13 = vshrl.u32 %v15290_v12, 16  ;;  %12332 = vmatprep.mubr.bf16.mxu1 %v11062_v21  ;;  %v5974_v35 = vrot.slane %v5973_v38, 4  ;;  %v5992_v7 = vrot.slane %v5990_v27, 5  ;;  %v6008_v28 = vshll.u32 %v15290_v12, 16 }
 0x375   : > { %v5987_v16 = vor.u32 %v5986_v37, %v5983_v22  ;;  %v5969_v61 = vsel %vm13635_vm2, %v5964_v45, %v5968_v43  ;;  %v5996_v8 = vrot.slane %v5994_v60, 4  ;;  %v6002_v3 = vrot.slane %v6000_v34, 5  ;;  %v15316_v22 = vld [vmem:[#allocation2 + $0xb0] sm:$0x1] }
 0x376   : > { %v6007_v15 = vrot.slane %v6005_v13, 4  ;;  %v5979_v40 = vsel %vm13635_vm2, %v5974_v35, %v5978_v39  ;;  %v6010_v54 = vrot.slane %v6008_v28, 5  ;;  %v6014_v55 = vshll.u32 %v15297_v2, 16  ;;  %v15322_v35 = vld [vmem:[#allocation2 + $0xb4] sm:$0xf] }
 0x377   : > { %v5988_v41 = vrot.slane %v5987_v16, 4  ;;  %v11063_v20 = vcombine.low %v5969_v61, %v5979_v40  ;;  %v5997_v46 = vor.u32 %v5996_v8, %v5992_v7  ;;  %v6018_v57 = vshrl.u32 %v15297_v2, 16  ;;  %v15327_v8 = vld [vmem:[#allocation2 + $0xb8] sm:$0xf] }
 0x378   : > { %v6024_v9 = vshll.u32 %v15300_v5, 16  ;;  %v6011_v56 = vor.u32 %v6010_v54, %v6007_v15  ;;  %v6016_v31 = vrot.slane %v6014_v55, 5  ;;  %v6029_v39 = vshrl.u32 %v15305_v26, 16  ;;  %v15331_v55 = vld [vmem:[#allocation2 + $0xbc] sm:$0x1] }
 0x379   : > { %v5993_v43 = vsel %vm13635_vm2, %v5988_v41, %v5992_v7  ;;  %12333 = vmatmul.mubr.bf16.gmra.mrb[20].mxu1 %v11063_v20  ;;  %v5998_v21 = vrot.slane %v5997_v46, 4  ;;  %v6020_v38 = vrot.slane %v6018_v57, 4  ;;  %v6032_v27 = vshll.u32 %v15305_v26, 16 }
 0x37a   : > { %v6026_v37 = vrot.slane %v6024_v9, 5  ;;  %v6012_v45 = vrot.slane %v6011_v56, 4  ;;  %v6031_v60 = vrot.slane %v6029_v39, 4  ;;  %v6038_v34 = vshll.u32 %v15312_v52, 16 }
 0x37b   : > { %v6042_v13 = vshrl.u32 %v15312_v52, 16  ;;  %v6003_v16 = vsel %vm13635_vm2, %v5998_v21, %v6002_v3  ;;  %v6021_v7 = vor.u32 %v6020_v38, %v6016_v31  ;;  %v6034_v28 = vrot.slane %v6032_v27, 5 }
 0x37c   : > { %v6048_v61 = vshll.u32 %v15316_v22, 16  ;;  %v11064_v15 = vcombine.low %v5993_v43, %v6003_v16  ;;  %v6017_v40 = vsel %vm13635_vm2, %v6012_v45, %v6016_v31  ;;  %v6040_v41 = vrot.slane %v6038_v34, 5 }
 0x37d   : > { %v6044_v54 = vrot.slane %v6042_v13, 4  ;;  %v6022_v20 = vrot.slane %v6021_v7, 4  ;;  %v6035_v46 = vor.u32 %v6034_v28, %v6031_v60  ;;  %v6053_v9 = vshrl.u32 %v15322_v35, 16 }
 0x37e   : > { %v6050_v57 = vrot.slane %v6048_v61, 5  ;;  %12336 = vmatprep.mubr.bf16.mxu1 %v11064_v15  ;;  %v6056_v56 = vshll.u32 %v15322_v35, 16  ;;  %v6062_v39 = vshll.u32 %v15327_v8, 16  ;;  %v6066_v43 = vshrl.u32 %v15327_v8, 16 }
 0x37f   : > { %v6045_v3 = vor.u32 %v6044_v54, %v6040_v41  ;;  %v6027_v31 = vsel %vm13635_vm2, %v6022_v20, %v6026_v37  ;;  %v6036_v21 = vrot.slane %v6035_v46, 4  ;;  %v6055_v38 = vrot.slane %v6053_v9, 4 }
 0x380   : > { %v6072_v27 = vshll.u32 %v15331_v55, 16  ;;  %v11065_v45 = vcombine.low %v6017_v40, %v6027_v31  ;;  %v6058_v34 = vrot.slane %v6056_v56, 5  ;;  %v6064_v13 = vrot.slane %v6062_v39, 5 }
 0x381   : > { %v6046_v60 = vrot.slane %v6045_v3, 4  ;;  %v6041_v16 = vsel %vm13635_vm2, %v6036_v21, %v6040_v41  ;;  %v6068_v7 = vrot.slane %v6066_v43, 4  ;;  %v11083_v46 = vcombine.low %v15186_v47, %v15204_v58  ;;  %v13397_v43 = vld [vmem:[%s16725_s3 + $0x98] sm:$0xff]  }
 0x382   : > { %12337 = vmatmul.mubr.bf16.gmra.mrb[24].mxu1 %v11065_v45  ;;  %v6059_v61 = vor.u32 %v6058_v34, %v6055_v38  ;;  %v6074_v20 = vrot.slane %v6072_v27, 5  ;;  %v11084_v40 = vcombine.low %v15207_v18, %v15219_v14  ;;  %v11085_v41 = vcombine.low %v15229_v53, %v15233_v32  ;;  %v13509_v38 = vld [vmem:[#allocation2] sm:$0xf]  ;;  %v15364_v27 = vld [vmem:[#allocation2 + $0x4] sm:$0xf] }
 0x383   : > { %v6051_v28 = vsel %vm13635_vm2, %v6046_v60, %v6050_v57  ;;  %v6069_v54 = vor.u32 %v6068_v7, %v6064_v13  ;;  %v11086_v3 = vcombine.low %v15248_v63, %v15251_v6  ;;  %v11087_v57 = vcombine.low %v15261_v24, %v15267_v33  ;;  %v15369_v7 = vld [vmem:[#allocation2 + $0x10] sm:$0xf]  ;;  %v6671_v18 = vld [vmem:[#allocation2] sm:$0xe] }
 0x384   : > { %v11066_v15 = vcombine.low %v6041_v16, %v6051_v28  ;;  %v6060_v37 = vrot.slane %v6059_v61, 4  ;;  %v11076_v45 = vcombine.low %v13509_v38, %v15364_v27  ;;  %v13511_v16 = vld [vmem:[#allocation2 + $0xc] sm:$0xf]  ;;  %v11079_v60 = vcombine.low %v15074_v44, %v15079_v59 }
 0x385   : > { %v6070_v9 = vrot.slane %v6069_v54, 4  ;;  %v11077_v28 = vcombine.low %v13511_v16, %v15369_v7  ;;  %v13391_v61 = vld [vmem:[%s16725_s3 + $0x88] sm:$0xff]   ;;  %v13513_v54 = vld [vmem:[#allocation2 + $0x18] sm:$0xf]  ;;  %v11080_v31 = vcombine.low %v15099_v42, %v15105_v0  ;;  %v6784_v0 = vrot.slane %v15233_v32, 5 }
 0x386   : > { %12340 = vmatprep.mubr.bf16.mxu1 %v11066_v15  ;;  %v6065_v56 = vsel %vm13635_vm2, %v6060_v37, %v6064_v13  ;;  %v6678_v13 = vld [vmem:[#allocation2 + $0x54] sm:$0xe]  ;;  %v6679_v15 = vld [vmem:[#allocation2 + $0x60] sm:$0xe]  ;;  %v15375_v37 = vld [vmem:[#allocation2 + $0x1c] sm:$0xf]  ;;  %v16825_v47 = vcombine.low %v15274_v49, %v15279_v51  ;;  %v16826_v32 = vcombine.low %v15290_v12, %v15297_v2  ;;  %v16827_v63 = vcombine.low %v15305_v26, %v15312_v52 }
 0x387   : > { %v6075_v21 = vsel %vm13635_vm2, %v6070_v9, %v6074_v20  ;;  %v11078_v20 = vcombine.low %v13513_v54, %v15375_v37  ;;  %v11107_v9 = vrot.slane %v6678_v13, 9  ;;  %v6680_v38 = vld [vmem:[#allocation2 + $0x6c] sm:$0xe]  ;;  %v6681_v16 = vld [vmem:[#allocation2 + $0x78] sm:$0xe]  ;;  %v6735_v49 = vrot.slane %v15375_v37, 5 }
 0x388   : > { %v11067_v34 = vcombine.low %v6065_v56, %v6075_v21  ;;  %v13394_v56 = vld [vmem:[%s16725_s3 + $0x90] sm:$0xff]   ;;  %v6770_v21 = vrot.slane %v15204_v58, 5  ;;  %v6682_v54 = vld [vmem:[#allocation2 + $0x84] sm:$0xe]  ;;  %v11109_v42 = vrot.slane %v6680_v38, 9  ;;  %v6721_v58 = vrot.slane %v15364_v27, 5 }
 0x389   : > { %v11111_v39 = vrot.slane %v6682_v54, 9  ;;  %v6685_v54 = vld [vmem:[#allocation2 + $0xa8] sm:$0xe]  ;;  %v16828_v12 = vcombine.low %v15322_v35, %v15327_v8  ;;  %v13516_v26 = vld [vmem:[#allocation2 + $0x14] sm:$0x1] }
 0x38a   : > { %12341 = vmatmul.mubr.bf16.gmra.mrb[28].mxu1 %v11067_v34  ;;  %v6777_v34 = vrot.slane %v15219_v14, 5  ;;  %v6772_v13 = vrot.slane %v6770_v21, 4  ;;  %v15417_v38 = vsel %vm13964_vm5, %v11109_v42, %v6784_v0  ;;  %v13515_v14 = vld [vmem:[#allocation2 + $0x8] sm:$0x1]  ;;  %v6723_v53 = vrot.slane %v6721_v58, 4 }
 0x38b   : > { %12360 = vmatprep.mubr.bf16.mxu1 %v11076_v45  ;;  %v11108_v45 = vrot.slane %v6679_v15, 9  ;;  %v6780_v15 = vrot.slane %v15227_v29, 5  ;;  %v6794_v29 = vrot.slane %v15256_v1, 5  ;;  %v6684_v1 = vld [vmem:[#allocation2 + $0x9c] sm:$0xe] }
 0x38c   : > { %v13518_v37 = vld [vmem:[#allocation2 + $0x28] sm:$0xf] }
 0x38d   : > { %v15403_v59 = vsel %vm13964_vm5, %v11108_v45, %v6777_v34 }
 0x392   : > { %12361 = vmatmul.mubr.bf16.vlgmr.msra.gmra.mrb[0].mxu1 %v11077_v28  ;;  %v6773_v28 = vrot.slane %v15202_v48, 5  ;;  %v6683_v48 = vld [vmem:[#allocation2 + $0x90] sm:$0xe] }
 0x393   : > { %12364 = vmatprep.mubr.bf16.mxu1 %v11078_v20  ;;  %12393 = vmatpush3.bf16.msra.mxu1 %v15191_v17  ;;  %v15391_v20 = vsel %vm13964_vm5, %v11107_v9, %v6770_v21  ;;  %v6779_v17 = vrot.slane %v6777_v34, 4  ;;  %v11110_v21 = vrot.slane %v6681_v16, 9  ;;  %v6786_v34 = vrot.slane %v6784_v0, 4  ;;  %v13400_v16 = vld [vmem:[%s16725_s3 + $0xa0] sm:$0xff]  }
 0x394   : > { %12394 = vmatprep.subr.bf16.mxu1 %v13391_v61  ;;  %v15399_v44 = vsel %vm13964_vm5, %v6772_v13, %v6773_v28  ;;  %v6791_v13 = vrot.slane %v15251_v6, 5  ;;  %v6805_v0 = vrot.slane %v15279_v51, 5 }
 0x395   : > { %v15410_v9 = vsel %vm13964_vm5, %v6779_v17, %v6780_v15  ;;  %v6798_v17 = vrot.slane %v15267_v33, 5  ;;  %v6728_v33 = vrot.slane %v15369_v7, 5 }
 0x396   : > { %v6793_v28 = vrot.slane %v6791_v13, 4  ;;  %v15431_v42 = vsel %vm13964_vm5, %v11110_v21, %v6791_v13 }
 0x397   : > { %12395 = vmatpush3.bf16.msra.mxu1 %v13391_v61  ;;  %v6787_v61 = vrot.slane %v15243_v62, 5  ;;  %v11112_v62 = vrot.slane %v6683_v48, 9  ;;  %v15445_v21 = vsel %vm13964_vm5, %v11111_v39, %v6798_v17  ;;  %v6826_v48 = vrot.slane %v15327_v8, 5 }
 0x398   : > { %12396 = vmatprep.subr.bf16.mxu1 %v13394_v56  ;;  %v15438_v45 = vsel %vm13964_vm5, %v6793_v28, %v6794_v29  ;;  %v6812_v28 = vrot.slane %v15297_v2, 5  ;;  %v6737_v2 = vrot.slane %v6735_v49, 4 }
 0x399   : > { %v15427_v15 = vsel %vm13964_vm5, %v6786_v34, %v6787_v61  ;;  %v6800_v34 = vrot.slane %v6798_v17, 4  ;;  %v6801_v61 = vrot.slane %v15272_v30, 5  ;;  %v15454_v29 = vsel %vm13964_vm5, %v11112_v62, %v6805_v0  ;;  %v7579_v62 = vld [vmem:[#allocation2 + $0xac] sm:$0xf] }
 0x39a   : > { %12365 = vmatmul.mubr.bf16.gmra.mrb[4].mxu1 %v11079_v60  ;;  %v11113_v30 = vrot.slane %v6684_v1, 9  ;;  %v6686_v60 = vld [vmem:[#allocation2 + $0xb4] sm:$0xe]  ;;  %v6819_v17 = vrot.slane %v15312_v52, 5  ;;  %v6815_v1 = vrot.slane %v15300_v5, 5  ;;  %v6731_v52 = vrot.slane %v13516_v26, 5 }
 0x39b   : > { %12368 = vmatprep.mubr.bf16.mxu1 %v11080_v31  ;;  %12397 = vmatpush3.bf16.msra.mxu1 %v13394_v56  ;;  %v6807_v31 = vrot.slane %v6805_v0, 4  ;;  %v6808_v56 = vrot.slane %v15283_v4, 5  ;;  %v15450_v13 = vsel %vm13964_vm5, %v6800_v34, %v6801_v61  ;;  %v11114_v4 = vrot.slane %v6685_v54, 9  ;;  %v13403_v61 = vld [vmem:[%s16725_s3 + $0xa8] sm:$0xff]  }
 0x39c   : > { %12398 = vmatprep.subr.bf16.mxu1 %v13397_v43  ;;  %v11081_v34 = vcombine.low %v15130_v23, %v15137_v10  ;;  %v6814_v0 = vrot.slane %v6812_v28, 4  ;;  %v6822_v54 = vrot.slane %v15316_v22, 5  ;;  %v11082_v23 = vcombine.low %v15143_v19, %v15164_v11  ;;  %v7577_v22 = vld [vmem:[#allocation2 + $0xa4] sm:$0x1] }
 0x39d   : > { %v15461_v39 = vsel %vm13964_vm5, %v6807_v31, %v6808_v56  ;;  %v6821_v31 = vrot.slane %v6819_v17, 4  ;;  %v11115_v56 = vrot.slane %v6686_v60, 9  ;;  %v15478_v10 = vsel %vm13964_vm5, %v11113_v30, %v6812_v28 }
 0x39e   : > { %v15482_v5 = vsel %vm13964_vm5, %v6814_v0, %v6815_v1  ;;  %v6828_v19 = vrot.slane %v6826_v48, 4  ;;  %v6829_v30 = vrot.slane %v15331_v55, 5  ;;  %v13517_v1 = vld [vmem:[#allocation2 + $0x20] sm:$0x1] }
 0x39f   : > { %12399 = vmatpush3.bf16.msra.mxu1 %v13397_v43  ;;  %v15486_v43 = vsel %vm13964_vm5, %v11114_v4, %v6819_v17  ;;  %v15492_v60 = vsel %vm13964_vm5, %v6821_v31, %v6822_v54  ;;  %v13406_v4 = vld [vmem:[%s16725_s3 + $0xb0] sm:$0xff]   ;;  %v15502_v17 = vsel %vm13964_vm5, %v11115_v56, %v6826_v48  ;;  %v13410_v48 = vld [vmem:[%s16725_s3 + $0xc0] sm:$0xff]   ;;  %v6742_v31 = vrot.slane %v13518_v37, 5 }
 0x3a0   : > { %12400 = vmatprep.subr.bf16.mxu1 %v13400_v16  ;;  %v13519_v56 = vld [vmem:[#allocation2 + $0x34] sm:$0xf]  ;;  %v6766_v37 = vrot.slane %v15180_v50, 5  ;;  %v13415_v50 = vld [vmem:[%s16725_s3 + $0xe8] sm:$0xff]  }
 0x3a2   : > { %12369 = vmatmul.mubr.bf16.gmra.mrb[8].mxu1 %v11081_v34  ;;  %v15506_v34 = vsel %vm13964_vm5, %v6828_v19, %v6829_v30  ;;  %v6674_v30 = vld [vmem:[#allocation2 + $0x24] sm:$0xe] }
 0x3a3   : > { %12372 = vmatprep.mubr.bf16.mxu1 %v11082_v23  ;;  %12401 = vmatpush3.bf16.msra.mxu1 %v13400_v16  ;;  %v13409_v16 = vld [vmem:[%s16725_s3 + $0xb8] sm:$0xff]   ;;  %v6749_v23 = vrot.slane %v13519_v56, 5 }
 0x3a4   : > { %12402 = vmatprep.subr.bf16.mxu1 %v13403_v61 }
 0x3a7   : > { %12403 = vmatpush3.bf16.msra.mxu1 %v13403_v61  ;;  %v6738_v61 = vrot.slane %v13517_v1, 5  ;;  %v13523_v1 = vld [vmem:[#allocation2 + $0x44] sm:$0x1] }
 0x3a8   : > { %12404 = vmatprep.subr.bf16.mxu1 %v13406_v4 }
 0x3a9   : > { %v6739_v54 = vsel %vm13964_vm5, %v6737_v2, %v6738_v61  ;;  %v13413_v2 = vld [vmem:[%s16725_s3 + $0xd8] sm:$0xff]   ;;  %v6759_v61 = vrot.slane %v13523_v1, 5  ;;  %v15641_v1 = vld [vmem:[#allocation2 + $0x64] sm:$0xf] }
 0x3aa   : > { %12373 = vmatmul.mubr.bf16.gmra.mrb[12].mxu1 %v11083_v46  ;;  %v6724_v46 = vrot.slane %v13515_v14, 5  ;;  %v11103_v14 = vrot.slane %v6674_v30, 9  ;;  %v13416_v30 = vld [vmem:[%s16725_s3 + $0xf0] sm:$0xff]  }
 0x3ab   : > { %12376 = vmatprep.mubr.bf16.mxu1 %v11084_v40  ;;  %12405 = vmatpush3.bf16.msra.mxu1 %v13406_v4  ;;  %v11100_v40 = vrot.slane %v6671_v18, 9  ;;  %v13411_v4 = vld [vmem:[%s16725_s3 + $0xc8] sm:$0xff]   ;;  %v6751_v18 = vrot.slane %v6749_v23, 4 }
 0x3ac   : > { %12406 = vmatprep.subr.bf16.mxu1 %v13409_v16  ;;  %v6725_v24 = vsel %vm13964_vm5, %v6723_v53, %v6724_v46  ;;  %v13520_v46 = vld [vmem:[#allocation2 + $0x2c] sm:$0x1] }
 0x3ad   : > { %v6722_v6 = vsel %vm13964_vm5, %v11100_v40, %v6721_v58  ;;  %v6675_v58 = vld [vmem:[#allocation2 + $0x30] sm:$0xe]  ;;  %v6745_v40 = vrot.slane %v13520_v46, 5 }
 0x3ae   : > { %v11132_v51 = vcombine.low %v6722_v6, %v6725_v24  ;;  %v11104_v53 = vrot.slane %v6675_v58, 9  ;;  %v13412_v6 = vld [vmem:[%s16725_s3 + $0xd0] sm:$0xff]  }
 0x3af   : > { %12407 = vmatpush3.bf16.msra.mxu1 %v13409_v16  ;;  %v15598_v58 = vld [vmem:[#allocation2 + $0x34] sm:$0xf] }
 0x3b0   : > { %12440 = vmatprep.subr.bf16.mxu1 %v13410_v48 }
 0x3b2   : > { %12377 = vmatmul.mubr.bf16.gmra.mrb[16].mxu1 %v11085_v41  ;;  %v6672_v41 = vld [vmem:[#allocation2 + $0xc] sm:$0xe] }
 0x3b3   : > { %12380 = vmatprep.mubr.bf16.mxu1 %v11086_v3  ;;  %v6730_v3 = vrot.slane %v6728_v33, 4  ;;  %v11101_v27 = vrot.slane %v6672_v41, 9  ;;  %v6743_v41 = vsel %vm13964_vm5, %v11103_v14, %v6742_v31  ;;  %v15603_v14 = vld [vmem:[#allocation2 + $0x38] sm:$0x1] }
 0x3b5   : > { %v6732_v7 = vsel %vm13964_vm5, %v6730_v3, %v6731_v52  ;;  %v6729_v35 = vsel %vm13964_vm5, %v11101_v27, %v6728_v33  ;;  %v13522_v33 = vld [vmem:[#allocation2 + $0x40] sm:$0xf]  ;;  %v6677_v27 = vld [vmem:[#allocation2 + $0x48] sm:$0xe] }
 0x3b6   : > { %v11133_v8 = vcombine.low %v6729_v35, %v6732_v7  ;;  %v11106_v7 = vrot.slane %v6677_v27, 9  ;;  %v8383_v27 = vrot.slane %v15603_v14, 5 }
 0x3ba   : > { %12381 = vmatmul.mubr.bf16.gmra.mrb[20].mxu1 %v11087_v57  ;;  %v6673_v57 = vld [vmem:[#allocation2 + $0x18] sm:$0xe] }
 0x3bb   : > { %12384 = vmatprep.mubr.bf16.mxu1 %v16825_v47  ;;  %v11102_v0 = vrot.slane %v6673_v57, 9  ;;  %v6744_v47 = vrot.slane %v6742_v31, 4  ;;  %v6750_v57 = vsel %vm13964_vm5, %v11104_v53, %v6749_v23  ;;  %v13414_v31 = vld [vmem:[%s16725_s3 + $0xe0] sm:$0xff]  }
 0x3bc   : > { %v15605_v53 = vld [vmem:[#allocation2 + $0x40] sm:$0xf] }
 0x3bd   : > { %v6736_v19 = vsel %vm13964_vm5, %v11102_v0, %v6735_v49  ;;  %v6746_v24 = vsel %vm13964_vm5, %v6744_v47, %v6745_v40  ;;  %v6756_v49 = vrot.slane %v13522_v33, 5  ;;  %v15596_v47 = vld [vmem:[#allocation2 + $0x2c] sm:$0x1]  ;;  %v8296_v40 = vld [vmem:[#allocation2 + $0x30] sm:$0xe] }
 0x3be   : > { %v11134_v16 = vcombine.low %v6736_v19, %v6739_v54  ;;  %v11135_v3 = vcombine.low %v6743_v41, %v6746_v24  ;;  %v15611_v24 = vld [vmem:[#allocation2 + $0x44] sm:$0x1]  ;;  %v15613_v33 = vld [vmem:[#allocation2 + $0x4c] sm:$0xf]  ;;  %v15620_v41 = vld [vmem:[#allocation2 + $0x58] sm:$0xf] }
 0x3bf   : > { %v6758_v52 = vrot.slane %v6756_v49, 4 }
 0x3c1   : > { %v6760_v54 = vsel %vm13964_vm5, %v6758_v52, %v6759_v61 }
 0x3c2   : > { %12385 = vmatmul.mubr.bf16.gmra.mrb[24].mxu1 %v16826_v32  ;;  %v13521_v32 = vld [vmem:[#allocation2 + $0x38] sm:$0x1] }
 0x3c3   : > { %12388 = vmatprep.mubr.bf16.mxu1 %v16827_v63  ;;  %v6752_v63 = vrot.slane %v13521_v32, 5 }
 0x3ca   : > { %12389 = vmatmul.mubr.bf16.gmra.mrb[28].mxu1 %v16828_v12  ;;  %v6676_v12 = vld [vmem:[#allocation2 + $0x3c] sm:$0xe] }
 0x3cb   : > { %12408 = vmatprep.mubr.bf16.mxu1 %v11132_v51  ;;  %v6753_v51 = vsel %vm13964_vm5, %v6751_v18, %v6752_v63  ;;  %v13417_v18 = vld [vmem:[%s16725_s3 + $0xf8] sm:$0xff]  }
 0x3cc   : > { %v11136_v26 = vcombine.low %v6750_v57, %v6753_v51  ;;  %v8297_v63 = vld [vmem:[#allocation2 + $0x3c] sm:$0xe]  ;;  %v16830_v51 = vcombine.low %v15403_v59, %v15410_v9  ;;  %v8376_v57 = vrot.slane %v15596_v47, 5  ;;  %v8380_v59 = vrot.slane %v15598_v58, 5 }
 0x3cd   : > { %v11240_v9 = vrot.slane %v8297_v63, 9 }
 0x3d2   : > { %12409 = vmatmul.mubr.bf16.vlgmr.msra.gmra.mrb[0].mxu1 %v11133_v8 }
 0x3d3   : > { %12412 = vmatprep.mubr.bf16.mxu1 %v11134_v16  ;;  %12441 = vmatpush3.bf16.msra.mxu1 %v13410_v48  ;;  %v6763_v48 = vrot.slane %v15164_v11, 5  ;;  %v11105_v11 = vrot.slane %v6676_v12, 9  ;;  %v15594_v16 = vld [vmem:[#allocation2 + $0x28] sm:$0xf]  ;;  %v11239_v12 = vrot.slane %v8296_v40, 9 }
 0x3d4   : > { %12442 = vmatprep.subr.bf16.mxu1 %v13411_v4  ;;  %v8373_v32 = vrot.slane %v15594_v16, 5  ;;  %v15664_v40 = vld [vmem:[#allocation2 + $0x70] sm:$0xf] }
 0x3d5   : > { %v6765_v0 = vrot.slane %v6763_v48, 4  ;;  %v6757_v23 = vsel %vm13964_vm5, %v11105_v11, %v6756_v49  ;;  %v6764_v8 = vsel %vm13964_vm5, %v11106_v7, %v6763_v48  ;;  %v8298_v49 = vld [vmem:[#allocation2 + $0x48] sm:$0xe]  ;;  %v15618_v48 = vld [vmem:[#allocation2 + $0x50] sm:$0x1]  ;;  %v8382_v7 = vrot.slane %v8380_v59, 4 }
 0x3d6   : > { %v11137_v35 = vcombine.low %v6757_v23, %v6760_v54  ;;  %v11241_v11 = vrot.slane %v8298_v49, 9  ;;  %v15647_v54 = vld [vmem:[#allocation2 + $0x68] sm:$0x1] }
 0x3d7   : > { %12443 = vmatpush3.bf16.msra.mxu1 %v13411_v4  ;;  %v6767_v56 = vsel %vm13964_vm5, %v6765_v0, %v6766_v37  ;;  %v8295_v4 = vld [vmem:[#allocation2 + $0x24] sm:$0xe]  ;;  %v8387_v0 = vrot.slane %v15605_v53, 5  ;;  %v8390_v37 = vrot.slane %v15611_v24, 5 }
 0x3d8   : > { %12444 = vmatprep.subr.bf16.mxu1 %v13412_v6  ;;  %v11138_v19 = vcombine.low %v6764_v8, %v6767_v56  ;;  %v11238_v46 = vrot.slane %v8295_v4, 9  ;;  %v15651_v56 = vsel %vm13964_vm5, %v11239_v12, %v8380_v59  ;;  %v8397_v4 = vrot.slane %v15618_v48, 5  ;;  %v15682_v12 = vld [vmem:[#allocation2 + $0x7c] sm:$0xf]  ;;  %v8304_v59 = vld [vmem:[#allocation2 + $0x90] sm:$0xe] }
 0x3d9   : > { %v15655_v23 = vsel %vm13964_vm5, %v11240_v9, %v8387_v0 }
 0x3da   : > { %12413 = vmatmul.mubr.bf16.gmra.mrb[4].mxu1 %v11135_v3  ;;  %v8375_v3 = vrot.slane %v8373_v32, 4  ;;  %16831 = vst [vmem:[#allocation5_spill] sm:$0xff] %v15655_v23  ;;  %v16042_v23 = vld [vmem:[#allocation2 + $0x64] sm:$0xf] }
 0x3db   : > { %12416 = vmatprep.mubr.bf16.mxu1 %v11136_v26  ;;  %12445 = vmatpush3.bf16.msra.mxu1 %v13412_v6  ;;  %v16829_v6 = vcombine.low %v15391_v20, %v15399_v44  ;;  %v15626_v20 = vld [vmem:[%s16725_s3 + $0x100] sm:$0xff]   ;;  %v15630_v44 = vsel %vm13964_vm5, %v11238_v46, %v8373_v32  ;;  %v15633_v26 = vld [vmem:[#allocation2 + $0x5c] sm:$0x1]  ;;  %v8301_v46 = vld [vmem:[#allocation2 + $0x6c] sm:$0xe]  ;;  %16876 = vst [vmem:[#allocation41_spill] sm:$0xff] %v16042_v23 }
 0x3dc   : > { %12446 = vmatprep.subr.bf16.mxu1 %v13413_v2  ;;  %v15637_v52 = vsel %vm13964_vm5, %v8375_v3, %v8376_v57  ;;  %v8404_v49 = vrot.slane %v15633_v26, 5  ;;  %v16834_v3 = vcombine.low %v15417_v38, %v15427_v15  ;;  %v15680_v57 = vld [vmem:[#allocation2 + $0x74] sm:$0x1]  ;;  %v7574_v32 = vld [vmem:[#allocation2 + $0x98] sm:$0x1] }
 0x3df   : > { %12447 = vmatpush3.bf16.msra.mxu1 %v13413_v2  ;;  %v8299_v2 = vld [vmem:[#allocation2 + $0x54] sm:$0xe] }
 0x3e0   : > { %12448 = vmatprep.subr.bf16.mxu1 %v13414_v31  ;;  %v11242_v8 = vrot.slane %v8299_v2, 9 }
 0x3e2   : > { %12417 = vmatmul.mubr.bf16.gmra.mrb[8].mxu1 %v11137_v35  ;;  %v8389_v35 = vrot.slane %v8387_v0, 4  ;;  %v16836_v0 = vcombine.low %v15431_v42, %v15438_v45  ;;  %v8411_v45 = vrot.slane %v15647_v54, 5  ;;  %v8415_v42 = vrot.slane %v15664_v40, 5 }
 0x3e3   : > { %12420 = vmatprep.mubr.bf16.mxu1 %v11138_v19  ;;  %12449 = vmatpush3.bf16.msra.mxu1 %v13414_v31  ;;  %v8394_v31 = vrot.slane %v15613_v33, 5  ;;  %v15660_v19 = vsel %vm13964_vm5, %v8382_v7, %v8383_v27  ;;  %v8408_v7 = vrot.slane %v15641_v1, 5 }
 0x3e4   : > { %12450 = vmatprep.subr.bf16.mxu1 %v13415_v50  ;;  %v15670_v63 = vsel %vm13964_vm5, %v8389_v35, %v8390_v37  ;;  %v11244_v37 = vrot.slane %v8301_v46, 9  ;;  %v15702_v35 = vld [vmem:[#allocation2 + $0x88] sm:$0xf]  ;;  %v8418_v46 = vrot.slane %v15680_v57, 5 }
 0x3e5   : > { %16832 = vst [vmem:[#allocation6_spill] sm:$0xff] %v15670_v63  ;;  %v13440_v63 = vld [vmem:[#allocation2 + $0xc0] sm:$0xff]  }
 0x3e7   : > { %12451 = vmatpush3.bf16.msra.mxu1 %v13415_v50  ;;  %v8300_v50 = vld [vmem:[#allocation2 + $0x60] sm:$0xe] }
 0x3e8   : > { %12452 = vmatprep.subr.bf16.mxu1 %v13416_v30  ;;  %v11243_v27 = vrot.slane %v8300_v50, 9 }
 0x3ea   : > { %12421 = vmatmul.mubr.bf16.gmra.mrb[12].mxu1 %v16829_v6  ;;  %v15674_v6 = vsel %vm13964_vm5, %v11241_v11, %v8394_v31  ;;  %v15693_v11 = vld [vmem:[#allocation2 + $0x80] sm:$0x1] }
 0x3eb   : > { %12424 = vmatprep.mubr.bf16.mxu1 %v16830_v51  ;;  %12453 = vmatpush3.bf16.msra.mxu1 %v13416_v30  ;;  %v8396_v30 = vrot.slane %v8394_v31, 4  ;;  %16833 = vst [vmem:[#allocation7_spill] sm:$0xff] %v15674_v6  ;;  %v8302_v51 = vld [vmem:[#allocation2 + $0x78] sm:$0xe]  ;;  %v8303_v31 = vld [vmem:[#allocation2 + $0x84] sm:$0xe] }
 0x3ec   : > { %12454 = vmatprep.subr.bf16.mxu1 %v13417_v18  ;;  %v11246_v38 = vrot.slane %v8303_v31, 9  ;;  %v8425_v28 = vrot.slane %v15693_v11, 5 }
 0x3ed   : > { %v15688_v9 = vsel %vm13964_vm5, %v8396_v30, %v8397_v4  ;;  %v11245_v30 = vrot.slane %v8302_v51, 9  ;;  %v15710_v4 = vld [vmem:[#allocation2 + $0x8c] sm:$0x1]  ;;  %v8417_v51 = vrot.slane %v8415_v42, 4 }
 0x3ee   : > { %16835 = vst [vmem:[#allocation3_spill] sm:$0xff] %v15688_v9  ;;  %v8308_v9 = vld [vmem:[#allocation2 + $0xc0] sm:$0xe] }
 0x3ef   : > { %12455 = vmatpush3.bf16.msra.mxu1 %v13417_v18  ;;  %v8401_v18 = vrot.slane %v15620_v41, 5 }
 0x3f0   : > { %12488 = vmatprep.subr.bf16.mxu1 %v15626_v20 }
 0x3f1   : > { %v8403_v2 = vrot.slane %v8401_v18, 4  ;;  %v15699_v15 = vsel %vm13964_vm5, %v11242_v8, %v8401_v18  ;;  %v8410_v18 = vrot.slane %v8408_v7, 4  ;;  %v15726_v8 = vld [vmem:[#allocation2 + $0xa0] sm:$0xf] }
 0x3f2   : > { %12425 = vmatmul.mubr.bf16.gmra.mrb[16].mxu1 %v16834_v3  ;;  %16837 = vst [vmem:[#allocation4_spill] sm:$0xff] %v15699_v15  ;;  %v8422_v3 = vrot.slane %v15682_v12, 5 }
 0x3f3   : > { %12428 = vmatprep.mubr.bf16.mxu1 %v16836_v0  ;;  %v15706_v50 = vsel %vm13964_vm5, %v8403_v2, %v8404_v49  ;;  %v15716_v0 = vld [vmem:[#allocation2 + $0x94] sm:$0xf]  ;;  %v15720_v49 = vsel %vm13964_vm5, %v11243_v27, %v8408_v7  ;;  %v15724_v2 = vsel %vm13964_vm5, %v11244_v37, %v8415_v42  ;;  %v15730_v61 = vsel %vm13964_vm5, %v8410_v18, %v8411_v45  ;;  %v8305_v45 = vld [vmem:[#allocation2 + $0x9c] sm:$0xe]  ;;  %v8306_v18 = vld [vmem:[#allocation2 + $0xa8] sm:$0xe] }
 0x3f4   : > { %16838 = vst [vmem:[#allocation8_spill] sm:$0xff] %v15706_v50  ;;  %16839 = vst [vmem:[#allocation9_spill] sm:$0xff] %v15720_v49  ;;  %v8424_v55 = vrot.slane %v8422_v3, 4  ;;  %v8429_v27 = vrot.slane %v15702_v35, 5  ;;  %v15738_v37 = vsel %vm13964_vm5, %v8417_v51, %v8418_v46  ;;  %v15742_v31 = vsel %vm13964_vm5, %v11245_v30, %v8422_v3  ;;  %v7580_v30 = vld [vmem:[#allocation2 + $0xb0] sm:$0x1] }
 0x3f5   : > { %16840 = vst [vmem:[#allocation10_spill] sm:$0xff] %v15724_v2  ;;  %16841 = vst [vmem:[#allocation11_spill] sm:$0xff] %v15730_v61  ;;  %v8432_v42 = vrot.slane %v15710_v4, 5  ;;  %v11247_v46 = vrot.slane %v8304_v59, 9  ;;  %v16845_v51 = vcombine.low %v15445_v21, %v15450_v13  ;;  %v7582_v3 = vld [vmem:[#allocation2 + $0xb8] sm:$0xf] }
 0x3f6   : > { %16842 = vst [vmem:[#allocation12_spill] sm:$0xff] %v15738_v37  ;;  %16843 = vst [vmem:[#allocation13_spill] sm:$0xff] %v15742_v31  ;;  %v15749_v7 = vsel %vm13964_vm5, %v8424_v55, %v8425_v28  ;;  %v8431_v61 = vrot.slane %v8429_v27, 4  ;;  %v15758_v15 = vsel %vm13964_vm5, %v11246_v38, %v8429_v27  ;;  %v8436_v50 = vrot.slane %v15716_v0, 5  ;;  %v7583_v49 = vld [vmem:[#allocation2 + $0xbc] sm:$0x1] }
 0x3f7   : > { %16844 = vst [vmem:[#allocation14_spill] sm:$0xff] %v15749_v7  ;;  %16846 = vst [vmem:[#allocation15_spill] sm:$0xff] %v15758_v15  ;;  %v16847_v28 = vcombine.low %v15454_v29, %v15461_v39  ;;  %v11248_v21 = vrot.slane %v8305_v45, 9  ;;  %v8443_v13 = vrot.slane %v15726_v8, 5  ;;  %v11249_v59 = vrot.slane %v8306_v18, 9  ;;  %v13435_v38 = vld [vmem:[%s16725_s3 + $0x128] sm:$0xff]  }
 0x3f8   : > { %v15766_v55 = vsel %vm13964_vm5, %v8431_v61, %v8432_v42  ;;  %v8438_v27 = vrot.slane %v8436_v50, 4  ;;  %v8439_v7 = vrot.slane %v7574_v32, 5  ;;  %v8450_v31 = vrot.slane %v7579_v62, 5  ;;  %v7585_v37 = vld [vmem:[#allocation2 + $0xc4] sm:$0xf]  ;;  %v13425_v32 = vld [vmem:[#allocation2 + $0x48] sm:$0xff]  }
 0x3f9   : > { %16848 = vst [vmem:[#allocation16_spill] sm:$0xff] %v15766_v55  ;;  %v15773_v29 = vsel %vm13964_vm5, %v11247_v46, %v8436_v50  ;;  %v8445_v39 = vrot.slane %v8443_v13, 4  ;;  %v8446_v61 = vrot.slane %v7577_v22, 5  ;;  %v8453_v42 = vrot.slane %v7580_v30, 5  ;;  %v7545_v46 = vld [vmem:[#allocation2 + $0x24] sm:$0xf] }
 0x3fa   : > { %12429 = vmatmul.mubr.bf16.gmra.mrb[20].mxu1 %v16845_v51  ;;  %v8307_v51 = vld [vmem:[#allocation2 + $0xb4] sm:$0xe]  ;;  %16849 = vst [vmem:[#allocation17_spill] sm:$0xff] %v15773_v29  ;;  %v15777_v45 = vsel %vm13964_vm5, %v8438_v27, %v8439_v7  ;;  %v8452_v18 = vrot.slane %v8450_v31, 4  ;;  %v8457_v2 = vrot.slane %v7582_v3, 5  ;;  %v15783_v62 = vsel %vm13964_vm5, %v11248_v21, %v8443_v13 }
 0x3fb   : > { %12432 = vmatprep.mubr.bf16.mxu1 %v16847_v28  ;;  %16850 = vst [vmem:[#allocation18_spill] sm:$0xff] %v15777_v45  ;;  %v11250_v28 = vrot.slane %v8307_v51, 9  ;;  %16851 = vst [vmem:[#allocation19_spill] sm:$0xff] %v15783_v62  ;;  %v15787_v50 = vsel %vm13964_vm5, %v8445_v39, %v8446_v61  ;;  %v15791_v22 = vsel %vm13964_vm5, %v11249_v59, %v8450_v31  ;;  %v7586_v7 = vld [vmem:[#allocation2 + $0xc8] sm:$0x1]  ;;  %v8460_v51 = vrot.slane %v7583_v49, 5 }
 0x3fc   : > { %16852 = vst [vmem:[#allocation20_spill] sm:$0xff] %v15787_v50  ;;  %16853 = vst [vmem:[#allocation21_spill] sm:$0xff] %v15791_v22  ;;  %v15797_v30 = vsel %vm13964_vm5, %v8452_v18, %v8453_v42  ;;  %v8459_v3 = vrot.slane %v8457_v2, 4  ;;  %v11251_v13 = vrot.slane %v8308_v9, 9  ;;  %v8464_v27 = vrot.slane %v7585_v37, 5  ;;  %v13418_v42 = vld [vmem:[#allocation2 + $0xc] sm:$0xff]  }
 0x3fd   : > { %16854 = vst [vmem:[#allocation22_spill] sm:$0xff] %v15797_v30  ;;  %v16855_v39 = vcombine.low %v15478_v10, %v15482_v5  ;;  %v15806_v31 = vsel %vm13964_vm5, %v11250_v28, %v8457_v2  ;;  %v16858_v49 = vcombine.low %v15486_v43, %v15492_v60  ;;  %v8467_v61 = vrot.slane %v7586_v7, 5  ;;  %v13419_v60 = vld [vmem:[#allocation2 + $0x18] sm:$0xff]   ;;  %v13423_v18 = vld [vmem:[%s16725_s3 + $0x108] sm:$0xff]   ;;  %v13428_v22 = vld [vmem:[#allocation2 + $0x60] sm:$0xff]  }
 0x3fe   : > { %16856 = vst [vmem:[#allocation23_spill] sm:$0xff] %v15806_v31  ;;  %v15810_v59 = vsel %vm13964_vm5, %v8459_v3, %v8460_v51  ;;  %v8466_v37 = vrot.slane %v8464_v27, 4  ;;  %v15819_v10 = vsel %vm13964_vm5, %v11251_v13, %v8464_v27  ;;  %v16861_v43 = vcombine.low %v15502_v17, %v15506_v34  ;;  %v13421_v28 = vld [vmem:[#allocation2 + $0x24] sm:$0xff]   ;;  %v7539_v7 = vld [vmem:[#allocation2 + $0xc] sm:$0xf]  ;;  %v13426_v51 = vld [vmem:[%s16725_s3 + $0x110] sm:$0xff]  }
 0x3ff   : > { %16857 = vst [vmem:[#allocation24_spill] sm:$0xff] %v15810_v59  ;;  %16859 = vst [vmem:[#allocation25_spill] sm:$0xff] %v15819_v10  ;;  %v7540_v3 = vld [vmem:[#allocation2 + $0x10] sm:$0xf]  ;;  %v7588_v17 = vshrl.u32 %v7539_v7, 16  ;;  %v7591_v34 = vshll.u32 %v7539_v7, 16 }
 0x400   : > { %v15823_v5 = vsel %vm13964_vm5, %v8466_v37, %v8467_v61  ;;  %v7597_v13 = vshll.u32 %v7540_v3, 16  ;;  %v7601_v27 = vshrl.u32 %v7540_v3, 16  ;;  %v13424_v37 = vld [vmem:[#allocation2 + $0x3c] sm:$0xff]   ;;  %v15840_v7 = vld [vmem:[#allocation2 + $0x14] sm:$0x1]  ;;  %v7655_v31 = vshll.u32 %v15596_v47, 16 }
 0x401   : > { %16860 = vst [vmem:[#allocation26_spill] sm:$0xff] %v15823_v5  ;;  %v13429_v61 = vld [vmem:[%s16725_s3 + $0x118] sm:$0xff]   ;;  %v7548_v59 = vld [vmem:[#allocation2 + $0x30] sm:$0xf]  ;;  %v7673_v30 = vshrl.u32 %v15598_v58, 16 }
 0x402   : > { %12433 = vmatmul.mubr.bf16.gmra.mrb[24].mxu1 %v16855_v39  ;;  %v7542_v39 = vld [vmem:[#allocation2 + $0x18] sm:$0xf] }
 0x403   : > { %12436 = vmatprep.mubr.bf16.mxu1 %v16858_v49  ;;  %v13422_v49 = vld [vmem:[#allocation2 + $0x30] sm:$0xff]   ;;  %v7612_v2 = vshrl.u32 %v7542_v39, 16  ;;  %v7615_v9 = vshll.u32 %v7542_v39, 16  ;;  %v15846_v39 = vld [vmem:[#allocation2 + $0x20] sm:$0x1] }
 0x40a   : > { %12437 = vmatmul.mubr.bf16.gmra.mrb[28].mxu1 %v16861_v43  ;;  %v7599_v43 = vrot.slane %v7597_v13, 5  ;;  %v7614_v13 = vrot.slane %v7612_v2, 4 }
 0x40b   : > { %12456 = vmatprep.mubr.bf16.mxu1 %v13418_v42  ;;  %v7590_v42 = vrot.slane %v7588_v17, 4 }
 0x412   : > { %12457 = vmatmul.mubr.bf16.vlgmr.msra.gmra.mrb[0].mxu1 %v13419_v60  ;;  %v7603_v60 = vrot.slane %v7601_v27, 4  ;;  %v7617_v27 = vrot.slane %v7615_v9, 5 }
 0x413   : > { %12460 = vmatprep.mubr.bf16.mxu1 %v13421_v28  ;;  %12489 = vmatpush3.bf16.msra.mxu1 %v15626_v20  ;;  %v7593_v20 = vrot.slane %v7591_v34, 5  ;;  %v7543_v28 = vld [vmem:[#allocation2 + $0x1c] sm:$0xf] }
 0x414   : > { %12490 = vmatprep.subr.bf16.mxu1 %v13423_v18  ;;  %v7621_v3 = vshll.u32 %v7543_v28, 16  ;;  %v7625_v21 = vshrl.u32 %v7543_v28, 16  ;;  %v7604_v34 = vor.u32 %v7603_v60, %v7599_v43  ;;  %v7618_v9 = vor.u32 %v7617_v27, %v7614_v13 }
 0x415   : > { %v7594_v17 = vor.u32 %v7593_v20, %v7590_v42  ;;  %v13427_v42 = vld [vmem:[#allocation2 + $0x54] sm:$0xff]  }
 0x416   : > { %v15851_v5 = vrot.slane %v7621_v3, 5  ;;  %v7627_v28 = vrot.slane %v7625_v21, 4  ;;  %v7605_v2 = vrot.slane %v7604_v34, 4  ;;  %v13438_v3 = vld [vmem:[%s16725_s3 + $0x130] sm:$0xff]   ;;  %v7619_v13 = vrot.slane %v7618_v9, 4 }
 0x417   : > { %12491 = vmatpush3.bf16.msra.mxu1 %v13423_v18  ;;  %v13432_v18 = vld [vmem:[%s16725_s3 + $0x120] sm:$0xff]   ;;  %v7595_v20 = vrot.slane %v7594_v17, 4  ;;  %v7645_v17 = vshll.u32 %v15594_v16, 16 }
 0x418   : > { %12492 = vmatprep.subr.bf16.mxu1 %v13426_v51  ;;  %v7628_v21 = vor.u32 %v7627_v28, %v15851_v5  ;;  %v7669_v28 = vshll.u32 %v15598_v58, 16  ;;  %v7697_v58 = vshrl.u32 %v15605_v53, 16 }
 0x419   : > { %v7600_v34 = vsel %vm13635_vm2, %v7595_v20, %v7599_v43  ;;  %v13441_v43 = vld [vmem:[%s16725_s3 + $0x138] sm:$0xff]  }
 0x41a   : > { %12461 = vmatmul.mubr.bf16.gmra.mrb[4].mxu1 %v13422_v49  ;;  %v7607_v49 = vshll.u32 %v15840_v7, 16 }
 0x41b   : > { %12464 = vmatprep.mubr.bf16.mxu1 %v13424_v37  ;;  %12493 = vmatpush3.bf16.msra.mxu1 %v13426_v51  ;;  %v7636_v51 = vshrl.u32 %v7545_v46, 16  ;;  %v7639_v37 = vshll.u32 %v7545_v46, 16 }
 0x41c   : > { %12494 = vmatprep.subr.bf16.mxu1 %v13429_v61  ;;  %v7609_v60 = vrot.slane %v7607_v49, 5  ;;  %v7660_v49 = vshrl.u32 %v7548_v59, 16 }
 0x41d   : > { %v7638_v46 = vrot.slane %v7636_v51, 4  ;;  %v7641_v10 = vrot.slane %v7639_v37, 5  ;;  %v7663_v51 = vshll.u32 %v7548_v59, 16  ;;  %v7551_v37 = vld [vmem:[#allocation2 + $0x3c] sm:$0xf]  ;;  %v15872_v59 = vrot.slane %v7645_v17, 5 }
 0x41e   : > { %v7684_v9 = vshrl.u32 %v7551_v37, 16  ;;  %v7687_v47 = vshll.u32 %v7551_v37, 16 }
 0x41f   : > { %12495 = vmatpush3.bf16.msra.mxu1 %v13429_v61  ;;  %v7631_v61 = vshll.u32 %v15846_v39, 16 }
 0x420   : > { %12496 = vmatprep.subr.bf16.mxu1 %v13432_v18 }
 0x421   : > { %v7633_v27 = vrot.slane %v7631_v61, 5  ;;  %v7693_v61 = vshll.u32 %v15605_v53, 16 }
 0x422   : > { %12465 = vmatmul.mubr.bf16.gmra.mrb[8].mxu1 %v13425_v32  ;;  %v7649_v32 = vshrl.u32 %v15594_v16, 16  ;;  %v7554_v16 = vld [vmem:[#allocation2 + $0x48] sm:$0xf] }
 0x423   : > { %12468 = vmatprep.mubr.bf16.mxu1 %v13427_v42  ;;  %12497 = vmatpush3.bf16.msra.mxu1 %v13432_v18  ;;  %v7610_v18 = vsel %vm13635_vm2, %v7605_v2, %v7609_v60  ;;  %v7642_v42 = vor.u32 %v7641_v10, %v7638_v46  ;;  %v7629_v2 = vrot.slane %v7628_v21, 4  ;;  %v13430_v10 = vld [vmem:[#allocation2 + $0x6c] sm:$0xff]   ;;  %v7662_v60 = vrot.slane %v7660_v49, 4 }
 0x424   : > { %12498 = vmatprep.subr.bf16.mxu1 %v13435_v38  ;;  %v15870_v20 = vcombine.low %v7600_v34, %v7610_v18  ;;  %v7665_v46 = vrot.slane %v7663_v51, 5  ;;  %v7708_v50 = vshrl.u32 %v7554_v16, 16  ;;  %v7711_v62 = vshll.u32 %v7554_v16, 16 }
 0x425   : > { %v7624_v21 = vsel %vm13635_vm2, %v7619_v13, %v15851_v5  ;;  %v15879_v17 = vrot.slane %v7642_v42, 4  ;;  %v7675_v34 = vrot.slane %v7673_v30, 4  ;;  %v7634_v53 = vsel %vm13635_vm2, %v7629_v2, %v7633_v27  ;;  %v7557_v13 = vld [vmem:[#allocation2 + $0x54] sm:$0xf]  ;;  %v13431_v2 = vld [vmem:[#allocation2 + $0x78] sm:$0xff]  }
 0x426   : > { %v15890_v18 = vrot.slane %v7655_v31, 5  ;;  %v7721_v5 = vshrl.u32 %v15613_v33, 16  ;;  %v7686_v49 = vrot.slane %v7684_v9, 4  ;;  %v7689_v51 = vrot.slane %v7687_v47, 5 }
 0x427   : > { %12499 = vmatpush3.bf16.msra.mxu1 %v13435_v38  ;;  %v7651_v38 = vrot.slane %v7649_v32, 4  ;;  %v15881_v32 = vrot.slane %v7669_v28, 5  ;;  %v15894_v37 = vrot.slane %v7693_v61, 5  ;;  %v7699_v30 = vrot.slane %v7697_v58, 4  ;;  %v7560_v61 = vld [vmem:[#allocation2 + $0x60] sm:$0xf] }
 0x428   : > { %12500 = vmatprep.subr.bf16.mxu1 %v13438_v3  ;;  %v7666_v27 = vor.u32 %v7665_v46, %v7662_v60  ;;  %v7710_v28 = vrot.slane %v7708_v50, 4  ;;  %v7713_v16 = vrot.slane %v7711_v62, 5  ;;  %v7732_v45 = vshrl.u32 %v7557_v13, 16  ;;  %v13433_v50 = vld [vmem:[#allocation2 + $0x84] sm:$0xff]  }
 0x429   : > { %v7652_v42 = vor.u32 %v7651_v38, %v15872_v59  ;;  %v7676_v31 = vor.u32 %v7675_v34, %v15881_v32  ;;  %v7735_v29 = vshll.u32 %v7557_v13, 16  ;;  %v7723_v9 = vrot.slane %v7721_v5, 4 }
 0x42a   : > { %12469 = vmatmul.mubr.bf16.gmra.mrb[12].mxu1 %v13428_v22  ;;  %v15888_v22 = vld [vmem:[%s16725_s3 + $0x140] sm:$0xff]   ;;  %v7741_v47 = vshll.u32 %v15620_v41, 16  ;;  %v7745_v38 = vshrl.u32 %v15620_v41, 16  ;;  %v7648_v62 = vsel %vm13635_vm2, %v15879_v17, %v15872_v59  ;;  %v7690_v58 = vor.u32 %v7689_v51, %v7686_v49 }
 0x42b   : > { %12472 = vmatprep.mubr.bf16.mxu1 %v13430_v10  ;;  %12501 = vmatpush3.bf16.msra.mxu1 %v13438_v3  ;;  %v7717_v3 = vshll.u32 %v15613_v33, 16  ;;  %v15897_v10 = vcombine.low %v7624_v21, %v7634_v53  ;;  %v7700_v60 = vor.u32 %v7699_v30, %v15894_v37  ;;  %v7653_v46 = vrot.slane %v7652_v42, 4 }
 0x42c   : > { %12502 = vmatprep.subr.bf16.mxu1 %v13441_v43  ;;  %v7667_v21 = vrot.slane %v7666_v27, 4  ;;  %v7703_v34 = vshll.u32 %v15611_v24, 16  ;;  %v7714_v53 = vor.u32 %v7713_v16, %v7710_v28  ;;  %v7734_v41 = vrot.slane %v7732_v45, 4 }
 0x42d   : > { %v15901_v33 = vrot.slane %v7717_v3, 5  ;;  %v7737_v3 = vrot.slane %v7735_v29, 5  ;;  %v7756_v5 = vshrl.u32 %v7560_v61, 16  ;;  %v7759_v13 = vshll.u32 %v7560_v61, 16  ;;  %v13436_v61 = vld [vmem:[#allocation2 + $0x9c] sm:$0xff]  }
 0x42e   : > { %v7677_v55 = vrot.slane %v7676_v31, 4  ;;  %v15913_v59 = vrot.slane %v7741_v47, 5  ;;  %v7691_v17 = vrot.slane %v7690_v58, 4  ;;  %v7701_v49 = vrot.slane %v7700_v60, 4  ;;  %v7563_v31 = vld [vmem:[#allocation2 + $0x6c] sm:$0xf] }
 0x42f   : > { %12503 = vmatpush3.bf16.msra.mxu1 %v13441_v43  ;;  %v7679_v43 = vshll.u32 %v15603_v14, 16  ;;  %v7724_v15 = vor.u32 %v7723_v9, %v15901_v33  ;;  %v7747_v14 = vrot.slane %v7745_v38, 4  ;;  %v7765_v51 = vshll.u32 %v15641_v1, 16  ;;  %v13434_v9 = vld [vmem:[#allocation2 + $0x90] sm:$0xff]  }
 0x430   : > { %12536 = vmatprep.subr.bf16.mxu1 %v15888_v22  ;;  %v7769_v30 = vshrl.u32 %v15641_v1, 16  ;;  %v7658_v24 = vsel %vm13635_vm2, %v7653_v46, %v15890_v18  ;;  %v7705_v29 = vrot.slane %v7703_v34, 5  ;;  %v7727_v42 = vshll.u32 %v15618_v48, 16 }
 0x431   : > { %v7681_v45 = vrot.slane %v7679_v43, 5  ;;  %v7715_v27 = vrot.slane %v7714_v53, 4  ;;  %v7738_v28 = vor.u32 %v7737_v3, %v7734_v41  ;;  %v7758_v16 = vrot.slane %v7756_v5, 4  ;;  %v7566_v53 = vld [vmem:[#allocation2 + $0x78] sm:$0xf] }
 0x432   : > { %12473 = vmatmul.mubr.bf16.gmra.mrb[16].mxu1 %v13431_v2  ;;  %v7761_v2 = vrot.slane %v7759_v13, 5  ;;  %v7672_v47 = vsel %vm13635_vm2, %v7667_v21, %v15881_v32  ;;  %v7725_v38 = vrot.slane %v7724_v15, 4  ;;  %v7748_v18 = vor.u32 %v7747_v14, %v15913_v59 }
 0x433   : > { %12476 = vmatprep.mubr.bf16.mxu1 %v13433_v50  ;;  %v7682_v1 = vsel %vm13635_vm2, %v7677_v55, %v7681_v45  ;;  %v7696_v48 = vsel %vm13635_vm2, %v7691_v17, %v15894_v37  ;;  %v7706_v50 = vsel %vm13635_vm2, %v7701_v49, %v7705_v29  ;;  %v15932_v43 = vrot.slane %v7765_v51, 5  ;;  %v15954_v49 = vld [vmem:[#allocation2 + $0x1c] sm:$0xf] }
 0x434   : > { %v7771_v58 = vrot.slane %v7769_v30, 4  ;;  %v7729_v60 = vrot.slane %v7727_v42, 5  ;;  %v7751_v32 = vshll.u32 %v15633_v26, 16  ;;  %v7780_v46 = vshrl.u32 %v7563_v31, 16  ;;  %16862 = vst [vmem:[#allocation27_spill] sm:$0xff] %v15954_v49 }
 0x435   : > { %v7783_v55 = vshll.u32 %v7563_v31, 16  ;;  %v7720_v15 = vsel %vm13635_vm2, %v7715_v27, %v15901_v33  ;;  %v15938_v21 = vrot.slane %v7738_v28, 4  ;;  %v7762_v37 = vor.u32 %v7761_v2, %v7758_v16  ;;  %v15962_v42 = vld [vmem:[#allocation2 + $0x20] sm:$0x1]  ;;  %v15974_v16 = vld [vmem:[#allocation2 + $0x28] sm:$0xf] }
 0x436   : > { %v7775_v34 = vshll.u32 %v15647_v54, 16  ;;  %v7730_v41 = vsel %vm13635_vm2, %v7725_v38, %v7729_v60  ;;  %v15943_v3 = vrot.slane %v7748_v18, 4  ;;  %v7789_v26 = vshll.u32 %v15664_v40, 16  ;;  %v13437_v54 = vld [vmem:[#allocation2 + $0xa8] sm:$0xff]   ;;  %16863 = vst [vmem:[#allocation28_spill] sm:$0xff] %v15962_v42  ;;  %16864 = vst [vmem:[#allocation29_spill] sm:$0xff] %v15974_v16 }
 0x437   : > { %v7793_v5 = vshrl.u32 %v15664_v40, 16  ;;  %v15947_v13 = vcombine.low %v7648_v62, %v7658_v24  ;;  %v15949_v14 = vcombine.low %v7672_v47, %v7682_v1  ;;  %v15951_v33 = vcombine.low %v7696_v48, %v7706_v50  ;;  %v9931_v40 = vld [vmem:[#allocation2 + $0x18] sm:$0xe]  ;;  %v15976_v2 = vld [vmem:[#allocation2 + $0x34] sm:$0xf] }
 0x438   : > { %v7772_v17 = vor.u32 %v7771_v58, %v15932_v43  ;;  %v15956_v51 = vrot.slane %v7751_v32, 5  ;;  %v15958_v30 = vrot.slane %v7780_v46, 4  ;;  %v15960_v45 = vrot.slane %v7783_v55, 5  ;;  %16865 = vst [vmem:[#allocation30_spill] sm:$0xff] %v15976_v2  ;;  %v13439_v31 = vld [vmem:[#allocation2 + $0xb4] sm:$0xff]  }
 0x439   : > { %v7804_v29 = vshrl.u32 %v7566_v53, 16  ;;  %v15964_v62 = vcombine.low %v7720_v15, %v7730_v41  ;;  %v15970_v27 = vrot.slane %v7762_v37, 4  ;;  %v15972_v28 = vrot.slane %v7775_v34, 5  ;;  %v15986_v18 = vld [vmem:[#allocation2 + $0x2c] sm:$0x1] }
 0x43a   : > { %12477 = vmatmul.mubr.bf16.gmra.mrb[20].mxu1 %v13434_v9  ;;  %v15982_v47 = vrot.slane %v7789_v26, 5  ;;  %v15984_v1 = vrot.slane %v7793_v5, 4  ;;  %v7807_v38 = vshll.u32 %v7566_v53, 16  ;;  %16866 = vst [vmem:[#allocation31_spill] sm:$0xff] %v15986_v18  ;;  %v15988_v48 = vrot.slane %v7772_v17, 4 }
 0x43b   : > { %12480 = vmatprep.mubr.bf16.mxu1 %v13436_v61  ;;  %v9932_v61 = vld [vmem:[#allocation2 + $0x24] sm:$0xe]  ;;  %v11372_v58 = vrot.slane %v9931_v40, 9  ;;  %v9997_v60 = vrot.slane %v15954_v49, 5  ;;  %v9933_v32 = vld [vmem:[#allocation2 + $0x30] sm:$0xe] }
 0x43c   : > { %v15994_v55 = vrot.slane %v7804_v29, 4  ;;  %v7813_v15 = vshll.u32 %v15682_v12, 16  ;;  %v15998_v34 = vld [vmem:[#allocation2 + $0x38] sm:$0x1]  ;;  %v16000_v53 = vld [vmem:[#allocation2 + $0x40] sm:$0xf] }
 0x43d   : > { %16867 = vst [vmem:[#allocation32_spill] sm:$0xff] %v15998_v34  ;;  %v9999_v41 = vrot.slane %v9997_v60, 4  ;;  %v10000_v26 = vrot.slane %v15962_v42, 5  ;;  %v11373_v5 = vrot.slane %v9932_v61, 9  ;;  %v10004_v17 = vrot.slane %v15974_v16, 5 }
 0x43e   : > { %v16006_v29 = vrot.slane %v7807_v38, 5  ;;  %v16008_v40 = vld [vmem:[#allocation2 + $0x44] sm:$0x1]  ;;  %v16010_v46 = vld [vmem:[#allocation2 + $0x4c] sm:$0xf]  ;;  %v11374_v50 = vrot.slane %v9933_v32, 9  ;;  %v16017_v61 = vsel %vm13964_vm5, %v11372_v58, %v9997_v60 }
 0x43f   : > { %16868 = vst [vmem:[#allocation33_spill] sm:$0xff] %v16008_v40  ;;  %v9934_v24 = vld [vmem:[#allocation2 + $0x3c] sm:$0xe]  ;;  %v16013_v9 = vld [vmem:[#allocation2 + $0x50] sm:$0x1]  ;;  %16870 = vst [vmem:[#allocation35_spill] sm:$0xff] %v16017_v61  ;;  %v16021_v37 = vsel %vm13964_vm5, %v9999_v41, %v10000_v26  ;;  %v16035_v60 = vsel %vm13964_vm5, %v11373_v5, %v10004_v17 }
 0x440   : > { %16869 = vst [vmem:[#allocation34_spill] sm:$0xff] %v16013_v9  ;;  %16871 = vst [vmem:[#allocation36_spill] sm:$0xff] %v16021_v37  ;;  %v10006_v38 = vrot.slane %v10004_v17, 4  ;;  %v9935_v42 = vld [vmem:[#allocation2 + $0x48] sm:$0xe]  ;;  %v16024_v16 = vrot.slane %v7813_v15, 5 }
 0x441   : > { %v16026_v32 = vld [vmem:[#allocation2 + $0x58] sm:$0xf]  ;;  %v10014_v6 = vrot.slane %v15998_v34, 5  ;;  %v16031_v58 = vld [vmem:[#allocation2 + $0x5c] sm:$0x1]  ;;  %16874 = vst [vmem:[#allocation39_spill] sm:$0xff] %v16035_v60 }
 0x442   : > { %12481 = vmatmul.mubr.bf16.gmra.mrb[24].mxu1 %v13437_v54  ;;  %v10007_v54 = vrot.slane %v15986_v18, 5  ;;  %16872 = vst [vmem:[#allocation37_spill] sm:$0xff] %v16026_v32  ;;  %16873 = vst [vmem:[#allocation38_spill] sm:$0xff] %v16031_v58  ;;  %v11375_v15 = vrot.slane %v9934_v24, 9  ;;  %v10018_v26 = vrot.slane %v16000_v53, 5  ;;  %v11376_v17 = vrot.slane %v9935_v42, 9 }
 0x443   : > { %12484 = vmatprep.mubr.bf16.mxu1 %v13439_v31  ;;  %v10011_v31 = vrot.slane %v15976_v2, 5  ;;  %v9936_v18 = vld [vmem:[#allocation2 + $0x54] sm:$0xe]  ;;  %v16054_v24 = vld [vmem:[#allocation2 + $0x70] sm:$0xf]  ;;  %v10021_v34 = vrot.slane %v16008_v40, 5 }
 0x444   : > { %v16039_v41 = vsel %vm13964_vm5, %v10006_v38, %v10007_v54  ;;  %v9937_v54 = vld [vmem:[#allocation2 + $0x60] sm:$0xe]  ;;  %16879 = vst [vmem:[#allocation44_spill] sm:$0xff] %v16054_v24  ;;  %v10020_v61 = vrot.slane %v10018_v26, 4  ;;  %v10025_v2 = vrot.slane %v16010_v46, 5  ;;  %v10032_v42 = vrot.slane %v16026_v32, 5 }
 0x445   : > { %v10013_v49 = vrot.slane %v10011_v31, 4  ;;  %16875 = vst [vmem:[#allocation40_spill] sm:$0xff] %v16039_v41  ;;  %v16048_v37 = vsel %vm13964_vm5, %v11374_v50, %v10011_v31  ;;  %v16062_v50 = vsel %vm13964_vm5, %v11375_v15, %v10018_v26  ;;  %v9938_v31 = vld [vmem:[#allocation2 + $0x6c] sm:$0xe]  ;;  %v16067_v41 = vld [vmem:[#allocation2 + $0x68] sm:$0x1] }
 0x446   : > { %16877 = vst [vmem:[#allocation42_spill] sm:$0xff] %v16048_v37  ;;  %16880 = vst [vmem:[#allocation45_spill] sm:$0xff] %v16062_v50  ;;  %v16071_v38 = vsel %vm13964_vm5, %v10020_v61, %v10021_v34  ;;  %v11378_v37 = vrot.slane %v9937_v54, 9  ;;  %v9200_v15 = vld [vmem:[#allocation2 + $0x74] sm:$0x1]  ;;  %v16078_v60 = vsel %vm13964_vm5, %v11376_v17, %v10025_v2  ;;  %v11379_v54 = vrot.slane %v9938_v31, 9 }
 0x447   : > { %v16052_v5 = vsel %vm13964_vm5, %v10013_v49, %v10014_v6  ;;  %v10028_v6 = vrot.slane %v16013_v9, 5  ;;  %v11377_v49 = vrot.slane %v9936_v18, 9  ;;  %16881 = vst [vmem:[#allocation46_spill] sm:$0xff] %v16067_v41  ;;  %16882 = vst [vmem:[#allocation47_spill] sm:$0xff] %v16071_v38  ;;  %v9202_v26 = vld [vmem:[#allocation2 + $0x7c] sm:$0xf] }
 0x448   : > { %16878 = vst [vmem:[#allocation43_spill] sm:$0xff] %v16052_v5  ;;  %v10027_v5 = vrot.slane %v10025_v2, 4  ;;  %16883 = vst [vmem:[#allocation48_spill] sm:$0xff] %v16078_v60  ;;  %v10039_v9 = vrot.slane %v16042_v23, 5  ;;  %v9203_v40 = vld [vmem:[#allocation2 + $0x80] sm:$0x1] }
 0x449   : > { %v16087_v61 = vsel %vm13964_vm5, %v11377_v49, %v10032_v42  ;;  %v9939_v18 = vld [vmem:[#allocation2 + $0x78] sm:$0xe]  ;;  %v9205_v38 = vld [vmem:[#allocation2 + $0x88] sm:$0xf]  ;;  %v9206_v23 = vld [vmem:[#allocation2 + $0x8c] sm:$0x1] }
 0x44a   : > { %12485 = vmatmul.mubr.bf16.gmra.mrb[28].mxu1 %v13440_v63  ;;  %v10035_v63 = vrot.slane %v16031_v58, 5  ;;  %v16083_v34 = vsel %vm13964_vm5, %v10027_v5, %v10028_v6  ;;  %16885 = vst [vmem:[#allocation50_spill] sm:$0xff] %v16087_v61  ;;  %v10046_v58 = vrot.slane %v16054_v24, 5  ;;  %v10041_v50 = vrot.slane %v10039_v9, 4  ;;  %v9940_v6 = vld [vmem:[#allocation2 + $0x84] sm:$0xe] }
 0x44b   : > { %12504 = vmatprep.mubr.bf16.mxu1 %v15870_v20  ;;  %v10034_v20 = vrot.slane %v10032_v42, 4  ;;  %16884 = vst [vmem:[#allocation49_spill] sm:$0xff] %v16083_v34  ;;  %v10042_v5 = vrot.slane %v16067_v41, 5  ;;  %v9208_v32 = vld [vmem:[#allocation2 + $0x94] sm:$0xf]  ;;  %v16101_v42 = vsel %vm13964_vm5, %v11378_v37, %v10039_v9  ;;  %v10049_v24 = vrot.slane %v9200_v15, 5 }
 0x44c   : > { %v10048_v31 = vrot.slane %v10046_v58, 4  ;;  %v16112_v2 = vsel %vm13964_vm5, %v11379_v54, %v10046_v58  ;;  %v11380_v34 = vrot.slane %v9939_v18, 9  ;;  %v10053_v49 = vrot.slane %v9202_v26, 5  ;;  %v9211_v61 = vld [vmem:[#allocation2 + $0xa0] sm:$0xf]  ;;  %v13444_v58 = vld [vmem:[%s16725_s3 + $0x150] sm:$0xff]  }
 0x44d   : > { %v16094_v17 = vsel %vm13964_vm5, %v10034_v20, %v10035_v63  ;;  %v13443_v63 = vld [vmem:[%s16725_s3 + $0x148] sm:$0xff]   ;;  %v16108_v20 = vsel %vm13964_vm5, %v10041_v50, %v10042_v5  ;;  %16888 = vst [vmem:[#allocation53_spill] sm:$0xff] %v16112_v2  ;;  %v11381_v15 = vrot.slane %v9940_v6, 9  ;;  %v10060_v60 = vrot.slane %v9205_v38, 5  ;;  %v9942_v41 = vld [vmem:[#allocation2 + $0x9c] sm:$0xe] }
 0x44e   : > { %16886 = vst [vmem:[#allocation51_spill] sm:$0xff] %v16094_v17  ;;  %16887 = vst [vmem:[#allocation52_spill] sm:$0xff] %v16108_v20  ;;  %v9941_v17 = vld [vmem:[#allocation2 + $0x90] sm:$0xe]  ;;  %v16118_v37 = vsel %vm13964_vm5, %v10048_v31, %v10049_v24  ;;  %v9209_v50 = vld [vmem:[#allocation2 + $0x98] sm:$0x1]  ;;  %v16125_v26 = vsel %vm13964_vm5, %v11380_v34, %v10053_v49 }
 0x44f   : > { %16889 = vst [vmem:[#allocation54_spill] sm:$0xff] %v16118_v37  ;;  %v9212_v5 = vld [vmem:[#allocation2 + $0xa4] sm:$0x1]  ;;  %16890 = vst [vmem:[#allocation55_spill] sm:$0xff] %v16125_v26  ;;  %v10055_v18 = vrot.slane %v10053_v49, 4  ;;  %v10056_v54 = vrot.slane %v9203_v40, 5  ;;  %v16138_v40 = vsel %vm13964_vm5, %v11381_v15, %v10060_v60 }
 0x450   : > { %v9214_v24 = vld [vmem:[#allocation2 + $0xac] sm:$0xf]  ;;  %v10062_v38 = vrot.slane %v10060_v60, 4  ;;  %v10063_v6 = vrot.slane %v9206_v23, 5  ;;  %v11382_v31 = vrot.slane %v9941_v17, 9  ;;  %16892 = vst [vmem:[#allocation57_spill] sm:$0xff] %v16138_v40 }
 0x451   : > { %v16134_v34 = vsel %vm13964_vm5, %v10055_v18, %v10056_v54  ;;  %v9943_v49 = vld [vmem:[#allocation2 + $0xa8] sm:$0xe]  ;;  %v9217_v9 = vld [vmem:[#allocation2 + $0xb8] sm:$0xf]  ;;  %v10070_v37 = vrot.slane %v9209_v50, 5  ;;  %v10077_v15 = vrot.slane %v9212_v5, 5 }
 0x452   : > { %12505 = vmatmul.mubr.bf16.vlgmr.msra.gmra.mrb[0].mxu1 %v15897_v10  ;;  %v10067_v10 = vrot.slane %v9208_v32, 5  ;;  %16891 = vst [vmem:[#allocation56_spill] sm:$0xff] %v16134_v34  ;;  %v16144_v32 = vsel %vm13964_vm5, %v10062_v38, %v10063_v6  ;;  %v9944_v2 = vld [vmem:[#allocation2 + $0xb4] sm:$0xe]  ;;  %v9215_v18 = vld [vmem:[#allocation2 + $0xb0] sm:$0x1] }
 0x453   : > { %12508 = vmatprep.mubr.bf16.mxu1 %v15947_v13  ;;  %12537 = vmatpush3.bf16.msra.mxu1 %v15888_v22  ;;  %v11383_v13 = vrot.slane %v9942_v41, 9  ;;  %v10074_v22 = vrot.slane %v9211_v61, 5  ;;  %16893 = vst [vmem:[#allocation58_spill] sm:$0xff] %v16144_v32  ;;  %v9218_v54 = vld [vmem:[#allocation2 + $0xbc] sm:$0x1]  ;;  %v11384_v6 = vrot.slane %v9943_v49, 9 }
 0x454   : > { %12538 = vmatprep.subr.bf16.mxu1 %v13443_v63  ;;  %v10069_v17 = vrot.slane %v10067_v10, 4  ;;  %v16150_v41 = vsel %vm13964_vm5, %v11382_v31, %v10067_v10  ;;  %v9220_v23 = vld [vmem:[#allocation2 + $0xc4] sm:$0xf]  ;;  %v10081_v34 = vrot.slane %v9214_v24, 5  ;;  %v9945_v26 = vld [vmem:[#allocation2 + $0xc0] sm:$0xe] }
 0x455   : > { %v10076_v61 = vrot.slane %v10074_v22, 4  ;;  %v16158_v50 = vsel %vm13964_vm5, %v11383_v13, %v10074_v22  ;;  %v13445_v31 = vld [vmem:[%s16725_s3 + $0x158] sm:$0xff]   ;;  %v7569_v10 = vld [vmem:[#allocation2 + $0x84] sm:$0xf]  ;;  %v11385_v5 = vrot.slane %v9944_v2, 9  ;;  %v16895_v13 = vshrl.u32 %v15682_v12, 16 }
 0x456   : > { %v16154_v38 = vsel %vm13964_vm5, %v10069_v17, %v10070_v37  ;;  %v10088_v17 = vrot.slane %v9217_v9, 5  ;;  %v9221_v24 = vld [vmem:[#allocation2 + $0xc8] sm:$0x1]  ;;  %v10083_v60 = vrot.slane %v10081_v34, 4  ;;  %v10084_v32 = vrot.slane %v9215_v18, 5  ;;  %v16964_v25 = vld [vmem:[#allocation48_spill] sm:$0xff] }
 0x457   : > { %12539 = vmatpush3.bf16.msra.mxu1 %v13443_v63  ;;  %16894 = vst [vmem:[#allocation59_spill] sm:$0xff] %v16154_v38  ;;  %v16167_v37 = vsel %vm13964_vm5, %v10076_v61, %v10077_v15  ;;  %v7819_v22 = vrot.slane %v16895_v13, 4  ;;  %v10091_v20 = vrot.slane %v9218_v54, 5  ;;  %v11386_v63 = vrot.slane %v9945_v26, 9 }
 0x458   : > { %12540 = vmatprep.subr.bf16.mxu1 %v13444_v58  ;;  %v11415_v49 = vcombine.low %v16158_v50, %v16167_v37  ;;  %v10090_v40 = vrot.slane %v10088_v17, 4  ;;  %v10095_v38 = vrot.slane %v9220_v23, 5  ;;  %v7828_v2 = vshrl.u32 %v7569_v10, 16 }
 0x459   : > { %v16177_v12 = vsel %vm13964_vm5, %v11384_v6, %v10081_v34  ;;  %v16181_v9 = vsel %vm13964_vm5, %v10083_v60, %v10084_v32  ;;  %v16185_v18 = vsel %vm13964_vm5, %v11385_v5, %v10088_v17  ;;  %v10098_v34 = vrot.slane %v9221_v24, 5 }
 0x45a   : > { %12509 = vmatmul.mubr.bf16.gmra.mrb[4].mxu1 %v15949_v14  ;;  %v13446_v14 = vld [vmem:[%s16725_s3 + $0x160] sm:$0xff]   ;;  %v10097_v26 = vrot.slane %v10095_v38, 4  ;;  %v7831_v23 = vshll.u32 %v7569_v10, 16  ;;  %v7837_v32 = vshll.u32 %v15702_v35, 16  ;;  %v7841_v54 = vshrl.u32 %v15702_v35, 16 }
 0x45b   : > { %12512 = vmatprep.mubr.bf16.mxu1 %v15951_v33  ;;  %12541 = vmatpush3.bf16.msra.mxu1 %v13444_v58  ;;  %v11416_v33 = vcombine.low %v16177_v12, %v16181_v9  ;;  %v16194_v58 = vsel %vm13964_vm5, %v10090_v40, %v10091_v20  ;;  %v7810_v61 = vor.u32 %v16006_v29, %v15994_v55  ;;  %v7830_v17 = vrot.slane %v7828_v2, 4 }
 0x45c   : > { %12542 = vmatprep.subr.bf16.mxu1 %v13445_v31  ;;  %v11417_v60 = vcombine.low %v16185_v18, %v16194_v58  ;;  %v7820_v15 = vor.u32 %v7819_v22, %v16024_v16  ;;  %v16205_v6 = vsel %vm13964_vm5, %v11386_v63, %v10095_v38  ;;  %v16209_v20 = vsel %vm13964_vm5, %v10097_v26, %v10098_v34  ;;  %v7572_v63 = vld [vmem:[#allocation2 + $0x90] sm:$0xf] }
 0x45d   : > { %v16896_v35 = vsel %vm13635_vm2, %v15943_v3, %v15956_v51  ;;  %v16897_v55 = vsel %vm13635_vm2, %v15938_v21, %v15913_v59  ;;  %v7768_v40 = vsel %vm13635_vm2, %v15970_v27, %v15932_v43  ;;  %v16898_v38 = vshll.u32 %v15680_v57, 16  ;;  %v13447_v27 = vld [vmem:[%s16725_s3 + $0x168] sm:$0xff]  }
 0x45e   : > { %v11218_v29 = vcombine.low %v16897_v55, %v16896_v35  ;;  %v11418_v5 = vcombine.low %v16205_v6, %v16209_v20  ;;  %v7778_v3 = vsel %vm13635_vm2, %v15988_v48, %v15972_v28  ;;  %v16899_v59 = vor.u32 %v15960_v45, %v15958_v30 }
 0x45f   : > { %v7801_v10 = vrot.slane %v16898_v38, 5  ;;  %12543 = vmatpush3.bf16.msra.mxu1 %v13445_v31  ;;  %v16900_v43 = vor.u32 %v15984_v1, %v15982_v47  ;;  %v7823_v57 = vshll.u32 %v15693_v11, 16  ;;  %v7575_v31 = vld [vmem:[#allocation2 + $0x9c] sm:$0xf]  ;;  %v7833_v13 = vrot.slane %v7831_v23, 5 }
 0x460   : > { %v7787_v21 = vrot.slane %v16899_v59, 4  ;;  %12544 = vmatprep.subr.bf16.mxu1 %v13446_v14  ;;  %v16243_v22 = vrot.slane %v7837_v32, 5  ;;  %v7843_v28 = vrot.slane %v7841_v54, 4  ;;  %v7811_v30 = vrot.slane %v7810_v61, 4 }
 0x461   : > { %v7797_v51 = vrot.slane %v16900_v43, 4  ;;  %v7821_v45 = vrot.slane %v7820_v15, 4  ;;  %v7852_v48 = vshrl.u32 %v7572_v63, 16  ;;  %v7855_v1 = vshll.u32 %v7572_v63, 16 }
 0x462   : > { %12513 = vmatmul.mubr.bf16.gmra.mrb[8].mxu1 %v15964_v62  ;;  %v7861_v11 = vshll.u32 %v15716_v0, 16  ;;  %v7865_v24 = vshrl.u32 %v15716_v0, 16  ;;  %v7876_v26 = vshrl.u32 %v7575_v31, 16  ;;  %v7879_v34 = vshll.u32 %v7575_v31, 16 }
 0x463   : > { %12516 = vmatprep.mubr.bf16.mxu1 %v11218_v29  ;;  %12545 = vmatpush3.bf16.msra.mxu1 %v13446_v14  ;;  %v7792_v2 = vsel %vm13635_vm2, %v7787_v21, %v15982_v47  ;;  %v7825_v23 = vrot.slane %v7823_v57, 5  ;;  %v7885_v62 = vshll.u32 %v15726_v8, 16  ;;  %v7889_v32 = vshrl.u32 %v15726_v8, 16  ;;  %v13448_v14 = vld [vmem:[%s16725_s3 + $0x170] sm:$0xff]  }
 0x464   : > { %12546 = vmatprep.subr.bf16.mxu1 %v13447_v27  ;;  %v7802_v54 = vsel %vm13635_vm2, %v7797_v51, %v7801_v10  ;;  %v7834_v0 = vor.u32 %v7833_v13, %v7830_v17  ;;  %v7844_v61 = vor.u32 %v7843_v28, %v16243_v22  ;;  %v7847_v15 = vshll.u32 %v15710_v4, 16  ;;  %v7578_v4 = vld [vmem:[#allocation2 + $0xa8] sm:$0xf] }
 0x465   : > { %v7816_v47 = vsel %vm13635_vm2, %v7811_v30, %v16024_v16  ;;  %v7826_v35 = vsel %vm13635_vm2, %v7821_v45, %v7825_v23  ;;  %v7854_v8 = vrot.slane %v7852_v48, 4  ;;  %v7857_v55 = vrot.slane %v7855_v1, 5  ;;  %v13449_v16 = vld [vmem:[%s16725_s3 + $0x178] sm:$0xff]   ;;  %v7581_v30 = vld [vmem:[#allocation2 + $0xb4] sm:$0xf] }
 0x466   : > { %v16265_v29 = vrot.slane %v7861_v11, 5  ;;  %v7867_v38 = vrot.slane %v7865_v24, 4  ;;  %v7878_v63 = vrot.slane %v7876_v26, 4  ;;  %v7881_v59 = vrot.slane %v7879_v34, 5  ;;  %v13524_v1 = vld [vmem:[#allocation2 + $0xac] sm:$0xf] }
 0x467   : > { %12547 = vmatpush3.bf16.msra.mxu1 %v13447_v27  ;;  %v11219_v10 = vcombine.low %v7768_v40, %v7778_v3  ;;  %v16267_v21 = vrot.slane %v7885_v62, 5  ;;  %v7891_v43 = vrot.slane %v7889_v32, 4  ;;  %v11220_v51 = vcombine.low %v7792_v2, %v7802_v54  ;;  %v16277_v26 = vld [vmem:[%s16725_s3 + $0x180] sm:$0xff]   ;;  %v13525_v23 = vld [vmem:[#allocation2 + $0x98] sm:$0x1] }
 0x468   : > { %12548 = vmatprep.subr.bf16.mxu1 %v13448_v14  ;;  %v7835_v57 = vrot.slane %v7834_v0, 4  ;;  %v7845_v31 = vrot.slane %v7844_v61, 4  ;;  %v11221_v17 = vcombine.low %v7816_v47, %v7826_v35  ;;  %v7849_v13 = vrot.slane %v7847_v15, 5  ;;  %v13526_v32 = vld [vmem:[#allocation2 + $0xa4] sm:$0x1] }
 0x469   : > { %v7858_v28 = vor.u32 %v7857_v55, %v7854_v8  ;;  %v7868_v27 = vor.u32 %v7867_v38, %v16265_v29  ;;  %v7882_v40 = vor.u32 %v7881_v59, %v7878_v63  ;;  %v7900_v3 = vshrl.u32 %v7578_v4, 16  ;;  %v13527_v61 = vld [vmem:[#allocation2 + $0xb8] sm:$0xf] }
 0x46a   : > { %12517 = vmatmul.mubr.bf16.gmra.mrb[12].mxu1 %v11219_v10  ;;  %v7892_v45 = vor.u32 %v7891_v43, %v16267_v21  ;;  %v7903_v48 = vshll.u32 %v7578_v4, 16  ;;  %v7909_v11 = vshll.u32 %v13524_v1, 16  ;;  %v7913_v24 = vshrl.u32 %v13524_v1, 16  ;;  %v7584_v1 = vld [vmem:[#allocation2 + $0xc0] sm:$0xf] }
 0x46b   : > { %12520 = vmatprep.mubr.bf16.mxu1 %v11220_v51  ;;  %12549 = vmatpush3.bf16.msra.mxu1 %v13448_v14  ;;  %v7840_v34 = vsel %vm13635_vm2, %v7835_v57, %v16243_v22  ;;  %v7850_v2 = vsel %vm13635_vm2, %v7845_v31, %v7849_v13  ;;  %v7871_v62 = vshll.u32 %v13525_v23, 16  ;;  %v7895_v14 = vshll.u32 %v13526_v32, 16 }
 0x46c   : > { %12550 = vmatprep.subr.bf16.mxu1 %v13449_v16  ;;  %v7924_v54 = vshrl.u32 %v7581_v30, 16  ;;  %v7927_v0 = vshll.u32 %v7581_v30, 16  ;;  %v7933_v15 = vshll.u32 %v13527_v61, 16  ;;  %v7937_v47 = vshrl.u32 %v13527_v61, 16  ;;  %v13530_v61 = vld [vmem:[#allocation2 + $0xbc] sm:$0x1] }
 0x46d   : > { %v7859_v35 = vrot.slane %v7858_v28, 4  ;;  %v7869_v8 = vrot.slane %v7868_v27, 4  ;;  %v7883_v55 = vrot.slane %v7882_v40, 4  ;;  %v7902_v38 = vrot.slane %v7900_v3, 4 }
 0x46e   : > { %v7893_v63 = vrot.slane %v7892_v45, 4  ;;  %v7905_v59 = vrot.slane %v7903_v48, 5  ;;  %v7911_v22 = vrot.slane %v7909_v11, 5  ;;  %v7915_v10 = vrot.slane %v7913_v24, 4  ;;  %v13528_v11 = vld [vmem:[#allocation2 + $0xc4] sm:$0xf] }
 0x46f   : > { %12551 = vmatpush3.bf16.msra.mxu1 %v13449_v16  ;;  %v11222_v43 = vcombine.low %v7840_v34, %v7850_v2  ;;  %v7873_v4 = vrot.slane %v7871_v62, 5  ;;  %v7897_v51 = vrot.slane %v7895_v14, 5  ;;  %v7926_v57 = vrot.slane %v7924_v54, 4  ;;  %v13529_v62 = vld [vmem:[#allocation2 + $0xb0] sm:$0x1] }
 0x470   : > { %12584 = vmatprep.subr.bf16.mxu1 %v16277_v26  ;;  %v7929_v31 = vrot.slane %v7927_v0, 5  ;;  %v7935_v13 = vrot.slane %v7933_v15, 5  ;;  %v7939_v30 = vrot.slane %v7937_v47, 4  ;;  %v7864_v16 = vsel %vm13635_vm2, %v7859_v35, %v16265_v29 }
 0x471   : > { %v7874_v28 = vsel %vm13635_vm2, %v7869_v8, %v7873_v4  ;;  %v7888_v27 = vsel %vm13635_vm2, %v7883_v55, %v16267_v21  ;;  %v7906_v40 = vor.u32 %v7905_v59, %v7902_v38  ;;  %v7916_v3 = vor.u32 %v7915_v10, %v7911_v22 }
 0x472   : > { %12521 = vmatmul.mubr.bf16.gmra.mrb[16].mxu1 %v11221_v17  ;;  %v7898_v17 = vsel %vm13635_vm2, %v7893_v63, %v7897_v51  ;;  %v7948_v45 = vshrl.u32 %v7584_v1, 16  ;;  %v7951_v48 = vshll.u32 %v7584_v1, 16  ;;  %v7957_v24 = vshll.u32 %v13528_v11, 16 }
 0x473   : > { %12524 = vmatprep.mubr.bf16.mxu1 %v11222_v43  ;;  %v7961_v34 = vshrl.u32 %v13528_v11, 16  ;;  %v7930_v2 = vor.u32 %v7929_v31, %v7926_v57  ;;  %v7940_v23 = vor.u32 %v7939_v30, %v7935_v13  ;;  %v11223_v29 = vcombine.low %v7864_v16, %v7874_v28  ;;  %v13531_v30 = vld [vmem:[#allocation2 + $0x10] sm:$0xf]  ;;  %v13532_v16 = vld [vmem:[#allocation2 + $0xc8] sm:$0x1] }
 0x474   : > { %v7919_v32 = vshll.u32 %v13529_v62, 16  ;;  %v11224_v14 = vcombine.low %v7888_v27, %v7898_v17  ;;  %v7907_v54 = vrot.slane %v7906_v40, 4  ;;  %v7917_v0 = vrot.slane %v7916_v3, 4 }
 0x475   : > { %v7943_v21 = vshll.u32 %v13530_v61, 16  ;;  %v7950_v15 = vrot.slane %v7948_v45, 4  ;;  %v7953_v47 = vrot.slane %v7951_v48, 5  ;;  %v7959_v35 = vrot.slane %v7957_v24, 5 }
 0x476   : > { %v7963_v8 = vrot.slane %v7961_v34, 4  ;;  %v7931_v55 = vrot.slane %v7930_v2, 4  ;;  %v7941_v38 = vrot.slane %v7940_v23, 4  ;;  %v7921_v63 = vrot.slane %v7919_v32, 5  ;;  %v13533_v2 = vld [vmem:[#allocation2 + $0x1c] sm:$0xf] }
 0x477   : > { %v7945_v59 = vrot.slane %v7943_v21, 5  ;;  %v7912_v10 = vsel %vm13635_vm2, %v7907_v54, %v7911_v22  ;;  %v7954_v4 = vor.u32 %v7953_v47, %v7950_v15  ;;  %v8359_v1 = vrot.slane %v13531_v30, 5  ;;  %v8293_v22 = vld [vmem:[#allocation2 + $0xc] sm:$0xe] }
 0x478   : > { %v7922_v43 = vsel %vm13635_vm2, %v7917_v0, %v7921_v63  ;;  %v7964_v51 = vor.u32 %v7963_v8, %v7959_v35  ;;  %v7936_v57 = vsel %vm13635_vm2, %v7931_v55, %v7935_v13  ;;  %v7967_v28 = vshll.u32 %v13532_v16, 16  ;;  %v13453_v55 = vld [vmem:[%s16725_s3 + $0x198] sm:$0xff]   ;;  %v16903_v63 = vld [vmem:[#allocation5_spill] sm:$0xff] }
 0x479   : > { %v7946_v31 = vsel %vm13635_vm2, %v7941_v38, %v7945_v59  ;;  %v11225_v27 = vcombine.low %v7912_v10, %v7922_v43  ;;  %v7955_v40 = vrot.slane %v7954_v4, 4  ;;  %v8361_v45 = vrot.slane %v8359_v1, 4  ;;  %v13455_v59 = vld [vmem:[%s16725_s3 + $0x1a8] sm:$0xff]   ;;  %v16906_v10 = vld [vmem:[#allocation7_spill] sm:$0xff]  ;;  %v16910_v4 = vld [vmem:[#allocation8_spill] sm:$0xff] }
 0x47a   : > { %12525 = vmatmul.mubr.bf16.gmra.mrb[20].mxu1 %v11223_v29  ;;  %v11226_v17 = vcombine.low %v7936_v57, %v7946_v31  ;;  %v7965_v3 = vrot.slane %v7964_v51, 4  ;;  %v7969_v48 = vrot.slane %v7967_v28, 5  ;;  %v11236_v11 = vrot.slane %v8293_v22, 9  ;;  %v16907_v43 = vld [vmem:[#allocation3_spill] sm:$0xff]  ;;  %v13456_v57 = vld [vmem:[%s16725_s3 + $0x1b0] sm:$0xff]   ;;  %v16912_v30 = vld [vmem:[#allocation9_spill] sm:$0xff] }
 0x47b   : > { %12528 = vmatprep.mubr.bf16.mxu1 %v11224_v14  ;;  %v8362_v24 = vrot.slane %v15840_v7, 5  ;;  %v7960_v13 = vsel %vm13635_vm2, %v7955_v40, %v7959_v35  ;;  %v8366_v23 = vrot.slane %v13533_v2, 5  ;;  %v8294_v14 = vld [vmem:[#allocation2 + $0x18] sm:$0xe]  ;;  %v8369_v61 = vrot.slane %v15846_v39, 5  ;;  %v13451_v35 = vld [vmem:[%s16725_s3 + $0x188] sm:$0xff]  }
 0x47c   : > { %v7970_v34 = vsel %vm13635_vm2, %v7965_v3, %v7969_v48  ;;  %v8360_v32 = vsel %vm13964_vm5, %v11236_v11, %v8359_v1  ;;  %v11237_v7 = vrot.slane %v8294_v14, 9  ;;  %v16901_v8 = vcombine.low %v15630_v44, %v15637_v52  ;;  %v13452_v39 = vld [vmem:[%s16725_s3 + $0x190] sm:$0xff]   ;;  %v13457_v31 = vld [vmem:[%s16725_s3 + $0x1b8] sm:$0xff]   ;;  %v13460_v40 = vld [vmem:[%s16725_s3 + $0x1c0] sm:$0xff]  }
 0x47d   : > { %v8363_v29 = vsel %vm13964_vm5, %v8361_v45, %v8362_v24  ;;  %v11227_v62 = vcombine.low %v7960_v13, %v7970_v34  ;;  %v8368_v0 = vrot.slane %v8366_v23, 4  ;;  %v16902_v38 = vcombine.low %v15651_v56, %v15660_v19  ;;  %v16904_v44 = vld [vmem:[#allocation6_spill] sm:$0xff]  ;;  %v16909_v19 = vld [vmem:[#allocation4_spill] sm:$0xff]  ;;  %v16913_v1 = vld [vmem:[#allocation11_spill] sm:$0xff] }
 0x47e   : > { %v11268_v54 = vcombine.low %v8360_v32, %v8363_v29  ;;  %v8367_v15 = vsel %vm13964_vm5, %v11237_v7, %v8366_v23  ;;  %v16905_v52 = vcombine.low %v16903_v63, %v16904_v44  ;;  %v16908_v56 = vcombine.low %v16906_v10, %v16907_v43  ;;  %v16915_v28 = vld [vmem:[#allocation10_spill] sm:$0xff]  ;;  %v16918_v3 = vld [vmem:[#allocation13_spill] sm:$0xff]  ;;  %v16921_v48 = vld [vmem:[#allocation15_spill] sm:$0xff] }
 0x47f   : > { %v8370_v21 = vsel %vm13964_vm5, %v8368_v0, %v8369_v61  ;;  %v16911_v51 = vcombine.low %v16909_v19, %v16910_v4  ;;  %v16914_v16 = vcombine.low %v16912_v30, %v16913_v1  ;;  %v16919_v22 = vld [vmem:[#allocation14_spill] sm:$0xff]  ;;  %v16922_v11 = vld [vmem:[#allocation16_spill] sm:$0xff]  ;;  %v16924_v13 = vld [vmem:[#allocation17_spill] sm:$0xff] }
 0x480   : > { %v11269_v47 = vcombine.low %v8367_v15, %v8370_v21  ;;  %v16920_v45 = vcombine.low %v16918_v3, %v16919_v22  ;;  %v16923_v24 = vcombine.low %v16921_v48, %v16922_v11  ;;  %v16925_v34 = vld [vmem:[#allocation18_spill] sm:$0xff]  ;;  %v16927_v23 = vld [vmem:[#allocation19_spill] sm:$0xff]  ;;  %v16928_v29 = vld [vmem:[#allocation20_spill] sm:$0xff] }
 0x481   : > { %v16926_v2 = vcombine.low %v16924_v13, %v16925_v34  ;;  %v16930_v32 = vld [vmem:[#allocation21_spill] sm:$0xff]  ;;  %v16931_v14 = vld [vmem:[#allocation22_spill] sm:$0xff]  ;;  %v16933_v0 = vld [vmem:[#allocation23_spill] sm:$0xff] }
 0x482   : > { %12529 = vmatmul.mubr.bf16.gmra.mrb[24].mxu1 %v11225_v27  ;;  %v16916_v27 = vld [vmem:[#allocation12_spill] sm:$0xff]  ;;  %v13458_v21 = vld [vmem:[#allocation2 + $0x18] sm:$0xff]   ;;  %v16936_v15 = vld [vmem:[#allocation25_spill] sm:$0xff] }
 0x483   : > { %12532 = vmatprep.mubr.bf16.mxu1 %v11226_v17  ;;  %v16917_v17 = vcombine.low %v16915_v28, %v16916_v27  ;;  %v16934_v7 = vld [vmem:[#allocation24_spill] sm:$0xff]  ;;  %v13469_v44 = vld [vmem:[%s16725_s3 + $0x1d8] sm:$0xff]   ;;  %v13475_v10 = vld [vmem:[%s16725_s3 + $0x1e8] sm:$0xff]  }
 0x484   : > { %v16935_v61 = vcombine.low %v16933_v0, %v16934_v7  ;;  %v13462_v63 = vld [vmem:[#allocation2 + $0x3c] sm:$0xff]   ;;  %v13468_v19 = vld [vmem:[#allocation2 + $0x6c] sm:$0xff]  }
 0x485   : > { %v13467_v43 = vld [vmem:[#allocation2 + $0x60] sm:$0xff]   ;;  %v13481_v4 = vld [vmem:[%s16725_s3 + $0x1f8] sm:$0xff]   ;;  %v13473_v11 = vld [vmem:[#allocation2 + $0x90] sm:$0xff]  }
 0x486   : > { %v16939_v1 = vld [vmem:[#allocation27_spill] sm:$0xff]  ;;  %v16410_v27 = vld [vmem:[%s16725_s3 + $0x200] sm:$0xff]   ;;  %v16940_v34 = vld [vmem:[#allocation29_spill] sm:$0xff] }
 0x487   : > { %v9239_v28 = vshrl.u32 %v16939_v1, 16 }
 0x489   : > { %v9241_v48 = vrot.slane %v9239_v28, 4 }
 0x48a   : > { %12533 = vmatmul.mubr.bf16.gmra.mrb[28].mxu1 %v11227_v62  ;;  %v16929_v62 = vcombine.low %v16927_v23, %v16928_v29  ;;  %v9263_v23 = vshrl.u32 %v16940_v34, 16 }
 0x48b   : > { %12552 = vmatprep.mubr.bf16.mxu1 %v11268_v54  ;;  %v16932_v54 = vcombine.low %v16930_v32, %v16931_v14  ;;  %v16941_v32 = vld [vmem:[#allocation28_spill] sm:$0xff] }
 0x48c   : > { %v9245_v14 = vshll.u32 %v16941_v32, 16 }
 0x492   : > { %12553 = vmatmul.mubr.bf16.vlgmr.msra.gmra.mrb[0].mxu1 %v11269_v47  ;;  %v16937_v47 = vld [vmem:[#allocation26_spill] sm:$0xff] }
 0x493   : > { %12556 = vmatprep.mubr.bf16.mxu1 %v16901_v8  ;;  %12585 = vmatpush3.bf16.msra.mxu1 %v16277_v26  ;;  %v13454_v26 = vld [vmem:[%s16725_s3 + $0x1a0] sm:$0xff]  }
 0x494   : > { %12586 = vmatprep.subr.bf16.mxu1 %v13451_v35  ;;  %v13459_v8 = vld [vmem:[#allocation2 + $0x24] sm:$0xff]  }
 0x497   : > { %12587 = vmatpush3.bf16.msra.mxu1 %v13451_v35  ;;  %v16938_v35 = vcombine.low %v16936_v15, %v16937_v47  ;;  %v13474_v15 = vld [vmem:[#allocation2 + $0x9c] sm:$0xff]  }
 0x498   : > { %12588 = vmatprep.subr.bf16.mxu1 %v13452_v39 }
 0x49a   : > { %12557 = vmatmul.mubr.bf16.gmra.mrb[4].mxu1 %v16902_v38  ;;  %v13466_v38 = vld [vmem:[%s16725_s3 + $0x1d0] sm:$0xff]  }
 0x49b   : > { %12560 = vmatprep.mubr.bf16.mxu1 %v16905_v52  ;;  %12589 = vmatpush3.bf16.msra.mxu1 %v13452_v39  ;;  %v13463_v39 = vld [vmem:[%s16725_s3 + $0x1c8] sm:$0xff]  }
 0x49c   : > { %12590 = vmatprep.subr.bf16.mxu1 %v13453_v55  ;;  %v13464_v52 = vld [vmem:[#allocation2 + $0x48] sm:$0xff]  }
 0x49f   : > { %12591 = vmatpush3.bf16.msra.mxu1 %v13453_v55  ;;  %v13461_v55 = vld [vmem:[#allocation2 + $0x30] sm:$0xff]  }
 0x4a0   : > { %12592 = vmatprep.subr.bf16.mxu1 %v13454_v26 }
 0x4a2   : > { %12561 = vmatmul.mubr.bf16.gmra.mrb[8].mxu1 %v16908_v56  ;;  %v13478_v56 = vld [vmem:[%s16725_s3 + $0x1f0] sm:$0xff]  }
 0x4a3   : > { %12564 = vmatprep.mubr.bf16.mxu1 %v16911_v51  ;;  %12593 = vmatpush3.bf16.msra.mxu1 %v13454_v26  ;;  %v13472_v26 = vld [vmem:[%s16725_s3 + $0x1e0] sm:$0xff]   ;;  %v13470_v51 = vld [vmem:[#allocation2 + $0x78] sm:$0xff]  }
 0x4a4   : > { %12594 = vmatprep.subr.bf16.mxu1 %v13455_v59 }
 0x4a7   : > { %12595 = vmatpush3.bf16.msra.mxu1 %v13455_v59  ;;  %v13465_v59 = vld [vmem:[#allocation2 + $0x54] sm:$0xff]  }
 0x4a8   : > { %12596 = vmatprep.subr.bf16.mxu1 %v13456_v57 }
 0x4aa   : > { %12565 = vmatmul.mubr.bf16.gmra.mrb[12].mxu1 %v16914_v16  ;;  %v9235_v16 = vshll.u32 %v16939_v1, 16  ;;  %v9189_v1 = vld [vmem:[#allocation2 + $0x48] sm:$0xf] }
 0x4ab   : > { %12568 = vmatprep.mubr.bf16.mxu1 %v16917_v17  ;;  %12597 = vmatpush3.bf16.msra.mxu1 %v13456_v57  ;;  %v9177_v57 = vld [vmem:[#allocation2 + $0x18] sm:$0xf]  ;;  %v9180_v17 = vld [vmem:[#allocation2 + $0x24] sm:$0xf] }
 0x4ac   : > { %12598 = vmatprep.subr.bf16.mxu1 %v13457_v31  ;;  %v9229_v30 = vshll.u32 %v9177_v57, 16  ;;  %v9253_v13 = vshll.u32 %v9180_v17, 16 }
 0x4ae   : > { %v9231_v22 = vrot.slane %v9229_v30, 5  ;;  %v9255_v0 = vrot.slane %v9253_v13, 5  ;;  %v16944_v13 = vld [vmem:[#allocation32_spill] sm:$0xff] }
 0x4af   : > { %12599 = vmatpush3.bf16.msra.mxu1 %v13457_v31  ;;  %v9226_v31 = vshrl.u32 %v9177_v57, 16 }
 0x4b0   : > { %12632 = vmatprep.subr.bf16.mxu1 %v13460_v40 }
 0x4b1   : > { %v9228_v3 = vrot.slane %v9226_v31, 4 }
 0x4b2   : > { %12569 = vmatmul.mubr.bf16.gmra.mrb[16].mxu1 %v16920_v45  ;;  %v9237_v45 = vrot.slane %v9235_v16, 5 }
 0x4b3   : > { %12572 = vmatprep.mubr.bf16.mxu1 %v16923_v24  ;;  %v9250_v24 = vshrl.u32 %v9180_v17, 16  ;;  %v9232_v29 = vor.u32 %v9231_v22, %v9228_v3  ;;  %v13477_v3 = vld [vmem:[#allocation2 + $0xb4] sm:$0xff]   ;;  %v13479_v22 = vld [vmem:[#allocation2 + $0xc0] sm:$0xff]  }
 0x4b5   : > { %v9233_v47 = vrot.slane %v9232_v29, 4  ;;  %v9331_v29 = vshll.u32 %v16010_v46, 16 }
 0x4ba   : > { %12573 = vmatmul.mubr.bf16.gmra.mrb[20].mxu1 %v16926_v2  ;;  %v9259_v2 = vshll.u32 %v16940_v34, 16  ;;  %v9293_v34 = vshll.u32 %v16944_v13, 16 }
 0x4bb   : > { %12576 = vmatprep.mubr.bf16.mxu1 %v16929_v62  ;;  %v9242_v62 = vor.u32 %v9241_v48, %v9237_v45 }
 0x4bc   : > { %v16416_v7 = vrot.slane %v9259_v2, 5  ;;  %v9322_v2 = vshrl.u32 %v9189_v1, 16 }
 0x4c2   : > { %12577 = vmatmul.mubr.bf16.gmra.mrb[24].mxu1 %v16932_v54  ;;  %v9252_v54 = vrot.slane %v9250_v24, 4  ;;  %v9311_v24 = vshrl.u32 %v16000_v53, 16 }
 0x4c3   : > { %12580 = vmatprep.mubr.bf16.mxu1 %v16935_v61  ;;  %v9265_v61 = vrot.slane %v9263_v23, 4  ;;  %v9325_v23 = vshll.u32 %v9189_v1, 16 }
 0x4ca   : > { %12581 = vmatmul.mubr.bf16.gmra.mrb[28].mxu1 %v16938_v35  ;;  %v9243_v35 = vrot.slane %v9242_v62, 4  ;;  %v9192_v62 = vld [vmem:[#allocation2 + $0x54] sm:$0xf] }
 0x4cb   : > { %12600 = vmatprep.mubr.bf16.mxu1 %v13458_v21  ;;  %v9183_v21 = vld [vmem:[#allocation2 + $0x30] sm:$0xf] }
 0x4d2   : > { %12601 = vmatmul.mubr.bf16.vlgmr.msra.gmra.mrb[0].mxu1 %v13459_v8  ;;  %v13476_v8 = vld [vmem:[#allocation2 + $0xa8] sm:$0xff]  }
 0x4d3   : > { %12604 = vmatprep.mubr.bf16.mxu1 %v13461_v55  ;;  %12633 = vmatpush3.bf16.msra.mxu1 %v13460_v40  ;;  %v13471_v40 = vld [vmem:[#allocation2 + $0x84] sm:$0xff]   ;;  %v9256_v55 = vor.u32 %v9255_v0, %v9252_v54  ;;  %v9335_v0 = vshrl.u32 %v16010_v46, 16 }
 0x4d4   : > { %12634 = vmatprep.subr.bf16.mxu1 %v13463_v39 }
 0x4d7   : > { %12635 = vmatpush3.bf16.msra.mxu1 %v13463_v39  ;;  %v9247_v39 = vrot.slane %v9245_v14, 5 }
 0x4d8   : > { %12636 = vmatprep.subr.bf16.mxu1 %v13466_v38 }
 0x4da   : > { %12605 = vmatmul.mubr.bf16.gmra.mrb[4].mxu1 %v13462_v63  ;;  %v9277_v63 = vshll.u32 %v9183_v21, 16 }
 0x4db   : > { %12608 = vmatprep.mubr.bf16.mxu1 %v13464_v52  ;;  %12637 = vmatpush3.bf16.msra.mxu1 %v13466_v38  ;;  %v9274_v38 = vshrl.u32 %v9183_v21, 16  ;;  %v16942_v52 = vld [vmem:[#allocation31_spill] sm:$0xff]  ;;  %v16438_v21 = vld [vmem:[#allocation2 + $0xd4] sm:$0x1] }
 0x4dc   : > { %12638 = vmatprep.subr.bf16.mxu1 %v13469_v44  ;;  %v9279_v31 = vrot.slane %v9277_v63, 5  ;;  %v9327_v63 = vrot.slane %v9325_v23, 5 }
 0x4dd   : > { %v9276_v57 = vrot.slane %v9274_v38, 4  ;;  %v9324_v38 = vrot.slane %v9322_v2, 4 }
 0x4df   : > { %12639 = vmatpush3.bf16.msra.mxu1 %v13469_v44  ;;  %v9266_v44 = vor.u32 %v9265_v61, %v16416_v7  ;;  %v9280_v14 = vor.u32 %v9279_v31, %v9276_v57  ;;  %v16436_v61 = vld [vmem:[#allocation2 + $0xd0] sm:$0xf] }
 0x4e0   : > { %12640 = vmatprep.subr.bf16.mxu1 %v13472_v26 }
 0x4e1   : > { %v9267_v28 = vrot.slane %v9266_v44, 4  ;;  %v16447_v44 = vrot.slane %v9331_v29, 5  ;;  %v9281_v1 = vrot.slane %v9280_v14, 4 }
 0x4e2   : > { %12609 = vmatmul.mubr.bf16.gmra.mrb[8].mxu1 %v13465_v59  ;;  %v9186_v59 = vld [vmem:[#allocation2 + $0x3c] sm:$0xf] }
 0x4e3   : > { %12612 = vmatprep.mubr.bf16.mxu1 %v13467_v43  ;;  %12641 = vmatpush3.bf16.msra.mxu1 %v13472_v26  ;;  %v9269_v26 = vshll.u32 %v16942_v52, 16  ;;  %v9248_v43 = vsel %vm13635_vm2, %v9243_v35, %v9247_v39  ;;  %v9298_v30 = vshrl.u32 %v9186_v59, 16  ;;  %v10102_v35 = vrot.slane %v16436_v61, 5 }
 0x4e4   : > { %12642 = vmatprep.subr.bf16.mxu1 %v13475_v10 }
 0x4e5   : > { %v9271_v17 = vrot.slane %v9269_v26, 5  ;;  %v9300_v54 = vrot.slane %v9298_v30, 4  ;;  %v10104_v52 = vrot.slane %v10102_v35, 4  ;;  %v13480_v26 = vld [vmem:[#allocation2 + $0xcc] sm:$0xff]  }
 0x4e7   : > { %12643 = vmatpush3.bf16.msra.mxu1 %v13475_v10  ;;  %v9238_v10 = vsel %vm13635_vm2, %v9233_v47, %v9237_v45  ;;  %v9946_v47 = vld [vmem:[#allocation2 + $0xcc] sm:$0xe] }
 0x4e8   : > { %12644 = vmatprep.subr.bf16.mxu1 %v13478_v56  ;;  %v11348_v16 = vcombine.low %v9238_v10, %v9248_v43  ;;  %v11387_v46 = vrot.slane %v9946_v47, 9  ;;  %v9346_v10 = vshrl.u32 %v9192_v62, 16  ;;  %v9349_v43 = vshll.u32 %v9192_v62, 16 }
 0x4ea   : > { %12613 = vmatmul.mubr.bf16.gmra.mrb[12].mxu1 %v13468_v19  ;;  %v9348_v2 = vrot.slane %v9346_v10, 4  ;;  %v9351_v23 = vrot.slane %v9349_v43, 5 }
 0x4eb   : > { %12616 = vmatprep.mubr.bf16.mxu1 %v13470_v51  ;;  %12645 = vmatpush3.bf16.msra.mxu1 %v13478_v56  ;;  %v16943_v56 = vld [vmem:[#allocation30_spill] sm:$0xff]  ;;  %v9257_v51 = vrot.slane %v9256_v55, 4  ;;  %v9313_v55 = vrot.slane %v9311_v24, 4 }
 0x4ec   : > { %12646 = vmatprep.subr.bf16.mxu1 %v13481_v4  ;;  %v9283_v19 = vshll.u32 %v16943_v56, 16  ;;  %v16947_v24 = vld [vmem:[#allocation34_spill] sm:$0xff] }
 0x4ed   : > { %v9262_v32 = vsel %vm13635_vm2, %v9257_v51, %v16416_v7  ;;  %v9341_v13 = vshll.u32 %v16947_v24, 16 }
 0x4ee   : > { %v16426_v48 = vrot.slane %v9283_v19, 5  ;;  %v9295_v19 = vrot.slane %v9293_v34, 5  ;;  %v9328_v34 = vor.u32 %v9327_v63, %v9324_v38  ;;  %v9352_v63 = vor.u32 %v9351_v23, %v9348_v2  ;;  %v16951_v23 = vld [vmem:[#allocation46_spill] sm:$0xff] }
 0x4ef   : > { %12647 = vmatpush3.bf16.msra.mxu1 %v13481_v4  ;;  %v9287_v4 = vshrl.u32 %v16943_v56, 16  ;;  %v16451_v56 = vsel %vm13964_vm5, %v11387_v46, %v10102_v35  ;;  %v9198_v35 = vld [vmem:[#allocation2 + $0x6c] sm:$0xf] }
 0x4f0   : > { %12680 = vmatprep.subr.bf16.mxu1 %v16410_v27  ;;  %v9329_v46 = vrot.slane %v9328_v34, 4  ;;  %v9394_v43 = vshrl.u32 %v9198_v35, 16  ;;  %v16493_v34 = vrot.slane %v9352_v63, 4  ;;  %v9204_v63 = vld [vmem:[#allocation2 + $0x84] sm:$0xf] }
 0x4f1   : > { %v9289_v45 = vrot.slane %v9287_v4, 4  ;;  %v16945_v4 = vld [vmem:[#allocation37_spill] sm:$0xff] }
 0x4f2   : > { %12617 = vmatmul.mubr.bf16.gmra.mrb[16].mxu1 %v13471_v40  ;;  %v9301_v40 = vshll.u32 %v9186_v59, 16  ;;  %v9337_v59 = vrot.slane %v9335_v0, 4  ;;  %v9355_v51 = vshll.u32 %v16945_v4, 16  ;;  %v9359_v57 = vshrl.u32 %v16945_v4, 16  ;;  %v13483_v4 = vld [vmem:[%s16725_s3 + $0x208] sm:$0xff]  }
 0x4f3   : > { %12620 = vmatprep.mubr.bf16.mxu1 %v13473_v11  ;;  %v9307_v11 = vshll.u32 %v16000_v53, 16  ;;  %v9272_v53 = vsel %vm13635_vm2, %v9267_v28, %v9271_v17  ;;  %v9290_v7 = vor.u32 %v9289_v45, %v16426_v48  ;;  %v16946_v28 = vld [vmem:[#allocation33_spill] sm:$0xff]  ;;  %v9334_v24 = vsel %vm13635_vm2, %v9329_v46, %v16447_v44 }
 0x4f4   : > { %v11349_v30 = vcombine.low %v9262_v32, %v9272_v53  ;;  %v9317_v17 = vshll.u32 %v16946_v28, 16  ;;  %v9338_v36 = vor.u32 %v9337_v59, %v16447_v44  ;;  %v16465_v29 = vrot.slane %v9355_v51, 5  ;;  %v16948_v53 = vld [vmem:[#allocation41_spill] sm:$0xff]  ;;  %v13484_v44 = vld [vmem:[%s16725_s3 + $0x210] sm:$0xff]  }
 0x4f5   : > { %v16445_v39 = vrot.slane %v9307_v11, 5  ;;  %v9361_v62 = vrot.slane %v9359_v57, 4  ;;  %v9383_v47 = vshrl.u32 %v16948_v53, 16  ;;  %v9397_v57 = vshll.u32 %v9198_v35, 16 }
 0x4f6   : > { %v9319_v0 = vrot.slane %v9317_v17, 5  ;;  %v9339_v38 = vrot.slane %v9338_v36, 4 }
 0x4f7   : > { %v9314_v11 = vor.u32 %v9313_v55, %v16445_v39  ;;  %v9343_v55 = vrot.slane %v9341_v13, 5  ;;  %v9362_v59 = vor.u32 %v9361_v62, %v16465_v29  ;;  %v9389_v62 = vshll.u32 %v16951_v23, 16 }
 0x4f9   : > { %v9344_v13 = vsel %vm13635_vm2, %v9339_v38, %v9343_v55  ;;  %v9391_v38 = vrot.slane %v9389_v62, 5 }
 0x4fa   : > { %12621 = vmatmul.mubr.bf16.gmra.mrb[20].mxu1 %v13474_v15  ;;  %v9303_v15 = vrot.slane %v9301_v40, 5  ;;  %v9195_v40 = vld [vmem:[#allocation2 + $0x60] sm:$0xf] }
 0x4fb   : > { %12624 = vmatprep.mubr.bf16.mxu1 %v13476_v8  ;;  %v10105_v8 = vrot.slane %v16438_v21, 5  ;;  %v9370_v32 = vshrl.u32 %v9195_v40, 16  ;;  %v9373_v14 = vshll.u32 %v9195_v40, 16 }
 0x4fc   : > { %v9304_v45 = vor.u32 %v9303_v15, %v9300_v54  ;;  %v9286_v54 = vsel %vm13635_vm2, %v9281_v1, %v16426_v48  ;;  %v9379_v15 = vshll.u32 %v16948_v53, 16  ;;  %v16950_v1 = vld [vmem:[#allocation44_spill] sm:$0xff] }
 0x4fd   : > { %v16457_v31 = vsel %vm13964_vm5, %v10104_v52, %v10105_v8  ;;  %v16949_v52 = vld [vmem:[#allocation38_spill] sm:$0xff]  ;;  %v9372_v48 = vrot.slane %v9370_v32, 4  ;;  %v9375_v10 = vrot.slane %v9373_v14, 5  ;;  %v9403_v28 = vshll.u32 %v16950_v1, 16 }
 0x4fe   : > { %v16479_v51 = vrot.slane %v9379_v15, 5  ;;  %v9399_v14 = vrot.slane %v9397_v57, 5 }
 0x4ff   : > { %v9376_v2 = vor.u32 %v9375_v10, %v9372_v48  ;;  %v13485_v10 = vld [vmem:[%s16725_s3 + $0x218] sm:$0xff]  }
 0x501   : > { %v9377_v46 = vrot.slane %v9376_v2, 4 }
 0x502   : > { %12625 = vmatmul.mubr.bf16.gmra.mrb[24].mxu1 %v13477_v3  ;;  %v11419_v3 = vcombine.low %v16451_v56, %v16457_v31 }
 0x503   : > { %12628 = vmatprep.mubr.bf16.mxu1 %v13479_v22  ;;  %v9291_v22 = vrot.slane %v9290_v7, 4  ;;  %v9305_v7 = vrot.slane %v9304_v45, 4  ;;  %v9407_v45 = vshrl.u32 %v16950_v1, 16 }
 0x505   : > { %v9296_v8 = vsel %vm13635_vm2, %v9291_v22, %v9295_v19  ;;  %v9385_v19 = vrot.slane %v9383_v47, 4  ;;  %v9310_v40 = vsel %vm13635_vm2, %v9305_v7, %v16445_v39  ;;  %v16498_v39 = vrot.slane %v9362_v59, 4  ;;  %v13535_v59 = vld [vmem:[#allocation2 + $0x74] sm:$0x1] }
 0x506   : > { %v11350_v17 = vcombine.low %v9286_v54, %v9296_v8  ;;  %v16505_v54 = vrot.slane %v9403_v28, 5  ;;  %v9409_v53 = vrot.slane %v9407_v45, 4  ;;  %v11352_v7 = vcombine.low %v9334_v24, %v9344_v13  ;;  %v13537_v13 = vld [vmem:[#allocation2 + $0x94] sm:$0xf] }
 0x507   : > { %v9386_v32 = vor.u32 %v9385_v19, %v16479_v51  ;;  %v9413_v48 = vshll.u32 %v13535_v59, 16  ;;  %v9442_v28 = vshrl.u32 %v9204_v63, 16 }
 0x509   : > { %v9415_v62 = vrot.slane %v9413_v48, 5 }
 0x50a   : > { %12629 = vmatmul.mubr.bf16.gmra.mrb[28].mxu1 %v13480_v26  ;;  %v9365_v26 = vshll.u32 %v16949_v52, 16  ;;  %v9387_v52 = vrot.slane %v9386_v32, 4 }
 0x50b   : > { %12648 = vmatprep.mubr.bf16.mxu1 %v11348_v16  ;;  %v9315_v16 = vrot.slane %v9314_v11, 4  ;;  %v9201_v11 = vld [vmem:[#allocation2 + $0x78] sm:$0xf] }
 0x50c   : > { %v16495_v36 = vrot.slane %v9365_v26, 5  ;;  %v9421_v15 = vshll.u32 %v9201_v11, 16  ;;  %v9392_v2 = vsel %vm13635_vm2, %v9387_v52, %v9391_v38  ;;  %v9210_v52 = vld [vmem:[#allocation2 + $0x9c] sm:$0xf] }
 0x50d   : > { %v9320_v22 = vsel %vm13635_vm2, %v9315_v16, %v9319_v0  ;;  %v9418_v0 = vshrl.u32 %v9201_v11, 16  ;;  %v9358_v16 = vsel %vm13635_vm2, %v16493_v34, %v16465_v29  ;;  %v9410_v29 = vor.u32 %v9409_v53, %v16505_v54 }
 0x50e   : > { %v11351_v8 = vcombine.low %v9310_v40, %v9320_v22  ;;  %v9368_v55 = vsel %vm13635_vm2, %v16498_v39, %v16495_v36  ;;  %v9423_v19 = vrot.slane %v9421_v15, 5  ;;  %v13536_v40 = vld [vmem:[#allocation2 + $0x88] sm:$0xf]  ;;  %v9475_v34 = vshll.u32 %v13537_v13, 16 }
 0x50f   : > { %v9451_v22 = vshll.u32 %v13536_v40, 16  ;;  %v9455_v45 = vshrl.u32 %v13536_v40, 16  ;;  %v9479_v36 = vshrl.u32 %v13537_v13, 16  ;;  %v9382_v39 = vsel %vm13635_vm2, %v9377_v46, %v16479_v51 }
 0x510   : > { %v9444_v15 = vrot.slane %v9442_v28, 4  ;;  %v11353_v38 = vcombine.low %v9358_v16, %v9368_v55  ;;  %v9490_v40 = vshrl.u32 %v9210_v52, 16 }
 0x511   : > { %v9457_v51 = vrot.slane %v9455_v45, 4  ;;  %v9481_v46 = vrot.slane %v9479_v36, 4 }
 0x512   : > { %12649 = vmatmul.mubr.bf16.vlgmr.msra.gmra.mrb[0].mxu1 %v11349_v30  ;;  %v9396_v30 = vrot.slane %v9394_v43, 4  ;;  %v9420_v43 = vrot.slane %v9418_v0, 4  ;;  %v13538_v0 = vld [vmem:[#allocation2 + $0x80] sm:$0x1] }
 0x513   : > { %12652 = vmatprep.mubr.bf16.mxu1 %v11350_v17  ;;  %12681 = vmatpush3.bf16.msra.mxu1 %v16410_v27  ;;  %v13534_v27 = vld [vmem:[#allocation2 + $0x7c] sm:$0xf]  ;;  %v9445_v17 = vshll.u32 %v9204_v63, 16  ;;  %v9437_v53 = vshll.u32 %v13538_v0, 16  ;;  %v11354_v63 = vcombine.low %v9382_v39, %v9392_v2  ;;  %v13541_v2 = vld [vmem:[#allocation2 + $0xac] sm:$0xf] }
 0x514   : > { %12682 = vmatprep.subr.bf16.mxu1 %v13483_v4  ;;  %v9427_v47 = vshll.u32 %v13534_v27, 16  ;;  %v9431_v35 = vshrl.u32 %v13534_v27, 16  ;;  %v9400_v26 = vor.u32 %v9399_v14, %v9396_v30  ;;  %v13486_v30 = vld [vmem:[%s16725_s3 + $0x220] sm:$0xff]   ;;  %v9424_v32 = vor.u32 %v9423_v19, %v9420_v43  ;;  %v13539_v19 = vld [vmem:[#allocation2 + $0x8c] sm:$0x1] }
 0x515   : > { %v9447_v27 = vrot.slane %v9445_v17, 5  ;;  %v9439_v43 = vrot.slane %v9437_v53, 5 }
 0x516   : > { %v16519_v57 = vrot.slane %v9427_v47, 5  ;;  %v9433_v1 = vrot.slane %v9431_v35, 4  ;;  %v9401_v23 = vrot.slane %v9400_v26, 4  ;;  %v16530_v47 = vrot.slane %v9451_v22, 5  ;;  %v13487_v26 = vld [vmem:[%s16725_s3 + $0x228] sm:$0xff]  }
 0x517   : > { %12683 = vmatpush3.bf16.msra.mxu1 %v13483_v4  ;;  %v9207_v4 = vld [vmem:[#allocation2 + $0x90] sm:$0xf]  ;;  %v9448_v16 = vor.u32 %v9447_v27, %v9444_v15  ;;  %v13540_v22 = vld [vmem:[#allocation2 + $0xa0] sm:$0xf]  ;;  %v9492_v27 = vrot.slane %v9490_v40, 4 }
 0x518   : > { %12684 = vmatprep.subr.bf16.mxu1 %v13484_v44  ;;  %v9466_v11 = vshrl.u32 %v9207_v4, 16  ;;  %v9469_v24 = vshll.u32 %v9207_v4, 16  ;;  %v9434_v14 = vor.u32 %v9433_v1, %v16519_v57  ;;  %v9406_v59 = vsel %vm13635_vm2, %v9401_v23, %v16505_v54  ;;  %v9213_v4 = vld [vmem:[#allocation2 + $0xa8] sm:$0xf] }
 0x519   : > { %v9458_v55 = vor.u32 %v9457_v51, %v16530_v47  ;;  %v9461_v1 = vshll.u32 %v13539_v19, 16  ;;  %v9493_v54 = vshll.u32 %v9210_v52, 16  ;;  %v9499_v45 = vshll.u32 %v13540_v22, 16 }
 0x51a   : > { %12653 = vmatmul.mubr.bf16.gmra.mrb[4].mxu1 %v11351_v8  ;;  %v9468_v35 = vrot.slane %v9466_v11, 4  ;;  %v9471_v8 = vrot.slane %v9469_v24, 5  ;;  %v9503_v11 = vshrl.u32 %v13540_v22, 16  ;;  %v9514_v24 = vshrl.u32 %v9213_v4, 16 }
 0x51b   : > { %12656 = vmatprep.mubr.bf16.mxu1 %v11352_v7  ;;  %12685 = vmatpush3.bf16.msra.mxu1 %v13484_v44  ;;  %v9411_v44 = vrot.slane %v9410_v29, 4  ;;  %v16532_v7 = vrot.slane %v9475_v34, 5  ;;  %v9435_v29 = vrot.slane %v9434_v14, 4  ;;  %v9517_v13 = vshll.u32 %v9213_v4, 16  ;;  %v13488_v34 = vld [vmem:[%s16725_s3 + $0x230] sm:$0xff]  }
 0x51c   : > { %12686 = vmatprep.subr.bf16.mxu1 %v13485_v10  ;;  %v9472_v28 = vor.u32 %v9471_v8, %v9468_v35  ;;  %v9523_v23 = vshll.u32 %v13541_v2, 16  ;;  %v13542_v14 = vld [vmem:[#allocation2 + $0x98] sm:$0x1]  ;;  %v9495_v51 = vrot.slane %v9493_v54, 5  ;;  %v16552_v35 = vrot.slane %v9499_v45, 5 }
 0x51d   : > { %v9416_v48 = vsel %vm13635_vm2, %v9411_v44, %v9415_v62  ;;  %v9482_v17 = vor.u32 %v9481_v46, %v16532_v7  ;;  %v9527_v62 = vshrl.u32 %v13541_v2, 16  ;;  %v9449_v44 = vrot.slane %v9448_v16, 4  ;;  %v13544_v45 = vld [vmem:[#allocation2 + $0xb8] sm:$0xf] }
 0x51e   : > { %v11355_v36 = vcombine.low %v9406_v59, %v9416_v48  ;;  %v9485_v0 = vshll.u32 %v13542_v14, 16  ;;  %v9473_v53 = vrot.slane %v9472_v28, 4  ;;  %v9505_v8 = vrot.slane %v9503_v11, 4  ;;  %v13546_v14 = vld [vmem:[#allocation2 + $0xb0] sm:$0x1] }
 0x51f   : > { %12687 = vmatpush3.bf16.msra.mxu1 %v13485_v10  ;;  %v9425_v10 = vrot.slane %v9424_v32, 4  ;;  %v9459_v32 = vrot.slane %v9458_v55, 4  ;;  %v9483_v15 = vrot.slane %v9482_v17, 4  ;;  %v9516_v46 = vrot.slane %v9514_v24, 4  ;;  %v13543_v55 = vld [vmem:[#allocation2 + $0xa4] sm:$0x1] }
 0x520   : > { %12688 = vmatprep.subr.bf16.mxu1 %v13486_v30  ;;  %v9463_v52 = vrot.slane %v9461_v1, 5  ;;  %v16557_v59 = vrot.slane %v9523_v23, 5  ;;  %v9529_v48 = vrot.slane %v9527_v62, 4  ;;  %v9496_v16 = vor.u32 %v9495_v51, %v9492_v27  ;;  %v9219_v1 = vld [vmem:[#allocation2 + $0xc0] sm:$0xf] }
 0x521   : > { %v9430_v39 = vsel %vm13635_vm2, %v9425_v10, %v16519_v57  ;;  %v9519_v57 = vrot.slane %v9517_v13, 5  ;;  %v9216_v10 = vld [vmem:[#allocation2 + $0xb4] sm:$0xf]  ;;  %v9509_v19 = vshll.u32 %v13543_v55, 16  ;;  %v9506_v17 = vor.u32 %v9505_v8, %v16552_v35 }
 0x522   : > { %12657 = vmatmul.mubr.bf16.gmra.mrb[8].mxu1 %v11353_v38  ;;  %v13489_v38 = vld [vmem:[%s16725_s3 + $0x238] sm:$0xff]   ;;  %v9464_v4 = vsel %vm13635_vm2, %v9459_v32, %v9463_v52  ;;  %v9538_v40 = vshrl.u32 %v9216_v10, 16  ;;  %v9530_v54 = vor.u32 %v9529_v48, %v16557_v59  ;;  %v9541_v22 = vshll.u32 %v9216_v10, 16 }
 0x523   : > { %12660 = vmatprep.mubr.bf16.mxu1 %v11354_v63  ;;  %12689 = vmatpush3.bf16.msra.mxu1 %v13486_v30  ;;  %v9440_v30 = vsel %vm13635_vm2, %v9435_v29, %v9439_v43  ;;  %v9487_v43 = vrot.slane %v9485_v0, 5  ;;  %v9478_v29 = vsel %vm13635_vm2, %v9473_v53, %v16532_v7  ;;  %v9547_v11 = vshll.u32 %v13544_v45, 16 }
 0x524   : > { %12690 = vmatprep.subr.bf16.mxu1 %v13487_v26  ;;  %v11356_v63 = vcombine.low %v9430_v39, %v9440_v30  ;;  %v9551_v24 = vshrl.u32 %v13544_v45, 16  ;;  %v9562_v7 = vshrl.u32 %v9219_v1, 16  ;;  %v9565_v13 = vshll.u32 %v9219_v1, 16  ;;  %v13547_v1 = vld [vmem:[#allocation2 + $0xbc] sm:$0x1] }
 0x525   : > { %v9488_v28 = vsel %vm13635_vm2, %v9483_v15, %v9487_v43  ;;  %v9497_v62 = vrot.slane %v9496_v16, 4  ;;  %v9511_v30 = vrot.slane %v9509_v19, 5  ;;  %v9533_v0 = vshll.u32 %v13546_v14, 16  ;;  %v9222_v15 = vld [vmem:[#allocation2 + $0xcc] sm:$0xf] }
 0x526   : > { %v11358_v23 = vcombine.low %v9478_v29, %v9488_v28  ;;  %v9540_v53 = vrot.slane %v9538_v40, 4  ;;  %v9531_v27 = vrot.slane %v9530_v54, 4  ;;  %v9543_v51 = vrot.slane %v9541_v22, 5 }
 0x527   : > { %12691 = vmatpush3.bf16.msra.mxu1 %v13487_v26  ;;  %v9454_v26 = vsel %vm13635_vm2, %v9449_v44, %v16530_v47  ;;  %v9520_v47 = vor.u32 %v9519_v57, %v9516_v46  ;;  %v9507_v44 = vrot.slane %v9506_v17, 4  ;;  %v9549_v8 = vrot.slane %v9547_v11, 5 }
 0x528   : > { %12692 = vmatprep.subr.bf16.mxu1 %v13488_v34  ;;  %v9553_v46 = vrot.slane %v9551_v24, 4  ;;  %v9564_v57 = vrot.slane %v9562_v7, 4  ;;  %v9586_v10 = vshrl.u32 %v9222_v15, 16  ;;  %v9599_v43 = vshrl.u32 %v16436_v61, 16  ;;  %v13548_v24 = vld [vmem:[#allocation2 + $0xc8] sm:$0x1] }
 0x529   : > { %v9521_v32 = vrot.slane %v9520_v47, 4  ;;  %v9535_v29 = vrot.slane %v9533_v0, 5  ;;  %v9512_v16 = vsel %vm13635_vm2, %v9507_v44, %v9511_v30  ;;  %v9544_v55 = vor.u32 %v9543_v51, %v9540_v53 }
 0x52a   : > { %12661 = vmatmul.mubr.bf16.gmra.mrb[12].mxu1 %v11355_v36  ;;  %v13545_v36 = vld [vmem:[#allocation2 + $0xc4] sm:$0xf]  ;;  %v9554_v19 = vor.u32 %v9553_v46, %v9549_v8  ;;  %v9557_v28 = vshll.u32 %v13547_v1, 16  ;;  %v9588_v54 = vrot.slane %v9586_v10, 4  ;;  %v9601_v45 = vrot.slane %v9599_v43, 4 }
 0x52b   : > { %12664 = vmatprep.mubr.bf16.mxu1 %v11356_v63  ;;  %12693 = vmatpush3.bf16.msra.mxu1 %v13488_v34  ;;  %v9571_v39 = vshll.u32 %v13545_v36, 16  ;;  %v9575_v2 = vshrl.u32 %v13545_v36, 16  ;;  %v11357_v34 = vcombine.low %v9454_v26, %v9464_v4  ;;  %v9567_v63 = vrot.slane %v9565_v13, 5 }
 0x52c   : > { %12694 = vmatprep.subr.bf16.mxu1 %v13489_v38  ;;  %v9589_v26 = vshll.u32 %v9222_v15, 16  ;;  %v9502_v4 = vsel %vm13635_vm2, %v9497_v62, %v16552_v35  ;;  %v9526_v17 = vsel %vm13635_vm2, %v9521_v32, %v16557_v59  ;;  %v9536_v47 = vsel %vm13635_vm2, %v9531_v27, %v9535_v29  ;;  %v16959_v29 = vld [vmem:[#allocation43_spill] sm:$0xff] }
 0x52d   : > { %v9573_v52 = vrot.slane %v9571_v39, 5  ;;  %v9577_v48 = vrot.slane %v9575_v2, 4  ;;  %v11359_v11 = vcombine.low %v9502_v4, %v9512_v16  ;;  %v9581_v7 = vshll.u32 %v13548_v24, 16  ;;  %v16958_v4 = vld [vmem:[#allocation42_spill] sm:$0xff]  ;;  %v16975_v24 = vld [vmem:[#allocation55_spill] sm:$0xff] }
 0x52e   : > { %v9591_v22 = vrot.slane %v9589_v26, 5  ;;  %v11360_v13 = vcombine.low %v9526_v17, %v9536_v47  ;;  %v9545_v36 = vrot.slane %v9544_v55, 4  ;;  %v9555_v39 = vrot.slane %v9554_v19, 4  ;;  %v16955_v26 = vld [vmem:[#allocation39_spill] sm:$0xff]  ;;  %v16961_v55 = vld [vmem:[#allocation45_spill] sm:$0xff]  ;;  %v16967_v47 = vld [vmem:[#allocation50_spill] sm:$0xff] }
 0x52f   : > { %12695 = vmatpush3.bf16.msra.mxu1 %v13489_v38  ;;  %v9595_v38 = vshll.u32 %v16436_v61, 16  ;;  %v9568_v61 = vor.u32 %v9567_v63, %v9564_v57  ;;  %v9578_v40 = vor.u32 %v9577_v48, %v9573_v52  ;;  %v9559_v59 = vrot.slane %v9557_v28, 5  ;;  %v16952_v48 = vld [vmem:[#allocation35_spill] sm:$0xff]  ;;  %v16965_v28 = vld [vmem:[#allocation49_spill] sm:$0xff] }
 0x530   : > { %v9605_v30 = vshll.u32 %v16438_v21, 16  ;;  %v9583_v44 = vrot.slane %v9581_v7, 5  ;;  %v9550_v32 = vsel %vm13635_vm2, %v9545_v36, %v9549_v8  ;;  %v16960_v16 = vcombine.low %v16958_v4, %v16959_v29  ;;  %v16962_v19 = vld [vmem:[#allocation47_spill] sm:$0xff]  ;;  %v16976_v7 = vld [vmem:[#allocation56_spill] sm:$0xff]  ;;  %v16978_v36 = vld [vmem:[#allocation57_spill] sm:$0xff] }
 0x531   : > { %v9597_v35 = vrot.slane %v9595_v38, 5  ;;  %v9569_v2 = vrot.slane %v9568_v61, 4  ;;  %v9560_v14 = vsel %vm13635_vm2, %v9555_v39, %v9559_v59  ;;  %v16956_v38 = vld [vmem:[#allocation40_spill] sm:$0xff]  ;;  %v16963_v1 = vcombine.low %v16961_v55, %v16962_v19  ;;  %v16968_v61 = vld [vmem:[#allocation51_spill] sm:$0xff]  ;;  %v16979_v39 = vld [vmem:[#allocation58_spill] sm:$0xff] }
 0x532   : > { %12665 = vmatmul.mubr.bf16.gmra.mrb[16].mxu1 %v11357_v34  ;;  %v9579_v34 = vrot.slane %v9578_v40, 4  ;;  %v9607_v51 = vrot.slane %v9605_v30, 5  ;;  %v11361_v46 = vcombine.low %v9550_v32, %v9560_v14  ;;  %v16957_v43 = vcombine.low %v16955_v26, %v16956_v38 }
 0x533   : > { %12668 = vmatprep.mubr.bf16.mxu1 %v11358_v23  ;;  %v9592_v23 = vor.u32 %v9591_v22, %v9588_v54  ;;  %v9602_v62 = vor.u32 %v9601_v45, %v9597_v35  ;;  %v9574_v0 = vsel %vm13635_vm2, %v9569_v2, %v9573_v52  ;;  %v16953_v52 = vld [vmem:[#allocation36_spill] sm:$0xff]  ;;  %v16966_v17 = vcombine.low %v16964_v25, %v16965_v28  ;;  %v16973_v45 = vld [vmem:[#allocation54_spill] sm:$0xff] }
 0x534   : > { %v9584_v53 = vsel %vm13635_vm2, %v9579_v34, %v9583_v44  ;;  %v16954_v10 = vcombine.low %v16952_v48, %v16953_v52  ;;  %v16969_v40 = vcombine.low %v16967_v47, %v16968_v61  ;;  %v16970_v54 = vld [vmem:[#allocation52_spill] sm:$0xff]  ;;  %v16980_v2 = vcombine.low %v16978_v36, %v16979_v39  ;;  %v16981_v34 = vld [vmem:[#allocation59_spill] sm:$0xff] }
 0x535   : > { %v9593_v15 = vrot.slane %v9592_v23, 4  ;;  %v9603_v27 = vrot.slane %v9602_v62, 4  ;;  %v11362_v57 = vcombine.low %v9574_v0, %v9584_v53  ;;  %v16971_v22 = vcombine.low %v16101_v42, %v16970_v54  ;;  %v16647_v42 = vld [vmem:[%s16726_s4] ss:$0 sm:$0xff] }
 0x536   : > { %v16982_v59 = vcombine.low %v16150_v41, %v16981_v34 }
 0x537   : > { %v9598_v21 = vsel %vm13635_vm2, %v9593_v15, %v9597_v35  ;;  %v9608_v8 = vsel %vm13635_vm2, %v9603_v27, %v9607_v51  ;;  %v16972_v35 = vld [vmem:[#allocation53_spill] sm:$0xff] }
 0x538   : > { %v11363_v63 = vcombine.low %v9598_v21, %v9608_v8 }
 0x53a   : > { %12669 = vmatmul.mubr.bf16.gmra.mrb[20].mxu1 %v11359_v11  ;;  %v16974_v11 = vcombine.low %v16972_v35, %v16973_v45 }
 0x53b   : > { %12672 = vmatprep.mubr.bf16.mxu1 %v11360_v13  ;;  %v16977_v13 = vcombine.low %v16975_v24, %v16976_v7 }
 0x542   : > { %12673 = vmatmul.mubr.bf16.gmra.mrb[24].mxu1 %v11361_v46 }
 0x543   : > { %12676 = vmatprep.mubr.bf16.mxu1 %v11362_v57 }
 0x54a   : > { %12677 = vmatmul.mubr.bf16.gmra.mrb[28].mxu1 %v11363_v63 }
 0x54b   : > { %12696 = vmatprep.mubr.bf16.mxu1 %v16954_v10 }
 0x552   : > { %12697 = vmatmul.mubr.bf16.vlgmr.msra.gmra.mrb[0].mxu1 %v16957_v43 }
 0x553   : > { %12700 = vmatprep.mubr.bf16.mxu1 %v16960_v16 }
 0x55a   : > { %12701 = vmatmul.mubr.bf16.gmra.mrb[4].mxu1 %v16963_v1 }
 0x55b   : > { %12704 = vmatprep.mubr.bf16.mxu1 %v16966_v17 }
 0x562   : > { %12705 = vmatmul.mubr.bf16.gmra.mrb[8].mxu1 %v16969_v40 }
 0x563   : > { %12708 = vmatprep.mubr.bf16.mxu1 %v16971_v22 }
 0x56a   : > { %12709 = vmatmul.mubr.bf16.gmra.mrb[12].mxu1 %v16974_v11 }
 0x56b   : > { %12712 = vmatprep.mubr.bf16.mxu1 %v16977_v13 }
 0x572   : > { %12713 = vmatmul.mubr.bf16.gmra.mrb[16].mxu1 %v16980_v2 }
 0x573   : > { %12716 = vmatprep.mubr.bf16.mxu1 %v16982_v59 }
 0x57a   : > { %12717 = vmatmul.mubr.bf16.gmra.mrb[20].mxu1 %v11415_v49 }
 0x57b   : > { %12720 = vmatprep.mubr.bf16.mxu1 %v11416_v33 }
 0x582   : > { %12721 = vmatmul.mubr.bf16.gmra.mrb[24].mxu1 %v11417_v60 }
 0x583   : > { %12724 = vmatprep.mubr.bf16.mxu1 %v11418_v5 }
 0x58a   : > { %12725 = vmatmul.mubr.bf16.gmra.mrb[28].mxu1 %v11419_v3 }
 0x625   : > { %v12698_v41 = vpop.f32.mrb[0].mxu1 }
 0x626   : > { %v10438_v50 = vadd.f32 %v12698_v41, %v16647_v42  ;;  %v10270_v37 = vpop.f32.mrb[1].mxu1 }
 0x627   : > { %v10436_v49 = vadd.f32 %v16647_v42, %v10270_v37  ;;  %v12699_v12 = vpop.f32.mrb[2].mxu1 }
 0x628   : > { %v10470_v9 = vmax.f32 %v10438_v50, 0.0  ;;  %v10439_v18 = vadd.f32 %v12699_v12, %v16647_v42  ;;  %v10273_v33 = vpop.f32.mrb[3].mxu1 }
 0x629   : > { %v10468_v58 = vmax.f32 %v10436_v49, 0.0  ;;  %v10437_v60 = vadd.f32 %v16647_v42, %v10273_v33 }
 0x62a   : > { %10502 = vst [vmem:[%s16654_s22 + $0x10] sm:$0xff] %v10470_v9  ;;  %v10471_v6 = vmax.f32 %v10439_v18, 0.0 }
 0x62b   : > { %10500 = vst [vmem:[%s16654_s22] sm:$0xff] %v10468_v58  ;;  %v10469_v20 = vmax.f32 %v10437_v60, 0.0 }
 0x62c   : > { %10503 = vst [vmem:[%s16654_s22 + $0x18] sm:$0xff] %v10471_v6 }
 0x62d   : > { %10501 = vst [vmem:[%s16654_s22 + $0x8] sm:$0xff] %v10469_v20  ;;  %v12702_v5 = vpop.f32.mrb[4].mxu1 }
 0x62e   : > { %v10442_v56 = vadd.f32 %v12702_v5, %v16647_v42  ;;  %v10286_v31 = vpop.f32.mrb[5].mxu1 }
 0x62f   : > { %v10440_v3 = vadd.f32 %v16647_v42, %v10286_v31  ;;  %v12703_v23 = vpop.f32.mrb[6].mxu1 }
 0x630   : > { %v10474_v62 = vmax.f32 %v10442_v56, 0.0  ;;  %v10443_v30 = vadd.f32 %v12703_v23, %v16647_v42  ;;  %v10289_v44 = vpop.f32.mrb[7].mxu1 }
 0x631   : > { %v10472_v32 = vmax.f32 %v10440_v3, 0.0  ;;  %v10441_v14 = vadd.f32 %v16647_v42, %v10289_v44 }
 0x632   : > { %10506 = vst [vmem:[%s16654_s22 + $0x30] sm:$0xff] %v10474_v62  ;;  %v10475_v0 = vmax.f32 %v10443_v30, 0.0 }
 0x633   : > { %10504 = vst [vmem:[%s16654_s22 + $0x20] sm:$0xff] %v10472_v32  ;;  %v10473_v53 = vmax.f32 %v10441_v14, 0.0 }
 0x634   : > { %10507 = vst [vmem:[%s16654_s22 + $0x38] sm:$0xff] %v10475_v0 }
 0x635   : > { %10505 = vst [vmem:[%s16654_s22 + $0x28] sm:$0xff] %v10473_v53  ;;  %v12706_v15 = vpop.f32.mrb[8].mxu1 }
 0x636   : > { %v10446_v27 = vadd.f32 %v12706_v15, %v16647_v42  ;;  %v10302_v51 = vpop.f32.mrb[9].mxu1 }
 0x637   : > { %v10444_v46 = vadd.f32 %v16647_v42, %v10302_v51  ;;  %v12707_v57 = vpop.f32.mrb[10].mxu1 }
 0x638   : > { %v10478_v21 = vmax.f32 %v10446_v27, 0.0  ;;  %v10447_v8 = vadd.f32 %v12707_v57, %v16647_v42  ;;  %v10305_v63 = vpop.f32.mrb[11].mxu1 }
 0x639   : > { %v10476_v48 = vmax.f32 %v10444_v46, 0.0  ;;  %v10445_v52 = vadd.f32 %v16647_v42, %v10305_v63 }
 0x63a   : > { %10510 = vst [vmem:[%s16654_s22 + $0x50] sm:$0xff] %v10478_v21  ;;  %v10479_v10 = vmax.f32 %v10447_v8, 0.0 }
 0x63b   : > { %10508 = vst [vmem:[%s16654_s22 + $0x40] sm:$0xff] %v10476_v48  ;;  %v10477_v26 = vmax.f32 %v10445_v52, 0.0 }
 0x63c   : > { %10511 = vst [vmem:[%s16654_s22 + $0x58] sm:$0xff] %v10479_v10 }
 0x63d   : > { %10509 = vst [vmem:[%s16654_s22 + $0x48] sm:$0xff] %v10477_v26  ;;  %v12710_v38 = vpop.f32.mrb[12].mxu1 }
 0x63e   : > { %v10450_v43 = vadd.f32 %v12710_v38, %v16647_v42  ;;  %v10318_v4 = vpop.f32.mrb[13].mxu1 }
 0x63f   : > { %v10448_v29 = vadd.f32 %v16647_v42, %v10318_v4  ;;  %v12711_v16 = vpop.f32.mrb[14].mxu1 }
 0x640   : > { %v10482_v55 = vmax.f32 %v10450_v43, 0.0  ;;  %v10451_v19 = vadd.f32 %v12711_v16, %v16647_v42  ;;  %v10321_v1 = vpop.f32.mrb[15].mxu1 }
 0x641   : > { %v10480_v25 = vmax.f32 %v10448_v29, 0.0  ;;  %v10449_v28 = vadd.f32 %v16647_v42, %v10321_v1 }
 0x642   : > { %10514 = vst [vmem:[%s16654_s22 + $0x70] sm:$0xff] %v10482_v55  ;;  %v10483_v17 = vmax.f32 %v10451_v19, 0.0 }
 0x643   : > { %10512 = vst [vmem:[%s16654_s22 + $0x60] sm:$0xff] %v10480_v25  ;;  %v10481_v47 = vmax.f32 %v10449_v28, 0.0 }
 0x644   : > { %10515 = vst [vmem:[%s16654_s22 + $0x78] sm:$0xff] %v10483_v17 }
 0x645   : > { %10513 = vst [vmem:[%s16654_s22 + $0x68] sm:$0xff] %v10481_v47  ;;  %v12714_v61 = vpop.f32.mrb[16].mxu1 }
 0x646   : > { %v10454_v40 = vadd.f32 %v12714_v61, %v16647_v42  ;;  %v10334_v54 = vpop.f32.mrb[17].mxu1 }
 0x647   : > { %v10452_v22 = vadd.f32 %v16647_v42, %v10334_v54  ;;  %v12715_v35 = vpop.f32.mrb[18].mxu1 }
 0x648   : > { %v10486_v45 = vmax.f32 %v10454_v40, 0.0  ;;  %v10455_v11 = vadd.f32 %v12715_v35, %v16647_v42  ;;  %v10337_v24 = vpop.f32.mrb[19].mxu1 }
 0x649   : > { %v10484_v7 = vmax.f32 %v10452_v22, 0.0  ;;  %v10453_v13 = vadd.f32 %v16647_v42, %v10337_v24 }
 0x64a   : > { %10518 = vst [vmem:[%s16654_s22 + $0x90] sm:$0xff] %v10486_v45  ;;  %v10487_v36 = vmax.f32 %v10455_v11, 0.0 }
 0x64b   : > { %10516 = vst [vmem:[%s16654_s22 + $0x80] sm:$0xff] %v10484_v7  ;;  %v10485_v39 = vmax.f32 %v10453_v13, 0.0 }
 0x64c   : > { %10519 = vst [vmem:[%s16654_s22 + $0x98] sm:$0xff] %v10487_v36 }
 0x64d   : > { %10517 = vst [vmem:[%s16654_s22 + $0x88] sm:$0xff] %v10485_v39  ;;  %v12718_v2 = vpop.f32.mrb[20].mxu1 }
 0x64e   : > { %v10458_v34 = vadd.f32 %v12718_v2, %v16647_v42  ;;  %v10350_v59 = vpop.f32.mrb[21].mxu1 }
 0x64f   : > { %v10456_v41 = vadd.f32 %v16647_v42, %v10350_v59  ;;  %v12719_v50 = vpop.f32.mrb[22].mxu1 }
 0x650   : > { %v10490_v37 = vmax.f32 %v10458_v34, 0.0  ;;  %v10459_v49 = vadd.f32 %v12719_v50, %v16647_v42  ;;  %v10353_v12 = vpop.f32.mrb[23].mxu1 }
 0x651   : > { %v10488_v9 = vmax.f32 %v10456_v41, 0.0  ;;  %v10457_v18 = vadd.f32 %v16647_v42, %v10353_v12 }
 0x652   : > { %10522 = vst [vmem:[%s16654_s22 + $0xb0] sm:$0xff] %v10490_v37  ;;  %v10491_v33 = vmax.f32 %v10459_v49, 0.0 }
 0x653   : > { %10520 = vst [vmem:[%s16654_s22 + $0xa0] sm:$0xff] %v10488_v9  ;;  %v10489_v58 = vmax.f32 %v10457_v18, 0.0 }
 0x654   : > { %10523 = vst [vmem:[%s16654_s22 + $0xb8] sm:$0xff] %v10491_v33 }
 0x655   : > { %10521 = vst [vmem:[%s16654_s22 + $0xa8] sm:$0xff] %v10489_v58  ;;  %v12722_v60 = vpop.f32.mrb[24].mxu1 }
 0x656   : > { %v10462_v6 = vadd.f32 %v12722_v60, %v16647_v42  ;;  %v10366_v20 = vpop.f32.mrb[25].mxu1 }
 0x657   : > { %v10460_v5 = vadd.f32 %v16647_v42, %v10366_v20  ;;  %v12723_v56 = vpop.f32.mrb[26].mxu1 }
 0x658   : > { %v10494_v31 = vmax.f32 %v10462_v6, 0.0  ;;  %v10463_v3 = vadd.f32 %v12723_v56, %v16647_v42  ;;  %v10369_v23 = vpop.f32.mrb[27].mxu1 }
 0x659   : > { %v10492_v62 = vmax.f32 %v10460_v5, 0.0  ;;  %v10461_v30 = vadd.f32 %v16647_v42, %v10369_v23 }
 0x65a   : > { %10526 = vst [vmem:[%s16654_s22 + $0xd0] sm:$0xff] %v10494_v31  ;;  %v10495_v44 = vmax.f32 %v10463_v3, 0.0 }
 0x65b   : > { %10524 = vst [vmem:[%s16654_s22 + $0xc0] sm:$0xff] %v10492_v62  ;;  %v10493_v32 = vmax.f32 %v10461_v30, 0.0 }
 0x65c   : > { %10527 = vst [vmem:[%s16654_s22 + $0xd8] sm:$0xff] %v10495_v44 }
 0x65d   : > { %10525 = vst [vmem:[%s16654_s22 + $0xc8] sm:$0xff] %v10493_v32  ;;  %v12726_v14 = vpop.f32.mrb[28].mxu1 }
 0x65e   : > { %v10466_v0 = vadd.f32 %v12726_v14, %v16647_v42  ;;  %v10382_v53 = vpop.f32.mrb[29].mxu1 }
 0x65f   : > { %v10464_v15 = vadd.f32 %v16647_v42, %v10382_v53  ;;  %v12727_v27 = vpop.f32.mrb[30].mxu1 }
 0x660   : > { %v10498_v51 = vmax.f32 %v10466_v0, 0.0  ;;  %v10467_v46 = vadd.f32 %v12727_v27, %v16647_v42  ;;  %v10385_v57 = vpop.f32.mrb[31].mxu1 }
 0x661   : > { %v10496_v21 = vmax.f32 %v10464_v15, 0.0  ;;  %v10465_v8 = vadd.f32 %v16647_v42, %v10385_v57 }
 0x662   : > { %10530 = vst [vmem:[%s16654_s22 + $0xf0] sm:$0xff] %v10498_v51  ;;  %v10499_v63 = vmax.f32 %v10467_v46, 0.0 }
 0x663   : > { %10528 = vst [vmem:[%s16654_s22 + $0xe0] sm:$0xff] %v10496_v21  ;;  %v10497_v48 = vmax.f32 %v10465_v8, 0.0 }
 0x664   : > { %10531 = vst [vmem:[%s16654_s22 + $0xf8] sm:$0xff] %v10499_v63 }
 0x665   : > { %10529 = vst [vmem:[%s16654_s22 + $0xe8] sm:$0xff] %v10497_v48 }
 0x666 PF: > { %s15_s18 = sadd.s32 1, %s13555_s18  }
 0x667   : > { %p12_p4 = scmp.ge.s32.totalorder %s15_s18, 4  }
 0x669   :  { %14 = sbr.rel (!%p12_p4) target bundleno = 1 (0x1), region = 89 }

</bundles_post_ra>
